<compile_context>
chip_gen: v7x
topology: tpu7x:2x2x1
jax: 0.10.0
libtpu: 0.0.40
codegen_flags: <defaults>
</compile_context>

<pallas_src>
import functools

import jax
import jax.numpy as jnp
from jax import lax
from jax.experimental import pallas as pl
from jax.experimental.pallas import tpu as pltpu

# Model hyper-params (match the PyTorch __init__ defaults).
BOARD_VOCAB = 13
BOARD_EMB = 16
BOARD_SQUARES = 64
INPUT_DIM = BOARD_SQUARES * BOARD_EMB  # 1024
FEATURE = 620
OUT_DIM = 128
LN_EPS = 1e-5

MAX_BATCH_TILE = 128  # MXU-shaped batch tile for large batches


def _gelu_exact(x):
    # nn.GELU() default: exact erf formulation (kept to match PyTorch numerics;
    # the tanh approximation would route to the EUP but changes results).
    return 0.5 * x * (1.0 + lax.erf(x * jnp.float32(0.7071067811865475)))


def chess_mlp_kernel(x_ref,
                     w1_ref, b1_ref,
                     w2_ref, b2_ref,
                     w3_ref, b3_ref,
                     w4_ref, b4_ref,
                     w5_ref, b5_ref,
                     gamma_ref, beta_ref,
                     out_ref):
    gamma = gamma_ref[...]
    beta = beta_ref[...]

    def layer_norm(v):
        # Fused affine: one scale + one shift per element.
        mu = jnp.mean(v, axis=-1, keepdims=True)
        var = jnp.mean(jnp.square(v - mu), axis=-1, keepdims=True)
        s = lax.rsqrt(var + LN_EPS) * gamma
        return v * s + (beta - mu * s)

    def lin(v, w_ref, b_ref):
        return jnp.dot(v, w_ref[...],
                       preferred_element_type=jnp.float32) + b_ref[...]

    x = x_ref[...]
    h = layer_norm(_gelu_exact(lin(x, w1_ref, b1_ref)))
    h = layer_norm(_gelu_exact(lin(h, w2_ref, b2_ref))) + h
    h = layer_norm(_gelu_exact(lin(h, w3_ref, b3_ref))) + h
    h = layer_norm(_gelu_exact(lin(h, w4_ref, b4_ref))) + h
    out_ref[...] = lin(h, w5_ref, b5_ref).astype(out_ref.dtype)


def chess_from_model_pallas(board_in, params):
    """ChessFromModel.forward.

    board_in : (N, 64) int32 in [0, 13)
    returns  : (2, 64) float32   (reference module hardcodes reshape(2, 64),
                                  i.e. N == 1)
    """
    n = board_in.shape[0]

    # --- glue: embedding lookup + flatten (tiny gather, no Pallas needed) ---
    x = params["em_board"][board_in].reshape(n, INPUT_DIM).astype(jnp.float32)

    # Batch tile: MXU-shaped (128) for big batches, smallest 8-multiple for
    # tiny ones so the demo N=1 does not pay for 128 padded rows.
    tile = min(MAX_BATCH_TILE, ((n + 7) // 8) * 8)
    n_pad = ((n + tile - 1) // tile) * tile
    if n_pad != n:
        x = jnp.pad(x, ((0, n_pad - n), (0, 0)))

    # 2-D views of 1-D params (TPU wants >=2-D blocks).
    b1 = params["b1"][None, :]
    b2 = params["b2"][None, :]
    b3 = params["b3"][None, :]
    b4 = params["b4"][None, :]
    b5 = params["b5"][None, :]
    gamma = params["ln_gamma"][None, :]
    beta = params["ln_beta"][None, :]

    def whole(arr):
        # Constant index_map across the batch grid -> fetched once, kept
        # resident in VMEM for every grid step.
        return pl.BlockSpec(arr.shape, lambda i: (0,) * arr.ndim)

    grid = (n_pad // tile,)
    out = pl.pallas_call(
        chess_mlp_kernel,
        out_shape=jax.ShapeDtypeStruct((n_pad, OUT_DIM), jnp.float32),
        grid_spec=pltpu.PrefetchScalarGridSpec(
            num_scalar_prefetch=0,
            grid=grid,
            in_specs=[
                pl.BlockSpec((tile, INPUT_DIM), lambda i: (i, 0)),
                whole(params["w1"]), whole(b1),
                whole(params["w2"]), whole(b2),
                whole(params["w3"]), whole(b3),
                whole(params["w4"]), whole(b4),
                whole(params["w5"]), whole(b5),
                whole(gamma), whole(beta),
            ],
            out_specs=pl.BlockSpec((tile, OUT_DIM), lambda i: (i, 0)),
        ),
        compiler_params=pltpu.CompilerParams(
            dimension_semantics=("parallel",),
            # Full f32 weight set is ~7.5 MiB; even double-buffered plus the
            # activation tiles the footprint stays well under 32 MiB, which
            # also fits v7x's 64 MiB physical VMEM.
            vmem_limit_bytes=32 << 20,
        ),
    )(x,
      params["w1"], b1, params["w2"], b2, params["w3"], b3,
      params["w4"], b4, params["w5"], b5, gamma, beta)

    out = out[:n]
    # Reference module hardcodes this reshape (valid for N == 1).
    return out.reshape(2, 64)


def chess_from_model_reference(board_in, params):
    """Pure-JAX reference for a tolerance check."""
    n = board_in.shape[0]
    x = params["em_board"][board_in].reshape(n, INPUT_DIM).astype(jnp.float32)

    def ln(v):
        mu = jnp.mean(v, axis=-1, keepdims=True)
        var = jnp.mean(jnp.square(v - mu), axis=-1, keepdims=True)
        return (v - mu) * lax.rsqrt(var + LN_EPS) * params["ln_gamma"] + params["ln_beta"]

    def gelu(v):
        return 0.5 * v * (1.0 + lax.erf(v / jnp.sqrt(2.0).astype(v.dtype)))

    h = ln(gelu(x @ params["w1"] + params["b1"]))
    h = ln(gelu(h @ params["w2"] + params["b2"])) + h
    h = ln(gelu(h @ params["w3"] + params["b3"])) + h
    h = ln(gelu(h @ params["w4"] + params["b4"])) + h
    return (h @ params["w5"] + params["b5"]).reshape(2, 64)


def init_params(key):
    ks = jax.random.split(key, 12)
    scale = 0.02

    def w(k, shape):
        return (scale * jax.random.normal(k, shape)).astype(jnp.float32)

    return {
        "em_board": w(ks[0], (BOARD_VOCAB, BOARD_EMB)),
        # weights stored as (in, out) so the kernel computes x @ W + b
        # (equivalent to PyTorch's x @ weight.T + bias).
        "w1": w(ks[1], (INPUT_DIM, FEATURE)), "b1": w(ks[2], (FEATURE,)),
        "w2": w(ks[3], (FEATURE, FEATURE)),   "b2": w(ks[4], (FEATURE,)),
        "w3": w(ks[5], (FEATURE, FEATURE)),   "b3": w(ks[6], (FEATURE,)),
        "w4": w(ks[7], (FEATURE, FEATURE)),   "b4": w(ks[8], (FEATURE,)),
        "w5": w(ks[9], (FEATURE, OUT_DIM)),   "b5": w(ks[10], (OUT_DIM,)),
        "ln_gamma": jnp.ones((FEATURE,), jnp.float32),
        "ln_beta": jnp.zeros((FEATURE,), jnp.float32),
    }


if __name__ == "__main__":
    key = jax.random.PRNGKey(0)
    k_params, k_board = jax.random.split(key)

    params = init_params(k_params)

    # board_in: one board of 64 squares (one of 13 piece codes each).
    # The reference forward reshapes the output to (2, 64), i.e. batch = 1.
    board_in = jax.random.randint(k_board, (1, BOARD_SQUARES), 0, BOARD_VOCAB,
                                  dtype=jnp.int32)

    fwd = jax.jit(functools.partial(chess_from_model_pallas, params=params))
    out = fwd(board_in)
    jax.block_until_ready(out)

    ref = chess_from_model_reference(board_in, params)
    assert out.shape == (2, 64) and out.dtype == jnp.float32
    assert bool(jnp.allclose(out, ref, atol=1e-3, rtol=1e-3))
    print("KERNEL_OK")
</pallas_src>

<mosaic_0001>
module attributes {stable_mosaic.version = 11 : i64} {
  func.func @chess_mlp_kernel(%arg0: i32, %arg1: memref<8x1024xf32, #tpu.memory_space<vmem>>, %arg2: memref<1024x620xf32, #tpu.memory_space<vmem>>, %arg3: memref<1x620xf32, #tpu.memory_space<vmem>>, %arg4: memref<620x620xf32, #tpu.memory_space<vmem>>, %arg5: memref<1x620xf32, #tpu.memory_space<vmem>>, %arg6: memref<620x620xf32, #tpu.memory_space<vmem>>, %arg7: memref<1x620xf32, #tpu.memory_space<vmem>>, %arg8: memref<620x620xf32, #tpu.memory_space<vmem>>, %arg9: memref<1x620xf32, #tpu.memory_space<vmem>>, %arg10: memref<620x128xf32, #tpu.memory_space<vmem>>, %arg11: memref<1x128xf32, #tpu.memory_space<vmem>>, %arg12: memref<1x620xf32, #tpu.memory_space<vmem>>, %arg13: memref<1x620xf32, #tpu.memory_space<vmem>>, %arg14: memref<8x128xf32, #tpu.memory_space<vmem>>) attributes {dimension_semantics = [#tpu.dimension_semantics<parallel>], iteration_bounds = array<i64: 1>, scalar_prefetch = 0 : i64, scratch_operands = 0 : i64, tpu.core_type = #tpu.core_type<tc>, window_params = [{transform_indices = @transform_0, window_bounds = array<i64: 8, 1024>}, {pipeline_mode = #tpu.pipeline_mode<synchronous>, transform_indices = @transform_1, window_bounds = array<i64: 1024, 620>}, {pipeline_mode = #tpu.pipeline_mode<synchronous>, transform_indices = @transform_2, window_bounds = array<i64: 1, 620>}, {pipeline_mode = #tpu.pipeline_mode<synchronous>, transform_indices = @transform_3, window_bounds = array<i64: 620, 620>}, {pipeline_mode = #tpu.pipeline_mode<synchronous>, transform_indices = @transform_4, window_bounds = array<i64: 1, 620>}, {pipeline_mode = #tpu.pipeline_mode<synchronous>, transform_indices = @transform_5, window_bounds = array<i64: 620, 620>}, {pipeline_mode = #tpu.pipeline_mode<synchronous>, transform_indices = @transform_6, window_bounds = array<i64: 1, 620>}, {pipeline_mode = #tpu.pipeline_mode<synchronous>, transform_indices = @transform_7, window_bounds = array<i64: 620, 620>}, {pipeline_mode = #tpu.pipeline_mode<synchronous>, transform_indices = @transform_8, window_bounds = array<i64: 1, 620>}, {pipeline_mode = #tpu.pipeline_mode<synchronous>, transform_indices = @transform_9, window_bounds = array<i64: 620, 128>}, {pipeline_mode = #tpu.pipeline_mode<synchronous>, transform_indices = @transform_10, window_bounds = array<i64: 1, 128>}, {pipeline_mode = #tpu.pipeline_mode<synchronous>, transform_indices = @transform_11, window_bounds = array<i64: 1, 620>}, {pipeline_mode = #tpu.pipeline_mode<synchronous>, transform_indices = @transform_12, window_bounds = array<i64: 1, 620>}, {transform_indices = @transform_13, window_bounds = array<i64: 8, 128>}]} {
    %c0 = arith.constant 0 : index
    %c0_0 = arith.constant 0 : index
    %0 = vector.load %arg12[%c0, %c0_0] : memref<1x620xf32, #tpu.memory_space<vmem>>, vector<1x620xf32>
    %c0_1 = arith.constant 0 : index
    %c0_2 = arith.constant 0 : index
    %1 = vector.load %arg13[%c0_1, %c0_2] : memref<1x620xf32, #tpu.memory_space<vmem>>, vector<1x620xf32>
    %c0_3 = arith.constant 0 : index
    %c0_4 = arith.constant 0 : index
    %2 = vector.load %arg1[%c0_3, %c0_4] : memref<8x1024xf32, #tpu.memory_space<vmem>>, vector<8x1024xf32>
    %c0_5 = arith.constant 0 : index
    %c0_6 = arith.constant 0 : index
    %3 = vector.load %arg2[%c0_5, %c0_6] : memref<1024x620xf32, #tpu.memory_space<vmem>>, vector<1024x620xf32>
    %cst = arith.constant dense<0.000000e+00> : vector<8x620xf32>
    %4 = tpu.matmul %2, %3, %cst {dimension_numbers = #tpu.dot_dimension_numbers<[1], [0], [0], [1], [0, 0, 1, 1], [], []>} : vector<8x1024xf32>, vector<1024x620xf32>, vector<8x620xf32> -> vector<8x620xf32>
    %c0_7 = arith.constant 0 : index
    %c0_8 = arith.constant 0 : index
    %5 = vector.load %arg3[%c0_7, %c0_8] : memref<1x620xf32, #tpu.memory_space<vmem>>, vector<1x620xf32>
    %6 = vector.broadcast %5 : vector<1x620xf32> to vector<8x620xf32>
    %7 = arith.addf %4, %6 : vector<8x620xf32>
    %cst_9 = arith.constant 5.000000e-01 : f32
    %8 = vector.broadcast %cst_9 : f32 to vector<8x620xf32>
    %9 = arith.mulf %8, %7 : vector<8x620xf32>
    %cst_10 = arith.constant 0.707106769 : f32
    %10 = vector.broadcast %cst_10 : f32 to vector<8x620xf32>
    %11 = arith.mulf %7, %10 : vector<8x620xf32>
    %12 = math.erf %11 : vector<8x620xf32>
    %cst_11 = arith.constant 1.000000e+00 : f32
    %13 = vector.broadcast %cst_11 : f32 to vector<8x620xf32>
    %14 = arith.addf %13, %12 : vector<8x620xf32>
    %15 = arith.mulf %9, %14 : vector<8x620xf32>
    %cst_12 = arith.constant dense<0.000000e+00> : vector<8xf32>
    %16 = vector.multi_reduction <add>, %15, %cst_12 [1] : vector<8x620xf32> to vector<8xf32>
    %17 = vector.shape_cast %16 : vector<8xf32> to vector<8x1xf32>
    %cst_13 = arith.constant 6.200000e+02 : f32
    %18 = vector.broadcast %cst_13 : f32 to vector<8x1xf32>
    %19 = arith.divf %17, %18 : vector<8x1xf32>
    %20 = vector.broadcast %19 : vector<8x1xf32> to vector<8x620xf32>
    %21 = arith.subf %15, %20 : vector<8x620xf32>
    %22 = arith.mulf %21, %21 : vector<8x620xf32>
    %cst_14 = arith.constant dense<0.000000e+00> : vector<8xf32>
    %23 = vector.multi_reduction <add>, %22, %cst_14 [1] : vector<8x620xf32> to vector<8xf32>
    %24 = vector.shape_cast %23 : vector<8xf32> to vector<8x1xf32>
    %cst_15 = arith.constant 6.200000e+02 : f32
    %25 = vector.broadcast %cst_15 : f32 to vector<8x1xf32>
    %26 = arith.divf %24, %25 : vector<8x1xf32>
    %cst_16 = arith.constant 9.99999974E-6 : f32
    %27 = vector.broadcast %cst_16 : f32 to vector<8x1xf32>
    %28 = arith.addf %26, %27 : vector<8x1xf32>
    %29 = math.rsqrt %28 : vector<8x1xf32>
    %30 = vector.broadcast %29 : vector<8x1xf32> to vector<8x620xf32>
    %31 = vector.broadcast %0 : vector<1x620xf32> to vector<8x620xf32>
    %32 = arith.mulf %30, %31 : vector<8x620xf32>
    %33 = arith.mulf %15, %32 : vector<8x620xf32>
    %34 = vector.broadcast %19 : vector<8x1xf32> to vector<8x620xf32>
    %35 = arith.mulf %34, %32 : vector<8x620xf32>
    %36 = vector.broadcast %1 : vector<1x620xf32> to vector<8x620xf32>
    %37 = arith.subf %36, %35 : vector<8x620xf32>
    %38 = arith.addf %33, %37 : vector<8x620xf32>
    %c0_17 = arith.constant 0 : index
    %c0_18 = arith.constant 0 : index
    %39 = vector.load %arg4[%c0_17, %c0_18] : memref<620x620xf32, #tpu.memory_space<vmem>>, vector<620x620xf32>
    %cst_19 = arith.constant dense<0.000000e+00> : vector<8x620xf32>
    %40 = tpu.matmul %38, %39, %cst_19 {dimension_numbers = #tpu.dot_dimension_numbers<[1], [0], [0], [1], [0, 0, 1, 1], [], []>} : vector<8x620xf32>, vector<620x620xf32>, vector<8x620xf32> -> vector<8x620xf32>
    %c0_20 = arith.constant 0 : index
    %c0_21 = arith.constant 0 : index
    %41 = vector.load %arg5[%c0_20, %c0_21] : memref<1x620xf32, #tpu.memory_space<vmem>>, vector<1x620xf32>
    %42 = vector.broadcast %41 : vector<1x620xf32> to vector<8x620xf32>
    %43 = arith.addf %40, %42 : vector<8x620xf32>
    %cst_22 = arith.constant 5.000000e-01 : f32
    %44 = vector.broadcast %cst_22 : f32 to vector<8x620xf32>
    %45 = arith.mulf %44, %43 : vector<8x620xf32>
    %cst_23 = arith.constant 0.707106769 : f32
    %46 = vector.broadcast %cst_23 : f32 to vector<8x620xf32>
    %47 = arith.mulf %43, %46 : vector<8x620xf32>
    %48 = math.erf %47 : vector<8x620xf32>
    %cst_24 = arith.constant 1.000000e+00 : f32
    %49 = vector.broadcast %cst_24 : f32 to vector<8x620xf32>
    %50 = arith.addf %49, %48 : vector<8x620xf32>
    %51 = arith.mulf %45, %50 : vector<8x620xf32>
    %cst_25 = arith.constant dense<0.000000e+00> : vector<8xf32>
    %52 = vector.multi_reduction <add>, %51, %cst_25 [1] : vector<8x620xf32> to vector<8xf32>
    %53 = vector.shape_cast %52 : vector<8xf32> to vector<8x1xf32>
    %cst_26 = arith.constant 6.200000e+02 : f32
    %54 = vector.broadcast %cst_26 : f32 to vector<8x1xf32>
    %55 = arith.divf %53, %54 : vector<8x1xf32>
    %56 = vector.broadcast %55 : vector<8x1xf32> to vector<8x620xf32>
    %57 = arith.subf %51, %56 : vector<8x620xf32>
    %58 = arith.mulf %57, %57 : vector<8x620xf32>
    %cst_27 = arith.constant dense<0.000000e+00> : vector<8xf32>
    %59 = vector.multi_reduction <add>, %58, %cst_27 [1] : vector<8x620xf32> to vector<8xf32>
    %60 = vector.shape_cast %59 : vector<8xf32> to vector<8x1xf32>
    %cst_28 = arith.constant 6.200000e+02 : f32
    %61 = vector.broadcast %cst_28 : f32 to vector<8x1xf32>
    %62 = arith.divf %60, %61 : vector<8x1xf32>
    %cst_29 = arith.constant 9.99999974E-6 : f32
    %63 = vector.broadcast %cst_29 : f32 to vector<8x1xf32>
    %64 = arith.addf %62, %63 : vector<8x1xf32>
    %65 = math.rsqrt %64 : vector<8x1xf32>
    %66 = vector.broadcast %65 : vector<8x1xf32> to vector<8x620xf32>
    %67 = vector.broadcast %0 : vector<1x620xf32> to vector<8x620xf32>
    %68 = arith.mulf %66, %67 : vector<8x620xf32>
    %69 = arith.mulf %51, %68 : vector<8x620xf32>
    %70 = vector.broadcast %55 : vector<8x1xf32> to vector<8x620xf32>
    %71 = arith.mulf %70, %68 : vector<8x620xf32>
    %72 = vector.broadcast %1 : vector<1x620xf32> to vector<8x620xf32>
    %73 = arith.subf %72, %71 : vector<8x620xf32>
    %74 = arith.addf %69, %73 : vector<8x620xf32>
    %75 = arith.addf %74, %38 : vector<8x620xf32>
    %c0_30 = arith.constant 0 : index
    %c0_31 = arith.constant 0 : index
    %76 = vector.load %arg6[%c0_30, %c0_31] : memref<620x620xf32, #tpu.memory_space<vmem>>, vector<620x620xf32>
    %cst_32 = arith.constant dense<0.000000e+00> : vector<8x620xf32>
    %77 = tpu.matmul %75, %76, %cst_32 {dimension_numbers = #tpu.dot_dimension_numbers<[1], [0], [0], [1], [0, 0, 1, 1], [], []>} : vector<8x620xf32>, vector<620x620xf32>, vector<8x620xf32> -> vector<8x620xf32>
    %c0_33 = arith.constant 0 : index
    %c0_34 = arith.constant 0 : index
    %78 = vector.load %arg7[%c0_33, %c0_34] : memref<1x620xf32, #tpu.memory_space<vmem>>, vector<1x620xf32>
    %79 = vector.broadcast %78 : vector<1x620xf32> to vector<8x620xf32>
    %80 = arith.addf %77, %79 : vector<8x620xf32>
    %cst_35 = arith.constant 5.000000e-01 : f32
    %81 = vector.broadcast %cst_35 : f32 to vector<8x620xf32>
    %82 = arith.mulf %81, %80 : vector<8x620xf32>
    %cst_36 = arith.constant 0.707106769 : f32
    %83 = vector.broadcast %cst_36 : f32 to vector<8x620xf32>
    %84 = arith.mulf %80, %83 : vector<8x620xf32>
    %85 = math.erf %84 : vector<8x620xf32>
    %cst_37 = arith.constant 1.000000e+00 : f32
    %86 = vector.broadcast %cst_37 : f32 to vector<8x620xf32>
    %87 = arith.addf %86, %85 : vector<8x620xf32>
    %88 = arith.mulf %82, %87 : vector<8x620xf32>
    %cst_38 = arith.constant dense<0.000000e+00> : vector<8xf32>
    %89 = vector.multi_reduction <add>, %88, %cst_38 [1] : vector<8x620xf32> to vector<8xf32>
    %90 = vector.shape_cast %89 : vector<8xf32> to vector<8x1xf32>
    %cst_39 = arith.constant 6.200000e+02 : f32
    %91 = vector.broadcast %cst_39 : f32 to vector<8x1xf32>
    %92 = arith.divf %90, %91 : vector<8x1xf32>
    %93 = vector.broadcast %92 : vector<8x1xf32> to vector<8x620xf32>
    %94 = arith.subf %88, %93 : vector<8x620xf32>
    %95 = arith.mulf %94, %94 : vector<8x620xf32>
    %cst_40 = arith.constant dense<0.000000e+00> : vector<8xf32>
    %96 = vector.multi_reduction <add>, %95, %cst_40 [1] : vector<8x620xf32> to vector<8xf32>
    %97 = vector.shape_cast %96 : vector<8xf32> to vector<8x1xf32>
    %cst_41 = arith.constant 6.200000e+02 : f32
    %98 = vector.broadcast %cst_41 : f32 to vector<8x1xf32>
    %99 = arith.divf %97, %98 : vector<8x1xf32>
    %cst_42 = arith.constant 9.99999974E-6 : f32
    %100 = vector.broadcast %cst_42 : f32 to vector<8x1xf32>
    %101 = arith.addf %99, %100 : vector<8x1xf32>
    %102 = math.rsqrt %101 : vector<8x1xf32>
    %103 = vector.broadcast %102 : vector<8x1xf32> to vector<8x620xf32>
    %104 = vector.broadcast %0 : vector<1x620xf32> to vector<8x620xf32>
    %105 = arith.mulf %103, %104 : vector<8x620xf32>
    %106 = arith.mulf %88, %105 : vector<8x620xf32>
    %107 = vector.broadcast %92 : vector<8x1xf32> to vector<8x620xf32>
    %108 = arith.mulf %107, %105 : vector<8x620xf32>
    %109 = vector.broadcast %1 : vector<1x620xf32> to vector<8x620xf32>
    %110 = arith.subf %109, %108 : vector<8x620xf32>
    %111 = arith.addf %106, %110 : vector<8x620xf32>
    %112 = arith.addf %111, %75 : vector<8x620xf32>
    %c0_43 = arith.constant 0 : index
    %c0_44 = arith.constant 0 : index
    %113 = vector.load %arg8[%c0_43, %c0_44] : memref<620x620xf32, #tpu.memory_space<vmem>>, vector<620x620xf32>
    %cst_45 = arith.constant dense<0.000000e+00> : vector<8x620xf32>
    %114 = tpu.matmul %112, %113, %cst_45 {dimension_numbers = #tpu.dot_dimension_numbers<[1], [0], [0], [1], [0, 0, 1, 1], [], []>} : vector<8x620xf32>, vector<620x620xf32>, vector<8x620xf32> -> vector<8x620xf32>
    %c0_46 = arith.constant 0 : index
    %c0_47 = arith.constant 0 : index
    %115 = vector.load %arg9[%c0_46, %c0_47] : memref<1x620xf32, #tpu.memory_space<vmem>>, vector<1x620xf32>
    %116 = vector.broadcast %115 : vector<1x620xf32> to vector<8x620xf32>
    %117 = arith.addf %114, %116 : vector<8x620xf32>
    %cst_48 = arith.constant 5.000000e-01 : f32
    %118 = vector.broadcast %cst_48 : f32 to vector<8x620xf32>
    %119 = arith.mulf %118, %117 : vector<8x620xf32>
    %cst_49 = arith.constant 0.707106769 : f32
    %120 = vector.broadcast %cst_49 : f32 to vector<8x620xf32>
    %121 = arith.mulf %117, %120 : vector<8x620xf32>
    %122 = math.erf %121 : vector<8x620xf32>
    %cst_50 = arith.constant 1.000000e+00 : f32
    %123 = vector.broadcast %cst_50 : f32 to vector<8x620xf32>
    %124 = arith.addf %123, %122 : vector<8x620xf32>
    %125 = arith.mulf %119, %124 : vector<8x620xf32>
    %cst_51 = arith.constant dense<0.000000e+00> : vector<8xf32>
    %126 = vector.multi_reduction <add>, %125, %cst_51 [1] : vector<8x620xf32> to vector<8xf32>
    %127 = vector.shape_cast %126 : vector<8xf32> to vector<8x1xf32>
    %cst_52 = arith.constant 6.200000e+02 : f32
    %128 = vector.broadcast %cst_52 : f32 to vector<8x1xf32>
    %129 = arith.divf %127, %128 : vector<8x1xf32>
    %130 = vector.broadcast %129 : vector<8x1xf32> to vector<8x620xf32>
    %131 = arith.subf %125, %130 : vector<8x620xf32>
    %132 = arith.mulf %131, %131 : vector<8x620xf32>
    %cst_53 = arith.constant dense<0.000000e+00> : vector<8xf32>
    %133 = vector.multi_reduction <add>, %132, %cst_53 [1] : vector<8x620xf32> to vector<8xf32>
    %134 = vector.shape_cast %133 : vector<8xf32> to vector<8x1xf32>
    %cst_54 = arith.constant 6.200000e+02 : f32
    %135 = vector.broadcast %cst_54 : f32 to vector<8x1xf32>
    %136 = arith.divf %134, %135 : vector<8x1xf32>
    %cst_55 = arith.constant 9.99999974E-6 : f32
    %137 = vector.broadcast %cst_55 : f32 to vector<8x1xf32>
    %138 = arith.addf %136, %137 : vector<8x1xf32>
    %139 = math.rsqrt %138 : vector<8x1xf32>
    %140 = vector.broadcast %139 : vector<8x1xf32> to vector<8x620xf32>
    %141 = vector.broadcast %0 : vector<1x620xf32> to vector<8x620xf32>
    %142 = arith.mulf %140, %141 : vector<8x620xf32>
    %143 = arith.mulf %125, %142 : vector<8x620xf32>
    %144 = vector.broadcast %129 : vector<8x1xf32> to vector<8x620xf32>
    %145 = arith.mulf %144, %142 : vector<8x620xf32>
    %146 = vector.broadcast %1 : vector<1x620xf32> to vector<8x620xf32>
    %147 = arith.subf %146, %145 : vector<8x620xf32>
    %148 = arith.addf %143, %147 : vector<8x620xf32>
    %149 = arith.addf %148, %112 : vector<8x620xf32>
    %c0_56 = arith.constant 0 : index
    %c0_57 = arith.constant 0 : index
    %150 = vector.load %arg10[%c0_56, %c0_57] : memref<620x128xf32, #tpu.memory_space<vmem>>, vector<620x128xf32>
    %cst_58 = arith.constant dense<0.000000e+00> : vector<8x128xf32>
    %151 = tpu.matmul %149, %150, %cst_58 {dimension_numbers = #tpu.dot_dimension_numbers<[1], [0], [0], [1], [0, 0, 1, 1], [], []>} : vector<8x620xf32>, vector<620x128xf32>, vector<8x128xf32> -> vector<8x128xf32>
    %c0_59 = arith.constant 0 : index
    %c0_60 = arith.constant 0 : index
    %152 = vector.load %arg11[%c0_59, %c0_60] : memref<1x128xf32, #tpu.memory_space<vmem>>, vector<1x128xf32>
    %153 = vector.broadcast %152 : vector<1x128xf32> to vector<8x128xf32>
    %154 = arith.addf %151, %153 : vector<8x128xf32>
    %c0_61 = arith.constant 0 : index
    %c0_62 = arith.constant 0 : index
    %155 = vector.load %arg14[%c0_61, %c0_62] : memref<8x128xf32, #tpu.memory_space<vmem>>, vector<8x128xf32>
    tpu.vector_store %arg14[%c0_61, %c0_62], %154 {strides = array<i32>} : memref<8x128xf32, #tpu.memory_space<vmem>>, vector<8x128xf32>,
    return
  }
  func.func @transform_0(%arg0: i32) -> (i32, i32) {
    %c0_i32 = arith.constant 0 : i32
    %c0_i32_0 = arith.constant 0 : i32
    return %arg0, %c0_i32 : i32, i32
  }
  func.func @transform_1(%arg0: i32) -> (i32, i32) {
    %c0_i32 = arith.constant 0 : i32
    %c0_i32_0 = arith.constant 0 : i32
    %c0_i32_1 = arith.constant 0 : i32
    return %c0_i32, %c0_i32_0 : i32, i32
  }
  func.func @transform_2(%arg0: i32) -> (i32, i32) {
    %c0_i32 = arith.constant 0 : i32
    %c0_i32_0 = arith.constant 0 : i32
    %c0_i32_1 = arith.constant 0 : i32
    return %c0_i32, %c0_i32_0 : i32, i32
  }
  func.func @transform_3(%arg0: i32) -> (i32, i32) {
    %c0_i32 = arith.constant 0 : i32
    %c0_i32_0 = arith.constant 0 : i32
    %c0_i32_1 = arith.constant 0 : i32
    return %c0_i32, %c0_i32_0 : i32, i32
  }
  func.func @transform_4(%arg0: i32) -> (i32, i32) {
    %c0_i32 = arith.constant 0 : i32
    %c0_i32_0 = arith.constant 0 : i32
    %c0_i32_1 = arith.constant 0 : i32
    return %c0_i32, %c0_i32_0 : i32, i32
  }
  func.func @transform_5(%arg0: i32) -> (i32, i32) {
    %c0_i32 = arith.constant 0 : i32
    %c0_i32_0 = arith.constant 0 : i32
    %c0_i32_1 = arith.constant 0 : i32
    return %c0_i32, %c0_i32_0 : i32, i32
  }
  func.func @transform_6(%arg0: i32) -> (i32, i32) {
    %c0_i32 = arith.constant 0 : i32
    %c0_i32_0 = arith.constant 0 : i32
    %c0_i32_1 = arith.constant 0 : i32
    return %c0_i32, %c0_i32_0 : i32, i32
  }
  func.func @transform_7(%arg0: i32) -> (i32, i32) {
    %c0_i32 = arith.constant 0 : i32
    %c0_i32_0 = arith.constant 0 : i32
    %c0_i32_1 = arith.constant 0 : i32
    return %c0_i32, %c0_i32_0 : i32, i32
  }
  func.func @transform_8(%arg0: i32) -> (i32, i32) {
    %c0_i32 = arith.constant 0 : i32
    %c0_i32_0 = arith.constant 0 : i32
    %c0_i32_1 = arith.constant 0 : i32
    return %c0_i32, %c0_i32_0 : i32, i32
  }
  func.func @transform_9(%arg0: i32) -> (i32, i32) {
    %c0_i32 = arith.constant 0 : i32
    %c0_i32_0 = arith.constant 0 : i32
    %c0_i32_1 = arith.constant 0 : i32
    return %c0_i32, %c0_i32_0 : i32, i32
  }
  func.func @transform_10(%arg0: i32) -> (i32, i32) {
    %c0_i32 = arith.constant 0 : i32
    %c0_i32_0 = arith.constant 0 : i32
    %c0_i32_1 = arith.constant 0 : i32
    return %c0_i32, %c0_i32_0 : i32, i32
  }
  func.func @transform_11(%arg0: i32) -> (i32, i32) {
    %c0_i32 = arith.constant 0 : i32
    %c0_i32_0 = arith.constant 0 : i32
    %c0_i32_1 = arith.constant 0 : i32
    return %c0_i32, %c0_i32_0 : i32, i32
  }
  func.func @transform_12(%arg0: i32) -> (i32, i32) {
    %c0_i32 = arith.constant 0 : i32
    %c0_i32_0 = arith.constant 0 : i32
    %c0_i32_1 = arith.constant 0 : i32
    return %c0_i32, %c0_i32_0 : i32, i32
  }
  func.func @transform_13(%arg0: i32) -> (i32, i32) {
    %c0_i32 = arith.constant 0 : i32
    %c0_i32_0 = arith.constant 0 : i32
    return %arg0, %c0_i32 : i32, i32
  }
}

</mosaic_0001>

<bundles_post_ra>
// kernel: chess_from_model_pallas.1
= control target key start
LH: loop header
LB: loop body
LE: loop exit
PB: predicated region body
PF: predicated region fallthrough
CT: control target
= control target key end

     0   :  { %18 = vsyncpa [#allocation3], 0  ;;  %s9271_s0 = inlined_call_operand.vmem [shape: f32[8,1024], index: 0, kind: input, shape index: {}]   ;;  %s9272_s1 = inlined_call_operand.hbm [shape: f32[1024,620], index: 1, kind: input, shape index: {}]   ;;  %s9273_s2 = inlined_call_operand.hbm [shape: f32[1,620], index: 2, kind: input, shape index: {}]   ;;  %s9274_s3 = inlined_call_operand.hbm [shape: f32[620,620], index: 3, kind: input, shape index: {}]   ;;  %s9275_s4 = inlined_call_operand.hbm [shape: f32[1,620], index: 4, kind: input, shape index: {}]   ;;  %s9276_s5 = inlined_call_operand.hbm [shape: f32[620,620], index: 5, kind: input, shape index: {}]   ;;  %s9277_s6 = inlined_call_operand.hbm [shape: f32[1,620], index: 6, kind: input, shape index: {}]   ;;  %s9278_s7 = inlined_call_operand.hbm [shape: f32[620,620], index: 7, kind: input, shape index: {}]   ;;  %s9279_s8 = inlined_call_operand.hbm [shape: f32[1,620], index: 8, kind: input, shape index: {}]   ;;  %s9280_s9 = inlined_call_operand.hbm [shape: f32[620,128], index: 9, kind: input, shape index: {}]   ;;  %s9281_s10 = inlined_call_operand.hbm [shape: f32[1,128], index: 10, kind: input, shape index: {}]   ;;  %s9282_s11 = inlined_call_operand.vmem [shape: f32[1,620], index: 11, kind: input, shape index: {}]   ;;  %s9283_s12 = inlined_call_operand.vmem [shape: f32[1,620], index: 12, kind: input, shape index: {}]   ;;  %s9284_s13 = inlined_call_operand.vmem [shape: f32[8,128], index: 13, kind: output, shape index: {}]  }
   0x1   :  { %19 = vsyncpa [#allocation5], 0 }
   0x2   :  { %20 = vsyncpa [#allocation8], 0 }
   0x3   :  { %21 = vsyncpa [#allocation11], 0 }
   0x4   :  { %22 = vsyncpa [#allocation14], 0 }
   0x5   :  { %23 = vsyncpa [#allocation17], 0  ;;  %s8521_s25 = smov [#allocation4]   ;;  %s8522_s27 = smov [#allocation7]  }
   0x6   :  { %s44_s26 = sshll.u32 %s8521_s25, 4  ;;  %s66_s28 = sshll.u32 %s8522_s27, 4  ;;  %s45_s26 = int_to_ptr.vmem [resolvable:$true] %s44_s26  ;;  %s67_s28 = int_to_ptr.vmem [resolvable:$true] %s66_s28 }
   0x7   :  { %s8289_s14 = scalar_lea.hbm %s9273_s2, 80 }
   0x8   :  { %p8290_p0 = scmp.ne.s32.totalorder %s9273_s2, %s8289_s14  ;;  %p8293_p1 = scmp.lt.u32.totalorder %s8289_s14, %s9273_s2 }
   0xa   :  { %p8295_p2 = pnand %p8293_p1, %p8290_p0 }
   0xc   :  { %8298 = shalt.err (!%p8295_p2)
}
   0xd   :  { %s8299_s19 = scalar_lea.vmem %s45_s26, 80  ;;  %s8303_s20 = scalar_lea.vmem %s45_s26, 96 }
   0xe   :  { %p8300_p3 = scmp.ne.s32.totalorder %s45_s26, %s8299_s19  ;;  %p8304_p4 = scmp.lt.s32.totalorder %s45_s26, %s45_s26 }
   0xf   :  { %p8305_p5 = scmp.lt.s32.totalorder %s8303_s20, %s8299_s19 }
  0x11   :  { %p8306_p6 = por %p8305_p5, %p8304_p4 }
  0x13   :  { %p8307_p7 = pnand %p8306_p6, %p8300_p3 }
  0x15   :  { %8310 = shalt.err (!%p8307_p7)
}
  0x16   :  { %47 = dma.hbm_to_vmem [thread:$0]  %s9273_s2, 80, %s45_s26, [#allocation5]  }
  0x17   :  { %s8311_s25 = scalar_lea.hbm %s9275_s4, 80 }
  0x18   :  { %p8312_p8 = scmp.ne.s32.totalorder %s9275_s4, %s8311_s25  ;;  %p8315_p9 = scmp.lt.u32.totalorder %s8311_s25, %s9275_s4 }
  0x1a   :  { %p8317_p10 = pnand %p8315_p9, %p8312_p8 }
  0x1c   :  { %8320 = shalt.err (!%p8317_p10)
}
  0x1d   :  { %s8321_s15 = scalar_lea.vmem %s67_s28, 80  ;;  %s8325_s16 = scalar_lea.vmem %s67_s28, 96 }
  0x1e   :  { %p8322_p11 = scmp.ne.s32.totalorder %s67_s28, %s8321_s15  ;;  %p8326_p12 = scmp.lt.s32.totalorder %s67_s28, %s67_s28 }
  0x1f   :  { %p8327_p13 = scmp.lt.s32.totalorder %s8325_s16, %s8321_s15 }
  0x21   :  { %p8328_p0 = por %p8327_p13, %p8326_p12 }
  0x23   :  { %p8329_p1 = pnand %p8328_p0, %p8322_p11 }
  0x25   :  { %8332 = shalt.err (!%p8329_p1)
}
  0x26   :  { %69 = dma.hbm_to_vmem [thread:$0]  %s9275_s4, 80, %s67_s28, [#allocation8]  }
  0x27   :  { %s8523_s17 = smov [#allocation10]   ;;  %s8524_s19 = smov [#allocation13]  }
  0x28   :  { %s88_s18 = sshll.u32 %s8523_s17, 4  ;;  %s110_s20 = sshll.u32 %s8524_s19, 4  ;;  %s89_s18 = int_to_ptr.vmem [resolvable:$true] %s88_s18  ;;  %s111_s20 = int_to_ptr.vmem [resolvable:$true] %s110_s20 }
  0x29   :  { %s8333_s23 = scalar_lea.hbm %s9277_s6, 80 }
  0x2a   :  { %p8334_p2 = scmp.ne.s32.totalorder %s9277_s6, %s8333_s23  ;;  %p8337_p3 = scmp.lt.u32.totalorder %s8333_s23, %s9277_s6 }
  0x2c   :  { %p8339_p4 = pnand %p8337_p3, %p8334_p2 }
  0x2e   :  { %8342 = shalt.err (!%p8339_p4)
}
  0x2f   :  { %s8343_s4 = scalar_lea.vmem %s89_s18, 80  ;;  %s8347_s28 = scalar_lea.vmem %s89_s18, 96 }
  0x30   :  { %p8344_p5 = scmp.ne.s32.totalorder %s89_s18, %s8343_s4  ;;  %p8348_p6 = scmp.lt.s32.totalorder %s89_s18, %s89_s18 }
  0x31   :  { %p8349_p7 = scmp.lt.s32.totalorder %s8347_s28, %s8343_s4 }
  0x33   :  { %p8350_p8 = por %p8349_p7, %p8348_p6 }
  0x35   :  { %p8351_p9 = pnand %p8350_p8, %p8344_p5 }
  0x37   :  { %8354 = shalt.err (!%p8351_p9)
}
  0x38   :  { %91 = dma.hbm_to_vmem [thread:$0]  %s9277_s6, 80, %s89_s18, [#allocation11]  }
  0x39   :  { %s8355_s2 = scalar_lea.hbm %s9279_s8, 80 }
  0x3a   :  { %p8356_p10 = scmp.ne.s32.totalorder %s9279_s8, %s8355_s2  ;;  %p8359_p11 = scmp.lt.u32.totalorder %s8355_s2, %s9279_s8 }
  0x3c   :  { %p8361_p12 = pnand %p8359_p11, %p8356_p10 }
  0x3e   :  { %8364 = shalt.err (!%p8361_p12)
}
  0x3f   :  { %s8365_s22 = scalar_lea.vmem %s111_s20, 80  ;;  %s8369_s23 = scalar_lea.vmem %s111_s20, 96 }
  0x40   :  { %p8366_p13 = scmp.ne.s32.totalorder %s111_s20, %s8365_s22  ;;  %p8370_p0 = scmp.lt.s32.totalorder %s111_s20, %s111_s20 }
  0x41   :  { %p8371_p1 = scmp.lt.s32.totalorder %s8369_s23, %s8365_s22 }
  0x43   :  { %p8372_p2 = por %p8371_p1, %p8370_p0 }
  0x45   :  { %p8373_p3 = pnand %p8372_p2, %p8366_p13 }
  0x47   :  { %8376 = shalt.err (!%p8373_p3)
}
  0x48   :  { %113 = dma.hbm_to_vmem [thread:$0]  %s9279_s8, 80, %s111_s20, [#allocation14]  }
  0x49   :  { %s8525_s24 = smov [#allocation2]   ;;  %s8377_s4 = scalar_lea.hbm %s9272_s1, 81920 }
  0x4a   :  { %s31_s25 = sshll.u32 %s8525_s24, 4  ;;  %p8378_p4 = scmp.ne.s32.totalorder %s9272_s1, %s8377_s4  ;;  %s32_s25 = int_to_ptr.vmem [resolvable:$true] %s31_s25 }
  0x4b   :  { %p8381_p5 = scmp.lt.u32.totalorder %s8377_s4, %s9272_s1 }
  0x4d   :  { %p8383_p6 = pnand %p8381_p5, %p8378_p4 }
  0x4f   :  { %8386 = shalt.err (!%p8383_p6)
}
  0x50   :  { %s8387_s16 = scalar_lea.vmem %s32_s25, 81920  ;;  %p8392_p8 = scmp.lt.s32.totalorder %s32_s25, %s32_s25 }
  0x51   :  { %p8388_p7 = scmp.ne.s32.totalorder %s32_s25, %s8387_s16  ;;  %p8393_p9 = scmp.lt.s32.totalorder %s8387_s16, %s8387_s16 }
  0x53   :  { %p8394_p10 = por %p8393_p9, %p8392_p8 }
  0x55   :  { %p8395_p11 = pnand %p8394_p10, %p8388_p7 }
  0x57   :  { %8398 = shalt.err (!%p8395_p11)
}
  0x58   :  { %s8526_s8 = smov 640   ;;  %s8527_s20 = smov 40  }
  0x59   :  { %37 = dma.hbm_to_vmem [thread:$0]  %s9272_s1, 81920, %s32_s25, [#allocation3], %s8526_s8, %s8526_s8, %s8527_s20  }
  0x5a   :  { %s8528_s17 = smov [#allocation6]   ;;  %s8529_s21 = smov [#allocation9]  }
  0x5b   :  { %s53_s19 = sshll.u32 %s8528_s17, 4  ;;  %s75_s22 = sshll.u32 %s8529_s21, 4  ;;  %s54_s19 = int_to_ptr.vmem [resolvable:$true] %s53_s19  ;;  %s76_s22 = int_to_ptr.vmem [resolvable:$true] %s75_s22 }
  0x5c   :  { %s8399_s18 = scalar_lea.hbm %s9274_s3, 49920 }
  0x5d   :  { %p8400_p12 = scmp.ne.s32.totalorder %s9274_s3, %s8399_s18  ;;  %p8403_p13 = scmp.lt.u32.totalorder %s8399_s18, %s9274_s3 }
  0x5f   :  { %p8405_p0 = pnand %p8403_p13, %p8400_p12 }
  0x61   :  { %8408 = shalt.err (!%p8405_p0)
}
  0x62   :  { %s8409_s1 = scalar_lea.vmem %s54_s19, 49920  ;;  %p8414_p2 = scmp.lt.s32.totalorder %s54_s19, %s54_s19 }
  0x63   :  { %p8410_p1 = scmp.ne.s32.totalorder %s54_s19, %s8409_s1  ;;  %p8415_p3 = scmp.lt.s32.totalorder %s8409_s1, %s8409_s1 }
  0x65   :  { %p8416_p4 = por %p8415_p3, %p8414_p2 }
  0x67   :  { %p8417_p5 = pnand %p8416_p4, %p8410_p1 }
  0x69   :  { %8420 = shalt.err (!%p8417_p5)
}
  0x6a   :  { %59 = dma.hbm_to_vmem [thread:$0]  %s9274_s3, 49920, %s54_s19, [#allocation5], %s8526_s8, %s8526_s8, %s8527_s20  }
  0x6b   :  { %s8421_s15 = scalar_lea.hbm %s9276_s5, 49920 }
  0x6c   :  { %p8422_p6 = scmp.ne.s32.totalorder %s9276_s5, %s8421_s15  ;;  %p8425_p7 = scmp.lt.u32.totalorder %s8421_s15, %s9276_s5 }
  0x6e   :  { %p8427_p8 = pnand %p8425_p7, %p8422_p6 }
  0x70   :  { %8430 = shalt.err (!%p8427_p8)
}
  0x71   :  { %s8431_s21 = scalar_lea.vmem %s76_s22, 49920  ;;  %p8436_p10 = scmp.lt.s32.totalorder %s76_s22, %s76_s22 }
  0x72   :  { %p8432_p9 = scmp.ne.s32.totalorder %s76_s22, %s8431_s21  ;;  %p8437_p11 = scmp.lt.s32.totalorder %s8431_s21, %s8431_s21 }
  0x74   :  { %p8438_p12 = por %p8437_p11, %p8436_p10 }
  0x76   :  { %p8439_p13 = pnand %p8438_p12, %p8432_p9 }
  0x78   :  { %8442 = shalt.err (!%p8439_p13)
}
  0x79   :  { %81 = dma.hbm_to_vmem [thread:$0]  %s9276_s5, 49920, %s76_s22, [#allocation8], %s8526_s8, %s8526_s8, %s8527_s20  }
  0x7a   :  { %s8530_s23 = smov [#allocation12]   ;;  %s8531_s18 = smov [#allocation15]  }
  0x7b   :  { %s97_s6 = sshll.u32 %s8530_s23, 4  ;;  %s119_s24 = sshll.u32 %s8531_s18, 4  ;;  %s98_s6 = int_to_ptr.vmem [resolvable:$true] %s97_s6  ;;  %s120_s24 = int_to_ptr.vmem [resolvable:$true] %s119_s24 }
  0x7c   :  { %s8443_s4 = scalar_lea.hbm %s9278_s7, 49920 }
  0x7d   :  { %p8444_p0 = scmp.ne.s32.totalorder %s9278_s7, %s8443_s4  ;;  %p8447_p1 = scmp.lt.u32.totalorder %s8443_s4, %s9278_s7 }
  0x7f   :  { %p8449_p2 = pnand %p8447_p1, %p8444_p0 }
  0x81   :  { %8452 = shalt.err (!%p8449_p2)
}
  0x82   :  { %s8453_s5 = scalar_lea.vmem %s98_s6, 49920  ;;  %p8458_p4 = scmp.lt.s32.totalorder %s98_s6, %s98_s6 }
  0x83   :  { %p8454_p3 = scmp.ne.s32.totalorder %s98_s6, %s8453_s5  ;;  %p8459_p5 = scmp.lt.s32.totalorder %s8453_s5, %s8453_s5 }
  0x85   :  { %p8460_p6 = por %p8459_p5, %p8458_p4 }
  0x87   :  { %p8461_p7 = pnand %p8460_p6, %p8454_p3 }
  0x89   :  { %8464 = shalt.err (!%p8461_p7)
}
  0x8a   :  { %103 = dma.hbm_to_vmem [thread:$0]  %s9278_s7, 49920, %s98_s6, [#allocation11], %s8526_s8, %s8526_s8, %s8527_s20  }
  0x8b   :  { %s8465_s2 = scalar_lea.hbm %s9280_s9, 9984 }
  0x8c   :  { %p8466_p8 = scmp.ne.s32.totalorder %s9280_s9, %s8465_s2  ;;  %p8469_p9 = scmp.lt.u32.totalorder %s8465_s2, %s9280_s9 }
  0x8e   :  { %p8471_p10 = pnand %p8469_p9, %p8466_p8 }
  0x90   :  { %8474 = shalt.err (!%p8471_p10)
}
  0x91   :  { %s8475_s19 = scalar_lea.vmem %s120_s24, 9984  ;;  %p8480_p12 = scmp.lt.s32.totalorder %s120_s24, %s120_s24 }
  0x92   :  { %p8476_p11 = scmp.ne.s32.totalorder %s120_s24, %s8475_s19  ;;  %p8481_p13 = scmp.lt.s32.totalorder %s8475_s19, %s8475_s19 }
  0x94   :  { %p8482_p0 = por %p8481_p13, %p8480_p12 }
  0x96   :  { %p8483_p1 = pnand %p8482_p0, %p8476_p11 }
  0x98   :  { %8486 = shalt.err (!%p8483_p1)
}
  0x99   :  { %s8532_s7 = smov 128   ;;  %s8533_s8 = smov 8  }
  0x9a   :  { %125 = dma.hbm_to_vmem [thread:$0]  %s9280_s9, 9984, %s120_s24, [#allocation14], %s8532_s7, %s8532_s7, %s8533_s8  }
  0x9b   :  { %s8534_s6 = smov [#allocation16]   ;;  %s8487_s4 = scalar_lea.hbm %s9281_s10, 16 }
  0x9c   :  { %s132_s18 = sshll.u32 %s8534_s6, 4  ;;  %p8488_p2 = scmp.ne.s32.totalorder %s9281_s10, %s8487_s4  ;;  %s133_s18 = int_to_ptr.vmem [resolvable:$true] %s132_s18 }
  0x9d   :  { %p8491_p3 = scmp.lt.u32.totalorder %s8487_s4, %s9281_s10 }
  0x9f   :  { %p8493_p4 = pnand %p8491_p3, %p8488_p2 }
  0xa1   :  { %8496 = shalt.err (!%p8493_p4)
}
  0xa2   :  { %s8497_s5 = scalar_lea.vmem %s133_s18, 16  ;;  %s8501_s9 = scalar_lea.vmem %s133_s18, 32 }
  0xa3   :  { %p8498_p5 = scmp.ne.s32.totalorder %s133_s18, %s8497_s5  ;;  %p8502_p6 = scmp.lt.s32.totalorder %s133_s18, %s133_s18 }
  0xa4   :  { %p8503_p7 = scmp.lt.s32.totalorder %s8501_s9, %s8497_s5 }
  0xa6   :  { %p8504_p8 = por %p8503_p7, %p8502_p6 }
  0xa8   :  { %p8505_p9 = pnand %p8504_p8, %p8498_p5 }
  0xaa   :  { %8508 = shalt.err (!%p8505_p9)
}
  0xab   :  { %135 = dma.hbm_to_vmem [thread:$0]  %s9281_s10, 16, %s133_s18, [#allocation17]  }
  0xac   :  { %8509 = dma.done.wait [#allocation3], 81920  }
  0xad   :  { %8510 = vsyncadd [#allocation3], 4294885376 }
  0xae   :  { %8511 = dma.done.wait [#allocation5], 50000  }
  0xaf   :  { %8512 = vsyncadd [#allocation5], 4294917296 }
  0xb0   :  { %8513 = dma.done.wait [#allocation8], 50000  }
  0xb1   :  { %8514 = vsyncadd [#allocation8], 4294917296 }
  0xb2   :  { %8515 = dma.done.wait [#allocation11], 50000  }
  0xb3   :  { %8516 = vsyncadd [#allocation11], 4294917296 }
  0xb4   :  { %8517 = dma.done.wait [#allocation14], 10064  }
  0xb5   :  { %8518 = vsyncadd [#allocation14], 4294957232 }
  0xb6   :  { %8519 = dma.done.wait [#allocation17], 16  }
  0xb7   :  { %8520 = vsyncadd [#allocation17], 4294967280  ;;  %v181_v0 = vld [vmem:[#allocation2 + $0x8] sm:$0xff]  ;;  %v186_v1 = vld [vmem:[#allocation2 + $0x30] sm:$0xff]  ;;  %vm1723_vm0 = vcmask 883712   ;;  %vm2247_vm1 = vcmask 1043456  }
  0xb8   :  { %v183_v2 = vld [vmem:[#allocation2 + $0x18] sm:$0xff]  ;;  %v6233_v3 = vpack.c.bf16 %v186_v1, %v181_v0  ;;  %v188_v4 = vld [vmem:[#allocation2 + $0x40] sm:$0xff]  ;;  %v185_v6 = vld [vmem:[#allocation2 + $0x28] sm:$0xff]  ;;  %vm8536_vm2 = vmmov 1   ;;  %vm8538_vm4 = vmmov 0  }
  0xb9   :  { %v180_v5 = vld [vmem:[#allocation2] sm:$0xff]  ;;  %v6489_v7 = vpack.c.bf16 %v188_v4, %v183_v2  ;;  %v182_v9 = vld [vmem:[#allocation2 + $0x10] sm:$0xff]  ;;  %v187_v10 = vld [vmem:[#allocation2 + $0x38] sm:$0xff] }
  0xba   :  { %v6235_v8 = vpack.c.bf16 %v185_v6, %v180_v5  ;;  %v191_v11 = vld [vmem:[#allocation2 + $0x58] sm:$0xff]  ;;  %6234 = vmatprep.subr.bf16.mxu0 %v6233_v3  ;;  %v6491_v12 = vpack.c.bf16 %v187_v10, %v182_v9  ;;  %v196_v13 = vld [vmem:[#allocation2 + $0x80] sm:$0xff]  ;;  %v193_v14 = vld [vmem:[#allocation2 + $0x68] sm:$0xff] }
  0xbb   :  { %v198_v15 = vld [vmem:[#allocation2 + $0x90] sm:$0xff]  ;;  %6490 = vmatprep.subr.bf16.mxu1 %v6489_v7  ;;  %v6237_v16 = vpack.c.bf16 %v196_v13, %v191_v11  ;;  %v195_v19 = vld [vmem:[#allocation2 + $0x78] sm:$0xff]  ;;  %v192_v20 = vld [vmem:[#allocation2 + $0x60] sm:$0xff] }
  0xbc   :  { %6236 = vmatpush1.bf16.msra.mxu0 %v6235_v8  ;;  %v6493_v17 = vpack.c.bf16 %v198_v15, %v193_v14  ;;  %v190_v18 = vld [vmem:[#allocation2 + $0x50] sm:$0xff]  ;;  %6492 = vmatpush1.bf16.msra.mxu1 %v6491_v12  ;;  %v197_v22 = vld [vmem:[#allocation2 + $0x88] sm:$0xff]  ;;  %v203_v27 = vld [vmem:[#allocation2 + $0xb8] sm:$0xff] }
  0xbd   :  { %v6239_v21 = vpack.c.bf16 %v195_v19, %v190_v18  ;;  %v201_v23 = vld [vmem:[#allocation2 + $0xa8] sm:$0xff]  ;;  %v206_v24 = vld [vmem:[#allocation2 + $0xd0] sm:$0xff]  ;;  %6238 = vmatprep.subr.bf16.mxu0 %v6237_v16  ;;  %v6495_v25 = vpack.c.bf16 %v197_v22, %v192_v20  ;;  %v208_v28 = vld [vmem:[#allocation2 + $0xe0] sm:$0xff] }
  0xbe   :  { %6494 = vmatprep.subr.bf16.mxu1 %v6493_v17  ;;  %v6241_v26 = vpack.c.bf16 %v206_v24, %v201_v23  ;;  %v200_v29 = vld [vmem:[#allocation2 + $0xa0] sm:$0xff]  ;;  %v6497_v30 = vpack.c.bf16 %v208_v28, %v203_v27  ;;  %v205_v31 = vld [vmem:[#allocation2 + $0xc8] sm:$0xff]  ;;  %v202_v32 = vld [vmem:[#allocation2 + $0xb0] sm:$0xff] }
  0xbf   :  { %v207_v33 = vld [vmem:[#allocation2 + $0xd8] sm:$0xff]  ;;  %v6243_v34 = vpack.c.bf16 %v205_v31, %v200_v29  ;;  %v216_v36 = vld [vmem:[#allocation2 + $0x120] sm:$0xff]  ;;  %v213_v37 = vld [vmem:[#allocation2 + $0x108] sm:$0xff] }
  0xc0   :  { %6240 = vmatpush1.bf16.msra.mxu0 %v6239_v21  ;;  %v211_v35 = vld [vmem:[#allocation2 + $0xf8] sm:$0xff]  ;;  %6496 = vmatpush1.bf16.msra.mxu1 %v6495_v25  ;;  %v6499_v38 = vpack.c.bf16 %v207_v33, %v202_v32  ;;  %v218_v40 = vld [vmem:[#allocation2 + $0x130] sm:$0xff]  ;;  %v212_v44 = vld [vmem:[#allocation2 + $0x100] sm:$0xff] }
  0xc1   :  { %6242 = vmatprep.subr.bf16.mxu0 %v6241_v26  ;;  %v6245_v39 = vpack.c.bf16 %v216_v36, %v211_v35  ;;  %v210_v41 = vld [vmem:[#allocation2 + $0xf0] sm:$0xff]  ;;  %v215_v42 = vld [vmem:[#allocation2 + $0x118] sm:$0xff]  ;;  %6498 = vmatprep.subr.bf16.mxu1 %v6497_v30  ;;  %v6501_v43 = vpack.c.bf16 %v218_v40, %v213_v37  ;;  %v217_v45 = vld [vmem:[#allocation2 + $0x128] sm:$0xff] }
  0xc2   :  { %v221_v46 = vld [vmem:[#allocation2 + $0x148] sm:$0xff]  ;;  %v226_v47 = vld [vmem:[#allocation2 + $0x170] sm:$0xff]  ;;  %v223_v48 = vld [vmem:[#allocation2 + $0x158] sm:$0xff]  ;;  %v6247_v50 = vpack.c.bf16 %v215_v42, %v210_v41  ;;  %v6503_v51 = vpack.c.bf16 %v217_v45, %v212_v44 }
  0xc3   :  { %v228_v49 = vld [vmem:[#allocation2 + $0x180] sm:$0xff]  ;;  %v6249_v52 = vpack.c.bf16 %v226_v47, %v221_v46  ;;  %v225_v54 = vld [vmem:[#allocation2 + $0x168] sm:$0xff]  ;;  %v222_v55 = vld [vmem:[#allocation2 + $0x150] sm:$0xff] }
  0xc4   :  { %6244 = vmatpush1.bf16.msra.mxu0 %v6243_v34  ;;  %6500 = vmatpush1.bf16.msra.mxu1 %v6499_v38  ;;  %v220_v53 = vld [vmem:[#allocation2 + $0x140] sm:$0xff]  ;;  %v6505_v56 = vpack.c.bf16 %v228_v49, %v223_v48  ;;  %v227_v57 = vld [vmem:[#allocation2 + $0x178] sm:$0xff]  ;;  %v233_v60 = vld [vmem:[#allocation2 + $0x1a8] sm:$0xff] }
  0xc5   :  { %6246 = vmatprep.subr.bf16.mxu0 %v6245_v39  ;;  %6502 = vmatprep.subr.bf16.mxu1 %v6501_v43  ;;  %v231_v58 = vld [vmem:[#allocation2 + $0x198] sm:$0xff]  ;;  %v236_v59 = vld [vmem:[#allocation2 + $0x1c0] sm:$0xff]  ;;  %v238_v61 = vld [vmem:[#allocation2 + $0x1d0] sm:$0xff]  ;;  %v6251_v62 = vpack.c.bf16 %v225_v54, %v220_v53  ;;  %v6507_v63 = vpack.c.bf16 %v227_v57, %v222_v55 }
  0xc6   :  { %v6253_v0 = vpack.c.bf16 %v236_v59, %v231_v58  ;;  %v230_v1 = vld [vmem:[#allocation2 + $0x190] sm:$0xff]  ;;  %v235_v2 = vld [vmem:[#allocation2 + $0x1b8] sm:$0xff]  ;;  %v232_v3 = vld [vmem:[#allocation2 + $0x1a0] sm:$0xff]  ;;  %v6509_v4 = vpack.c.bf16 %v238_v61, %v233_v60 }
  0xc7   :  { %v237_v5 = vld [vmem:[#allocation2 + $0x1c8] sm:$0xff]  ;;  %v246_v7 = vld [vmem:[#allocation2 + $0x210] sm:$0xff]  ;;  %v243_v8 = vld [vmem:[#allocation2 + $0x1f8] sm:$0xff]  ;;  %v6255_v10 = vpack.c.bf16 %v235_v2, %v230_v1 }
  0xc8   :  { %6248 = vmatpush1.bf16.msra.mxu0 %v6247_v50  ;;  %6504 = vmatpush1.bf16.msra.mxu1 %v6503_v51  ;;  %v241_v6 = vld [vmem:[#allocation2 + $0x1e8] sm:$0xff]  ;;  %v248_v9 = vld [vmem:[#allocation2 + $0x220] sm:$0xff]  ;;  %v6511_v11 = vpack.c.bf16 %v237_v5, %v232_v3  ;;  %v242_v15 = vld [vmem:[#allocation2 + $0x1f0] sm:$0xff] }
  0xc9   :  { %6250 = vmatprep.subr.bf16.mxu0 %v6249_v52  ;;  %6506 = vmatprep.subr.bf16.mxu1 %v6505_v56  ;;  %v6257_v12 = vpack.c.bf16 %v246_v7, %v241_v6  ;;  %v240_v13 = vld [vmem:[#allocation2 + $0x1e0] sm:$0xff]  ;;  %v245_v14 = vld [vmem:[#allocation2 + $0x208] sm:$0xff]  ;;  %v6513_v16 = vpack.c.bf16 %v248_v9, %v243_v8  ;;  %v247_v17 = vld [vmem:[#allocation2 + $0x218] sm:$0xff] }
  0xca   :  { %v251_v18 = vld [vmem:[#allocation2 + $0x238] sm:$0xff]  ;;  %v256_v19 = vld [vmem:[#allocation2 + $0x260] sm:$0xff]  ;;  %v253_v20 = vld [vmem:[#allocation2 + $0x248] sm:$0xff]  ;;  %v6259_v22 = vpack.c.bf16 %v245_v14, %v240_v13  ;;  %v6515_v23 = vpack.c.bf16 %v247_v17, %v242_v15 }
  0xcb   :  { %v258_v21 = vld [vmem:[#allocation2 + $0x270] sm:$0xff]  ;;  %v6261_v24 = vpack.c.bf16 %v256_v19, %v251_v18  ;;  %v255_v26 = vld [vmem:[#allocation2 + $0x258] sm:$0xff]  ;;  %v252_v27 = vld [vmem:[#allocation2 + $0x240] sm:$0xff] }
  0xcc   :  { %6252 = vmatpush1.bf16.msra.mxu0 %v6251_v62  ;;  %6508 = vmatpush1.bf16.msra.mxu1 %v6507_v63  ;;  %v250_v25 = vld [vmem:[#allocation2 + $0x230] sm:$0xff]  ;;  %v6517_v28 = vpack.c.bf16 %v258_v21, %v253_v20  ;;  %v257_v29 = vld [vmem:[#allocation2 + $0x268] sm:$0xff]  ;;  %v263_v32 = vld [vmem:[#allocation2 + $0x298] sm:$0xff] }
  0xcd   :  { %6254 = vmatprep.subr.bf16.mxu0 %v6253_v0  ;;  %6510 = vmatprep.subr.bf16.mxu1 %v6509_v4  ;;  %v261_v30 = vld [vmem:[#allocation2 + $0x288] sm:$0xff]  ;;  %v266_v31 = vld [vmem:[#allocation2 + $0x2b0] sm:$0xff]  ;;  %v268_v33 = vld [vmem:[#allocation2 + $0x2c0] sm:$0xff]  ;;  %v6263_v34 = vpack.c.bf16 %v255_v26, %v250_v25  ;;  %v6519_v35 = vpack.c.bf16 %v257_v29, %v252_v27 }
  0xce   :  { %v6265_v36 = vpack.c.bf16 %v266_v31, %v261_v30  ;;  %v260_v37 = vld [vmem:[#allocation2 + $0x280] sm:$0xff]  ;;  %v265_v38 = vld [vmem:[#allocation2 + $0x2a8] sm:$0xff]  ;;  %v262_v39 = vld [vmem:[#allocation2 + $0x290] sm:$0xff]  ;;  %v6521_v40 = vpack.c.bf16 %v268_v33, %v263_v32 }
  0xcf   :  { %v267_v41 = vld [vmem:[#allocation2 + $0x2b8] sm:$0xff]  ;;  %v276_v43 = vld [vmem:[#allocation2 + $0x300] sm:$0xff]  ;;  %v273_v44 = vld [vmem:[#allocation2 + $0x2e8] sm:$0xff]  ;;  %v6267_v46 = vpack.c.bf16 %v265_v38, %v260_v37 }
  0xd0   :  { %6256 = vmatpush1.bf16.msra.mxu0 %v6255_v10  ;;  %6512 = vmatpush1.bf16.msra.mxu1 %v6511_v11  ;;  %v271_v42 = vld [vmem:[#allocation2 + $0x2d8] sm:$0xff]  ;;  %v278_v45 = vld [vmem:[#allocation2 + $0x310] sm:$0xff]  ;;  %v6523_v47 = vpack.c.bf16 %v267_v41, %v262_v39  ;;  %v272_v51 = vld [vmem:[#allocation2 + $0x2e0] sm:$0xff] }
  0xd1   :  { %6258 = vmatprep.subr.bf16.mxu0 %v6257_v12  ;;  %6514 = vmatprep.subr.bf16.mxu1 %v6513_v16  ;;  %v6269_v48 = vpack.c.bf16 %v276_v43, %v271_v42  ;;  %v270_v49 = vld [vmem:[#allocation2 + $0x2d0] sm:$0xff]  ;;  %v275_v50 = vld [vmem:[#allocation2 + $0x2f8] sm:$0xff]  ;;  %v6525_v52 = vpack.c.bf16 %v278_v45, %v273_v44  ;;  %v277_v53 = vld [vmem:[#allocation2 + $0x308] sm:$0xff] }
  0xd2   :  { %v281_v54 = vld [vmem:[#allocation2 + $0x328] sm:$0xff]  ;;  %v286_v55 = vld [vmem:[#allocation2 + $0x350] sm:$0xff]  ;;  %v283_v56 = vld [vmem:[#allocation2 + $0x338] sm:$0xff]  ;;  %v6271_v58 = vpack.c.bf16 %v275_v50, %v270_v49  ;;  %v6527_v59 = vpack.c.bf16 %v277_v53, %v272_v51 }
  0xd3   :  { %v288_v57 = vld [vmem:[#allocation2 + $0x360] sm:$0xff]  ;;  %v6273_v60 = vpack.c.bf16 %v286_v55, %v281_v54  ;;  %v285_v62 = vld [vmem:[#allocation2 + $0x348] sm:$0xff]  ;;  %v282_v63 = vld [vmem:[#allocation2 + $0x330] sm:$0xff] }
  0xd4   :  { %6260 = vmatpush1.bf16.msra.mxu0 %v6259_v22  ;;  %6516 = vmatpush1.bf16.msra.mxu1 %v6515_v23  ;;  %v280_v61 = vld [vmem:[#allocation2 + $0x320] sm:$0xff]  ;;  %v6529_v0 = vpack.c.bf16 %v288_v57, %v283_v56  ;;  %v287_v1 = vld [vmem:[#allocation2 + $0x358] sm:$0xff]  ;;  %v293_v4 = vld [vmem:[#allocation2 + $0x388] sm:$0xff] }
  0xd5   :  { %6262 = vmatprep.subr.bf16.mxu0 %v6261_v24  ;;  %6518 = vmatprep.subr.bf16.mxu1 %v6517_v28  ;;  %v291_v2 = vld [vmem:[#allocation2 + $0x378] sm:$0xff]  ;;  %v296_v3 = vld [vmem:[#allocation2 + $0x3a0] sm:$0xff]  ;;  %v298_v5 = vld [vmem:[#allocation2 + $0x3b0] sm:$0xff]  ;;  %v6275_v6 = vpack.c.bf16 %v285_v62, %v280_v61  ;;  %v6531_v8 = vpack.c.bf16 %v287_v1, %v282_v63 }
  0xd6   :  { %v290_v7 = vld [vmem:[#allocation2 + $0x370] sm:$0xff]  ;;  %v6277_v9 = vpack.c.bf16 %v296_v3, %v291_v2  ;;  %v295_v10 = vld [vmem:[#allocation2 + $0x398] sm:$0xff]  ;;  %v292_v11 = vld [vmem:[#allocation2 + $0x380] sm:$0xff]  ;;  %v6533_v13 = vpack.c.bf16 %v298_v5, %v293_v4 }
  0xd7   :  { %v297_v12 = vld [vmem:[#allocation2 + $0x3a8] sm:$0xff]  ;;  %v306_v15 = vld [vmem:[#allocation2 + $0x3f0] sm:$0xff]  ;;  %v303_v17 = vld [vmem:[#allocation2 + $0x3d8] sm:$0xff]  ;;  %v6279_v19 = vpack.c.bf16 %v295_v10, %v290_v7 }
  0xd8   :  { %6264 = vmatpush1.bf16.msra.mxu0 %v6263_v34  ;;  %6520 = vmatpush1.bf16.msra.mxu1 %v6519_v35  ;;  %v301_v14 = vld [vmem:[#allocation2 + $0x3c8] sm:$0xff]  ;;  %v308_v18 = vld [vmem:[#allocation2 + $0x400] sm:$0xff]  ;;  %v6535_v20 = vpack.c.bf16 %v297_v12, %v292_v11  ;;  %v302_v24 = vld [vmem:[#allocation2 + $0x3d0] sm:$0xff] }
  0xd9   :  { %6266 = vmatprep.subr.bf16.mxu0 %v6265_v36  ;;  %6522 = vmatprep.subr.bf16.mxu1 %v6521_v40  ;;  %v173_v16 = vld [vmem:[%s9271_s0 + $0x8] sm:$0xff]  ;;  %v6281_v21 = vpack.c.bf16 %v306_v15, %v301_v14  ;;  %v300_v22 = vld [vmem:[#allocation2 + $0x3c0] sm:$0xff]  ;;  %v6537_v25 = vpack.c.bf16 %v308_v18, %v303_v17  ;;  %v307_v26 = vld [vmem:[#allocation2 + $0x3f8] sm:$0xff] }
  0xda   :  { %911 = vmatprep.mubr.f32.mxu0 %v173_v16  ;;  %1195 = vmatprep.mubr.f32.mxu1 %v173_v16  ;;  %v305_v23 = vld [vmem:[#allocation2 + $0x3e8] sm:$0xff]  ;;  %v311_v27 = vld [vmem:[#allocation2 + $0x418] sm:$0xff]  ;;  %v316_v28 = vld [vmem:[#allocation2 + $0x440] sm:$0xff]  ;;  %v6539_v32 = vpack.c.bf16 %v307_v26, %v302_v24 }
  0xdb   :  { %v313_v29 = vld [vmem:[#allocation2 + $0x428] sm:$0xff]  ;;  %v318_v30 = vld [vmem:[#allocation2 + $0x450] sm:$0xff]  ;;  %v6283_v31 = vpack.c.bf16 %v305_v23, %v300_v22  ;;  %v6285_v33 = vpack.c.bf16 %v316_v28, %v311_v27  ;;  %v315_v35 = vld [vmem:[#allocation2 + $0x438] sm:$0xff] }
  0xdc   :  { %6268 = vmatpush1.bf16.msra.mxu0 %v6267_v46  ;;  %6524 = vmatpush1.bf16.msra.mxu1 %v6523_v47  ;;  %v310_v34 = vld [vmem:[#allocation2 + $0x410] sm:$0xff]  ;;  %v312_v36 = vld [vmem:[#allocation2 + $0x420] sm:$0xff]  ;;  %v6541_v37 = vpack.c.bf16 %v318_v30, %v313_v29  ;;  %v317_v38 = vld [vmem:[#allocation2 + $0x448] sm:$0xff] }
  0xdd   :  { %6270 = vmatprep.subr.bf16.mxu0 %v6269_v48  ;;  %6526 = vmatprep.subr.bf16.mxu1 %v6525_v52  ;;  %v321_v39 = vld [vmem:[#allocation2 + $0x468] sm:$0xff]  ;;  %v326_v40 = vld [vmem:[#allocation2 + $0x490] sm:$0xff]  ;;  %v323_v41 = vld [vmem:[#allocation2 + $0x478] sm:$0xff]  ;;  %v6287_v43 = vpack.c.bf16 %v315_v35, %v310_v34  ;;  %v6543_v44 = vpack.c.bf16 %v317_v38, %v312_v36 }
  0xde   :  { %v328_v42 = vld [vmem:[#allocation2 + $0x4a0] sm:$0xff]  ;;  %v6289_v45 = vpack.c.bf16 %v326_v40, %v321_v39  ;;  %v325_v47 = vld [vmem:[#allocation2 + $0x488] sm:$0xff]  ;;  %v322_v48 = vld [vmem:[#allocation2 + $0x470] sm:$0xff] }
  0xdf   :  { %v320_v46 = vld [vmem:[#allocation2 + $0x460] sm:$0xff]  ;;  %v6545_v49 = vpack.c.bf16 %v328_v42, %v323_v41  ;;  %v327_v50 = vld [vmem:[#allocation2 + $0x498] sm:$0xff]  ;;  %v333_v53 = vld [vmem:[#allocation2 + $0x4c8] sm:$0xff] }
  0xe0   :  { %6272 = vmatpush1.bf16.msra.mxu0 %v6271_v58  ;;  %6528 = vmatpush1.bf16.msra.mxu1 %v6527_v59  ;;  %v331_v51 = vld [vmem:[#allocation2 + $0x4b8] sm:$0xff]  ;;  %v336_v52 = vld [vmem:[#allocation2 + $0x4e0] sm:$0xff]  ;;  %v338_v54 = vld [vmem:[#allocation2 + $0x4f0] sm:$0xff]  ;;  %v6291_v55 = vpack.c.bf16 %v325_v47, %v320_v46  ;;  %v6547_v56 = vpack.c.bf16 %v327_v50, %v322_v48 }
  0xe1   :  { %6274 = vmatprep.subr.bf16.mxu0 %v6273_v60  ;;  %6530 = vmatprep.subr.bf16.mxu1 %v6529_v0  ;;  %v6293_v57 = vpack.c.bf16 %v336_v52, %v331_v51  ;;  %v330_v58 = vld [vmem:[#allocation2 + $0x4b0] sm:$0xff]  ;;  %v335_v59 = vld [vmem:[#allocation2 + $0x4d8] sm:$0xff]  ;;  %v332_v60 = vld [vmem:[#allocation2 + $0x4c0] sm:$0xff]  ;;  %v6549_v61 = vpack.c.bf16 %v338_v54, %v333_v53 }
  0xe2   :  { %v337_v62 = vld [vmem:[#allocation2 + $0x4e8] sm:$0xff]  ;;  %v346_v0 = vld [vmem:[#allocation2 + $0x530] sm:$0xff]  ;;  %v343_v1 = vld [vmem:[#allocation2 + $0x518] sm:$0xff]  ;;  %v6295_v3 = vpack.c.bf16 %v335_v59, %v330_v58 }
  0xe3   :  { %v341_v63 = vld [vmem:[#allocation2 + $0x508] sm:$0xff]  ;;  %v348_v2 = vld [vmem:[#allocation2 + $0x540] sm:$0xff]  ;;  %v6551_v4 = vpack.c.bf16 %v337_v62, %v332_v60  ;;  %v347_v10 = vld [vmem:[#allocation2 + $0x538] sm:$0xff] }
  0xe4   :  { %6276 = vmatpush1.bf16.msra.mxu0 %v6275_v6  ;;  %6532 = vmatpush1.bf16.msra.mxu1 %v6531_v8  ;;  %v6297_v5 = vpack.c.bf16 %v346_v0, %v341_v63  ;;  %v340_v6 = vld [vmem:[#allocation2 + $0x500] sm:$0xff]  ;;  %v345_v7 = vld [vmem:[#allocation2 + $0x528] sm:$0xff]  ;;  %v342_v8 = vld [vmem:[#allocation2 + $0x510] sm:$0xff] }
  0xe5   :  { %6278 = vmatprep.subr.bf16.mxu0 %v6277_v9  ;;  %6534 = vmatprep.subr.bf16.mxu1 %v6533_v13  ;;  %v6553_v9 = vpack.c.bf16 %v348_v2, %v343_v1  ;;  %v351_v11 = vld [vmem:[#allocation2 + $0x558] sm:$0xff]  ;;  %v356_v12 = vld [vmem:[#allocation2 + $0x580] sm:$0xff]  ;;  %v353_v13 = vld [vmem:[#allocation2 + $0x568] sm:$0xff]  ;;  %v6299_v16 = vpack.c.bf16 %v345_v7, %v340_v6  ;;  %v6555_v17 = vpack.c.bf16 %v347_v10, %v342_v8 }
  0xe6   :  { %v358_v14 = vld [vmem:[#allocation2 + $0x590] sm:$0xff]  ;;  %v172_v15 = vld [vmem:[%s9271_s0] sm:$0xff]  ;;  %v6301_v18 = vpack.c.bf16 %v356_v12, %v351_v11  ;;  %v357_v23 = vld [vmem:[#allocation2 + $0x588] sm:$0xff] }
  0xe7   :  { %v6557_v22 = vpack.c.bf16 %v358_v14, %v353_v13  ;;  %v361_v24 = vld [vmem:[#allocation2 + $0x5a8] sm:$0xff]  ;;  %v363_v26 = vld [vmem:[#allocation2 + $0x5b8] sm:$0xff]  ;;  %v368_v27 = vld [vmem:[#allocation2 + $0x5e0] sm:$0xff] }
  0xe8   :  { %6280 = vmatpush1.bf16.msra.mxu0 %v6279_v19  ;;  %6536 = vmatpush1.bf16.msra.mxu1 %v6535_v20  ;;  %v350_v19 = vld [vmem:[#allocation2 + $0x550] sm:$0xff]  ;;  %v355_v20 = vld [vmem:[#allocation2 + $0x578] sm:$0xff]  ;;  %v6561_v34 = vpack.c.bf16 %v368_v27, %v363_v26  ;;  %v373_v38 = vld [vmem:[#allocation2 + $0x608] sm:$0xff] }
  0xe9   :  { %6282 = vmatprep.subr.bf16.mxu0 %v6281_v21  ;;  %6538 = vmatprep.subr.bf16.mxu1 %v6537_v25  ;;  %v352_v21 = vld [vmem:[#allocation2 + $0x560] sm:$0xff]  ;;  %v366_v25 = vld [vmem:[#allocation2 + $0x5d0] sm:$0xff]  ;;  %v6303_v28 = vpack.c.bf16 %v355_v20, %v350_v19  ;;  %v367_v35 = vld [vmem:[#allocation2 + $0x5d8] sm:$0xff] }
  0xea   :  { %v6559_v29 = vpack.c.bf16 %v357_v23, %v352_v21  ;;  %v6305_v30 = vpack.c.bf16 %v366_v25, %v361_v24  ;;  %v371_v36 = vld [vmem:[#allocation2 + $0x5f8] sm:$0xff]  ;;  %v378_v39 = vld [vmem:[#allocation2 + $0x630] sm:$0xff]  ;;  %v377_v47 = vld [vmem:[#allocation2 + $0x628] sm:$0xff] }
  0xeb   :  { %v6565_v46 = vpack.c.bf16 %v378_v39, %v373_v38  ;;  %v381_v48 = vld [vmem:[#allocation2 + $0x648] sm:$0xff]  ;;  %v383_v50 = vld [vmem:[#allocation2 + $0x658] sm:$0xff]  ;;  %v388_v51 = vld [vmem:[#allocation2 + $0x680] sm:$0xff] }
  0xec   :  { %6284 = vmatpush1.bf16.msra.mxu0 %v6283_v31  ;;  %6540 = vmatpush1.bf16.msra.mxu1 %v6539_v32  ;;  %v360_v31 = vld [vmem:[#allocation2 + $0x5a0] sm:$0xff]  ;;  %v365_v32 = vld [vmem:[#allocation2 + $0x5c8] sm:$0xff]  ;;  %v6569_v58 = vpack.c.bf16 %v388_v51, %v383_v50  ;;  %v387_v59 = vld [vmem:[#allocation2 + $0x678] sm:$0xff] }
  0xed   :  { %6286 = vmatprep.subr.bf16.mxu0 %v6285_v33  ;;  %6542 = vmatprep.subr.bf16.mxu1 %v6541_v37  ;;  %v362_v33 = vld [vmem:[#allocation2 + $0x5b0] sm:$0xff]  ;;  %v376_v37 = vld [vmem:[#allocation2 + $0x620] sm:$0xff]  ;;  %v6307_v40 = vpack.c.bf16 %v365_v32, %v360_v31  ;;  %v391_v60 = vld [vmem:[#allocation2 + $0x698] sm:$0xff] }
  0xee   :  { %v6563_v41 = vpack.c.bf16 %v367_v35, %v362_v33  ;;  %v6309_v42 = vpack.c.bf16 %v376_v37, %v371_v36  ;;  %v393_v62 = vld [vmem:[#allocation2 + $0x6a8] sm:$0xff]  ;;  %v398_v63 = vld [vmem:[#allocation2 + $0x6d0] sm:$0xff]  ;;  %v403_v10 = vld [vmem:[#allocation2 + $0x6f8] sm:$0xff] }
  0xef   :  { %v6573_v6 = vpack.c.bf16 %v398_v63, %v393_v62  ;;  %v397_v7 = vld [vmem:[#allocation2 + $0x6c8] sm:$0xff]  ;;  %v408_v11 = vld [vmem:[#allocation2 + $0x720] sm:$0xff]  ;;  %v411_v20 = vld [vmem:[#allocation2 + $0x738] sm:$0xff] }
  0xf0   :  { %6288 = vmatpush1.bf16.msra.mxu0 %v6287_v43  ;;  %6544 = vmatpush1.bf16.msra.mxu1 %v6543_v44  ;;  %v370_v43 = vld [vmem:[#allocation2 + $0x5f0] sm:$0xff]  ;;  %v375_v44 = vld [vmem:[#allocation2 + $0x618] sm:$0xff]  ;;  %v401_v8 = vld [vmem:[#allocation2 + $0x6e8] sm:$0xff]  ;;  %v6577_v19 = vpack.c.bf16 %v408_v11, %v403_v10 }
  0xf1   :  { %6290 = vmatprep.subr.bf16.mxu0 %v6289_v45  ;;  %6546 = vmatprep.subr.bf16.mxu1 %v6545_v49  ;;  %v372_v45 = vld [vmem:[#allocation2 + $0x600] sm:$0xff]  ;;  %v386_v49 = vld [vmem:[#allocation2 + $0x670] sm:$0xff]  ;;  %v6311_v52 = vpack.c.bf16 %v375_v44, %v370_v43  ;;  %v413_v23 = vld [vmem:[#allocation2 + $0x748] sm:$0xff] }
  0xf2   :  { %v6567_v53 = vpack.c.bf16 %v377_v47, %v372_v45  ;;  %v6313_v54 = vpack.c.bf16 %v386_v49, %v381_v48  ;;  %v400_v13 = vld [vmem:[#allocation2 + $0x6e0] sm:$0xff]  ;;  %v418_v24 = vld [vmem:[#allocation2 + $0x770] sm:$0xff]  ;;  %v417_v32 = vld [vmem:[#allocation2 + $0x768] sm:$0xff] }
  0xf3   :  { %v416_v21 = vld [vmem:[#allocation2 + $0x760] sm:$0xff]  ;;  %v6581_v31 = vpack.c.bf16 %v418_v24, %v413_v23  ;;  %v421_v33 = vld [vmem:[#allocation2 + $0x788] sm:$0xff]  ;;  %v423_v35 = vld [vmem:[#allocation2 + $0x798] sm:$0xff] }
  0xf4   :  { %6292 = vmatpush1.bf16.msra.mxu0 %v6291_v55  ;;  %6548 = vmatpush1.bf16.msra.mxu1 %v6547_v56  ;;  %v380_v55 = vld [vmem:[#allocation2 + $0x640] sm:$0xff]  ;;  %v385_v56 = vld [vmem:[#allocation2 + $0x668] sm:$0xff]  ;;  %v6325_v27 = vpack.c.bf16 %v416_v21, %v411_v20  ;;  %v427_v44 = vld [vmem:[#allocation2 + $0x7b8] sm:$0xff] }
  0xf5   :  { %6294 = vmatprep.subr.bf16.mxu0 %v6293_v57  ;;  %6550 = vmatprep.subr.bf16.mxu1 %v6549_v61  ;;  %v382_v57 = vld [vmem:[#allocation2 + $0x650] sm:$0xff]  ;;  %v396_v61 = vld [vmem:[#allocation2 + $0x6c0] sm:$0xff]  ;;  %v6315_v0 = vpack.c.bf16 %v385_v56, %v380_v55  ;;  %v431_v45 = vld [vmem:[#allocation2 + $0x7d8] sm:$0xff] }
  0xf6   :  { %v6571_v1 = vpack.c.bf16 %v387_v59, %v382_v57  ;;  %v6317_v2 = vpack.c.bf16 %v396_v61, %v391_v60  ;;  %v428_v36 = vld [vmem:[#allocation2 + $0x7c0] sm:$0xff]  ;;  %v433_v47 = vld [vmem:[#allocation2 + $0x7e8] sm:$0xff]  ;;  %v438_v48 = vld [vmem:[#allocation2 + $0x810] sm:$0xff] }
  0xf7   :  { %v6585_v43 = vpack.c.bf16 %v428_v36, %v423_v35  ;;  %v6589_v55 = vpack.c.bf16 %v438_v48, %v433_v47  ;;  %v437_v56 = vld [vmem:[#allocation2 + $0x808] sm:$0xff]  ;;  %v443_v59 = vld [vmem:[#allocation2 + $0x838] sm:$0xff]  ;;  %v448_v60 = vld [vmem:[#allocation2 + $0x860] sm:$0xff] }
  0xf8   :  { %6296 = vmatpush1.bf16.msra.mxu0 %v6295_v3  ;;  %6552 = vmatpush1.bf16.msra.mxu1 %v6551_v4  ;;  %v390_v3 = vld [vmem:[#allocation2 + $0x690] sm:$0xff]  ;;  %v395_v4 = vld [vmem:[#allocation2 + $0x6b8] sm:$0xff]  ;;  %v441_v57 = vld [vmem:[#allocation2 + $0x828] sm:$0xff] }
  0xf9   :  { %6298 = vmatprep.subr.bf16.mxu0 %v6297_v5  ;;  %6554 = vmatprep.subr.bf16.mxu1 %v6553_v9  ;;  %v392_v5 = vld [vmem:[#allocation2 + $0x6a0] sm:$0xff]  ;;  %v406_v9 = vld [vmem:[#allocation2 + $0x710] sm:$0xff]  ;;  %v6319_v12 = vpack.c.bf16 %v395_v4, %v390_v3  ;;  %v6593_v3 = vpack.c.bf16 %v448_v60, %v443_v59  ;;  %v447_v4 = vld [vmem:[#allocation2 + $0x858] sm:$0xff] }
  0xfa   :  { %v6575_v14 = vpack.c.bf16 %v397_v7, %v392_v5  ;;  %v451_v5 = vld [vmem:[#allocation2 + $0x878] sm:$0xff]  ;;  %v453_v7 = vld [vmem:[#allocation2 + $0x888] sm:$0xff]  ;;  %v468_v20 = vld [vmem:[#allocation2 + $0x900] sm:$0xff] }
  0xfb   :  { %912 = vmatmul.mubr.f32.vlgmr.msra.gmra.mrb[0].mxu0 %v172_v15  ;;  %1196 = vmatmul.mubr.f32.vlgmr.msra.gmra.mrb[0].mxu1 %v172_v15  ;;  %v6321_v15 = vpack.c.bf16 %v406_v9, %v401_v8  ;;  %v458_v8 = vld [vmem:[#allocation2 + $0x8b0] sm:$0xff]  ;;  %v460_v24 = vld [vmem:[#allocation2 + $0x8c0] sm:$0xff]  ;;  %vm8925_vm3 = vmpackc.low %vm2247_vm1, %vm8536_vm2 }
  0xfc   :  { %6300 = vmatpush1.bf16.msra.mxu0 %v6299_v16  ;;  %6556 = vmatpush1.bf16.msra.mxu1 %v6555_v17  ;;  %v405_v16 = vld [vmem:[#allocation2 + $0x708] sm:$0xff]  ;;  %v402_v17 = vld [vmem:[#allocation2 + $0x6f0] sm:$0xff]  ;;  %v480_v48 = vld [vmem:[#allocation2 + $0x960] sm:$0xff] }
  0xfd   :  { %6302 = vmatprep.subr.bf16.mxu0 %v6301_v18  ;;  %6558 = vmatprep.subr.bf16.mxu1 %v6557_v22  ;;  %v407_v18 = vld [vmem:[#allocation2 + $0x718] sm:$0xff]  ;;  %v6323_v25 = vpack.c.bf16 %v405_v16, %v400_v13  ;;  %v457_v16 = vld [vmem:[#allocation2 + $0x8a8] sm:$0xff]  ;;  %v470_v36 = vld [vmem:[#allocation2 + $0x910] sm:$0xff] }
  0xfe   :  { %v175_v22 = vld [vmem:[%s9271_s0 + $0x18] sm:$0xff]  ;;  %v6579_v26 = vpack.c.bf16 %v407_v18, %v402_v17  ;;  %v461_v17 = vld [vmem:[#allocation2 + $0x8c8] sm:$0xff]  ;;  %v466_v18 = vld [vmem:[#allocation2 + $0x8f0] sm:$0xff] }
  0xff   :  { %982 = vmatprep.mubr.f32.mxu0 %v175_v22  ;;  %1266 = vmatprep.mubr.f32.mxu1 %v175_v22  ;;  %v455_v13 = vld [vmem:[#allocation2 + $0x898] sm:$0xff]  ;;  %v6345_v23 = vpack.c.bf16 %v466_v18, %v461_v17  ;;  %v490_v60 = vld [vmem:[#allocation2 + $0x9b0] sm:$0xff] }
 0x100   :  { %6304 = vmatpush1.bf16.msra.mxu0 %v6303_v28  ;;  %6560 = vmatpush1.bf16.msra.mxu1 %v6559_v29  ;;  %v410_v28 = vld [vmem:[#allocation2 + $0x730] sm:$0xff]  ;;  %v415_v29 = vld [vmem:[#allocation2 + $0x758] sm:$0xff] }
 0x101   :  { %6306 = vmatprep.subr.bf16.mxu0 %v6305_v30  ;;  %6562 = vmatprep.subr.bf16.mxu1 %v6561_v34  ;;  %v412_v30 = vld [vmem:[#allocation2 + $0x740] sm:$0xff]  ;;  %v426_v34 = vld [vmem:[#allocation2 + $0x7b0] sm:$0xff]  ;;  %v6327_v37 = vpack.c.bf16 %v415_v29, %v410_v28  ;;  %v467_v28 = vld [vmem:[#allocation2 + $0x8f8] sm:$0xff] }
 0x102   :  { %v6583_v38 = vpack.c.bf16 %v417_v32, %v412_v30  ;;  %v6329_v39 = vpack.c.bf16 %v426_v34, %v421_v33  ;;  %v471_v29 = vld [vmem:[#allocation2 + $0x918] sm:$0xff]  ;;  %v476_v30 = vld [vmem:[#allocation2 + $0x940] sm:$0xff]  ;;  %v478_v32 = vld [vmem:[#allocation2 + $0x950] sm:$0xff] }
 0x103   :  { %v6349_v35 = vpack.c.bf16 %v476_v30, %v471_v29  ;;  %v174_v17 = vld [vmem:[%s9271_s0 + $0x10] sm:$0xff]  ;;  %v528_v29 = vld [vmem:[#allocation2 + $0xae0] sm:$0xff]  ;;  %v177_v30 = vld [vmem:[%s9271_s0 + $0x28] sm:$0xff] }
 0x104   :  { %6308 = vmatpush1.bf16.msra.mxu0 %v6307_v40  ;;  %6564 = vmatpush1.bf16.msra.mxu1 %v6563_v41  ;;  %v420_v40 = vld [vmem:[#allocation2 + $0x780] sm:$0xff]  ;;  %v425_v41 = vld [vmem:[#allocation2 + $0x7a8] sm:$0xff] }
 0x105   :  { %6310 = vmatprep.subr.bf16.mxu0 %v6309_v42  ;;  %6566 = vmatprep.subr.bf16.mxu1 %v6565_v46  ;;  %v422_v42 = vld [vmem:[#allocation2 + $0x790] sm:$0xff]  ;;  %v436_v46 = vld [vmem:[#allocation2 + $0x800] sm:$0xff]  ;;  %v6331_v49 = vpack.c.bf16 %v425_v41, %v420_v40  ;;  %v477_v40 = vld [vmem:[#allocation2 + $0x948] sm:$0xff] }
 0x106   :  { %v6587_v50 = vpack.c.bf16 %v427_v44, %v422_v42  ;;  %v6333_v51 = vpack.c.bf16 %v436_v46, %v431_v45  ;;  %v481_v41 = vld [vmem:[#allocation2 + $0x968] sm:$0xff]  ;;  %v486_v42 = vld [vmem:[#allocation2 + $0x990] sm:$0xff]  ;;  %v488_v44 = vld [vmem:[#allocation2 + $0x9a0] sm:$0xff] }
 0x107   :  { %v6353_v47 = vpack.c.bf16 %v486_v42, %v481_v41  ;;  %v533_v41 = vld [vmem:[#allocation2 + $0xb08] sm:$0xff]  ;;  %v538_v42 = vld [vmem:[#allocation2 + $0xb30] sm:$0xff] }
 0x108   :  { %6312 = vmatpush1.bf16.msra.mxu0 %v6311_v52  ;;  %6568 = vmatpush1.bf16.msra.mxu1 %v6567_v53  ;;  %v430_v52 = vld [vmem:[#allocation2 + $0x7d0] sm:$0xff]  ;;  %v435_v53 = vld [vmem:[#allocation2 + $0x7f8] sm:$0xff] }
 0x109   :  { %6314 = vmatprep.subr.bf16.mxu0 %v6313_v54  ;;  %6570 = vmatprep.subr.bf16.mxu1 %v6569_v58  ;;  %v432_v54 = vld [vmem:[#allocation2 + $0x7e0] sm:$0xff]  ;;  %v446_v58 = vld [vmem:[#allocation2 + $0x850] sm:$0xff]  ;;  %v6335_v61 = vpack.c.bf16 %v435_v53, %v430_v52  ;;  %v487_v52 = vld [vmem:[#allocation2 + $0x998] sm:$0xff] }
 0x10a   :  { %v6591_v62 = vpack.c.bf16 %v437_v56, %v432_v54  ;;  %v6337_v63 = vpack.c.bf16 %v446_v58, %v441_v57  ;;  %v491_v53 = vld [vmem:[#allocation2 + $0x9b8] sm:$0xff]  ;;  %v496_v54 = vld [vmem:[#allocation2 + $0x9e0] sm:$0xff]  ;;  %v498_v56 = vld [vmem:[#allocation2 + $0x9f0] sm:$0xff] }
 0x10b   :  { %v6357_v59 = vpack.c.bf16 %v496_v54, %v491_v53  ;;  %v543_v53 = vld [vmem:[#allocation2 + $0xb58] sm:$0xff]  ;;  %v548_v54 = vld [vmem:[#allocation2 + $0xb80] sm:$0xff] }
 0x10c   :  { %6316 = vmatpush1.bf16.msra.mxu0 %v6315_v0  ;;  %6572 = vmatpush1.bf16.msra.mxu1 %v6571_v1  ;;  %v440_v0 = vld [vmem:[#allocation2 + $0x820] sm:$0xff]  ;;  %v445_v1 = vld [vmem:[#allocation2 + $0x848] sm:$0xff] }
 0x10d   :  { %6318 = vmatprep.subr.bf16.mxu0 %v6317_v2  ;;  %6574 = vmatprep.subr.bf16.mxu1 %v6573_v6  ;;  %v442_v2 = vld [vmem:[#allocation2 + $0x830] sm:$0xff]  ;;  %v456_v6 = vld [vmem:[#allocation2 + $0x8a0] sm:$0xff]  ;;  %v6339_v9 = vpack.c.bf16 %v445_v1, %v440_v0  ;;  %v497_v0 = vld [vmem:[#allocation2 + $0x9e8] sm:$0xff] }
 0x10e   :  { %v6595_v10 = vpack.c.bf16 %v447_v4, %v442_v2  ;;  %v6341_v11 = vpack.c.bf16 %v456_v6, %v451_v5  ;;  %v501_v1 = vld [vmem:[#allocation2 + $0xa08] sm:$0xff]  ;;  %v506_v2 = vld [vmem:[#allocation2 + $0xa30] sm:$0xff]  ;;  %v508_v4 = vld [vmem:[#allocation2 + $0xa40] sm:$0xff] }
 0x110   :  { %6320 = vmatpush1.bf16.msra.mxu0 %v6319_v12  ;;  %6576 = vmatpush1.bf16.msra.mxu1 %v6575_v14  ;;  %v450_v12 = vld [vmem:[#allocation2 + $0x870] sm:$0xff]  ;;  %v452_v14 = vld [vmem:[#allocation2 + $0x880] sm:$0xff] }
 0x111   :  { %6322 = vmatprep.subr.bf16.mxu0 %v6321_v15  ;;  %6578 = vmatprep.subr.bf16.mxu1 %v6577_v19  ;;  %v6597_v15 = vpack.c.bf16 %v458_v8, %v453_v7  ;;  %v463_v19 = vld [vmem:[#allocation2 + $0x8d8] sm:$0xff]  ;;  %v6343_v21 = vpack.c.bf16 %v455_v13, %v450_v12  ;;  %v6599_v22 = vpack.c.bf16 %v457_v16, %v452_v14  ;;  %v500_v8 = vld [vmem:[#allocation2 + $0xa00] sm:$0xff]  ;;  %v518_v16 = vld [vmem:[#allocation2 + $0xa90] sm:$0xff] }
 0x112   :  { %v6361_v7 = vpack.c.bf16 %v506_v2, %v501_v1  ;;  %v507_v12 = vld [vmem:[#allocation2 + $0xa38] sm:$0xff]  ;;  %v516_v14 = vld [vmem:[#allocation2 + $0xa80] sm:$0xff]  ;;  %v553_v1 = vld [vmem:[#allocation2 + $0xba8] sm:$0xff] }
 0x113   :  { %v511_v13 = vld [vmem:[#allocation2 + $0xa58] sm:$0xff]  ;;  %v558_v2 = vld [vmem:[#allocation2 + $0xbd0] sm:$0xff] }
 0x114   :  { %6324 = vmatpush1.bf16.msra.mxu0 %v6323_v25  ;;  %6580 = vmatpush1.bf16.msra.mxu1 %v6579_v26  ;;  %v465_v25 = vld [vmem:[#allocation2 + $0x8e8] sm:$0xff]  ;;  %v462_v26 = vld [vmem:[#allocation2 + $0x8d0] sm:$0xff] }
 0x115   :  { %6326 = vmatprep.subr.bf16.mxu0 %v6325_v27  ;;  %6582 = vmatprep.subr.bf16.mxu1 %v6581_v31  ;;  %v6601_v27 = vpack.c.bf16 %v468_v20, %v463_v19  ;;  %v473_v31 = vld [vmem:[#allocation2 + $0x928] sm:$0xff]  ;;  %v6347_v33 = vpack.c.bf16 %v465_v25, %v460_v24  ;;  %v6603_v34 = vpack.c.bf16 %v467_v28, %v462_v26  ;;  %v523_v28 = vld [vmem:[#allocation2 + $0xab8] sm:$0xff] }
 0x116   :  { %v6365_v20 = vpack.c.bf16 %v516_v14, %v511_v13  ;;  %v517_v25 = vld [vmem:[#allocation2 + $0xa88] sm:$0xff]  ;;  %v563_v13 = vld [vmem:[#allocation2 + $0xbf8] sm:$0xff]  ;;  %v568_v14 = vld [vmem:[#allocation2 + $0xc20] sm:$0xff] }
 0x117   :  { %v521_v26 = vld [vmem:[#allocation2 + $0xaa8] sm:$0xff] }
 0x118   :  { %6328 = vmatpush1.bf16.msra.mxu0 %v6327_v37  ;;  %6584 = vmatpush1.bf16.msra.mxu1 %v6583_v38  ;;  %v475_v37 = vld [vmem:[#allocation2 + $0x938] sm:$0xff]  ;;  %v472_v38 = vld [vmem:[#allocation2 + $0x920] sm:$0xff] }
 0x119   :  { %6330 = vmatprep.subr.bf16.mxu0 %v6329_v39  ;;  %6586 = vmatprep.subr.bf16.mxu1 %v6585_v43  ;;  %v6605_v39 = vpack.c.bf16 %v478_v32, %v473_v31  ;;  %v483_v43 = vld [vmem:[#allocation2 + $0x978] sm:$0xff]  ;;  %v6351_v45 = vpack.c.bf16 %v475_v37, %v470_v36  ;;  %v6607_v46 = vpack.c.bf16 %v477_v40, %v472_v38  ;;  %v522_v36 = vld [vmem:[#allocation2 + $0xab0] sm:$0xff]  ;;  %v536_v40 = vld [vmem:[#allocation2 + $0xb20] sm:$0xff] }
 0x11a   :  { %v6625_v37 = vpack.c.bf16 %v528_v29, %v523_v28  ;;  %v527_v38 = vld [vmem:[#allocation2 + $0xad8] sm:$0xff] }
 0x11c   :  { %6332 = vmatpush1.bf16.msra.mxu0 %v6331_v49  ;;  %6588 = vmatpush1.bf16.msra.mxu1 %v6587_v50  ;;  %v485_v49 = vld [vmem:[#allocation2 + $0x988] sm:$0xff]  ;;  %v482_v50 = vld [vmem:[#allocation2 + $0x970] sm:$0xff] }
 0x11d   :  { %6334 = vmatprep.subr.bf16.mxu0 %v6333_v51  ;;  %6590 = vmatprep.subr.bf16.mxu1 %v6589_v55  ;;  %v6609_v51 = vpack.c.bf16 %v488_v44, %v483_v43  ;;  %v493_v55 = vld [vmem:[#allocation2 + $0x9c8] sm:$0xff]  ;;  %v6355_v57 = vpack.c.bf16 %v485_v49, %v480_v48  ;;  %v6611_v58 = vpack.c.bf16 %v487_v52, %v482_v50  ;;  %v532_v48 = vld [vmem:[#allocation2 + $0xb00] sm:$0xff]  ;;  %v546_v52 = vld [vmem:[#allocation2 + $0xb70] sm:$0xff] }
 0x11e   :  { %v6627_v44 = vpack.c.bf16 %v527_v38, %v522_v36  ;;  %v6629_v49 = vpack.c.bf16 %v538_v42, %v533_v41  ;;  %v537_v50 = vld [vmem:[#allocation2 + $0xb28] sm:$0xff]  ;;  %v586_v36 = vld [vmem:[#allocation2 + $0xcb0] sm:$0xff]  ;;  %v588_v38 = vld [vmem:[#allocation2 + $0xcc0] sm:$0xff] }
 0x11f   :  { %v580_v42 = vld [vmem:[#allocation2 + $0xc80] sm:$0xff] }
 0x120   :  { %6336 = vmatpush1.bf16.msra.mxu0 %v6335_v61  ;;  %6592 = vmatpush1.bf16.msra.mxu1 %v6591_v62  ;;  %v495_v61 = vld [vmem:[#allocation2 + $0x9d8] sm:$0xff]  ;;  %v492_v62 = vld [vmem:[#allocation2 + $0x9c0] sm:$0xff] }
 0x121   :  { %6338 = vmatprep.subr.bf16.mxu0 %v6337_v63  ;;  %6594 = vmatprep.subr.bf16.mxu1 %v6593_v3  ;;  %v6613_v63 = vpack.c.bf16 %v498_v56, %v493_v55  ;;  %v503_v3 = vld [vmem:[#allocation2 + $0xa18] sm:$0xff]  ;;  %v6359_v5 = vpack.c.bf16 %v495_v61, %v490_v60  ;;  %v6615_v6 = vpack.c.bf16 %v497_v0, %v492_v62  ;;  %v542_v60 = vld [vmem:[#allocation2 + $0xb50] sm:$0xff]  ;;  %v556_v0 = vld [vmem:[#allocation2 + $0xbc0] sm:$0xff] }
 0x122   :  { %v6631_v56 = vpack.c.bf16 %v537_v50, %v532_v48  ;;  %v6633_v61 = vpack.c.bf16 %v548_v54, %v543_v53  ;;  %v547_v62 = vld [vmem:[#allocation2 + $0xb78] sm:$0xff]  ;;  %v596_v48 = vld [vmem:[#allocation2 + $0xd00] sm:$0xff]  ;;  %v598_v50 = vld [vmem:[#allocation2 + $0xd10] sm:$0xff] }
 0x123   :  { %v590_v54 = vld [vmem:[#allocation2 + $0xcd0] sm:$0xff] }
 0x124   :  { %6340 = vmatpush1.bf16.msra.mxu0 %v6339_v9  ;;  %6596 = vmatpush1.bf16.msra.mxu1 %v6595_v10  ;;  %v505_v9 = vld [vmem:[#allocation2 + $0xa28] sm:$0xff]  ;;  %v502_v10 = vld [vmem:[#allocation2 + $0xa10] sm:$0xff] }
 0x125   :  { %6342 = vmatprep.subr.bf16.mxu0 %v6341_v11  ;;  %6598 = vmatprep.subr.bf16.mxu1 %v6597_v15  ;;  %v6617_v11 = vpack.c.bf16 %v508_v4, %v503_v3  ;;  %v513_v15 = vld [vmem:[#allocation2 + $0xa68] sm:$0xff]  ;;  %v6363_v18 = vpack.c.bf16 %v505_v9, %v500_v8  ;;  %v6619_v19 = vpack.c.bf16 %v507_v12, %v502_v10  ;;  %v552_v8 = vld [vmem:[#allocation2 + $0xba0] sm:$0xff]  ;;  %v566_v12 = vld [vmem:[#allocation2 + $0xc10] sm:$0xff] }
 0x126   :  { %v6621_v24 = vpack.c.bf16 %v518_v16, %v513_v15  ;;  %v6635_v4 = vpack.c.bf16 %v547_v62, %v542_v60  ;;  %v6637_v9 = vpack.c.bf16 %v558_v2, %v553_v1  ;;  %v557_v10 = vld [vmem:[#allocation2 + $0xbc8] sm:$0xff]  ;;  %v606_v60 = vld [vmem:[#allocation2 + $0xd50] sm:$0xff]  ;;  %v608_v62 = vld [vmem:[#allocation2 + $0xd60] sm:$0xff] }
 0x127   :  { %v6639_v16 = vpack.c.bf16 %v557_v10, %v552_v8  ;;  %v600_v2 = vld [vmem:[#allocation2 + $0xd20] sm:$0xff]  ;;  %v618_v10 = vld [vmem:[#allocation2 + $0xdb0] sm:$0xff] }
 0x128   :  { %6344 = vmatpush1.bf16.msra.mxu0 %v6343_v21  ;;  %6600 = vmatpush1.bf16.msra.mxu1 %v6599_v22  ;;  %v510_v21 = vld [vmem:[#allocation2 + $0xa50] sm:$0xff]  ;;  %v515_v22 = vld [vmem:[#allocation2 + $0xa78] sm:$0xff]  ;;  %v616_v8 = vld [vmem:[#allocation2 + $0xda0] sm:$0xff] }
 0x129   :  { %6346 = vmatprep.subr.bf16.mxu0 %v6345_v23  ;;  %6602 = vmatprep.subr.bf16.mxu1 %v6601_v27  ;;  %v512_v23 = vld [vmem:[#allocation2 + $0xa60] sm:$0xff]  ;;  %v526_v27 = vld [vmem:[#allocation2 + $0xad0] sm:$0xff]  ;;  %v6367_v31 = vpack.c.bf16 %v515_v22, %v510_v21  ;;  %v6641_v21 = vpack.c.bf16 %v568_v14, %v563_v13  ;;  %v567_v22 = vld [vmem:[#allocation2 + $0xc18] sm:$0xff] }
 0x12a   :  { %v6623_v32 = vpack.c.bf16 %v517_v25, %v512_v23  ;;  %v571_v23 = vld [vmem:[#allocation2 + $0xc38] sm:$0xff]  ;;  %v573_v25 = vld [vmem:[#allocation2 + $0xc48] sm:$0xff]  ;;  %v610_v14 = vld [vmem:[#allocation2 + $0xd70] sm:$0xff] }
 0x12c   :  { %6348 = vmatpush1.bf16.msra.mxu0 %v6347_v33  ;;  %6604 = vmatpush1.bf16.msra.mxu1 %v6603_v34  ;;  %v6369_v33 = vpack.c.bf16 %v526_v27, %v521_v26  ;;  %v520_v34 = vld [vmem:[#allocation2 + $0xaa0] sm:$0xff]  ;;  %v578_v26 = vld [vmem:[#allocation2 + $0xc70] sm:$0xff] }
 0x12d   :  { %6350 = vmatprep.subr.bf16.mxu0 %v6349_v35  ;;  %6606 = vmatprep.subr.bf16.mxu1 %v6605_v39  ;;  %v525_v35 = vld [vmem:[#allocation2 + $0xac8] sm:$0xff]  ;;  %v531_v39 = vld [vmem:[#allocation2 + $0xaf8] sm:$0xff] }
 0x12e   :  { %v6371_v43 = vpack.c.bf16 %v525_v35, %v520_v34  ;;  %v577_v34 = vld [vmem:[#allocation2 + $0xc68] sm:$0xff] }
 0x12f   :  { %v581_v35 = vld [vmem:[#allocation2 + $0xc88] sm:$0xff] }
 0x130   :  { %6352 = vmatpush1.bf16.msra.mxu0 %v6351_v45  ;;  %6608 = vmatpush1.bf16.msra.mxu1 %v6607_v46  ;;  %v6373_v45 = vpack.c.bf16 %v536_v40, %v531_v39  ;;  %v530_v46 = vld [vmem:[#allocation2 + $0xaf0] sm:$0xff]  ;;  %v6393_v41 = vpack.c.bf16 %v586_v36, %v581_v35 }
 0x131   :  { %6354 = vmatprep.subr.bf16.mxu0 %v6353_v47  ;;  %6610 = vmatprep.subr.bf16.mxu1 %v6609_v51  ;;  %v535_v47 = vld [vmem:[#allocation2 + $0xb18] sm:$0xff]  ;;  %v541_v51 = vld [vmem:[#allocation2 + $0xb48] sm:$0xff] }
 0x132   :  { %v6375_v55 = vpack.c.bf16 %v535_v47, %v530_v46  ;;  %v587_v46 = vld [vmem:[#allocation2 + $0xcb8] sm:$0xff] }
 0x133   :  { %v591_v47 = vld [vmem:[#allocation2 + $0xcd8] sm:$0xff] }
 0x134   :  { %6356 = vmatpush1.bf16.msra.mxu0 %v6355_v57  ;;  %6612 = vmatpush1.bf16.msra.mxu1 %v6611_v58  ;;  %v6377_v57 = vpack.c.bf16 %v546_v52, %v541_v51  ;;  %v540_v58 = vld [vmem:[#allocation2 + $0xb40] sm:$0xff]  ;;  %v6397_v53 = vpack.c.bf16 %v596_v48, %v591_v47 }
 0x135   :  { %6358 = vmatprep.subr.bf16.mxu0 %v6357_v59  ;;  %6614 = vmatprep.subr.bf16.mxu1 %v6613_v63  ;;  %v545_v59 = vld [vmem:[#allocation2 + $0xb68] sm:$0xff]  ;;  %v551_v63 = vld [vmem:[#allocation2 + $0xb98] sm:$0xff] }
 0x136   :  { %v6379_v3 = vpack.c.bf16 %v545_v59, %v540_v58  ;;  %v597_v58 = vld [vmem:[#allocation2 + $0xd08] sm:$0xff] }
 0x137   :  { %v601_v59 = vld [vmem:[#allocation2 + $0xd28] sm:$0xff] }
 0x138   :  { %6360 = vmatpush1.bf16.msra.mxu0 %v6359_v5  ;;  %6616 = vmatpush1.bf16.msra.mxu1 %v6615_v6  ;;  %v6381_v5 = vpack.c.bf16 %v556_v0, %v551_v63  ;;  %v550_v6 = vld [vmem:[#allocation2 + $0xb90] sm:$0xff]  ;;  %v6401_v1 = vpack.c.bf16 %v606_v60, %v601_v59 }
 0x139   :  { %6362 = vmatprep.subr.bf16.mxu0 %v6361_v7  ;;  %6618 = vmatprep.subr.bf16.mxu1 %v6617_v11  ;;  %v555_v7 = vld [vmem:[#allocation2 + $0xbb8] sm:$0xff]  ;;  %v561_v11 = vld [vmem:[#allocation2 + $0xbe8] sm:$0xff] }
 0x13a   :  { %v6383_v15 = vpack.c.bf16 %v555_v7, %v550_v6  ;;  %v607_v6 = vld [vmem:[#allocation2 + $0xd58] sm:$0xff] }
 0x13b   :  { %983 = vmatmul.mubr.f32.vlgmr.msra.gmra.mrb[0].mxu0 %v174_v17  ;;  %1267 = vmatmul.mubr.f32.vlgmr.msra.gmra.mrb[0].mxu1 %v174_v17  ;;  %v6385_v17 = vpack.c.bf16 %v566_v12, %v561_v11  ;;  %v611_v7 = vld [vmem:[#allocation2 + $0xd78] sm:$0xff] }
 0x13c   :  { %6364 = vmatpush1.bf16.msra.mxu0 %v6363_v18  ;;  %6620 = vmatpush1.bf16.msra.mxu1 %v6619_v19  ;;  %v560_v18 = vld [vmem:[#allocation2 + $0xbe0] sm:$0xff]  ;;  %v565_v19 = vld [vmem:[#allocation2 + $0xc08] sm:$0xff]  ;;  %v6405_v13 = vpack.c.bf16 %v616_v8, %v611_v7 }
 0x13d   :  { %6366 = vmatprep.subr.bf16.mxu0 %v6365_v20  ;;  %6622 = vmatprep.subr.bf16.mxu1 %v6621_v24  ;;  %v562_v20 = vld [vmem:[#allocation2 + $0xbf0] sm:$0xff]  ;;  %v576_v24 = vld [vmem:[#allocation2 + $0xc60] sm:$0xff]  ;;  %v6387_v27 = vpack.c.bf16 %v565_v19, %v560_v18  ;;  %v617_v18 = vld [vmem:[#allocation2 + $0xda8] sm:$0xff] }
 0x13e   :  { %1053 = vmatprep.mubr.f32.mxu0 %v177_v30  ;;  %1337 = vmatprep.mubr.f32.mxu1 %v177_v30  ;;  %v6643_v28 = vpack.c.bf16 %v567_v22, %v562_v20  ;;  %v6389_v29 = vpack.c.bf16 %v576_v24, %v571_v23  ;;  %v570_v30 = vld [vmem:[#allocation2 + $0xc30] sm:$0xff]  ;;  %v621_v19 = vld [vmem:[#allocation2 + $0xdc8] sm:$0xff]  ;;  %v628_v22 = vld [vmem:[#allocation2 + $0xe00] sm:$0xff] }
 0x13f   :  { %v626_v20 = vld [vmem:[#allocation2 + $0xdf0] sm:$0xff] }
 0x140   :  { %6368 = vmatpush1.bf16.msra.mxu0 %v6367_v31  ;;  %6624 = vmatpush1.bf16.msra.mxu1 %v6623_v32  ;;  %v575_v31 = vld [vmem:[#allocation2 + $0xc58] sm:$0xff]  ;;  %v572_v32 = vld [vmem:[#allocation2 + $0xc40] sm:$0xff] }
 0x141   :  { %6370 = vmatprep.subr.bf16.mxu0 %v6369_v33  ;;  %6626 = vmatprep.subr.bf16.mxu1 %v6625_v37  ;;  %v6645_v33 = vpack.c.bf16 %v578_v26, %v573_v25  ;;  %v583_v37 = vld [vmem:[#allocation2 + $0xc98] sm:$0xff]  ;;  %v6391_v39 = vpack.c.bf16 %v575_v31, %v570_v30  ;;  %v6647_v40 = vpack.c.bf16 %v577_v34, %v572_v32  ;;  %v620_v26 = vld [vmem:[#allocation2 + $0xdc0] sm:$0xff]  ;;  %v638_v34 = vld [vmem:[#allocation2 + $0xe50] sm:$0xff] }
 0x142   :  { %v6409_v25 = vpack.c.bf16 %v626_v20, %v621_v19  ;;  %v627_v30 = vld [vmem:[#allocation2 + $0xdf8] sm:$0xff]  ;;  %v636_v32 = vld [vmem:[#allocation2 + $0xe40] sm:$0xff] }
 0x143   :  { %v631_v31 = vld [vmem:[#allocation2 + $0xe18] sm:$0xff]  ;;  %v176_v19 = vld [vmem:[%s9271_s0 + $0x20] sm:$0xff] }
 0x144   :  { %6372 = vmatpush1.bf16.msra.mxu0 %v6371_v43  ;;  %6628 = vmatpush1.bf16.msra.mxu1 %v6627_v44  ;;  %v585_v43 = vld [vmem:[#allocation2 + $0xca8] sm:$0xff]  ;;  %v582_v44 = vld [vmem:[#allocation2 + $0xc90] sm:$0xff] }
 0x145   :  { %6374 = vmatprep.subr.bf16.mxu0 %v6373_v45  ;;  %6630 = vmatprep.subr.bf16.mxu1 %v6629_v49  ;;  %v6649_v45 = vpack.c.bf16 %v588_v38, %v583_v37  ;;  %v593_v49 = vld [vmem:[#allocation2 + $0xce8] sm:$0xff]  ;;  %v6395_v51 = vpack.c.bf16 %v585_v43, %v580_v42  ;;  %v6651_v52 = vpack.c.bf16 %v587_v46, %v582_v44  ;;  %v630_v38 = vld [vmem:[#allocation2 + $0xe10] sm:$0xff]  ;;  %v648_v46 = vld [vmem:[#allocation2 + $0xea0] sm:$0xff] }
 0x146   :  { %v6413_v37 = vpack.c.bf16 %v636_v32, %v631_v31  ;;  %v637_v42 = vld [vmem:[#allocation2 + $0xe48] sm:$0xff]  ;;  %v646_v44 = vld [vmem:[#allocation2 + $0xe90] sm:$0xff]  ;;  %v688_v31 = vld [vmem:[#allocation2 + $0xfe0] sm:$0xff] }
 0x147   :  { %v641_v43 = vld [vmem:[#allocation2 + $0xe68] sm:$0xff]  ;;  %v8762_v32 = vld [vmem:[%s9271_s0 + $0x38] sm:$0xff] }
 0x148   :  { %6376 = vmatpush1.bf16.msra.mxu0 %v6375_v55  ;;  %6632 = vmatpush1.bf16.msra.mxu1 %v6631_v56  ;;  %v595_v55 = vld [vmem:[#allocation2 + $0xcf8] sm:$0xff]  ;;  %v592_v56 = vld [vmem:[#allocation2 + $0xce0] sm:$0xff] }
 0x149   :  { %6378 = vmatprep.subr.bf16.mxu0 %v6377_v57  ;;  %6634 = vmatprep.subr.bf16.mxu1 %v6633_v61  ;;  %v6653_v57 = vpack.c.bf16 %v598_v50, %v593_v49  ;;  %v603_v61 = vld [vmem:[#allocation2 + $0xd38] sm:$0xff]  ;;  %v6399_v63 = vpack.c.bf16 %v595_v55, %v590_v54  ;;  %v6655_v0 = vpack.c.bf16 %v597_v58, %v592_v56  ;;  %v640_v50 = vld [vmem:[#allocation2 + $0xe60] sm:$0xff]  ;;  %v658_v58 = vld [vmem:[#allocation2 + $0xef0] sm:$0xff] }
 0x14a   :  { %v6417_v49 = vpack.c.bf16 %v646_v44, %v641_v43  ;;  %v647_v54 = vld [vmem:[#allocation2 + $0xe98] sm:$0xff]  ;;  %v656_v56 = vld [vmem:[#allocation2 + $0xee0] sm:$0xff]  ;;  %v693_v43 = vld [vmem:[#allocation2 + $0x1008] sm:$0xff] }
 0x14b   :  { %v651_v55 = vld [vmem:[#allocation2 + $0xeb8] sm:$0xff]  ;;  %v698_v44 = vld [vmem:[#allocation2 + $0x1030] sm:$0xff] }
 0x14c   :  { %6380 = vmatpush1.bf16.msra.mxu0 %v6379_v3  ;;  %6636 = vmatpush1.bf16.msra.mxu1 %v6635_v4  ;;  %v605_v3 = vld [vmem:[#allocation2 + $0xd48] sm:$0xff]  ;;  %v602_v4 = vld [vmem:[#allocation2 + $0xd30] sm:$0xff] }
 0x14d   :  { %6382 = vmatprep.subr.bf16.mxu0 %v6381_v5  ;;  %6638 = vmatprep.subr.bf16.mxu1 %v6637_v9  ;;  %v6657_v5 = vpack.c.bf16 %v608_v62, %v603_v61  ;;  %v613_v9 = vld [vmem:[#allocation2 + $0xd88] sm:$0xff]  ;;  %v6403_v11 = vpack.c.bf16 %v605_v3, %v600_v2  ;;  %v6659_v12 = vpack.c.bf16 %v607_v6, %v602_v4  ;;  %v650_v62 = vld [vmem:[#allocation2 + $0xeb0] sm:$0xff]  ;;  %v668_v6 = vld [vmem:[#allocation2 + $0xf40] sm:$0xff] }
 0x14e   :  { %v6421_v61 = vpack.c.bf16 %v656_v56, %v651_v55  ;;  %v657_v2 = vld [vmem:[#allocation2 + $0xee8] sm:$0xff]  ;;  %v666_v4 = vld [vmem:[#allocation2 + $0xf30] sm:$0xff]  ;;  %v703_v55 = vld [vmem:[#allocation2 + $0x1058] sm:$0xff] }
 0x14f   :  { %v661_v3 = vld [vmem:[#allocation2 + $0xf08] sm:$0xff]  ;;  %v708_v56 = vld [vmem:[#allocation2 + $0x1080] sm:$0xff] }
 0x150   :  { %6384 = vmatpush1.bf16.msra.mxu0 %v6383_v15  ;;  %6640 = vmatpush1.bf16.msra.mxu1 %v6639_v16  ;;  %v615_v15 = vld [vmem:[#allocation2 + $0xd98] sm:$0xff]  ;;  %v612_v16 = vld [vmem:[#allocation2 + $0xd80] sm:$0xff] }
 0x151   :  { %6386 = vmatprep.subr.bf16.mxu0 %v6385_v17  ;;  %6642 = vmatprep.subr.bf16.mxu1 %v6641_v21  ;;  %v6661_v17 = vpack.c.bf16 %v618_v10, %v613_v9  ;;  %v623_v21 = vld [vmem:[#allocation2 + $0xdd8] sm:$0xff]  ;;  %v6407_v23 = vpack.c.bf16 %v615_v15, %v610_v14  ;;  %v6663_v24 = vpack.c.bf16 %v617_v18, %v612_v16  ;;  %v660_v10 = vld [vmem:[#allocation2 + $0xf00] sm:$0xff]  ;;  %v678_v18 = vld [vmem:[#allocation2 + $0xf90] sm:$0xff] }
 0x152   :  { %v6425_v9 = vpack.c.bf16 %v666_v4, %v661_v3  ;;  %v667_v14 = vld [vmem:[#allocation2 + $0xf38] sm:$0xff]  ;;  %v676_v16 = vld [vmem:[#allocation2 + $0xf80] sm:$0xff]  ;;  %v713_v3 = vld [vmem:[#allocation2 + $0x10a8] sm:$0xff] }
 0x153   :  { %v671_v15 = vld [vmem:[#allocation2 + $0xf58] sm:$0xff]  ;;  %v718_v4 = vld [vmem:[#allocation2 + $0x10d0] sm:$0xff] }
 0x154   :  { %6388 = vmatpush1.bf16.msra.mxu0 %v6387_v27  ;;  %6644 = vmatpush1.bf16.msra.mxu1 %v6643_v28  ;;  %v625_v27 = vld [vmem:[#allocation2 + $0xde8] sm:$0xff]  ;;  %v622_v28 = vld [vmem:[#allocation2 + $0xdd0] sm:$0xff] }
 0x155   :  { %6390 = vmatprep.subr.bf16.mxu0 %v6389_v29  ;;  %6646 = vmatprep.subr.bf16.mxu1 %v6645_v33  ;;  %v6665_v29 = vpack.c.bf16 %v628_v22, %v623_v21  ;;  %v633_v33 = vld [vmem:[#allocation2 + $0xe28] sm:$0xff]  ;;  %v6411_v35 = vpack.c.bf16 %v625_v27, %v620_v26  ;;  %v6667_v36 = vpack.c.bf16 %v627_v30, %v622_v28  ;;  %v683_v30 = vld [vmem:[#allocation2 + $0xfb8] sm:$0xff] }
 0x156   :  { %v6429_v22 = vpack.c.bf16 %v676_v16, %v671_v15  ;;  %v677_v27 = vld [vmem:[#allocation2 + $0xf88] sm:$0xff]  ;;  %v723_v15 = vld [vmem:[#allocation2 + $0x10f8] sm:$0xff]  ;;  %v728_v16 = vld [vmem:[#allocation2 + $0x1120] sm:$0xff] }
 0x157   :  { %v681_v28 = vld [vmem:[#allocation2 + $0xfa8] sm:$0xff] }
 0x158   :  { %6392 = vmatpush1.bf16.msra.mxu0 %v6391_v39  ;;  %6648 = vmatpush1.bf16.msra.mxu1 %v6647_v40  ;;  %v635_v39 = vld [vmem:[#allocation2 + $0xe38] sm:$0xff]  ;;  %v632_v40 = vld [vmem:[#allocation2 + $0xe20] sm:$0xff] }
 0x159   :  { %6394 = vmatprep.subr.bf16.mxu0 %v6393_v41  ;;  %6650 = vmatprep.subr.bf16.mxu1 %v6649_v45  ;;  %v6669_v41 = vpack.c.bf16 %v638_v34, %v633_v33  ;;  %v643_v45 = vld [vmem:[#allocation2 + $0xe78] sm:$0xff]  ;;  %v6415_v47 = vpack.c.bf16 %v635_v39, %v630_v38  ;;  %v6671_v48 = vpack.c.bf16 %v637_v42, %v632_v40  ;;  %v682_v38 = vld [vmem:[#allocation2 + $0xfb0] sm:$0xff]  ;;  %v696_v42 = vld [vmem:[#allocation2 + $0x1020] sm:$0xff] }
 0x15a   :  { %v6689_v39 = vpack.c.bf16 %v688_v31, %v683_v30  ;;  %v687_v40 = vld [vmem:[#allocation2 + $0xfd8] sm:$0xff] }
 0x15c   :  { %6396 = vmatpush1.bf16.msra.mxu0 %v6395_v51  ;;  %6652 = vmatpush1.bf16.msra.mxu1 %v6651_v52  ;;  %v645_v51 = vld [vmem:[#allocation2 + $0xe88] sm:$0xff]  ;;  %v642_v52 = vld [vmem:[#allocation2 + $0xe70] sm:$0xff] }
 0x15d   :  { %6398 = vmatprep.subr.bf16.mxu0 %v6397_v53  ;;  %6654 = vmatprep.subr.bf16.mxu1 %v6653_v57  ;;  %v6673_v53 = vpack.c.bf16 %v648_v46, %v643_v45  ;;  %v653_v57 = vld [vmem:[#allocation2 + $0xec8] sm:$0xff]  ;;  %v6419_v59 = vpack.c.bf16 %v645_v51, %v640_v50  ;;  %v6675_v60 = vpack.c.bf16 %v647_v54, %v642_v52  ;;  %v692_v50 = vld [vmem:[#allocation2 + $0x1000] sm:$0xff]  ;;  %v706_v54 = vld [vmem:[#allocation2 + $0x1070] sm:$0xff] }
 0x15e   :  { %v6691_v46 = vpack.c.bf16 %v687_v40, %v682_v38  ;;  %v6693_v51 = vpack.c.bf16 %v698_v44, %v693_v43  ;;  %v697_v52 = vld [vmem:[#allocation2 + $0x1028] sm:$0xff]  ;;  %v743_v40 = vld [vmem:[#allocation2 + $0x1198] sm:$0xff] }
 0x15f   :  { %v741_v38 = vld [vmem:[#allocation2 + $0x1188] sm:$0xff] }
 0x160   :  { %6400 = vmatpush1.bf16.msra.mxu0 %v6399_v63  ;;  %6656 = vmatpush1.bf16.msra.mxu1 %v6655_v0  ;;  %v655_v63 = vld [vmem:[#allocation2 + $0xed8] sm:$0xff]  ;;  %v652_v0 = vld [vmem:[#allocation2 + $0xec0] sm:$0xff] }
 0x161   :  { %6402 = vmatprep.subr.bf16.mxu0 %v6401_v1  ;;  %6658 = vmatprep.subr.bf16.mxu1 %v6657_v5  ;;  %v6677_v1 = vpack.c.bf16 %v658_v58, %v653_v57  ;;  %v663_v5 = vld [vmem:[#allocation2 + $0xf18] sm:$0xff]  ;;  %v6423_v7 = vpack.c.bf16 %v655_v63, %v650_v62  ;;  %v6679_v8 = vpack.c.bf16 %v657_v2, %v652_v0  ;;  %v702_v62 = vld [vmem:[#allocation2 + $0x1050] sm:$0xff]  ;;  %v716_v2 = vld [vmem:[#allocation2 + $0x10c0] sm:$0xff] }
 0x162   :  { %v6695_v58 = vpack.c.bf16 %v697_v52, %v692_v50  ;;  %v6697_v63 = vpack.c.bf16 %v708_v56, %v703_v55  ;;  %v707_v0 = vld [vmem:[#allocation2 + $0x1078] sm:$0xff]  ;;  %v753_v52 = vld [vmem:[#allocation2 + $0x11e8] sm:$0xff] }
 0x163   :  { %v751_v50 = vld [vmem:[#allocation2 + $0x11d8] sm:$0xff] }
 0x164   :  { %6404 = vmatpush1.bf16.msra.mxu0 %v6403_v11  ;;  %6660 = vmatpush1.bf16.msra.mxu1 %v6659_v12  ;;  %v665_v11 = vld [vmem:[#allocation2 + $0xf28] sm:$0xff]  ;;  %v662_v12 = vld [vmem:[#allocation2 + $0xf10] sm:$0xff] }
 0x165   :  { %6406 = vmatprep.subr.bf16.mxu0 %v6405_v13  ;;  %6662 = vmatprep.subr.bf16.mxu1 %v6661_v17  ;;  %v6681_v13 = vpack.c.bf16 %v668_v6, %v663_v5  ;;  %v673_v17 = vld [vmem:[#allocation2 + $0xf68] sm:$0xff]  ;;  %v6427_v20 = vpack.c.bf16 %v665_v11, %v660_v10  ;;  %v6683_v21 = vpack.c.bf16 %v667_v14, %v662_v12  ;;  %v712_v10 = vld [vmem:[#allocation2 + $0x10a0] sm:$0xff]  ;;  %v726_v14 = vld [vmem:[#allocation2 + $0x1110] sm:$0xff] }
 0x166   :  { %v6685_v26 = vpack.c.bf16 %v678_v18, %v673_v17  ;;  %v6699_v6 = vpack.c.bf16 %v707_v0, %v702_v62  ;;  %v6701_v11 = vpack.c.bf16 %v718_v4, %v713_v3  ;;  %v717_v12 = vld [vmem:[#allocation2 + $0x10c8] sm:$0xff]  ;;  %v763_v0 = vld [vmem:[#allocation2 + $0x1238] sm:$0xff] }
 0x167   :  { %v6703_v18 = vpack.c.bf16 %v717_v12, %v712_v10  ;;  %v761_v62 = vld [vmem:[#allocation2 + $0x1228] sm:$0xff]  ;;  %v771_v10 = vld [vmem:[#allocation2 + $0x1278] sm:$0xff] }
 0x168   :  { %6408 = vmatpush1.bf16.msra.mxu0 %v6407_v23  ;;  %6664 = vmatpush1.bf16.msra.mxu1 %v6663_v24  ;;  %v670_v23 = vld [vmem:[#allocation2 + $0xf50] sm:$0xff]  ;;  %v675_v24 = vld [vmem:[#allocation2 + $0xf78] sm:$0xff]  ;;  %v773_v12 = vld [vmem:[#allocation2 + $0x1288] sm:$0xff] }
 0x169   :  { %6410 = vmatprep.subr.bf16.mxu0 %v6409_v25  ;;  %6666 = vmatprep.subr.bf16.mxu1 %v6665_v29  ;;  %v672_v25 = vld [vmem:[#allocation2 + $0xf60] sm:$0xff]  ;;  %v686_v29 = vld [vmem:[#allocation2 + $0xfd0] sm:$0xff]  ;;  %v6431_v33 = vpack.c.bf16 %v675_v24, %v670_v23  ;;  %v6705_v23 = vpack.c.bf16 %v728_v16, %v723_v15  ;;  %v727_v24 = vld [vmem:[#allocation2 + $0x1118] sm:$0xff] }
 0x16a   :  { %v6687_v34 = vpack.c.bf16 %v677_v27, %v672_v25  ;;  %v731_v25 = vld [vmem:[#allocation2 + $0x1138] sm:$0xff]  ;;  %v733_v27 = vld [vmem:[#allocation2 + $0x1148] sm:$0xff] }
 0x16c   :  { %6412 = vmatpush1.bf16.msra.mxu0 %v6411_v35  ;;  %6668 = vmatpush1.bf16.msra.mxu1 %v6667_v36  ;;  %v6433_v35 = vpack.c.bf16 %v686_v29, %v681_v28  ;;  %v680_v36 = vld [vmem:[#allocation2 + $0xfa0] sm:$0xff]  ;;  %v738_v28 = vld [vmem:[#allocation2 + $0x1170] sm:$0xff] }
 0x16d   :  { %6414 = vmatprep.subr.bf16.mxu0 %v6413_v37  ;;  %6670 = vmatprep.subr.bf16.mxu1 %v6669_v41  ;;  %v685_v37 = vld [vmem:[#allocation2 + $0xfc8] sm:$0xff]  ;;  %v691_v41 = vld [vmem:[#allocation2 + $0xff8] sm:$0xff] }
 0x16e   :  { %v6435_v45 = vpack.c.bf16 %v685_v37, %v680_v36  ;;  %v6709_v36 = vpack.c.bf16 %v738_v28, %v733_v27  ;;  %v737_v37 = vld [vmem:[#allocation2 + $0x1168] sm:$0xff] }
 0x170   :  { %6416 = vmatpush1.bf16.msra.mxu0 %v6415_v47  ;;  %6672 = vmatpush1.bf16.msra.mxu1 %v6671_v48  ;;  %v6437_v47 = vpack.c.bf16 %v696_v42, %v691_v41  ;;  %v690_v48 = vld [vmem:[#allocation2 + $0xff0] sm:$0xff]  ;;  %v748_v41 = vld [vmem:[#allocation2 + $0x11c0] sm:$0xff] }
 0x171   :  { %6418 = vmatprep.subr.bf16.mxu0 %v6417_v49  ;;  %6674 = vmatprep.subr.bf16.mxu1 %v6673_v53  ;;  %v695_v49 = vld [vmem:[#allocation2 + $0x1018] sm:$0xff]  ;;  %v701_v53 = vld [vmem:[#allocation2 + $0x1048] sm:$0xff] }
 0x172   :  { %v6439_v57 = vpack.c.bf16 %v695_v49, %v690_v48  ;;  %v6713_v48 = vpack.c.bf16 %v748_v41, %v743_v40  ;;  %v747_v49 = vld [vmem:[#allocation2 + $0x11b8] sm:$0xff] }
 0x174   :  { %6420 = vmatpush1.bf16.msra.mxu0 %v6419_v59  ;;  %6676 = vmatpush1.bf16.msra.mxu1 %v6675_v60  ;;  %v6441_v59 = vpack.c.bf16 %v706_v54, %v701_v53  ;;  %v700_v60 = vld [vmem:[#allocation2 + $0x1040] sm:$0xff]  ;;  %v758_v53 = vld [vmem:[#allocation2 + $0x1210] sm:$0xff] }
 0x175   :  { %6422 = vmatprep.subr.bf16.mxu0 %v6421_v61  ;;  %6678 = vmatprep.subr.bf16.mxu1 %v6677_v1  ;;  %v705_v61 = vld [vmem:[#allocation2 + $0x1068] sm:$0xff]  ;;  %v711_v1 = vld [vmem:[#allocation2 + $0x1098] sm:$0xff] }
 0x176   :  { %v6443_v5 = vpack.c.bf16 %v705_v61, %v700_v60  ;;  %v6717_v60 = vpack.c.bf16 %v758_v53, %v753_v52  ;;  %v757_v61 = vld [vmem:[#allocation2 + $0x1208] sm:$0xff] }
 0x178   :  { %6424 = vmatpush1.bf16.msra.mxu0 %v6423_v7  ;;  %6680 = vmatpush1.bf16.msra.mxu1 %v6679_v8  ;;  %v6445_v7 = vpack.c.bf16 %v716_v2, %v711_v1  ;;  %v710_v8 = vld [vmem:[#allocation2 + $0x1090] sm:$0xff]  ;;  %v768_v1 = vld [vmem:[#allocation2 + $0x1260] sm:$0xff] }
 0x179   :  { %6426 = vmatprep.subr.bf16.mxu0 %v6425_v9  ;;  %6682 = vmatprep.subr.bf16.mxu1 %v6681_v13  ;;  %v715_v9 = vld [vmem:[#allocation2 + $0x10b8] sm:$0xff]  ;;  %v721_v13 = vld [vmem:[#allocation2 + $0x10e8] sm:$0xff] }
 0x17a   :  { %v6447_v17 = vpack.c.bf16 %v715_v9, %v710_v8  ;;  %v6721_v8 = vpack.c.bf16 %v768_v1, %v763_v0  ;;  %v767_v9 = vld [vmem:[#allocation2 + $0x1258] sm:$0xff] }
 0x17b   :  { %1054 = vmatmul.mubr.f32.vlgmr.msra.gmra.mrb[0].mxu0 %v176_v19  ;;  %1338 = vmatmul.mubr.f32.vlgmr.msra.gmra.mrb[0].mxu1 %v176_v19  ;;  %v6449_v19 = vpack.c.bf16 %v726_v14, %v721_v13  ;;  %v778_v13 = vld [vmem:[#allocation2 + $0x12b0] sm:$0xff] }
 0x17c   :  { %6428 = vmatpush1.bf16.msra.mxu0 %v6427_v20  ;;  %6684 = vmatpush1.bf16.msra.mxu1 %v6683_v21  ;;  %v720_v20 = vld [vmem:[#allocation2 + $0x10e0] sm:$0xff]  ;;  %v725_v21 = vld [vmem:[#allocation2 + $0x1108] sm:$0xff] }
 0x17d   :  { %6430 = vmatprep.subr.bf16.mxu0 %v6429_v22  ;;  %6686 = vmatprep.subr.bf16.mxu1 %v6685_v26  ;;  %v722_v22 = vld [vmem:[#allocation2 + $0x10f0] sm:$0xff]  ;;  %v736_v26 = vld [vmem:[#allocation2 + $0x1160] sm:$0xff]  ;;  %v6451_v29 = vpack.c.bf16 %v725_v21, %v720_v20  ;;  %v6725_v20 = vpack.c.bf16 %v778_v13, %v773_v12  ;;  %v777_v21 = vld [vmem:[#allocation2 + $0x12a8] sm:$0xff] }
 0x17e   :  { %1124 = vmatprep.mubr.f32.mxu0 %v8762_v32  ;;  %1408 = vmatprep.mubr.f32.mxu1 %v8762_v32  ;;  %v6707_v30 = vpack.c.bf16 %v727_v24, %v722_v22  ;;  %v6453_v31 = vpack.c.bf16 %v736_v26, %v731_v25  ;;  %v781_v22 = vld [vmem:[#allocation2 + $0x12c8] sm:$0xff]  ;;  %v783_v24 = vld [vmem:[#allocation2 + $0x12d8] sm:$0xff]  ;;  %v788_v25 = vld [vmem:[#allocation2 + $0x1300] sm:$0xff] }
 0x180   :  { %6432 = vmatpush1.bf16.msra.mxu0 %v6431_v33  ;;  %6688 = vmatpush1.bf16.msra.mxu1 %v6687_v34  ;;  %v730_v33 = vld [vmem:[#allocation2 + $0x1130] sm:$0xff]  ;;  %v735_v34 = vld [vmem:[#allocation2 + $0x1158] sm:$0xff] }
 0x181   :  { %6434 = vmatprep.subr.bf16.mxu0 %v6433_v35  ;;  %6690 = vmatprep.subr.bf16.mxu1 %v6689_v39  ;;  %v732_v35 = vld [vmem:[#allocation2 + $0x1140] sm:$0xff]  ;;  %v746_v39 = vld [vmem:[#allocation2 + $0x11b0] sm:$0xff]  ;;  %v6455_v42 = vpack.c.bf16 %v735_v34, %v730_v33  ;;  %v6729_v33 = vpack.c.bf16 %v788_v25, %v783_v24  ;;  %v787_v34 = vld [vmem:[#allocation2 + $0x12f8] sm:$0xff] }
 0x182   :  { %v6711_v43 = vpack.c.bf16 %v737_v37, %v732_v35  ;;  %v6457_v44 = vpack.c.bf16 %v746_v39, %v741_v38  ;;  %v791_v35 = vld [vmem:[#allocation2 + $0x1318] sm:$0xff]  ;;  %v793_v37 = vld [vmem:[#allocation2 + $0x1328] sm:$0xff]  ;;  %v798_v38 = vld [vmem:[#allocation2 + $0x1350] sm:$0xff] }
 0x184   :  { %6436 = vmatpush1.bf16.msra.mxu0 %v6435_v45  ;;  %6692 = vmatpush1.bf16.msra.mxu1 %v6691_v46  ;;  %v740_v45 = vld [vmem:[#allocation2 + $0x1180] sm:$0xff]  ;;  %v745_v46 = vld [vmem:[#allocation2 + $0x11a8] sm:$0xff] }
 0x185   :  { %6438 = vmatprep.subr.bf16.mxu0 %v6437_v47  ;;  %6694 = vmatprep.subr.bf16.mxu1 %v6693_v51  ;;  %v742_v47 = vld [vmem:[#allocation2 + $0x1190] sm:$0xff]  ;;  %v756_v51 = vld [vmem:[#allocation2 + $0x1200] sm:$0xff]  ;;  %v6459_v54 = vpack.c.bf16 %v745_v46, %v740_v45  ;;  %v6733_v45 = vpack.c.bf16 %v798_v38, %v793_v37  ;;  %v797_v46 = vld [vmem:[#allocation2 + $0x1348] sm:$0xff] }
 0x186   :  { %v6715_v55 = vpack.c.bf16 %v747_v49, %v742_v47  ;;  %v6461_v56 = vpack.c.bf16 %v756_v51, %v751_v50  ;;  %v801_v47 = vld [vmem:[#allocation2 + $0x1368] sm:$0xff]  ;;  %v803_v49 = vld [vmem:[#allocation2 + $0x1378] sm:$0xff]  ;;  %v808_v50 = vld [vmem:[#allocation2 + $0x13a0] sm:$0xff] }
 0x188   :  { %6440 = vmatpush1.bf16.msra.mxu0 %v6439_v57  ;;  %6696 = vmatpush1.bf16.msra.mxu1 %v6695_v58  ;;  %v750_v57 = vld [vmem:[#allocation2 + $0x11d0] sm:$0xff]  ;;  %v755_v58 = vld [vmem:[#allocation2 + $0x11f8] sm:$0xff] }
 0x189   :  { %6442 = vmatprep.subr.bf16.mxu0 %v6441_v59  ;;  %6698 = vmatprep.subr.bf16.mxu1 %v6697_v63  ;;  %v752_v59 = vld [vmem:[#allocation2 + $0x11e0] sm:$0xff]  ;;  %v766_v63 = vld [vmem:[#allocation2 + $0x1250] sm:$0xff]  ;;  %v6463_v2 = vpack.c.bf16 %v755_v58, %v750_v57  ;;  %v6737_v57 = vpack.c.bf16 %v808_v50, %v803_v49  ;;  %v807_v58 = vld [vmem:[#allocation2 + $0x1398] sm:$0xff] }
 0x18a   :  { %v6719_v3 = vpack.c.bf16 %v757_v61, %v752_v59  ;;  %v6465_v4 = vpack.c.bf16 %v766_v63, %v761_v62  ;;  %v811_v59 = vld [vmem:[#allocation2 + $0x13b8] sm:$0xff]  ;;  %v813_v61 = vld [vmem:[#allocation2 + $0x13c8] sm:$0xff]  ;;  %v818_v62 = vld [vmem:[#allocation2 + $0x13f0] sm:$0xff] }
 0x18b   :  { %v459_v49 = vld [vmem:[#allocation2 + $0x8b8] sm:$0xff] }
 0x18c   :  { %6444 = vmatpush1.bf16.msra.mxu0 %v6443_v5  ;;  %6700 = vmatpush1.bf16.msra.mxu1 %v6699_v6  ;;  %v760_v5 = vld [vmem:[#allocation2 + $0x1220] sm:$0xff]  ;;  %v765_v6 = vld [vmem:[#allocation2 + $0x1248] sm:$0xff]  ;;  %v8284_v50 = vld [vmem:[%s9271_s0 + $0x18] sm:$0xff] }
 0x18d   :  { %6446 = vmatprep.subr.bf16.mxu0 %v6445_v7  ;;  %6702 = vmatprep.subr.bf16.mxu1 %v6701_v11  ;;  %v762_v7 = vld [vmem:[#allocation2 + $0x1230] sm:$0xff]  ;;  %v776_v11 = vld [vmem:[#allocation2 + $0x12a0] sm:$0xff]  ;;  %v6467_v14 = vpack.c.bf16 %v765_v6, %v760_v5  ;;  %v6741_v5 = vpack.c.bf16 %v818_v62, %v813_v61  ;;  %v817_v6 = vld [vmem:[#allocation2 + $0x13e8] sm:$0xff] }
 0x18e   :  { %v6723_v15 = vpack.c.bf16 %v767_v9, %v762_v7  ;;  %v6469_v16 = vpack.c.bf16 %v776_v11, %v771_v10  ;;  %v264_v7 = vld [vmem:[#allocation2 + $0x2a0] sm:$0xff]  ;;  %v429_v10 = vld [vmem:[#allocation2 + $0x7c8] sm:$0xff] }
 0x18f   :  { %v424_v9 = vld [vmem:[#allocation2 + $0x7a0] sm:$0xff]  ;;  %v469_v62 = vld [vmem:[#allocation2 + $0x908] sm:$0xff] }
 0x190   :  { %6448 = vmatpush1.bf16.msra.mxu0 %v6447_v17  ;;  %6704 = vmatpush1.bf16.msra.mxu1 %v6703_v18  ;;  %v770_v17 = vld [vmem:[#allocation2 + $0x1270] sm:$0xff]  ;;  %v775_v18 = vld [vmem:[#allocation2 + $0x1298] sm:$0xff]  ;;  %v464_v61 = vld [vmem:[#allocation2 + $0x8e0] sm:$0xff] }
 0x191   :  { %6450 = vmatprep.subr.bf16.mxu0 %v6449_v19  ;;  %6706 = vmatprep.subr.bf16.mxu1 %v6705_v23  ;;  %v772_v19 = vld [vmem:[#allocation2 + $0x1280] sm:$0xff]  ;;  %v786_v23 = vld [vmem:[#allocation2 + $0x12f0] sm:$0xff]  ;;  %v6471_v26 = vpack.c.bf16 %v775_v18, %v770_v17  ;;  %v6777_v17 = vpack.c.bf16 %v429_v10, %v424_v9  ;;  %v349_v18 = vld [vmem:[#allocation2 + $0x548] sm:$0xff] }
 0x192   :  { %v6727_v27 = vpack.c.bf16 %v777_v21, %v772_v19  ;;  %v6473_v28 = vpack.c.bf16 %v786_v23, %v781_v22  ;;  %v274_v19 = vld [vmem:[#allocation2 + $0x2f0] sm:$0xff]  ;;  %v439_v22 = vld [vmem:[#allocation2 + $0x818] sm:$0xff] }
 0x193   :  { %v434_v21 = vld [vmem:[#allocation2 + $0x7f0] sm:$0xff]  ;;  %v479_v10 = vld [vmem:[#allocation2 + $0x958] sm:$0xff] }
 0x194   :  { %6452 = vmatpush1.bf16.msra.mxu0 %v6451_v29  ;;  %6708 = vmatpush1.bf16.msra.mxu1 %v6707_v30  ;;  %v780_v29 = vld [vmem:[#allocation2 + $0x12c0] sm:$0xff]  ;;  %v785_v30 = vld [vmem:[#allocation2 + $0x12e8] sm:$0xff]  ;;  %v8769_v23 = vld [vmem:[%s9271_s0 + $0x30] sm:$0xff] }
 0x195   :  { %6454 = vmatprep.subr.bf16.mxu0 %v6453_v31  ;;  %6710 = vmatprep.subr.bf16.mxu1 %v6709_v36  ;;  %v782_v31 = vld [vmem:[#allocation2 + $0x12d0] sm:$0xff]  ;;  %v796_v36 = vld [vmem:[#allocation2 + $0x1340] sm:$0xff]  ;;  %v6475_v39 = vpack.c.bf16 %v785_v30, %v780_v29  ;;  %v6781_v30 = vpack.c.bf16 %v439_v22, %v434_v21  ;;  %v489_v22 = vld [vmem:[#allocation2 + $0x9a8] sm:$0xff] }
 0x196   :  { %v6731_v40 = vpack.c.bf16 %v787_v34, %v782_v31  ;;  %v6477_v41 = vpack.c.bf16 %v796_v36, %v791_v35  ;;  %v354_v29 = vld [vmem:[#allocation2 + $0x570] sm:$0xff]  ;;  %v359_v31 = vld [vmem:[#allocation2 + $0x598] sm:$0xff]  ;;  %v289_v34 = vld [vmem:[#allocation2 + $0x368] sm:$0xff] }
 0x197   :  { %v444_v35 = vld [vmem:[#allocation2 + $0x840] sm:$0xff]  ;;  %v449_v36 = vld [vmem:[#allocation2 + $0x868] sm:$0xff]  ;;  %v6783_v38 = vpack.c.bf16 %v359_v31, %v354_v29  ;;  %v474_v9 = vld [vmem:[#allocation2 + $0x930] sm:$0xff] }
 0x198   :  { %6456 = vmatpush1.bf16.msra.mxu0 %v6455_v42  ;;  %6712 = vmatpush1.bf16.msra.mxu1 %v6711_v43  ;;  %v790_v42 = vld [vmem:[#allocation2 + $0x1310] sm:$0xff]  ;;  %v795_v43 = vld [vmem:[#allocation2 + $0x1338] sm:$0xff]  ;;  %v484_v21 = vld [vmem:[#allocation2 + $0x980] sm:$0xff] }
 0x199   :  { %6458 = vmatprep.subr.bf16.mxu0 %v6457_v44  ;;  %6714 = vmatprep.subr.bf16.mxu1 %v6713_v48  ;;  %v792_v44 = vld [vmem:[#allocation2 + $0x1320] sm:$0xff]  ;;  %v806_v48 = vld [vmem:[#allocation2 + $0x1390] sm:$0xff]  ;;  %v6479_v51 = vpack.c.bf16 %v795_v43, %v790_v42  ;;  %v6785_v43 = vpack.c.bf16 %v449_v36, %v444_v35  ;;  %v409_v31 = vld [vmem:[#allocation2 + $0x728] sm:$0xff] }
 0x19a   :  { %v6735_v52 = vpack.c.bf16 %v797_v46, %v792_v44  ;;  %v6481_v53 = vpack.c.bf16 %v806_v48, %v801_v47  ;;  %v364_v42 = vld [vmem:[#allocation2 + $0x5c0] sm:$0xff]  ;;  %v369_v44 = vld [vmem:[#allocation2 + $0x5e8] sm:$0xff]  ;;  %v299_v46 = vld [vmem:[#allocation2 + $0x3b8] sm:$0xff] }
 0x19b   :  { %v8283_v47 = vld [vmem:[%s9271_s0 + $0x8] sm:$0xff]  ;;  %v454_v48 = vld [vmem:[#allocation2 + $0x890] sm:$0xff]  ;;  %v404_v29 = vld [vmem:[#allocation2 + $0x700] sm:$0xff] }
 0x19c   :  { %6460 = vmatpush1.bf16.msra.mxu0 %v6459_v54  ;;  %6716 = vmatpush1.bf16.msra.mxu1 %v6715_v55  ;;  %v800_v54 = vld [vmem:[#allocation2 + $0x1360] sm:$0xff]  ;;  %v805_v55 = vld [vmem:[#allocation2 + $0x1388] sm:$0xff]  ;;  %v494_v35 = vld [vmem:[#allocation2 + $0x9d0] sm:$0xff] }
 0x19d   :  { %6462 = vmatprep.subr.bf16.mxu0 %v6461_v56  ;;  %6718 = vmatprep.subr.bf16.mxu1 %v6717_v60  ;;  %v802_v56 = vld [vmem:[#allocation2 + $0x1370] sm:$0xff]  ;;  %v816_v60 = vld [vmem:[#allocation2 + $0x13e0] sm:$0xff]  ;;  %v6483_v63 = vpack.c.bf16 %v805_v55, %v800_v54  ;;  %v219_v55 = vld [vmem:[#allocation2 + $0x138] sm:$0xff] }
 0x19e   :  { %v6739_v0 = vpack.c.bf16 %v807_v58, %v802_v56  ;;  %v6485_v1 = vpack.c.bf16 %v816_v60, %v811_v59  ;;  %v214_v54 = vld [vmem:[#allocation2 + $0x110] sm:$0xff]  ;;  %v379_v58 = vld [vmem:[#allocation2 + $0x638] sm:$0xff]  ;;  %v304_v59 = vld [vmem:[#allocation2 + $0x3e0] sm:$0xff] }
 0x19f   :  { %v374_v56 = vld [vmem:[#allocation2 + $0x610] sm:$0xff]  ;;  %v309_v60 = vld [vmem:[#allocation2 + $0x408] sm:$0xff]  ;;  %v499_v36 = vld [vmem:[#allocation2 + $0x9f8] sm:$0xff] }
 0x1a0   :  { %6464 = vmatpush1.bf16.msra.mxu0 %v6463_v2  ;;  %6720 = vmatpush1.bf16.msra.mxu1 %v6719_v3  ;;  %v810_v2 = vld [vmem:[#allocation2 + $0x13b0] sm:$0xff]  ;;  %v815_v3 = vld [vmem:[#allocation2 + $0x13d8] sm:$0xff] }
 0x1a1   :  { %6466 = vmatprep.subr.bf16.mxu0 %v6465_v4  ;;  %6722 = vmatprep.subr.bf16.mxu1 %v6721_v8  ;;  %v812_v4 = vld [vmem:[#allocation2 + $0x13c0] sm:$0xff]  ;;  %v269_v8 = vld [vmem:[#allocation2 + $0x2c8] sm:$0xff]  ;;  %v6487_v11 = vpack.c.bf16 %v815_v3, %v810_v2 }
 0x1a2   :  { %v6743_v12 = vpack.c.bf16 %v817_v6, %v812_v4  ;;  %v6745_v13 = vpack.c.bf16 %v269_v8, %v264_v7  ;;  %v224_v2 = vld [vmem:[#allocation2 + $0x160] sm:$0xff]  ;;  %v229_v3 = vld [vmem:[#allocation2 + $0x188] sm:$0xff]  ;;  %v314_v7 = vld [vmem:[#allocation2 + $0x430] sm:$0xff] }
 0x1a3   :  { %v384_v4 = vld [vmem:[#allocation2 + $0x660] sm:$0xff]  ;;  %v389_v6 = vld [vmem:[#allocation2 + $0x688] sm:$0xff]  ;;  %v319_v8 = vld [vmem:[#allocation2 + $0x458] sm:$0xff] }
 0x1a4   :  { %6468 = vmatpush1.bf16.msra.mxu0 %v6467_v14  ;;  %6724 = vmatpush1.bf16.msra.mxu1 %v6723_v15  ;;  %v184_v14 = vld [vmem:[#allocation2 + $0x20] sm:$0xff]  ;;  %v189_v15 = vld [vmem:[#allocation2 + $0x48] sm:$0xff] }
 0x1a5   :  { %6470 = vmatprep.subr.bf16.mxu0 %v6469_v16  ;;  %6726 = vmatprep.subr.bf16.mxu1 %v6725_v20  ;;  %v344_v16 = vld [vmem:[#allocation2 + $0x520] sm:$0xff]  ;;  %v279_v20 = vld [vmem:[#allocation2 + $0x318] sm:$0xff]  ;;  %v6747_v24 = vpack.c.bf16 %v189_v15, %v184_v14  ;;  %v234_v14 = vld [vmem:[#allocation2 + $0x1b0] sm:$0xff] }
 0x1a6   :  { %v6779_v25 = vpack.c.bf16 %v349_v18, %v344_v16  ;;  %v239_v15 = vld [vmem:[#allocation2 + $0x1d8] sm:$0xff]  ;;  %v394_v16 = vld [vmem:[#allocation2 + $0x6b0] sm:$0xff] }
 0x1a7   :  { %v399_v18 = vld [vmem:[#allocation2 + $0x6d8] sm:$0xff] }
 0x1a8   :  { %6472 = vmatpush1.bf16.msra.mxu0 %v6471_v26  ;;  %6728 = vmatpush1.bf16.msra.mxu1 %v6727_v27  ;;  %v6749_v26 = vpack.c.bf16 %v279_v20, %v274_v19  ;;  %v194_v27 = vld [vmem:[#allocation2 + $0x70] sm:$0xff]  ;;  %v324_v19 = vld [vmem:[#allocation2 + $0x480] sm:$0xff]  ;;  %v329_v20 = vld [vmem:[#allocation2 + $0x4a8] sm:$0xff] }
 0x1a9   :  { %6474 = vmatprep.subr.bf16.mxu0 %v6473_v28  ;;  %6730 = vmatprep.subr.bf16.mxu1 %v6729_v33  ;;  %v199_v28 = vld [vmem:[#allocation2 + $0x98] sm:$0xff]  ;;  %v284_v33 = vld [vmem:[#allocation2 + $0x340] sm:$0xff] }
 0x1aa   :  { %v6751_v37 = vpack.c.bf16 %v199_v28, %v194_v27  ;;  %v244_v27 = vld [vmem:[#allocation2 + $0x200] sm:$0xff]  ;;  %v249_v28 = vld [vmem:[#allocation2 + $0x228] sm:$0xff] }
 0x1ac   :  { %6476 = vmatpush1.bf16.msra.mxu0 %v6475_v39  ;;  %6732 = vmatpush1.bf16.msra.mxu1 %v6731_v40  ;;  %v6753_v39 = vpack.c.bf16 %v289_v34, %v284_v33  ;;  %v204_v40 = vld [vmem:[#allocation2 + $0xc0] sm:$0xff]  ;;  %v334_v33 = vld [vmem:[#allocation2 + $0x4d0] sm:$0xff]  ;;  %v339_v34 = vld [vmem:[#allocation2 + $0x4f8] sm:$0xff] }
 0x1ad   :  { %6478 = vmatprep.subr.bf16.mxu0 %v6477_v41  ;;  %6734 = vmatprep.subr.bf16.mxu1 %v6733_v45  ;;  %v209_v41 = vld [vmem:[#allocation2 + $0xe8] sm:$0xff]  ;;  %v294_v45 = vld [vmem:[#allocation2 + $0x390] sm:$0xff] }
 0x1b0   :  { %6480 = vmatpush1.bf16.msra.mxu0 %v6479_v51  ;;  %6736 = vmatpush1.bf16.msra.mxu1 %v6735_v52  ;;  %v6755_v51 = vpack.c.bf16 %v209_v41, %v204_v40  ;;  %v6787_v52 = vpack.c.bf16 %v369_v44, %v364_v42  ;;  %v254_v40 = vld [vmem:[#allocation2 + $0x250] sm:$0xff]  ;;  %v259_v41 = vld [vmem:[#allocation2 + $0x278] sm:$0xff] }
 0x1b1   :  { %6482 = vmatprep.subr.bf16.mxu0 %v6481_v53  ;;  %6738 = vmatprep.subr.bf16.mxu1 %v6737_v57  ;;  %v6757_v53 = vpack.c.bf16 %v299_v46, %v294_v45  ;;  %v6789_v57 = vpack.c.bf16 %v459_v49, %v454_v48  ;;  %v414_v42 = vld [vmem:[#allocation2 + $0x750] sm:$0xff]  ;;  %v419_v44 = vld [vmem:[#allocation2 + $0x778] sm:$0xff]  ;;  %v584_v45 = vld [vmem:[#allocation2 + $0xca0] sm:$0xff]  ;;  %v6775_v49 = vpack.c.bf16 %v259_v41, %v254_v40 }
 0x1b2   :  { %v589_v46 = vld [vmem:[#allocation2 + $0xcc8] sm:$0xff]  ;;  %v544_v40 = vld [vmem:[#allocation2 + $0xb60] sm:$0xff] }
 0x1b3   :  { %v749_v48 = vld [vmem:[#allocation2 + $0x11c8] sm:$0xff] }
 0x1b4   :  { %6484 = vmatpush1.bf16.msra.mxu0 %v6483_v63  ;;  %6740 = vmatpush1.bf16.msra.mxu1 %v6739_v0  ;;  %v6759_v63 = vpack.c.bf16 %v219_v55, %v214_v54  ;;  %v6791_v0 = vpack.c.bf16 %v379_v58, %v374_v56  ;;  %v664_v54 = vld [vmem:[#allocation2 + $0xf20] sm:$0xff]  ;;  %v669_v56 = vld [vmem:[#allocation2 + $0xf48] sm:$0xff]  ;;  %v599_v58 = vld [vmem:[#allocation2 + $0xd18] sm:$0xff] }
 0x1b5   :  { %6486 = vmatprep.subr.bf16.mxu0 %v6485_v1  ;;  %6742 = vmatprep.subr.bf16.mxu1 %v6741_v5  ;;  %v6761_v1 = vpack.c.bf16 %v309_v60, %v304_v59  ;;  %v6793_v5 = vpack.c.bf16 %v469_v62, %v464_v61  ;;  %v754_v59 = vld [vmem:[#allocation2 + $0x11f0] sm:$0xff]  ;;  %v759_v60 = vld [vmem:[#allocation2 + $0x1218] sm:$0xff]  ;;  %v6843_v62 = vpack.c.bf16 %v669_v56, %v664_v54  ;;  %v549_v41 = vld [vmem:[#allocation2 + $0xb88] sm:$0xff] }
 0x1b6   :  { %v714_v54 = vld [vmem:[#allocation2 + $0x10b0] sm:$0xff]  ;;  %v719_v56 = vld [vmem:[#allocation2 + $0x10d8] sm:$0xff] }
 0x1b8   :  { %6488 = vmatpush1.bf16.msra.mxu0 %v6487_v11  ;;  %6744 = vmatpush1.bf16.msra.mxu1 %v6743_v12  ;;  %v6763_v11 = vpack.c.bf16 %v229_v3, %v224_v2  ;;  %v6795_v12 = vpack.c.bf16 %v389_v6, %v384_v4  ;;  %v674_v2 = vld [vmem:[#allocation2 + $0xf70] sm:$0xff]  ;;  %v6845_v3 = vpack.c.bf16 %v759_v60, %v754_v59  ;;  %v679_v4 = vld [vmem:[#allocation2 + $0xf98] sm:$0xff]  ;;  %v609_v6 = vld [vmem:[#allocation2 + $0xd68] sm:$0xff] }
 0x1b9   :  { %6746 = vmatprep.subr.bf16.mxu0 %v6745_v13  ;;  %6778 = vmatprep.subr.bf16.mxu1 %v6777_v17  ;;  %v6765_v13 = vpack.c.bf16 %v319_v8, %v314_v7  ;;  %v6797_v17 = vpack.c.bf16 %v479_v10, %v474_v9  ;;  %v8285_v7 = vld [vmem:[%s9271_s0] sm:$0xff]  ;;  %v769_v9 = vld [vmem:[#allocation2 + $0x1268] sm:$0xff]  ;;  %v8286_v10 = vld [vmem:[%s9271_s0 + $0x10] sm:$0xff] }
 0x1ba   :  { %v764_v8 = vld [vmem:[#allocation2 + $0x1240] sm:$0xff]  ;;  %v809_v60 = vld [vmem:[#allocation2 + $0x13a8] sm:$0xff] }
 0x1bb   :  { %1125 = vmatmul.mubr.f32.vlgmr.msra.gmra.mrb[0].mxu0 %v8769_v23  ;;  %1409 = vmatmul.mubr.f32.vlgmr.msra.gmra.mrb[0].mxu1 %v8769_v23  ;;  %v804_v59 = vld [vmem:[#allocation2 + $0x1380] sm:$0xff] }
 0x1bc   :  { %6748 = vmatpush3.bf16.msra.mxu0 %v6747_v24  ;;  %6780 = vmatpush3.bf16.msra.mxu1 %v6779_v25  ;;  %v6767_v24 = vpack.c.bf16 %v239_v15, %v234_v14  ;;  %v6799_v25 = vpack.c.bf16 %v399_v18, %v394_v16  ;;  %v524_v14 = vld [vmem:[#allocation2 + $0xac0] sm:$0xff]  ;;  %v529_v15 = vld [vmem:[#allocation2 + $0xae8] sm:$0xff] }
 0x1bd   :  { %6750 = vmatprep.subr.bf16.mxu0 %v6749_v26  ;;  %6782 = vmatprep.subr.bf16.mxu1 %v6781_v30  ;;  %v6769_v26 = vpack.c.bf16 %v329_v20, %v324_v19  ;;  %v6801_v30 = vpack.c.bf16 %v489_v22, %v484_v21  ;;  %v684_v16 = vld [vmem:[#allocation2 + $0xfc0] sm:$0xff]  ;;  %v689_v18 = vld [vmem:[#allocation2 + $0xfe8] sm:$0xff]  ;;  %v614_v19 = vld [vmem:[#allocation2 + $0xd90] sm:$0xff] }
 0x1be   :  { %1479 = vmatprep.mubr.f32.mxu0 %v8283_v47  ;;  %1549 = vmatprep.mubr.f32.mxu1 %v8284_v50  ;;  %v744_v47 = vld [vmem:[#allocation2 + $0x11a0] sm:$0xff]  ;;  %v6807_v50 = vpack.c.bf16 %v419_v44, %v414_v42  ;;  %v619_v20 = vld [vmem:[#allocation2 + $0xdb8] sm:$0xff]  ;;  %v8287_v21 = vld [vmem:[%s9271_s0 + $0x28] sm:$0xff] }
 0x1bf   :  { %v6841_v55 = vpack.c.bf16 %v749_v48, %v744_v47  ;;  %v774_v22 = vld [vmem:[#allocation2 + $0x1290] sm:$0xff]  ;;  %v704_v42 = vld [vmem:[#allocation2 + $0x1060] sm:$0xff]  ;;  %v709_v44 = vld [vmem:[#allocation2 + $0x1088] sm:$0xff] }
 0x1c0   :  { %6752 = vmatpush3.bf16.msra.mxu0 %v6751_v37  ;;  %6784 = vmatpush3.bf16.msra.mxu1 %v6783_v38  ;;  %v6771_v37 = vpack.c.bf16 %v249_v28, %v244_v27  ;;  %v6803_v38 = vpack.c.bf16 %v409_v31, %v404_v29  ;;  %v6821_v27 = vpack.c.bf16 %v619_v20, %v614_v19  ;;  %v534_v28 = vld [vmem:[#allocation2 + $0xb10] sm:$0xff]  ;;  %v539_v29 = vld [vmem:[#allocation2 + $0xb38] sm:$0xff]  ;;  %v8288_v19 = vld [vmem:[%s9271_s0 + $0x20] sm:$0xff] }
 0x1c1   :  { %6754 = vmatprep.subr.bf16.mxu0 %v6753_v39  ;;  %6786 = vmatprep.subr.bf16.mxu1 %v6785_v43  ;;  %v6773_v39 = vpack.c.bf16 %v339_v34, %v334_v33  ;;  %v6805_v43 = vpack.c.bf16 %v499_v36, %v494_v35  ;;  %v699_v33 = vld [vmem:[#allocation2 + $0x1038] sm:$0xff]  ;;  %v624_v34 = vld [vmem:[#allocation2 + $0xde0] sm:$0xff]  ;;  %v629_v35 = vld [vmem:[#allocation2 + $0xe08] sm:$0xff] }
 0x1c2   :  { %v784_v36 = vld [vmem:[#allocation2 + $0x12e0] sm:$0xff]  ;;  %v794_v47 = vld [vmem:[#allocation2 + $0x1330] sm:$0xff]  ;;  %v799_v48 = vld [vmem:[#allocation2 + $0x1358] sm:$0xff] }
 0x1c4   :  { %6756 = vmatpush3.bf16.msra.mxu0 %v6755_v51  ;;  %6788 = vmatpush3.bf16.msra.mxu1 %v6787_v52  ;;  %v6809_v51 = vpack.c.bf16 %v589_v46, %v584_v45  ;;  %v504_v52 = vld [vmem:[#allocation2 + $0xa20] sm:$0xff]  ;;  %v634_v45 = vld [vmem:[#allocation2 + $0xe30] sm:$0xff]  ;;  %v639_v46 = vld [vmem:[#allocation2 + $0xe58] sm:$0xff] }
 0x1c5   :  { %6758 = vmatprep.subr.bf16.mxu0 %v6757_v53  ;;  %6790 = vmatprep.subr.bf16.mxu1 %v6789_v57  ;;  %v509_v53 = vld [vmem:[#allocation2 + $0xa48] sm:$0xff]  ;;  %v594_v57 = vld [vmem:[#allocation2 + $0xcf0] sm:$0xff] }
 0x1c6   :  { %v6811_v61 = vpack.c.bf16 %v509_v53, %v504_v52  ;;  %v554_v52 = vld [vmem:[#allocation2 + $0xbb0] sm:$0xff]  ;;  %v559_v53 = vld [vmem:[#allocation2 + $0xbd8] sm:$0xff] }
 0x1c8   :  { %6760 = vmatpush3.bf16.msra.mxu0 %v6759_v63  ;;  %6792 = vmatpush3.bf16.msra.mxu1 %v6791_v0  ;;  %v6813_v63 = vpack.c.bf16 %v599_v58, %v594_v57  ;;  %v514_v0 = vld [vmem:[#allocation2 + $0xa70] sm:$0xff]  ;;  %v644_v57 = vld [vmem:[#allocation2 + $0xe80] sm:$0xff]  ;;  %v649_v58 = vld [vmem:[#allocation2 + $0xea8] sm:$0xff] }
 0x1c9   :  { %6762 = vmatprep.subr.bf16.mxu0 %v6761_v1  ;;  %6794 = vmatprep.subr.bf16.mxu1 %v6793_v5  ;;  %v519_v1 = vld [vmem:[#allocation2 + $0xa98] sm:$0xff]  ;;  %v604_v5 = vld [vmem:[#allocation2 + $0xd40] sm:$0xff] }
 0x1cc   :  { %6764 = vmatpush3.bf16.msra.mxu0 %v6763_v11  ;;  %6796 = vmatpush3.bf16.msra.mxu1 %v6795_v12  ;;  %v6815_v11 = vpack.c.bf16 %v519_v1, %v514_v0  ;;  %v6847_v12 = vpack.c.bf16 %v679_v4, %v674_v2  ;;  %v564_v0 = vld [vmem:[#allocation2 + $0xc00] sm:$0xff]  ;;  %v569_v1 = vld [vmem:[#allocation2 + $0xc28] sm:$0xff] }
 0x1cd   :  { %6766 = vmatprep.subr.bf16.mxu0 %v6765_v13  ;;  %6798 = vmatprep.subr.bf16.mxu1 %v6797_v17  ;;  %v6817_v13 = vpack.c.bf16 %v609_v6, %v604_v5  ;;  %v6849_v17 = vpack.c.bf16 %v769_v9, %v764_v8  ;;  %v724_v2 = vld [vmem:[#allocation2 + $0x1100] sm:$0xff]  ;;  %v729_v4 = vld [vmem:[#allocation2 + $0x1128] sm:$0xff]  ;;  %v654_v5 = vld [vmem:[#allocation2 + $0xed0] sm:$0xff]  ;;  %v6835_v9 = vpack.c.bf16 %v569_v1, %v564_v0 }
 0x1ce   :  { %v659_v6 = vld [vmem:[#allocation2 + $0xef8] sm:$0xff] }
 0x1cf   :  { %v819_v8 = vld [vmem:[#allocation2 + $0x13f8] sm:$0xff] }
 0x1d0   :  { %6768 = vmatpush3.bf16.msra.mxu0 %v6767_v24  ;;  %6800 = vmatpush3.bf16.msra.mxu1 %v6799_v25  ;;  %v779_v24 = vld [vmem:[#allocation2 + $0x12b8] sm:$0xff]  ;;  %v6819_v25 = vpack.c.bf16 %v529_v15, %v524_v14  ;;  %v734_v15 = vld [vmem:[#allocation2 + $0x1150] sm:$0xff] }
 0x1d1   :  { %6770 = vmatprep.subr.bf16.mxu0 %v6769_v26  ;;  %6802 = vmatprep.subr.bf16.mxu1 %v6801_v30  ;;  %v6851_v26 = vpack.c.bf16 %v689_v18, %v684_v16  ;;  %v694_v30 = vld [vmem:[#allocation2 + $0x1010] sm:$0xff]  ;;  %v6853_v31 = vpack.c.bf16 %v779_v24, %v774_v22  ;;  %v739_v16 = vld [vmem:[#allocation2 + $0x1178] sm:$0xff] }
 0x1d2   :  { %v6871_v18 = vpack.c.bf16 %v739_v16, %v734_v15 }
 0x1d4   :  { %6772 = vmatpush3.bf16.msra.mxu0 %v6771_v37  ;;  %6804 = vmatpush3.bf16.msra.mxu1 %v6803_v38  ;;  %v789_v37 = vld [vmem:[#allocation2 + $0x1308] sm:$0xff]  ;;  %v6823_v38 = vpack.c.bf16 %v539_v29, %v534_v28  ;;  %v820_v28 = vld [vmem:[#allocation4] sm:$0x1f] }
 0x1d5   :  { %6774 = vmatprep.subr.bf16.mxu0 %v6773_v39  ;;  %6806 = vmatprep.subr.bf16.mxu1 %v6805_v43  ;;  %v6825_v39 = vpack.c.bf16 %v629_v35, %v624_v34  ;;  %v6857_v43 = vpack.c.bf16 %v789_v37, %v784_v36 }
 0x1d8   :  { %6776 = vmatpush3.bf16.msra.mxu0 %v6775_v49  ;;  %6808 = vmatpush3.bf16.msra.mxu1 %v6807_v50  ;;  %v6827_v49 = vpack.c.bf16 %v549_v41, %v544_v40  ;;  %v6859_v50 = vpack.c.bf16 %v709_v44, %v704_v42 }
 0x1d9   :  { %6810 = vmatprep.subr.bf16.mxu0 %v6809_v51  ;;  %6842 = vmatprep.subr.bf16.mxu1 %v6841_v55  ;;  %v6829_v51 = vpack.c.bf16 %v639_v46, %v634_v45  ;;  %v6861_v55 = vpack.c.bf16 %v799_v48, %v794_v47 }
 0x1db   :  { %1480 = vmatmul.mubr.f32.vlgmr.msra.gmra.mrb[2].mxu0 %v8285_v7  ;;  %1550 = vmatmul.mubr.f32.vlgmr.msra.gmra.mrb[2].mxu1 %v8286_v10  ;;  %v814_v7 = vld [vmem:[#allocation2 + $0x13d0] sm:$0xff]  ;;  %v6867_v10 = vpack.c.bf16 %v729_v4, %v724_v2 }
 0x1dc   :  { %6812 = vmatpush3.bf16.msra.mxu0 %v6811_v61  ;;  %6844 = vmatpush3.bf16.msra.mxu1 %v6843_v62  ;;  %v6831_v61 = vpack.c.bf16 %v559_v53, %v554_v52  ;;  %v6863_v62 = vpack.c.bf16 %v719_v56, %v714_v54  ;;  %v6869_v14 = vpack.c.bf16 %v819_v8, %v814_v7 }
 0x1dd   :  { %6814 = vmatprep.subr.bf16.mxu0 %v6813_v63  ;;  %6846 = vmatprep.subr.bf16.mxu1 %v6845_v3  ;;  %v6833_v63 = vpack.c.bf16 %v649_v58, %v644_v57  ;;  %v6865_v3 = vpack.c.bf16 %v809_v60, %v804_v59 }
 0x1de   :  { %1619 = vmatprep.mubr.f32.mxu0 %v8287_v21  ;;  %1689 = vmatprep.mubr.f32.mxu1 %v8762_v32  ;;  %v6855_v32 = vpack.c.bf16 %v699_v33, %v694_v30 }
 0x1e0   :  { %6816 = vmatpush3.bf16.msra.mxu0 %v6815_v11  ;;  %6848 = vmatpush3.bf16.msra.mxu1 %v6847_v12  ;;  %v6837_v11 = vpack.c.bf16 %v659_v6, %v654_v5  ;;  %v574_v12 = vld [vmem:[#allocation2 + $0xc50] sm:$0xff] }
 0x1e1   :  { %6818 = vmatprep.subr.bf16.mxu0 %v6817_v13  ;;  %6850 = vmatprep.subr.bf16.mxu1 %v6849_v17  ;;  %v579_v13 = vld [vmem:[#allocation2 + $0xc78] sm:$0xff] }
 0x1e2   :  { %v6839_v17 = vpack.c.bf16 %v579_v13, %v574_v12 }
 0x1e4   :  { %6820 = vmatpush3.bf16.msra.mxu0 %v6819_v25  ;;  %6852 = vmatpush3.bf16.msra.mxu1 %v6851_v26  ;;  %v822_v25 = vlaneseq }
 0x1e5   :  { %6822 = vmatprep.subr.bf16.mxu0 %v6821_v27  ;;  %6854 = vmatprep.subr.bf16.mxu1 %v6853_v31 }
 0x1e6   :  { %v823_v26 = vshrl.u32 %v822_v25, 7  ;;  %v1833_v25 = vld [vmem:[#allocation6 + $0x30] sm:$0xff] }
 0x1e8   :  { %6824 = vmatpush3.bf16.msra.mxu0 %v6823_v38  ;;  %6856 = vmatpush3.bf16.msra.mxu1 %v6855_v32  ;;  %v8793_v27 = vsub.s32 4, %v823_v26  ;;  %v8798_v32 = vsub.s32 1, %v823_v26  ;;  %v8802_v41 = vsub.s32 2, %v823_v26  ;;  %v8805_v45 = vsub.s32 3, %v823_v26 }
 0x1e9   :  { %6826 = vmatprep.subr.bf16.mxu0 %v6825_v39  ;;  %6858 = vmatprep.subr.bf16.mxu1 %v6857_v43 }
 0x1ea   :  { %v841_v30 = vrot.slane %v820_v28, %v8793_v27  ;;  %v829_v40 = vrot.slane %v820_v28, %v8798_v32  ;;  %v833_v44 = vrot.slane %v820_v28, %v8802_v41 }
 0x1ec   :  { %6828 = vmatpush3.bf16.msra.mxu0 %v6827_v49  ;;  %6860 = vmatpush3.bf16.msra.mxu1 %v6859_v50  ;;  %v837_v49 = vrot.slane %v820_v28, %v8805_v45 }
 0x1ed   :  { %6830 = vmatprep.subr.bf16.mxu0 %v6829_v51  ;;  %6862 = vmatprep.subr.bf16.mxu1 %v6861_v55 }
 0x1f0   :  { %6832 = vmatpush3.bf16.msra.mxu0 %v6831_v61  ;;  %6864 = vmatpush3.bf16.msra.mxu1 %v6863_v62 }
 0x1f1   :  { %6834 = vmatprep.subr.bf16.mxu0 %v6833_v63  ;;  %6866 = vmatprep.subr.bf16.mxu1 %v6865_v3 }
 0x1f4   :  { %6836 = vmatpush3.bf16.msra.mxu0 %v6835_v9  ;;  %6868 = vmatpush3.bf16.msra.mxu1 %v6867_v10 }
 0x1f5   :  { %6838 = vmatprep.subr.bf16.mxu0 %v6837_v11  ;;  %6870 = vmatprep.subr.bf16.mxu1 %v6869_v14 }
 0x1f8   :  { %6840 = vmatpush3.bf16.msra.mxu0 %v6839_v17  ;;  %6872 = vmatpush3.bf16.msra.mxu1 %v6871_v18 }
 0x1fb   :  { %1620 = vmatmul.mubr.f32.vlgmr.msra.gmra.mrb[4].mxu0 %v8288_v19  ;;  %1690 = vmatmul.mubr.f32.vlgmr.msra.gmra.mrb[4].mxu1 %v8769_v23  ;;  %v8796_v23 = vsub.s32 0, %v823_v26  ;;  %v1830_v26 = vld [vmem:[#allocation6 + $0x18] sm:$0xff] }
 0x1fd   :  { %v825_v39 = vrot.slane %v820_v28, %v8796_v23 }
 0x28e   :  { %v1126_v20 = vpop.f32.mrb[0].mxu0  ;;  %v1410_v21 = vpop.f32.mrb[0].mxu1 }
 0x28f   :  { %v1128_v22 = vpop.f32.mrb[1].mxu0  ;;  %v1412_v24 = vpop.f32.mrb[1].mxu1  ;;  %v8165_v42 = vadd.f32 %v1126_v20, %v825_v39  ;;  %v8167_v48 = vadd.f32 %v1410_v21, %v833_v44  ;;  %v1843_v39 = vld [vmem:[#allocation6 + $0x80] sm:$0xff] }
 0x290   :  { %v8166_v43 = vadd.f32 %v1128_v22, %v829_v40  ;;  %v8168_v51 = vadd.f32 %v1412_v24, %v837_v49  ;;  %v1828_v24 = vld [vmem:[#allocation6 + $0x8] sm:$0xff] }
 0x291   :  { %v1700_v46 = vmul.f32 0.70710677, %v8165_v42  ;;  %v1702_v50 = vmul.f32 0.70710677, %v8167_v48  ;;  %v1695_v2 = vmul.f32 0.5, %v8165_v42  ;;  %v1697_v9 = vmul.f32 0.5, %v8167_v48 }
 0x292   :  { %v1701_v47 = vmul.f32 0.70710677, %v8166_v43  ;;  %v1703_v53 = vmul.f32 0.70710677, %v8168_v51  ;;  %v1696_v3 = vmul.f32 0.5, %v8166_v43  ;;  %v1698_v14 = vmul.f32 0.5, %v8168_v51 }
 0x293   :  { %8235 = verf.f32 %v1700_v46  ;;  %v6873_v28 = vpack.c.bf16 %v1833_v25, %v1828_v24  ;;  %v1840_v40 = vld [vmem:[#allocation6 + $0x68] sm:$0xff]  ;;  %v1845_v42 = vld [vmem:[#allocation6 + $0x90] sm:$0xff]  ;;  %v1839_v48 = vld [vmem:[#allocation6 + $0x60] sm:$0xff] }
 0x294   :  { %8237 = verf.f32 %v1701_v47  ;;  %v7035_v44 = vpack.c.bf16 %v1845_v42, %v1840_v40  ;;  %v1837_v46 = vld [vmem:[#allocation6 + $0x50] sm:$0xff]  ;;  %v1842_v47 = vld [vmem:[#allocation6 + $0x78] sm:$0xff]  ;;  %v1848_v51 = vld [vmem:[#allocation6 + $0xa8] sm:$0xff] }
 0x295   :  { %8239 = verf.f32 %v1702_v50  ;;  %6874 = vmatprep.subr.bf16.mxu0 %v6873_v28  ;;  %v6879_v49 = vpack.c.bf16 %v1842_v47, %v1837_v46  ;;  %v1844_v50 = vld [vmem:[#allocation6 + $0x88] sm:$0xff]  ;;  %v1869_v25 = vld [vmem:[#allocation6 + $0x150] sm:$0xff]  ;;  %v1874_v28 = vld [vmem:[#allocation6 + $0x178] sm:$0xff] }
 0x296   :  { %8241 = verf.f32 %v1703_v53  ;;  %v7037_v53 = vpack.c.bf16 %v1844_v50, %v1839_v48  ;;  %v1872_v24 = vld [vmem:[#allocation6 + $0x168] sm:$0xff]  ;;  %v1890_v46 = vld [vmem:[#allocation6 + $0x1f8] sm:$0xff]  ;;  %v1895_v47 = vld [vmem:[#allocation6 + $0x220] sm:$0xff] }
 0x297   :  { %v1884_v42 = vld [vmem:[#allocation6 + $0x1c8] sm:$0xff] }
 0x29d   :  { %v8236_v59 = vpop.eup %8235 }
 0x29e   :  { %v8238_v61 = vpop.eup %8237  ;;  %v1710_v63 = vadd.f32 1.0, %v8236_v59  ;;  %v1852_v59 = vld [vmem:[#allocation6 + $0xc8] sm:$0xff] }
 0x29f   :  { %v1711_v0 = vadd.f32 1.0, %v8238_v61  ;;  %v8240_v4 = vpop.eup %8239  ;;  %v1854_v61 = vld [vmem:[#allocation6 + $0xd8] sm:$0xff] }
 0x2a0   :  { %v8808_v5 = vmul.f32 %v1710_v63, %v1695_v2  ;;  %v1712_v7 = vadd.f32 1.0, %v8240_v4  ;;  %v8242_v8 = vpop.eup %8241  ;;  %v1858_v63 = vld [vmem:[#allocation6 + $0xf8] sm:$0xff]  ;;  %v1865_v4 = vld [vmem:[#allocation6 + $0x130] sm:$0xff] }
 0x2a1   :  { %v8810_v6 = vmul.f32 %v1711_v0, %v1696_v3  ;;  %v1713_v12 = vadd.f32 1.0, %v8242_v8  ;;  %v1863_v0 = vld [vmem:[#allocation6 + $0x120] sm:$0xff]  ;;  %v1862_v8 = vld [vmem:[#allocation6 + $0x118] sm:$0xff] }
 0x2a2   :  { %v8814_v11 = vmul.f32 %v1712_v7, %v1697_v9  ;;  %v6885_v3 = vpack.c.bf16 %v1863_v0, %v1858_v63  ;;  %v1857_v7 = vld [vmem:[#allocation6 + $0xf0] sm:$0xff]  ;;  %v1902_v0 = vld [vmem:[#allocation6 + $0x258] sm:$0xff] }
 0x2a3   :  { %v1720_v10 = vadd.f32 %v8810_v6, %v8808_v5  ;;  %v8817_v18 = vmul.f32 %v1713_v12, %v1698_v14  ;;  %v1864_v12 = vld [vmem:[#allocation6 + $0x128] sm:$0xff]  ;;  %v1873_v14 = vld [vmem:[#allocation6 + $0x170] sm:$0xff] }
 0x2a4   :  { %v1897_v63 = vld [vmem:[#allocation6 + $0x230] sm:$0xff] }
 0x2a5   :  { %v1721_v15 = vadd.f32 %v1720_v10, %v8814_v11  ;;  %v1859_v10 = vld [vmem:[#allocation6 + $0x100] sm:$0xff] }
 0x2a7   :  { %v1722_v20 = vadd.f32 %v1721_v15, %v8817_v18  ;;  %v1870_v15 = vld [vmem:[#allocation6 + $0x158] sm:$0xff] }
 0x2ae   :  { %v5661_v29 = vpop.f32.mrb[2].mxu0  ;;  %v5696_v33 = vpop.f32.mrb[2].mxu1 }
 0x2af   :  { %v5662_v31 = vpop.f32.mrb[3].mxu0  ;;  %v5697_v35 = vpop.f32.mrb[3].mxu1 }
 0x2b0   :  { %v5663_v34 = vadd.f32 %v5662_v31, %v5661_v29  ;;  %v5698_v36 = vadd.f32 %v5697_v35, %v5696_v33  ;;  %v1835_v29 = vld [vmem:[#allocation6 + $0x40] sm:$0xff]  ;;  %v1832_v31 = vld [vmem:[#allocation6 + $0x28] sm:$0xff]  ;;  %v1829_v35 = vld [vmem:[#allocation6 + $0x10] sm:$0xff] }
 0x2b1   :  { %v7031_v33 = vpack.c.bf16 %v1835_v29, %v1830_v26  ;;  %v1878_v29 = vld [vmem:[#allocation6 + $0x198] sm:$0xff] }
 0x2b2   :  { %v1482_v37 = vadd.f32 %v5663_v34, %v841_v30  ;;  %v1827_v30 = vld [vmem:[#allocation6] sm:$0xff] }
 0x2b3   :  { %v6875_v34 = vpack.c.bf16 %v1832_v31, %v1827_v30  ;;  %7032 = vmatprep.subr.bf16.mxu1 %v7031_v33  ;;  %v1883_v30 = vld [vmem:[#allocation6 + $0x1c0] sm:$0xff]  ;;  %v1880_v31 = vld [vmem:[#allocation6 + $0x1a8] sm:$0xff]  ;;  %v1885_v33 = vld [vmem:[#allocation6 + $0x1d0] sm:$0xff] }
 0x2b4   :  { %v1552_v38 = vadd.f32 %v5698_v36, %v1482_v37  ;;  %v1834_v36 = vld [vmem:[#allocation6 + $0x38] sm:$0xff]  ;;  %v7051_v40 = vpack.c.bf16 %v1885_v33, %v1880_v31  ;;  %v1919_v33 = vld [vmem:[#allocation6 + $0x2e0] sm:$0xff] }
 0x2b5   :  { %v1838_v37 = vld [vmem:[#allocation6 + $0x58] sm:$0xff]  ;;  %6876 = vmatpush1.bf16.msra.mxu0 %v6875_v34 }
 0x2b6   :  { %v6877_v43 = vpack.c.bf16 %v1843_v39, %v1838_v37  ;;  %v1877_v37 = vld [vmem:[#allocation6 + $0x190] sm:$0xff]  ;;  %v1879_v39 = vld [vmem:[#allocation6 + $0x1a0] sm:$0xff]  ;;  %v1922_v31 = vld [vmem:[#allocation6 + $0x2f8] sm:$0xff] }
 0x2b8   :  { %6878 = vmatprep.subr.bf16.mxu0 %v6877_v43  ;;  %v1888_v43 = vld [vmem:[#allocation6 + $0x1e8] sm:$0xff] }
 0x2b9   :  { %6880 = vmatpush1.bf16.msra.mxu0 %v6879_v49  ;;  %v7053_v49 = vpack.c.bf16 %v1884_v42, %v1879_v39  ;;  %v1935_v39 = vld [vmem:[#allocation6 + $0x360] sm:$0xff] }
 0x2ce   :  { %v5731_v52 = vpop.f32.mrb[4].mxu0  ;;  %v5766_v55 = vpop.f32.mrb[4].mxu1 }
 0x2cf   :  { %v5732_v54 = vpop.f32.mrb[5].mxu0  ;;  %v5767_v57 = vpop.f32.mrb[5].mxu1 }
 0x2d0   :  { %v5733_v56 = vadd.f32 %v5732_v54, %v5731_v52  ;;  %v5768_v58 = vadd.f32 %v5767_v57, %v5766_v55  ;;  %v1853_v52 = vld [vmem:[#allocation6 + $0xd0] sm:$0xff]  ;;  %v1850_v55 = vld [vmem:[#allocation6 + $0xb8] sm:$0xff]  ;;  %v1847_v57 = vld [vmem:[#allocation6 + $0xa0] sm:$0xff] }
 0x2d1   :  { %v6881_v54 = vpack.c.bf16 %v1853_v52, %v1848_v51  ;;  %v1887_v51 = vld [vmem:[#allocation6 + $0x1e0] sm:$0xff]  ;;  %v1892_v52 = vld [vmem:[#allocation6 + $0x208] sm:$0xff] }
 0x2d2   :  { %v1622_v60 = vadd.f32 %v5733_v56, %v1552_v38  ;;  %v7033_v38 = vpack.c.bf16 %v1834_v36, %v1829_v35  ;;  %v1855_v56 = vld [vmem:[#allocation6 + $0xe0] sm:$0xff]  ;;  %v7049_v35 = vpack.c.bf16 %v1874_v28, %v1869_v25  ;;  %v6893_v36 = vpack.c.bf16 %v1883_v30, %v1878_v29  ;;  %v1925_v25 = vld [vmem:[#allocation6 + $0x310] sm:$0xff] }
 0x2d3   :  { %6882 = vmatprep.subr.bf16.mxu0 %v6881_v54  ;;  %v7055_v54 = vpack.c.bf16 %v1895_v47, %v1890_v46  ;;  %v1917_v30 = vld [vmem:[#allocation6 + $0x2d0] sm:$0xff] }
 0x2d4   :  { %v1692_v62 = vadd.f32 %v5768_v58, %v1622_v60  ;;  %7034 = vmatpush1.bf16.msra.mxu1 %v7033_v38  ;;  %v7039_v58 = vpack.c.bf16 %v1855_v56, %v1850_v55  ;;  %v1849_v60 = vld [vmem:[#allocation6 + $0xb0] sm:$0xff]  ;;  %v1882_v38 = vld [vmem:[#allocation6 + $0x1b8] sm:$0xff] }
 0x2d5   :  { %7036 = vmatprep.subr.bf16.mxu1 %v7035_v44  ;;  %v7041_v2 = vpack.c.bf16 %v1854_v61, %v1849_v60  ;;  %v1893_v44 = vld [vmem:[#allocation6 + $0x210] sm:$0xff]  ;;  %v6895_v48 = vpack.c.bf16 %v1882_v38, %v1877_v37  ;;  %v1894_v55 = vld [vmem:[#allocation6 + $0x218] sm:$0xff]  ;;  %v6899_v60 = vpack.c.bf16 %v1892_v52, %v1887_v51 }
 0x2d6   :  { %v1704_v1 = vmul.f32 0.70710677, %v1692_v62  ;;  %v1699_v16 = vmul.f32 0.5, %v1692_v62  ;;  %v6883_v62 = vpack.c.bf16 %v1852_v59, %v1847_v57  ;;  %v6897_v50 = vpack.c.bf16 %v1893_v44, %v1888_v43  ;;  %v1898_v56 = vld [vmem:[#allocation6 + $0x238] sm:$0xff]  ;;  %v1903_v57 = vld [vmem:[#allocation6 + $0x260] sm:$0xff]  ;;  %v1905_v59 = vld [vmem:[#allocation6 + $0x270] sm:$0xff] }
 0x2d7   :  { %v1933_v37 = vld [vmem:[#allocation6 + $0x350] sm:$0xff]  ;;  %v1930_v38 = vld [vmem:[#allocation6 + $0x338] sm:$0xff] }
 0x2d8   :  { %8243 = verf.f32 %v1704_v1  ;;  %v1860_v1 = vld [vmem:[#allocation6 + $0x108] sm:$0xff]  ;;  %7038 = vmatpush1.bf16.msra.mxu1 %v7037_v53  ;;  %6884 = vmatpush1.bf16.msra.mxu0 %v6883_v62  ;;  %v1889_v53 = vld [vmem:[#allocation6 + $0x1f0] sm:$0xff]  ;;  %v6901_v62 = vpack.c.bf16 %v1903_v57, %v1898_v56  ;;  %v7071_v44 = vpack.c.bf16 %v1935_v39, %v1930_v38 }
 0x2d9   :  { %7040 = vmatprep.subr.bf16.mxu1 %v7039_v58  ;;  %v7043_v9 = vpack.c.bf16 %v1865_v4, %v1860_v1  ;;  %6886 = vmatprep.subr.bf16.mxu0 %v6885_v3  ;;  %v1900_v58 = vld [vmem:[#allocation6 + $0x248] sm:$0xff]  ;;  %v7057_v61 = vpack.c.bf16 %v1894_v55, %v1889_v53  ;;  %v1899_v1 = vld [vmem:[#allocation6 + $0x240] sm:$0xff] }
 0x2da   :  { %v1904_v3 = vld [vmem:[#allocation6 + $0x268] sm:$0xff] }
 0x2db   :  { %v1908_v4 = vld [vmem:[#allocation6 + $0x288] sm:$0xff] }
 0x2dc   :  { %7042 = vmatpush1.bf16.msra.mxu1 %v7041_v2  ;;  %v7059_v2 = vpack.c.bf16 %v1905_v59, %v1900_v58 }
 0x2dd   :  { %7044 = vmatprep.subr.bf16.mxu1 %v7043_v9  ;;  %v1915_v9 = vld [vmem:[#allocation6 + $0x2c0] sm:$0xff] }
 0x2e2   :  { %v8244_v13 = vpop.eup %8243 }
 0x2e3   :  { %v1714_v17 = vadd.f32 1.0, %v8244_v13  ;;  %v1868_v13 = vld [vmem:[#allocation6 + $0x148] sm:$0xff] }
 0x2e5   :  { %v8819_v19 = vmul.f32 %v1714_v17, %v1699_v16  ;;  %v1875_v16 = vld [vmem:[#allocation6 + $0x180] sm:$0xff]  ;;  %v6887_v17 = vpack.c.bf16 %v1862_v8, %v1857_v7  ;;  %v1913_v7 = vld [vmem:[#allocation6 + $0x2b0] sm:$0xff]  ;;  %v1910_v8 = vld [vmem:[#allocation6 + $0x298] sm:$0xff] }
 0x2e6   :  { %v7047_v26 = vpack.c.bf16 %v1875_v16, %v1870_v15  ;;  %v1912_v15 = vld [vmem:[#allocation6 + $0x2a8] sm:$0xff]  ;;  %v1909_v16 = vld [vmem:[#allocation6 + $0x290] sm:$0xff] }
 0x2e7   :  { %v1724_v21 = vsel %vm1723_vm0, %v8819_v19, 0.0  ;;  %6888 = vmatpush1.bf16.msra.mxu0 %v6887_v17  ;;  %v7063_v17 = vpack.c.bf16 %v1915_v9, %v1910_v8  ;;  %v1943_v8 = vld [vmem:[#allocation6 + $0x3a0] sm:$0xff]  ;;  %v1940_v9 = vld [vmem:[#allocation6 + $0x388] sm:$0xff] }
 0x2e8   :  { %v1725_v22 = vadd.f32 %v1724_v21, %v1722_v20  ;;  %v7045_v20 = vpack.c.bf16 %v1864_v12, %v1859_v10  ;;  %v6889_v21 = vpack.c.bf16 %v1873_v14, %v1868_v13  ;;  %v6903_v10 = vpack.c.bf16 %v1902_v0, %v1897_v63  ;;  %v1907_v14 = vld [vmem:[#allocation6 + $0x280] sm:$0xff]  ;;  %v1932_v0 = vld [vmem:[#allocation6 + $0x348] sm:$0xff] }
 0x2e9   :  { %v7061_v12 = vpack.c.bf16 %v1904_v3, %v1899_v1  ;;  %v6905_v13 = vpack.c.bf16 %v1913_v7, %v1908_v4  ;;  %v1927_v63 = vld [vmem:[#allocation6 + $0x320] sm:$0xff]  ;;  %v1929_v1 = vld [vmem:[#allocation6 + $0x330] sm:$0xff]  ;;  %v1934_v3 = vld [vmem:[#allocation6 + $0x358] sm:$0xff] }
 0x2ea   :  { %1726 = vadd.xlane.f32.xlu0 %v1725_v22  ;;  %v1867_v22 = vld [vmem:[#allocation6 + $0x140] sm:$0xff]  ;;  %7046 = vmatpush1.bf16.msra.mxu1 %v7045_v20  ;;  %v1914_v20 = vld [vmem:[#allocation6 + $0x2b8] sm:$0xff]  ;;  %v7073_v4 = vpack.c.bf16 %v1934_v3, %v1929_v1  ;;  %v1985_v1 = vld [vmem:[#allocation6 + $0x4f0] sm:$0xff] }
 0x2eb   :  { %v6891_v34 = vpack.c.bf16 %v1872_v24, %v1867_v22  ;;  %6890 = vmatprep.subr.bf16.mxu0 %v6889_v21  ;;  %7048 = vmatprep.subr.bf16.mxu1 %v7047_v26  ;;  %v1918_v21 = vld [vmem:[#allocation6 + $0x2d8] sm:$0xff]  ;;  %v1923_v22 = vld [vmem:[#allocation6 + $0x300] sm:$0xff]  ;;  %v1920_v24 = vld [vmem:[#allocation6 + $0x2e8] sm:$0xff]  ;;  %v6907_v26 = vpack.c.bf16 %v1912_v15, %v1907_v14  ;;  %v7065_v28 = vpack.c.bf16 %v1914_v20, %v1909_v16 }
 0x2ec   :  { %v6909_v29 = vpack.c.bf16 %v1923_v22, %v1918_v21  ;;  %v1938_v7 = vld [vmem:[#allocation6 + $0x378] sm:$0xff]  ;;  %v1944_v20 = vld [vmem:[#allocation6 + $0x3a8] sm:$0xff] }
 0x2ed   :  { %6892 = vmatpush1.bf16.msra.mxu0 %v6891_v34  ;;  %v7067_v34 = vpack.c.bf16 %v1925_v25, %v1920_v24  ;;  %v1942_v14 = vld [vmem:[#allocation6 + $0x398] sm:$0xff]  ;;  %v1948_v21 = vld [vmem:[#allocation6 + $0x3c8] sm:$0xff]  ;;  %v1953_v24 = vld [vmem:[#allocation6 + $0x3f0] sm:$0xff] }
 0x2ee   :  { %7050 = vmatpush1.bf16.msra.mxu1 %v7049_v35  ;;  %6894 = vmatprep.subr.bf16.mxu0 %v6893_v36  ;;  %v1924_v35 = vld [vmem:[#allocation6 + $0x308] sm:$0xff]  ;;  %v1950_v25 = vld [vmem:[#allocation6 + $0x3d8] sm:$0xff] }
 0x2ef   :  { %7052 = vmatprep.subr.bf16.mxu1 %v7051_v40  ;;  %v1928_v36 = vld [vmem:[#allocation6 + $0x328] sm:$0xff]  ;;  %v6911_v40 = vpack.c.bf16 %v1922_v31, %v1917_v30  ;;  %v7069_v42 = vpack.c.bf16 %v1924_v35, %v1919_v33  ;;  %v1947_v30 = vld [vmem:[#allocation6 + $0x3c0] sm:$0xff]  ;;  %v1949_v33 = vld [vmem:[#allocation6 + $0x3d0] sm:$0xff] }
 0x2f0   :  { %v6913_v43 = vpack.c.bf16 %v1933_v37, %v1928_v36  ;;  %v1952_v31 = vld [vmem:[#allocation6 + $0x3e8] sm:$0xff]  ;;  %v1954_v35 = vld [vmem:[#allocation6 + $0x3f8] sm:$0xff]  ;;  %v1963_v37 = vld [vmem:[#allocation6 + $0x440] sm:$0xff] }
 0x2f1   :  { %6896 = vmatpush1.bf16.msra.mxu0 %v6895_v48  ;;  %v1958_v36 = vld [vmem:[#allocation6 + $0x418] sm:$0xff]  ;;  %v7081_v38 = vpack.c.bf16 %v1954_v35, %v1949_v33 }
 0x2f2   :  { %7054 = vmatpush1.bf16.msra.mxu1 %v7053_v49  ;;  %6898 = vmatprep.subr.bf16.mxu0 %v6897_v50  ;;  %v6925_v39 = vpack.c.bf16 %v1963_v37, %v1958_v36 }
 0x2f3   :  { %7056 = vmatprep.subr.bf16.mxu1 %v7055_v54 }
 0x2f5   :  { %6900 = vmatpush1.bf16.msra.mxu0 %v6899_v60 }
 0x2f6   :  { %7058 = vmatpush1.bf16.msra.mxu1 %v7057_v61  ;;  %6902 = vmatprep.subr.bf16.mxu0 %v6901_v62 }
 0x2f7   :  { %7060 = vmatprep.subr.bf16.mxu1 %v7059_v2  ;;  %v6915_v2 = vpack.c.bf16 %v1932_v0, %v1927_v63  ;;  %v1983_v63 = vld [vmem:[#allocation6 + $0x4e0] sm:$0xff]  ;;  %v1980_v0 = vld [vmem:[#allocation6 + $0x4c8] sm:$0xff] }
 0x2f9   :  { %6904 = vmatpush1.bf16.msra.mxu0 %v6903_v10  ;;  %v6917_v10 = vpack.c.bf16 %v1943_v8, %v1938_v7  ;;  %v1977_v7 = vld [vmem:[#allocation6 + $0x4b0] sm:$0xff]  ;;  %v1982_v8 = vld [vmem:[#allocation6 + $0x4d8] sm:$0xff] }
 0x2fa   :  { %7062 = vmatpush1.bf16.msra.mxu1 %v7061_v12  ;;  %6906 = vmatprep.subr.bf16.mxu0 %v6905_v13  ;;  %v1945_v12 = vld [vmem:[#allocation6 + $0x3b0] sm:$0xff] }
 0x2fb   :  { %7064 = vmatprep.subr.bf16.mxu1 %v7063_v17  ;;  %v1937_v13 = vld [vmem:[#allocation6 + $0x370] sm:$0xff]  ;;  %v7075_v15 = vpack.c.bf16 %v1945_v12, %v1940_v9  ;;  %v1939_v17 = vld [vmem:[#allocation6 + $0x380] sm:$0xff]  ;;  %v7091_v9 = vpack.c.bf16 %v1985_v1, %v1980_v0  ;;  %v1984_v12 = vld [vmem:[#allocation6 + $0x4e8] sm:$0xff] }
 0x2fc   :  { %v6919_v16 = vpack.c.bf16 %v1942_v14, %v1937_v13  ;;  %v7077_v22 = vpack.c.bf16 %v1944_v20, %v1939_v17  ;;  %v6935_v13 = vpack.c.bf16 %v1982_v8, %v1977_v7  ;;  %v1990_v17 = vld [vmem:[#allocation6 + $0x518] sm:$0xff]  ;;  %v1997_v0 = vld [vmem:[#allocation6 + $0x550] sm:$0xff] }
 0x2fd   :  { %6908 = vmatpush1.bf16.msra.mxu0 %v6907_v26  ;;  %v1955_v26 = vld [vmem:[#allocation6 + $0x400] sm:$0xff]  ;;  %v2013_v8 = vld [vmem:[#allocation6 + $0x5d0] sm:$0xff] }
 0x2fe   :  { %7066 = vmatpush1.bf16.msra.mxu1 %v7065_v28  ;;  %6910 = vmatprep.subr.bf16.mxu0 %v6909_v29  ;;  %v6921_v28 = vpack.c.bf16 %v1953_v24, %v1948_v21  ;;  %v7079_v29 = vpack.c.bf16 %v1955_v26, %v1950_v25  ;;  %v1995_v21 = vld [vmem:[#allocation6 + $0x540] sm:$0xff] }
 0x2ff   :  { %7068 = vmatprep.subr.bf16.mxu1 %v7067_v34  ;;  %v6923_v34 = vpack.c.bf16 %v1952_v31, %v1947_v30 }
 0x301   :  { %6912 = vmatpush1.bf16.msra.mxu0 %v6911_v40  ;;  %v1960_v40 = vld [vmem:[#allocation6 + $0x428] sm:$0xff] }
 0x302   :  { %7070 = vmatpush1.bf16.msra.mxu1 %v7069_v42  ;;  %6914 = vmatprep.subr.bf16.mxu0 %v6913_v43  ;;  %v1965_v42 = vld [vmem:[#allocation6 + $0x450] sm:$0xff] }
 0x303   :  { %7072 = vmatprep.subr.bf16.mxu1 %v7071_v44  ;;  %v1957_v43 = vld [vmem:[#allocation6 + $0x410] sm:$0xff]  ;;  %v7083_v44 = vpack.c.bf16 %v1965_v42, %v1960_v40 }
 0x305   :  { %6916 = vmatpush1.bf16.msra.mxu0 %v6915_v2 }
 0x306   :  { %7074 = vmatpush1.bf16.msra.mxu1 %v7073_v4  ;;  %6918 = vmatprep.subr.bf16.mxu0 %v6917_v10  ;;  %v1979_v10 = vld [vmem:[#allocation6 + $0x4c0] sm:$0xff] }
 0x307   :  { %7076 = vmatprep.subr.bf16.mxu1 %v7075_v15  ;;  %v7093_v14 = vpack.c.bf16 %v1984_v12, %v1979_v10  ;;  %v1988_v15 = vld [vmem:[#allocation6 + $0x508] sm:$0xff]  ;;  %v2015_v10 = vld [vmem:[#allocation6 + $0x5e0] sm:$0xff] }
 0x309   :  { %6920 = vmatpush1.bf16.msra.mxu0 %v6919_v16  ;;  %v1993_v16 = vld [vmem:[#allocation6 + $0x530] sm:$0xff] }
 0x30a   :  { %7078 = vmatpush1.bf16.msra.mxu1 %v7077_v22  ;;  %6922 = vmatprep.subr.bf16.mxu0 %v6921_v28  ;;  %v6937_v20 = vpack.c.bf16 %v1993_v16, %v1988_v15  ;;  %v7095_v22 = vpack.c.bf16 %v1995_v21, %v1990_v17  ;;  %v8840_v28 = vld [vmem:[%s9282_s11] sm:$0x1f]  ;;  %v2012_v15 = vld [vmem:[#allocation6 + $0x5c8] sm:$0xff] }
 0x30b   :  { %7080 = vmatprep.subr.bf16.mxu1 %v7079_v29  ;;  %v8845_v29 = vld [vmem:[%s9283_s12] sm:$0x1f]  ;;  %v8849_v30 = vrot.slane %v8840_v28, %v8798_v32  ;;  %v8853_v31 = vrot.slane %v8840_v28, %v8796_v23  ;;  %v8857_v33 = vrot.slane %v8840_v28, %v8805_v45 }
 0x30c   :  { %v8863_v35 = vrot.slane %v8845_v29, %v8798_v32  ;;  %v8877_v40 = vrot.slane %v8845_v29, %v8805_v45  ;;  %v2014_v21 = vld [vmem:[#allocation6 + $0x5d8] sm:$0xff] }
 0x30d   :  { %6924 = vmatpush1.bf16.msra.mxu0 %v6923_v34 }
 0x30e   :  { %7082 = vmatpush1.bf16.msra.mxu1 %v7081_v38  ;;  %6926 = vmatprep.subr.bf16.mxu0 %v6925_v39  ;;  %v8871_v38 = vrot.slane %v8845_v29, %v8796_v23 }
 0x30f   :  { %7084 = vmatprep.subr.bf16.mxu1 %v7083_v44  ;;  %v1987_v44 = vld [vmem:[#allocation6 + $0x500] sm:$0xff] }
 0x377   :  { %v1727_v46 = vpop.xlane.xlu0 %1726 }
 0x378   :  { %v8824_v47 = vmul.f32 0.0016129032, %v1727_v46  ;;  %v1962_v46 = vld [vmem:[#allocation6 + $0x438] sm:$0xff] }
 0x37a   :  { %v1730_v48 = vsub.f32 %v8808_v5, %v8824_v47  ;;  %v1731_v49 = vsub.f32 %v8810_v6, %v8824_v47  ;;  %v1732_v50 = vsub.f32 %v8814_v11, %v8824_v47  ;;  %v1734_v51 = vsub.f32 %v8819_v19, %v8824_v47 }
 0x37b   :  { %v1733_v52 = vsub.f32 %v8817_v18, %v8824_v47 }
 0x37c   :  { %v1735_v53 = vmul.f32 %v1730_v48, %v1730_v48  ;;  %v1736_v54 = vmul.f32 %v1731_v49, %v1731_v49  ;;  %v1737_v55 = vmul.f32 %v1732_v50, %v1732_v50  ;;  %v1739_v57 = vmul.f32 %v1734_v51, %v1734_v51  ;;  %v1959_v48 = vld [vmem:[#allocation6 + $0x420] sm:$0xff]  ;;  %v1964_v49 = vld [vmem:[#allocation6 + $0x448] sm:$0xff] }
 0x37d   :  { %v1738_v58 = vmul.f32 %v1733_v52, %v1733_v52  ;;  %v6927_v50 = vpack.c.bf16 %v1962_v46, %v1957_v43  ;;  %v1968_v51 = vld [vmem:[#allocation6 + $0x468] sm:$0xff]  ;;  %v1973_v52 = vld [vmem:[#allocation6 + $0x490] sm:$0xff] }
 0x37e   :  { %v1740_v56 = vadd.f32 %v1736_v54, %v1735_v53  ;;  %v1743_v61 = vsel %vm1723_vm0, %v1739_v57, 0.0  ;;  %v1970_v53 = vld [vmem:[#allocation6 + $0x478] sm:$0xff]  ;;  %v7085_v54 = vpack.c.bf16 %v1964_v49, %v1959_v48  ;;  %v1967_v57 = vld [vmem:[#allocation6 + $0x460] sm:$0xff]  ;;  %v1992_v46 = vld [vmem:[#allocation6 + $0x528] sm:$0xff] }
 0x37f   :  { %6928 = vmatpush1.bf16.msra.mxu0 %v6927_v50  ;;  %v1989_v48 = vld [vmem:[#allocation6 + $0x510] sm:$0xff]  ;;  %v1994_v49 = vld [vmem:[#allocation6 + $0x538] sm:$0xff] }
 0x380   :  { %v1741_v59 = vadd.f32 %v1740_v56, %v1737_v55  ;;  %v6929_v55 = vpack.c.bf16 %v1973_v52, %v1968_v51  ;;  %v1975_v56 = vld [vmem:[#allocation6 + $0x4a0] sm:$0xff]  ;;  %7086 = vmatpush1.bf16.msra.mxu1 %v7085_v54 }
 0x382   :  { %v1742_v60 = vadd.f32 %v1741_v59, %v1738_v58  ;;  %v1972_v58 = vld [vmem:[#allocation6 + $0x488] sm:$0xff]  ;;  %v7087_v59 = vpack.c.bf16 %v1975_v56, %v1970_v53  ;;  %6930 = vmatprep.subr.bf16.mxu0 %v6929_v55  ;;  %v1998_v55 = vld [vmem:[#allocation6 + $0x558] sm:$0xff] }
 0x383   :  { %v6931_v2 = vpack.c.bf16 %v1972_v58, %v1967_v57  ;;  %v2003_v57 = vld [vmem:[#allocation6 + $0x580] sm:$0xff]  ;;  %v2000_v58 = vld [vmem:[#allocation6 + $0x568] sm:$0xff] }
 0x384   :  { %v1744_v62 = vadd.f32 %v1743_v61, %v1742_v60  ;;  %v1969_v60 = vld [vmem:[#allocation6 + $0x470] sm:$0xff]  ;;  %v1974_v61 = vld [vmem:[#allocation6 + $0x498] sm:$0xff]  ;;  %7088 = vmatprep.subr.bf16.mxu1 %v7087_v59 }
 0x385   :  { %v7089_v3 = vpack.c.bf16 %v1974_v61, %v1969_v60  ;;  %6932 = vmatpush1.bf16.msra.mxu0 %v6931_v2  ;;  %v2005_v59 = vld [vmem:[#allocation6 + $0x590] sm:$0xff]  ;;  %v1999_v2 = vld [vmem:[#allocation6 + $0x560] sm:$0xff] }
 0x386   :  { %1745 = vadd.xlane.f32.xlu0 %v1744_v62  ;;  %v1978_v62 = vld [vmem:[#allocation6 + $0x4b8] sm:$0xff]  ;;  %v7099_v7 = vpack.c.bf16 %v2005_v59, %v2000_v58  ;;  %v2029_v59 = vld [vmem:[#allocation6 + $0x650] sm:$0xff] }
 0x387   :  { %v6933_v4 = vpack.c.bf16 %v1983_v63, %v1978_v62  ;;  %7090 = vmatpush1.bf16.msra.mxu1 %v7089_v3  ;;  %v6939_v62 = vpack.c.bf16 %v1992_v46, %v1987_v44  ;;  %v7097_v63 = vpack.c.bf16 %v1994_v49, %v1989_v48  ;;  %v2008_v3 = vld [vmem:[#allocation6 + $0x5a8] sm:$0xff]  ;;  %v2019_v46 = vld [vmem:[#allocation6 + $0x600] sm:$0xff] }
 0x388   :  { %7092 = vmatprep.subr.bf16.mxu1 %v7091_v9  ;;  %v2010_v9 = vld [vmem:[#allocation6 + $0x5b8] sm:$0xff]  ;;  %v6945_v16 = vpack.c.bf16 %v2013_v8, %v2008_v3  ;;  %v2024_v48 = vld [vmem:[#allocation6 + $0x628] sm:$0xff]  ;;  %v2037_v3 = vld [vmem:[#allocation6 + $0x690] sm:$0xff] }
 0x389   :  { %6934 = vmatprep.subr.bf16.mxu0 %v6933_v4  ;;  %v6941_v4 = vpack.c.bf16 %v2003_v57, %v1998_v55  ;;  %v7103_v17 = vpack.c.bf16 %v2015_v10, %v2010_v9  ;;  %v2028_v49 = vld [vmem:[#allocation6 + $0x648] sm:$0xff]  ;;  %v2027_v55 = vld [vmem:[#allocation6 + $0x640] sm:$0xff] }
 0x38a   :  { %6936 = vmatpush1.bf16.msra.mxu0 %v6935_v13  ;;  %v2039_v9 = vld [vmem:[#allocation6 + $0x6a0] sm:$0xff]  ;;  %v2044_v10 = vld [vmem:[#allocation6 + $0x6c8] sm:$0xff] }
 0x38b   :  { %7094 = vmatpush1.bf16.msra.mxu1 %v7093_v14  ;;  %6938 = vmatprep.subr.bf16.mxu0 %v6937_v20  ;;  %v2007_v14 = vld [vmem:[#allocation6 + $0x5a0] sm:$0xff]  ;;  %v2009_v20 = vld [vmem:[#allocation6 + $0x5b0] sm:$0xff] }
 0x38c   :  { %7096 = vmatprep.subr.bf16.mxu1 %v7095_v22  ;;  %v2018_v22 = vld [vmem:[#allocation6 + $0x5f8] sm:$0xff] }
 0x413   :  { %v1746_v24 = vpop.xlane.xlu0 %1745 }
 0x414   :  { %v1747_v25 = vmul.f32 0.0016129032, %v1746_v24  ;;  %v2023_v24 = vld [vmem:[#allocation6 + $0x620] sm:$0xff] }
 0x416   :  { %v1748_v26 = vadd.f32 1e-05, %v1747_v25  ;;  %v2020_v25 = vld [vmem:[#allocation6 + $0x608] sm:$0xff] }
 0x418   :  { %8245 = vrsqrt.f32 %v1748_v26  ;;  %v2025_v26 = vld [vmem:[#allocation6 + $0x630] sm:$0xff] }
 0x419   :  { %v7107_v44 = vpack.c.bf16 %v2025_v26, %v2020_v25  ;;  %v2049_v25 = vld [vmem:[#allocation6 + $0x6f0] sm:$0xff]  ;;  %v2054_v26 = vld [vmem:[#allocation6 + $0x718] sm:$0xff] }
 0x422   :  { %v8859_v34 = vpop.eup %8245 }
 0x423   :  { %v1777_v36 = vmul.f32 %v8859_v34, %v8849_v30  ;;  %v1776_v37 = vmul.f32 %v8859_v34, %v8853_v31  ;;  %v1779_v39 = vmul.f32 %v8859_v34, %v8857_v33 }
 0x425   :  { %v1787_v42 = vmul.f32 %v1777_v36, %v8824_v47  ;;  %v1786_v43 = vmul.f32 %v1776_v37, %v8824_v47  ;;  %v1789_v50 = vmul.f32 %v1779_v39, %v8824_v47  ;;  %v1782_v51 = vmul.f32 %v1777_v36, %v8810_v6  ;;  %v2002_v6 = vld [vmem:[#allocation6 + $0x578] sm:$0xff] }
 0x426   :  { %v1781_v53 = vmul.f32 %v1776_v37, %v8808_v5  ;;  %v1784_v1 = vmul.f32 %v1779_v39, %v8817_v18  ;;  %v2004_v5 = vld [vmem:[#allocation6 + $0x588] sm:$0xff]  ;;  %v6943_v18 = vpack.c.bf16 %v2002_v6, %v1997_v0  ;;  %v6947_v36 = vpack.c.bf16 %v2012_v15, %v2007_v14  ;;  %v2017_v39 = vld [vmem:[#allocation6 + $0x5f0] sm:$0xff]  ;;  %v2043_v0 = vld [vmem:[#allocation6 + $0x6c0] sm:$0xff] }
 0x427   :  { %v1818_v52 = vsub.f32 %v8863_v35, %v1787_v42  ;;  %v1817_v54 = vsub.f32 %v8871_v38, %v1786_v43  ;;  %v1820_v56 = vsub.f32 %v8877_v40, %v1789_v50  ;;  %v7101_v13 = vpack.c.bf16 %v2004_v5, %v1999_v2  ;;  %v2022_v42 = vld [vmem:[#allocation6 + $0x618] sm:$0xff]  ;;  %v2033_v50 = vld [vmem:[#allocation6 + $0x670] sm:$0xff]  ;;  %v2040_v6 = vld [vmem:[#allocation6 + $0x6a8] sm:$0xff] }
 0x428   :  { %v7105_v37 = vpack.c.bf16 %v2014_v21, %v2009_v20  ;;  %v6949_v43 = vpack.c.bf16 %v2023_v24, %v2018_v22  ;;  %v6953_v57 = vpack.c.bf16 %v2033_v50, %v2028_v49  ;;  %v2050_v14 = vld [vmem:[#allocation6 + $0x6f8] sm:$0xff]  ;;  %v2055_v15 = vld [vmem:[#allocation6 + $0x720] sm:$0xff]  ;;  %v2052_v21 = vld [vmem:[#allocation6 + $0x708] sm:$0xff] }
 0x429   :  { %v8887_v60 = vadd.f32 %v1818_v52, %v1782_v51  ;;  %v8889_v61 = vadd.f32 %v1817_v54, %v1781_v53  ;;  %v8896_v12 = vadd.f32 %v1820_v56, %v1784_v1  ;;  %v2030_v51 = vld [vmem:[#allocation6 + $0x658] sm:$0xff]  ;;  %v2035_v52 = vld [vmem:[#allocation6 + $0x680] sm:$0xff]  ;;  %v6951_v53 = vpack.c.bf16 %v2022_v42, %v2017_v39  ;;  %v2032_v56 = vld [vmem:[#allocation6 + $0x668] sm:$0xff] }
 0x42a   :  { %v7109_v54 = vpack.c.bf16 %v2024_v48, %v2019_v46  ;;  %v7111_v58 = vpack.c.bf16 %v2035_v52, %v2030_v51  ;;  %v2045_v1 = vld [vmem:[#allocation6 + $0x6d0] sm:$0xff]  ;;  %v6955_v2 = vpack.c.bf16 %v2032_v56, %v2027_v55  ;;  %v2047_v20 = vld [vmem:[#allocation6 + $0x6e0] sm:$0xff]  ;;  %v7119_v24 = vpack.c.bf16 %v2055_v15, %v2050_v14  ;;  %v2060_v39 = vld [vmem:[#allocation6 + $0x748] sm:$0xff] }
 0x42b   :  { %2327 = vmatprep.mubr.f32.mxu0 %v8887_v60  ;;  %2540 = vmatprep.mubr.f32.mxu1 %v8887_v60  ;;  %v7115_v8 = vpack.c.bf16 %v2045_v1, %v2040_v6  ;;  %v2065_v42 = vld [vmem:[#allocation6 + $0x770] sm:$0xff]  ;;  %v2062_v48 = vld [vmem:[#allocation6 + $0x758] sm:$0xff]  ;;  %v2059_v51 = vld [vmem:[#allocation6 + $0x740] sm:$0xff] }
 0x42c   :  { %2328 = vmatmul.mubr.f32.vlgmr.msra.gmra.mrb[6].mxu0 %v8889_v61  ;;  %2541 = vmatmul.mubr.f32.vlgmr.msra.gmra.mrb[6].mxu1 %v8889_v61  ;;  %v2057_v46 = vld [vmem:[#allocation6 + $0x730] sm:$0xff]  ;;  %v7123_v50 = vpack.c.bf16 %v2065_v42, %v2060_v39  ;;  %v2064_v52 = vld [vmem:[#allocation6 + $0x768] sm:$0xff]  ;;  %v2070_v55 = vld [vmem:[#allocation6 + $0x798] sm:$0xff] }
 0x42d   :  { %6940 = vmatpush1.bf16.msra.mxu0 %v6939_v62  ;;  %7098 = vmatpush1.bf16.msra.mxu1 %v7097_v63  ;;  %v2034_v62 = vld [vmem:[#allocation6 + $0x678] sm:$0xff]  ;;  %v2075_v56 = vld [vmem:[#allocation6 + $0x7c0] sm:$0xff]  ;;  %v2069_v6 = vld [vmem:[#allocation6 + $0x790] sm:$0xff] }
 0x42e   :  { %2398 = vmatprep.mubr.f32.mxu0 %v8896_v12  ;;  %2611 = vmatprep.mubr.f32.mxu1 %v8896_v12  ;;  %v2038_v63 = vld [vmem:[#allocation6 + $0x698] sm:$0xff]  ;;  %v7113_v5 = vpack.c.bf16 %v2034_v62, %v2029_v59  ;;  %v2067_v59 = vld [vmem:[#allocation6 + $0x780] sm:$0xff]  ;;  %v2072_v62 = vld [vmem:[#allocation6 + $0x7a8] sm:$0xff] }
 0x42f   :  { %6942 = vmatprep.subr.bf16.mxu0 %v6941_v4  ;;  %7100 = vmatprep.subr.bf16.mxu1 %v7099_v7  ;;  %v2042_v4 = vld [vmem:[#allocation6 + $0x6b8] sm:$0xff]  ;;  %v6957_v7 = vpack.c.bf16 %v2043_v0, %v2038_v63  ;;  %v7127_v0 = vpack.c.bf16 %v2075_v56, %v2070_v55  ;;  %v2079_v14 = vld [vmem:[#allocation6 + $0x7e0] sm:$0xff]  ;;  %v2084_v15 = vld [vmem:[#allocation6 + $0x808] sm:$0xff] }
 0x430   :  { %v2074_v1 = vld [vmem:[#allocation6 + $0x7b8] sm:$0xff]  ;;  %v2089_v39 = vld [vmem:[#allocation6 + $0x830] sm:$0xff]  ;;  %v2099_v55 = vld [vmem:[#allocation6 + $0x880] sm:$0xff] }
 0x431   :  { %6944 = vmatpush1.bf16.msra.mxu0 %v6943_v18  ;;  %7102 = vmatpush1.bf16.msra.mxu1 %v7101_v13  ;;  %v2048_v18 = vld [vmem:[#allocation6 + $0x6e8] sm:$0xff]  ;;  %v2053_v13 = vld [vmem:[#allocation6 + $0x710] sm:$0xff]  ;;  %v2094_v42 = vld [vmem:[#allocation6 + $0x858] sm:$0xff] }
 0x432   :  { %6946 = vmatprep.subr.bf16.mxu0 %v6945_v16  ;;  %7104 = vmatprep.subr.bf16.mxu1 %v7103_v17  ;;  %v6959_v16 = vpack.c.bf16 %v2042_v4, %v2037_v3  ;;  %v7117_v17 = vpack.c.bf16 %v2044_v10, %v2039_v9  ;;  %v6961_v22 = vpack.c.bf16 %v2053_v13, %v2048_v18  ;;  %v2080_v3 = vld [vmem:[#allocation6 + $0x7e8] sm:$0xff]  ;;  %v2085_v4 = vld [vmem:[#allocation6 + $0x810] sm:$0xff]  ;;  %v2082_v10 = vld [vmem:[#allocation6 + $0x7f8] sm:$0xff] }
 0x433   :  { %v2077_v9 = vld [vmem:[#allocation6 + $0x7d0] sm:$0xff]  ;;  %v7131_v13 = vpack.c.bf16 %v2085_v4, %v2080_v3  ;;  %v2104_v56 = vld [vmem:[#allocation6 + $0x8a8] sm:$0xff]  ;;  %v2114_v4 = vld [vmem:[#allocation6 + $0x8f8] sm:$0xff] }
 0x434   :  { %v2109_v3 = vld [vmem:[#allocation6 + $0x8d0] sm:$0xff] }
 0x435   :  { %6948 = vmatpush1.bf16.msra.mxu0 %v6947_v36  ;;  %7106 = vmatpush1.bf16.msra.mxu1 %v7105_v37  ;;  %v2058_v36 = vld [vmem:[#allocation6 + $0x738] sm:$0xff]  ;;  %v2063_v37 = vld [vmem:[#allocation6 + $0x760] sm:$0xff] }
 0x436   :  { %6950 = vmatprep.subr.bf16.mxu0 %v6949_v43  ;;  %7108 = vmatprep.subr.bf16.mxu1 %v7107_v44  ;;  %v6963_v43 = vpack.c.bf16 %v2052_v21, %v2047_v20  ;;  %v7121_v44 = vpack.c.bf16 %v2054_v26, %v2049_v25  ;;  %v6965_v49 = vpack.c.bf16 %v2063_v37, %v2058_v36  ;;  %v2090_v20 = vld [vmem:[#allocation6 + $0x838] sm:$0xff]  ;;  %v2095_v21 = vld [vmem:[#allocation6 + $0x860] sm:$0xff]  ;;  %v2092_v26 = vld [vmem:[#allocation6 + $0x848] sm:$0xff] }
 0x437   :  { %v2087_v25 = vld [vmem:[#allocation6 + $0x820] sm:$0xff]  ;;  %v7135_v37 = vpack.c.bf16 %v2095_v21, %v2090_v20  ;;  %v2124_v21 = vld [vmem:[#allocation6 + $0x948] sm:$0xff] }
 0x438   :  { %v2119_v20 = vld [vmem:[#allocation6 + $0x920] sm:$0xff] }
 0x439   :  { %6952 = vmatpush1.bf16.msra.mxu0 %v6951_v53  ;;  %7110 = vmatpush1.bf16.msra.mxu1 %v7109_v54  ;;  %v2068_v53 = vld [vmem:[#allocation6 + $0x788] sm:$0xff]  ;;  %v2073_v54 = vld [vmem:[#allocation6 + $0x7b0] sm:$0xff] }
 0x43a   :  { %6954 = vmatprep.subr.bf16.mxu0 %v6953_v57  ;;  %7112 = vmatprep.subr.bf16.mxu1 %v7111_v58  ;;  %v6967_v57 = vpack.c.bf16 %v2062_v48, %v2057_v46  ;;  %v7125_v58 = vpack.c.bf16 %v2064_v52, %v2059_v51  ;;  %v6969_v63 = vpack.c.bf16 %v2073_v54, %v2068_v53  ;;  %v2100_v46 = vld [vmem:[#allocation6 + $0x888] sm:$0xff]  ;;  %v2105_v48 = vld [vmem:[#allocation6 + $0x8b0] sm:$0xff]  ;;  %v2102_v52 = vld [vmem:[#allocation6 + $0x898] sm:$0xff] }
 0x43b   :  { %v2097_v51 = vld [vmem:[#allocation6 + $0x870] sm:$0xff]  ;;  %v7139_v54 = vpack.c.bf16 %v2105_v48, %v2100_v46 }
 0x43c   :  { %v2129_v48 = vld [vmem:[#allocation6 + $0x970] sm:$0xff] }
 0x43d   :  { %6956 = vmatpush1.bf16.msra.mxu0 %v6955_v2  ;;  %7114 = vmatpush1.bf16.msra.mxu1 %v7113_v5  ;;  %v2078_v2 = vld [vmem:[#allocation6 + $0x7d8] sm:$0xff]  ;;  %v2083_v5 = vld [vmem:[#allocation6 + $0x800] sm:$0xff] }
 0x43e   :  { %6958 = vmatprep.subr.bf16.mxu0 %v6957_v7  ;;  %7116 = vmatprep.subr.bf16.mxu1 %v7115_v8  ;;  %v6971_v7 = vpack.c.bf16 %v2072_v62, %v2067_v59  ;;  %v7129_v8 = vpack.c.bf16 %v2074_v1, %v2069_v6  ;;  %v6973_v18 = vpack.c.bf16 %v2083_v5, %v2078_v2  ;;  %v2110_v59 = vld [vmem:[#allocation6 + $0x8d8] sm:$0xff]  ;;  %v2115_v62 = vld [vmem:[#allocation6 + $0x900] sm:$0xff]  ;;  %v2112_v1 = vld [vmem:[#allocation6 + $0x8e8] sm:$0xff] }
 0x43f   :  { %v2107_v6 = vld [vmem:[#allocation6 + $0x8c0] sm:$0xff]  ;;  %v7143_v5 = vpack.c.bf16 %v2115_v62, %v2110_v59  ;;  %v8908_v59 = vrot.slane %v8845_v29, %v8802_v41 }
 0x441   :  { %6960 = vmatpush1.bf16.msra.mxu0 %v6959_v16  ;;  %7118 = vmatpush1.bf16.msra.mxu1 %v7117_v17  ;;  %v2088_v16 = vld [vmem:[#allocation6 + $0x828] sm:$0xff]  ;;  %v2093_v17 = vld [vmem:[#allocation6 + $0x850] sm:$0xff] }
 0x442   :  { %6962 = vmatprep.subr.bf16.mxu0 %v6961_v22  ;;  %7120 = vmatprep.subr.bf16.mxu1 %v7119_v24  ;;  %v6975_v22 = vpack.c.bf16 %v2082_v10, %v2077_v9  ;;  %v7133_v24 = vpack.c.bf16 %v2084_v15, %v2079_v14  ;;  %v6977_v36 = vpack.c.bf16 %v2093_v17, %v2088_v16  ;;  %v2120_v9 = vld [vmem:[#allocation6 + $0x928] sm:$0xff]  ;;  %v2125_v10 = vld [vmem:[#allocation6 + $0x950] sm:$0xff]  ;;  %v2122_v15 = vld [vmem:[#allocation6 + $0x938] sm:$0xff] }
 0x443   :  { %v2117_v14 = vld [vmem:[#allocation6 + $0x910] sm:$0xff]  ;;  %v7147_v17 = vpack.c.bf16 %v2125_v10, %v2120_v9  ;;  %v2147_v9 = vld [vmem:[#allocation6 + $0xa00] sm:$0xff]  ;;  %v2152_v10 = vld [vmem:[#allocation6 + $0xa28] sm:$0xff] }
 0x445   :  { %6964 = vmatpush1.bf16.msra.mxu0 %v6963_v43  ;;  %7122 = vmatpush1.bf16.msra.mxu1 %v7121_v44  ;;  %v2098_v43 = vld [vmem:[#allocation6 + $0x878] sm:$0xff]  ;;  %v2103_v44 = vld [vmem:[#allocation6 + $0x8a0] sm:$0xff] }
 0x446   :  { %6966 = vmatprep.subr.bf16.mxu0 %v6965_v49  ;;  %7124 = vmatprep.subr.bf16.mxu1 %v7123_v50  ;;  %v6979_v49 = vpack.c.bf16 %v2092_v26, %v2087_v25  ;;  %v7137_v50 = vpack.c.bf16 %v2094_v42, %v2089_v39  ;;  %v6981_v53 = vpack.c.bf16 %v2103_v44, %v2098_v43  ;;  %v2133_v25 = vld [vmem:[#allocation6 + $0x990] sm:$0xff]  ;;  %v2130_v26 = vld [vmem:[#allocation6 + $0x978] sm:$0xff]  ;;  %v2127_v42 = vld [vmem:[#allocation6 + $0x960] sm:$0xff] }
 0x447   :  { %v7149_v39 = vpack.c.bf16 %v2124_v21, %v2119_v20  ;;  %v2132_v43 = vld [vmem:[#allocation6 + $0x988] sm:$0xff]  ;;  %v2163_v20 = vld [vmem:[#allocation6 + $0xa80] sm:$0xff] }
 0x448   :  { %v2160_v21 = vld [vmem:[#allocation6 + $0xa68] sm:$0xff] }
 0x449   :  { %6968 = vmatpush1.bf16.msra.mxu0 %v6967_v57  ;;  %7126 = vmatpush1.bf16.msra.mxu1 %v7125_v58  ;;  %v2108_v57 = vld [vmem:[#allocation6 + $0x8c8] sm:$0xff]  ;;  %v2113_v58 = vld [vmem:[#allocation6 + $0x8f0] sm:$0xff] }
 0x44a   :  { %6970 = vmatprep.subr.bf16.mxu0 %v6969_v63  ;;  %7128 = vmatprep.subr.bf16.mxu1 %v7127_v0  ;;  %v6983_v63 = vpack.c.bf16 %v2102_v52, %v2097_v51  ;;  %v7141_v0 = vpack.c.bf16 %v2104_v56, %v2099_v55  ;;  %v6985_v2 = vpack.c.bf16 %v2113_v58, %v2108_v57  ;;  %v2143_v52 = vld [vmem:[#allocation6 + $0x9e0] sm:$0xff]  ;;  %v2137_v57 = vld [vmem:[#allocation6 + $0x9b0] sm:$0xff]  ;;  %v2142_v58 = vld [vmem:[#allocation6 + $0x9d8] sm:$0xff] }
 0x44b   :  { %v6995_v55 = vpack.c.bf16 %v2132_v43, %v2127_v42 }
 0x44d   :  { %6972 = vmatpush1.bf16.msra.mxu0 %v6971_v7  ;;  %7130 = vmatpush1.bf16.msra.mxu1 %v7129_v8  ;;  %v2118_v7 = vld [vmem:[#allocation6 + $0x918] sm:$0xff]  ;;  %v2123_v8 = vld [vmem:[#allocation6 + $0x940] sm:$0xff] }
 0x44e   :  { %6974 = vmatprep.subr.bf16.mxu0 %v6973_v18  ;;  %7132 = vmatprep.subr.bf16.mxu1 %v7131_v13  ;;  %v6987_v18 = vpack.c.bf16 %v2112_v1, %v2107_v6  ;;  %v7145_v13 = vpack.c.bf16 %v2114_v4, %v2109_v3  ;;  %v6989_v16 = vpack.c.bf16 %v2123_v8, %v2118_v7  ;;  %v2144_v6 = vld [vmem:[#allocation6 + $0x9e8] sm:$0xff]  ;;  %v2150_v3 = vld [vmem:[#allocation6 + $0xa18] sm:$0xff]  ;;  %v2155_v4 = vld [vmem:[#allocation6 + $0xa40] sm:$0xff] }
 0x44f   :  { %v6999_v7 = vpack.c.bf16 %v2142_v58, %v2137_v57  ;;  %v2169_v58 = vld [vmem:[#allocation6 + $0xab0] sm:$0xff] }
 0x451   :  { %6976 = vmatpush1.bf16.msra.mxu0 %v6975_v22  ;;  %7134 = vmatpush1.bf16.msra.mxu1 %v7133_v24  ;;  %v2128_v22 = vld [vmem:[#allocation6 + $0x968] sm:$0xff]  ;;  %v8902_v24 = vrot.slane %v8840_v28, %v8802_v41 }
 0x452   :  { %6978 = vmatprep.subr.bf16.mxu0 %v6977_v36  ;;  %7136 = vmatprep.subr.bf16.mxu1 %v7135_v37  ;;  %v2135_v36 = vld [vmem:[#allocation6 + $0x9a0] sm:$0xff]  ;;  %v6991_v37 = vpack.c.bf16 %v2122_v15, %v2117_v14  ;;  %v6993_v44 = vpack.c.bf16 %v2133_v25, %v2128_v22  ;;  %v7159_v14 = vpack.c.bf16 %v2155_v4, %v2150_v3  ;;  %v2149_v15 = vld [vmem:[#allocation6 + $0xa10] sm:$0xff] }
 0x453   :  { %v7151_v46 = vpack.c.bf16 %v2135_v36, %v2130_v26  ;;  %v1778_v51 = vmul.f32 %v8859_v34, %v8902_v24  ;;  %v2165_v22 = vld [vmem:[#allocation6 + $0xa90] sm:$0xff]  ;;  %v7003_v26 = vpack.c.bf16 %v2152_v10, %v2147_v9  ;;  %v2179_v10 = vld [vmem:[#allocation6 + $0xb00] sm:$0xff] }
 0x454   :  { %v2177_v4 = vld [vmem:[#allocation6 + $0xaf0] sm:$0xff] }
 0x455   :  { %6980 = vmatpush1.bf16.msra.mxu0 %v6979_v49  ;;  %7138 = vmatpush1.bf16.msra.mxu1 %v7137_v50  ;;  %v2134_v49 = vld [vmem:[#allocation6 + $0x998] sm:$0xff]  ;;  %v1788_v1 = vmul.f32 %v1778_v51, %v8824_v47  ;;  %v1783_v25 = vmul.f32 %v1778_v51, %v8814_v11 }
 0x456   :  { %6982 = vmatprep.subr.bf16.mxu0 %v6981_v53  ;;  %7140 = vmatprep.subr.bf16.mxu1 %v7139_v54  ;;  %v2138_v50 = vld [vmem:[#allocation6 + $0x9b8] sm:$0xff]  ;;  %v2140_v53 = vld [vmem:[#allocation6 + $0x9c8] sm:$0xff]  ;;  %v2145_v54 = vld [vmem:[#allocation6 + $0x9f0] sm:$0xff]  ;;  %v7153_v56 = vpack.c.bf16 %v2134_v49, %v2129_v48 }
 0x457   :  { %v6997_v62 = vpack.c.bf16 %v2143_v52, %v2138_v50  ;;  %v2164_v48 = vld [vmem:[#allocation6 + $0xa88] sm:$0xff]  ;;  %v2173_v50 = vld [vmem:[#allocation6 + $0xad0] sm:$0xff]  ;;  %v2170_v52 = vld [vmem:[#allocation6 + $0xab8] sm:$0xff] }
 0x458   :  { %v2168_v49 = vld [vmem:[#allocation6 + $0xaa8] sm:$0xff] }
 0x459   :  { %6984 = vmatpush1.bf16.msra.mxu0 %v6983_v63  ;;  %7142 = vmatpush1.bf16.msra.mxu1 %v7141_v0  ;;  %v7155_v63 = vpack.c.bf16 %v2145_v54, %v2140_v53  ;;  %v2139_v0 = vld [vmem:[#allocation6 + $0x9c0] sm:$0xff] }
 0x45a   :  { %6986 = vmatprep.subr.bf16.mxu0 %v6985_v2  ;;  %7144 = vmatprep.subr.bf16.mxu1 %v7143_v5  ;;  %v2148_v2 = vld [vmem:[#allocation6 + $0xa08] sm:$0xff]  ;;  %v2153_v5 = vld [vmem:[#allocation6 + $0xa30] sm:$0xff]  ;;  %v7157_v8 = vpack.c.bf16 %v2144_v6, %v2139_v0  ;;  %v2175_v53 = vld [vmem:[#allocation6 + $0xae0] sm:$0xff] }
 0x45b   :  { %v2167_v54 = vld [vmem:[#allocation6 + $0xaa0] sm:$0xff]  ;;  %v7167_v57 = vpack.c.bf16 %v2175_v53, %v2170_v52  ;;  %v2180_v6 = vld [vmem:[#allocation6 + $0xb08] sm:$0xff]  ;;  %v2197_v53 = vld [vmem:[#allocation6 + $0xb90] sm:$0xff] }
 0x45c   :  { %v2183_v0 = vld [vmem:[#allocation6 + $0xb20] sm:$0xff] }
 0x45d   :  { %6988 = vmatpush1.bf16.msra.mxu0 %v6987_v18  ;;  %7146 = vmatpush1.bf16.msra.mxu1 %v7145_v13  ;;  %v1819_v18 = vsub.f32 %v8908_v59, %v1788_v1  ;;  %v7001_v13 = vpack.c.bf16 %v2153_v5, %v2148_v2  ;;  %v2185_v1 = vld [vmem:[#allocation6 + $0xb30] sm:$0xff]  ;;  %v8535_v2 = vmov 0.0  }
 0x45e   :  { %6990 = vmatprep.subr.bf16.mxu0 %v6989_v16  ;;  %7148 = vmatprep.subr.bf16.mxu1 %v7147_v17  ;;  %v2154_v16 = vld [vmem:[#allocation6 + $0xa38] sm:$0xff]  ;;  %v7171_v9 = vpack.c.bf16 %v2185_v1, %v2180_v6  ;;  %v2207_v1 = vld [vmem:[#allocation6 + $0xbe0] sm:$0xff] }
 0x45f   :  { %v2158_v17 = vld [vmem:[#allocation6 + $0xa58] sm:$0xff]  ;;  %v7161_v36 = vpack.c.bf16 %v2154_v16, %v2149_v15  ;;  %v8913_v42 = vadd.f32 %v1819_v18, %v1783_v25  ;;  %v2184_v18 = vld [vmem:[#allocation6 + $0xb28] sm:$0xff]  ;;  %v2195_v16 = vld [vmem:[#allocation6 + $0xb80] sm:$0xff] }
 0x460   :  { %v7005_v43 = vpack.c.bf16 %v2163_v20, %v2158_v17  ;;  %v2190_v15 = vld [vmem:[#allocation6 + $0xb58] sm:$0xff]  ;;  %v7173_v20 = vpack.c.bf16 %v2184_v18, %v2179_v10  ;;  %v2189_v25 = vld [vmem:[#allocation6 + $0xb50] sm:$0xff]  ;;  %v1911_v10 = vld [vmem:[#allocation6 + $0x2a0] sm:$0xff] }
 0x461   :  { %6992 = vmatpush1.bf16.msra.mxu0 %v6991_v37  ;;  %7150 = vmatpush1.bf16.msra.mxu1 %v7149_v39  ;;  %v2157_v37 = vld [vmem:[#allocation6 + $0xa50] sm:$0xff]  ;;  %v2162_v39 = vld [vmem:[#allocation6 + $0xa78] sm:$0xff]  ;;  %v1916_v18 = vld [vmem:[#allocation6 + $0x2c8] sm:$0xff] }
 0x462   :  { %6994 = vmatprep.subr.bf16.mxu0 %v6993_v44  ;;  %7152 = vmatprep.subr.bf16.mxu1 %v7151_v46  ;;  %v7163_v44 = vpack.c.bf16 %v2165_v22, %v2160_v21  ;;  %v2159_v46 = vld [vmem:[#allocation6 + $0xa60] sm:$0xff]  ;;  %v7007_v11 = vpack.c.bf16 %v2162_v39, %v2157_v37  ;;  %v2192_v22 = vld [vmem:[#allocation6 + $0xb68] sm:$0xff]  ;;  %v2194_v37 = vld [vmem:[#allocation6 + $0xb78] sm:$0xff] }
 0x463   :  { %v7165_v51 = vpack.c.bf16 %v2164_v48, %v2159_v46  ;;  %v2187_v21 = vld [vmem:[#allocation6 + $0xb40] sm:$0xff]  ;;  %v2198_v39 = vld [vmem:[#allocation6 + $0xb98] sm:$0xff]  ;;  %v2200_v46 = vld [vmem:[#allocation6 + $0xba8] sm:$0xff] }
 0x464   :  { %v2205_v48 = vld [vmem:[#allocation6 + $0xbd0] sm:$0xff] }
 0x465   :  { %6996 = vmatpush1.bf16.msra.mxu0 %v6995_v55  ;;  %7154 = vmatpush1.bf16.msra.mxu1 %v7153_v56  ;;  %v2172_v55 = vld [vmem:[#allocation6 + $0xac8] sm:$0xff]  ;;  %v7009_v56 = vpack.c.bf16 %v2173_v50, %v2168_v49  ;;  %v7019_v49 = vpack.c.bf16 %v2192_v22, %v2187_v21  ;;  %v7177_v50 = vpack.c.bf16 %v2194_v37, %v2189_v25  ;;  %v1831_v21 = vld [vmem:[#allocation6 + $0x20] sm:$0xff]  ;;  %v1926_v37 = vld [vmem:[#allocation6 + $0x318] sm:$0xff] }
 0x466   :  { %6998 = vmatprep.subr.bf16.mxu0 %v6997_v62  ;;  %7156 = vmatprep.subr.bf16.mxu1 %v7155_v63  ;;  %v2174_v62 = vld [vmem:[#allocation6 + $0xad8] sm:$0xff]  ;;  %v7011_v5 = vpack.c.bf16 %v2172_v55, %v2167_v54  ;;  %v2199_v54 = vld [vmem:[#allocation6 + $0xba0] sm:$0xff]  ;;  %v2204_v55 = vld [vmem:[#allocation6 + $0xbc8] sm:$0xff] }
 0x467   :  { %v2178_v63 = vld [vmem:[#allocation6 + $0xaf8] sm:$0xff]  ;;  %v7169_v3 = vpack.c.bf16 %v2174_v62, %v2169_v58  ;;  %v2215_v62 = vld [vmem:[#allocation6 + $0xc20] sm:$0xf]  ;;  %v1996_v25 = vld [vmem:[#allocation6 + $0x548] sm:$0xff] }
 0x468   :  { %v2210_v58 = vld [vmem:[#allocation6 + $0xbf8] sm:$0xff]  ;;  %v1991_v22 = vld [vmem:[#allocation6 + $0x520] sm:$0xff] }
 0x469   :  { %7000 = vmatpush1.bf16.msra.mxu0 %v6999_v7  ;;  %7158 = vmatpush1.bf16.msra.mxu1 %v7157_v8  ;;  %v2182_v7 = vld [vmem:[#allocation6 + $0xb18] sm:$0xff]  ;;  %v7013_v8 = vpack.c.bf16 %v2183_v0, %v2178_v63  ;;  %v7181_v0 = vpack.c.bf16 %v2204_v55, %v2199_v54  ;;  %v1931_v54 = vld [vmem:[#allocation6 + $0x340] sm:$0xff]  ;;  %v1936_v55 = vld [vmem:[#allocation6 + $0x368] sm:$0xff] }
 0x46a   :  { %7002 = vmatprep.subr.bf16.mxu0 %v7001_v13  ;;  %7160 = vmatprep.subr.bf16.mxu1 %v7159_v14  ;;  %v2188_v13 = vld [vmem:[#allocation6 + $0xb48] sm:$0xff]  ;;  %v2193_v14 = vld [vmem:[#allocation6 + $0xb70] sm:$0xff]  ;;  %v7015_v17 = vpack.c.bf16 %v2182_v7, %v2177_v4  ;;  %v7183_v4 = vpack.c.bf16 %v2215_v62, %v2210_v58  ;;  %v7197_v62 = vpack.c.bf16 %v1936_v55, %v1931_v54 }
 0x46b   :  { %v2209_v7 = vld [vmem:[#allocation6 + $0xbf0] sm:$0xff] }
 0x46c   :  { %2399 = vmatmul.mubr.f32.vlgmr.msra.gmra.mrb[6].mxu0 %v8913_v42  ;;  %2612 = vmatmul.mubr.f32.vlgmr.msra.gmra.mrb[6].mxu1 %v8913_v42  ;;  %v1881_v55 = vld [vmem:[#allocation6 + $0x1b0] sm:$0xff] }
 0x46d   :  { %7004 = vmatpush1.bf16.msra.mxu0 %v7003_v26  ;;  %7162 = vmatpush1.bf16.msra.mxu1 %v7161_v36  ;;  %v7017_v26 = vpack.c.bf16 %v2193_v14, %v2188_v13  ;;  %v7175_v36 = vpack.c.bf16 %v2195_v16, %v2190_v15  ;;  %v2071_v13 = vld [vmem:[#allocation6 + $0x7a0] sm:$0xff]  ;;  %v2076_v14 = vld [vmem:[#allocation6 + $0x7c8] sm:$0xff] }
 0x46e   :  { %7006 = vmatprep.subr.bf16.mxu0 %v7005_v43  ;;  %7164 = vmatprep.subr.bf16.mxu1 %v7163_v44  ;;  %v2203_v43 = vld [vmem:[#allocation6 + $0xbc0] sm:$0xff]  ;;  %v8921_v44 = vrot.slane %v8840_v28, %v8793_v27 }
 0x46f   :  { %2469 = vmatprep.mubr.f32.mxu0 %v8535_v2  ;;  %2682 = vmatprep.mubr.f32.mxu1 %v8535_v2  ;;  %v7021_v52 = vpack.c.bf16 %v2203_v43, %v2198_v39  ;;  %v2081_v39 = vld [vmem:[#allocation6 + $0x7f0] sm:$0xff]  ;;  %v2086_v43 = vld [vmem:[#allocation6 + $0x818] sm:$0xff] }
 0x470   :  { %v1780_v28 = vmul.f32 %v8859_v34, %v8921_v44 }
 0x471   :  { %7008 = vmatpush1.bf16.msra.mxu0 %v7007_v11  ;;  %7166 = vmatpush1.bf16.msra.mxu1 %v7165_v51  ;;  %v2202_v11 = vld [vmem:[#allocation6 + $0xbb8] sm:$0xff]  ;;  %v7179_v51 = vpack.c.bf16 %v2205_v48, %v2200_v46 }
 0x472   :  { %7010 = vmatprep.subr.bf16.mxu0 %v7009_v56  ;;  %7168 = vmatprep.subr.bf16.mxu1 %v7167_v57  ;;  %v2208_v56 = vld [vmem:[#allocation6 + $0xbe8] sm:$0xff]  ;;  %v2213_v57 = vld [vmem:[#allocation6 + $0xc10] sm:$0xf]  ;;  %v7023_v63 = vpack.c.bf16 %v2202_v11, %v2197_v53 }
 0x473   :  { %v7025_v34 = vpack.c.bf16 %v2213_v57, %v2208_v56  ;;  %v2001_v53 = vld [vmem:[#allocation6 + $0x570] sm:$0xff]  ;;  %v2091_v56 = vld [vmem:[#allocation6 + $0x840] sm:$0xff] }
 0x475   :  { %7012 = vmatpush1.bf16.msra.mxu0 %v7011_v5  ;;  %7170 = vmatpush1.bf16.msra.mxu1 %v7169_v3  ;;  %v2212_v5 = vld [vmem:[#allocation6 + $0xc08] sm:$0xf]  ;;  %v8931_v3 = vrot.slane %v8845_v29, %v8793_v27 }
 0x476   :  { %7014 = vmatprep.subr.bf16.mxu0 %v7013_v8  ;;  %7172 = vmatprep.subr.bf16.mxu1 %v7171_v9  ;;  %v2214_v8 = vld [vmem:[#allocation6 + $0xc18] sm:$0xf]  ;;  %v1790_v9 = vmul.f32 %v1780_v28, %v8824_v47  ;;  %v7028_v15 = vpack.c.bf16 %v2212_v5, %v2207_v1  ;;  %v1836_v47 = vld [vmem:[#allocation6 + $0x48] sm:$0xff]  ;;  %v2011_v1 = vld [vmem:[#allocation6 + $0x5c0] sm:$0xff] }
 0x477   :  { %v7186_v16 = vpack.c.bf16 %v2214_v8, %v2209_v7  ;;  %v7191_v46 = vpack.c.bf16 %v1836_v47, %v1831_v21  ;;  %v1946_v7 = vld [vmem:[#allocation6 + $0x3b8] sm:$0xff]  ;;  %v2101_v8 = vld [vmem:[#allocation6 + $0x890] sm:$0xff]  ;;  %v1956_v21 = vld [vmem:[#allocation6 + $0x408] sm:$0xff] }
 0x478   :  { %v1821_v29 = vsub.f32 %v8931_v3, %v1790_v9  ;;  %v2106_v9 = vld [vmem:[#allocation6 + $0x8b8] sm:$0xff]  ;;  %v2111_v47 = vld [vmem:[#allocation6 + $0x8e0] sm:$0xff] }
 0x479   :  { %7016 = vmatpush1.bf16.msra.mxu0 %v7015_v17  ;;  %7174 = vmatpush1.bf16.msra.mxu1 %v7173_v20  ;;  %v7189_v17 = vpack.c.bf16 %v1916_v18, %v1911_v10  ;;  %v7221_v20 = vpack.c.bf16 %v2076_v14, %v2071_v13  ;;  %v1861_v14 = vld [vmem:[#allocation6 + $0x110] sm:$0xff] }
 0x47a   :  { %7018 = vmatprep.subr.bf16.mxu0 %v7017_v26  ;;  %7176 = vmatprep.subr.bf16.mxu1 %v7175_v36  ;;  %v1921_v26 = vld [vmem:[#allocation6 + $0x2f0] sm:$0xff]  ;;  %v1785_v36 = vmul.f32 %v1780_v28, %v8819_v19  ;;  %v7225_v19 = vpack.c.bf16 %v2086_v43, %v2081_v39  ;;  %v2096_v28 = vld [vmem:[#allocation6 + $0x868] sm:$0xff]  ;;  %v2031_v43 = vld [vmem:[#allocation6 + $0x660] sm:$0xff] }
 0x47b   :  { %v7193_v11 = vpack.c.bf16 %v1926_v37, %v1921_v26  ;;  %v7229_v5 = vpack.c.bf16 %v2096_v28, %v2091_v56  ;;  %v1871_v37 = vld [vmem:[#allocation6 + $0x160] sm:$0xff]  ;;  %v1876_v39 = vld [vmem:[#allocation6 + $0x188] sm:$0xff]  ;;  %v1886_v56 = vld [vmem:[#allocation6 + $0x1d8] sm:$0xff] }
 0x47c   :  { %v8944_v48 = vadd.f32 %v1821_v29, %v1785_v36  ;;  %v7233_v29 = vpack.c.bf16 %v2106_v9, %v2101_v8  ;;  %v2041_v28 = vld [vmem:[#allocation6 + $0x6b0] sm:$0xff]  ;;  %v1896_v8 = vld [vmem:[#allocation6 + $0x228] sm:$0xff]  ;;  %v2051_v9 = vld [vmem:[#allocation6 + $0x700] sm:$0xff] }
 0x47d   :  { %7020 = vmatpush1.bf16.msra.mxu0 %v7019_v49  ;;  %7178 = vmatpush1.bf16.msra.mxu1 %v7177_v50  ;;  %v7223_v49 = vpack.c.bf16 %v1996_v25, %v1991_v22  ;;  %v1841_v50 = vld [vmem:[#allocation6 + $0x70] sm:$0xff]  ;;  %v2116_v22 = vld [vmem:[#allocation6 + $0x908] sm:$0xff] }
 0x47e   :  { %7022 = vmatprep.subr.bf16.mxu0 %v7021_v52  ;;  %7180 = vmatprep.subr.bf16.mxu1 %v7179_v51  ;;  %v1846_v52 = vld [vmem:[#allocation6 + $0x98] sm:$0xff] }
 0x47f   :  { %v2006_v51 = vld [vmem:[#allocation6 + $0x598] sm:$0xff]  ;;  %v7195_v57 = vpack.c.bf16 %v1846_v52, %v1841_v50  ;;  %v1961_v50 = vld [vmem:[#allocation6 + $0x430] sm:$0xff] }
 0x480   :  { %v7227_v58 = vpack.c.bf16 %v2006_v51, %v2001_v53  ;;  %v1966_v52 = vld [vmem:[#allocation6 + $0x458] sm:$0xff]  ;;  %v2121_v53 = vld [vmem:[#allocation6 + $0x930] sm:$0xff] }
 0x481   :  { %7024 = vmatpush1.bf16.msra.mxu0 %v7023_v63  ;;  %7182 = vmatpush1.bf16.msra.mxu1 %v7181_v0  ;;  %v1851_v63 = vld [vmem:[#allocation6 + $0xc0] sm:$0xff]  ;;  %v1856_v0 = vld [vmem:[#allocation6 + $0xe8] sm:$0xff]  ;;  %v7209_v54 = vpack.c.bf16 %v1966_v52, %v1961_v50  ;;  %v2161_v50 = vld [vmem:[#allocation6 + $0xa70] sm:$0xff] }
 0x482   :  { %7027 = vmatprep.subr.msk.bf16.mxu0 %vm8925_vm3, %v7025_v34  ;;  %7185 = vmatprep.subr.msk.bf16.mxu1 %vm8925_vm3, %v7183_v4  ;;  %v2016_v34 = vld [vmem:[#allocation6 + $0x5e8] sm:$0xff]  ;;  %v1941_v4 = vld [vmem:[#allocation6 + $0x390] sm:$0xff]  ;;  %v7199_v10 = vpack.c.bf16 %v1856_v0, %v1851_v63  ;;  %v2131_v0 = vld [vmem:[#allocation6 + $0x980] sm:$0xff] }
 0x483   :  { %v7231_v18 = vpack.c.bf16 %v2016_v34, %v2011_v1  ;;  %v7201_v13 = vpack.c.bf16 %v1946_v7, %v1941_v4  ;;  %v1976_v63 = vld [vmem:[#allocation6 + $0x4a8] sm:$0xff]  ;;  %v1891_v7 = vld [vmem:[#allocation6 + $0x200] sm:$0xff]  ;;  %v2166_v52 = vld [vmem:[#allocation6 + $0xa98] sm:$0xff] }
 0x484   :  { %v2136_v1 = vld [vmem:[#allocation6 + $0x9a8] sm:$0xff] }
 0x485   :  { %7030 = vmatpush1.bf16.msk.msra.mxu0 %vm8925_vm3, %v7028_v15  ;;  %7188 = vmatpush1.bf16.msk.msra.mxu1 %vm8925_vm3, %v7186_v16  ;;  %v1866_v15 = vld [vmem:[#allocation6 + $0x138] sm:$0xff]  ;;  %v2021_v16 = vld [vmem:[#allocation6 + $0x610] sm:$0xff] }
 0x486   :  { %7190 = vmatprep.subr.bf16.mxu0 %v7189_v17  ;;  %7222 = vmatprep.subr.bf16.mxu1 %v7221_v20  ;;  %v2026_v17 = vld [vmem:[#allocation6 + $0x638] sm:$0xff]  ;;  %v1951_v20 = vld [vmem:[#allocation6 + $0x3e0] sm:$0xff]  ;;  %v7203_v25 = vpack.c.bf16 %v1866_v15, %v1861_v14  ;;  %v2141_v15 = vld [vmem:[#allocation6 + $0x9d0] sm:$0xff] }
 0x487   :  { %v7235_v26 = vpack.c.bf16 %v2026_v17, %v2021_v16  ;;  %v7205_v36 = vpack.c.bf16 %v1956_v21, %v1951_v20  ;;  %v1986_v14 = vld [vmem:[#allocation6 + $0x4f8] sm:$0xff]  ;;  %v1901_v21 = vld [vmem:[#allocation6 + $0x250] sm:$0xff] }
 0x488   :  { %5604 = vmatmul.mubr.msk.f32.vlgmr.msra.gmra.mrb[6].mxu0 %vm1723_vm0, %v8944_v48  ;;  %5607 = vmatmul.mubr.msk.f32.vlgmr.msra.gmra.mrb[6].mxu1 %vm1723_vm0, %v8944_v48  ;;  %v2146_v16 = vld [vmem:[#allocation6 + $0x9f8] sm:$0xff] }
 0x489   :  { %7192 = vmatpush3.bf16.msra.mxu0 %v7191_v46  ;;  %2753 = vmatprep.mubr.f32.mxu0 %v8887_v60  ;;  %v7237_v46 = vpack.c.bf16 %v2116_v22, %v2111_v47  ;;  %v1906_v47 = vld [vmem:[#allocation6 + $0x278] sm:$0xff]  ;;  %v7249_v22 = vpack.c.bf16 %v2146_v16, %v2141_v15 }
 0x48a   :  { %7224 = vmatpush3.bf16.msra.mxu1 %v7223_v49  ;;  %2823 = vmatprep.mubr.f32.mxu1 %v8896_v12  ;;  %v2036_v49 = vld [vmem:[#allocation6 + $0x688] sm:$0xff] }
 0x48b   :  { %7194 = vmatprep.subr.bf16.mxu0 %v7193_v11  ;;  %7226 = vmatprep.subr.bf16.mxu1 %v7225_v19  ;;  %v2126_v11 = vld [vmem:[#allocation6 + $0x958] sm:$0xff]  ;;  %v7207_v19 = vpack.c.bf16 %v1876_v39, %v1871_v37  ;;  %v7239_v51 = vpack.c.bf16 %v2036_v49, %v2031_v43  ;;  %v2151_v39 = vld [vmem:[#allocation6 + $0xa20] sm:$0xff]  ;;  %v2156_v43 = vld [vmem:[#allocation6 + $0xa48] sm:$0xff]  ;;  %v8537_v49 = vmov 0.0|0.0  }
 0x48d   :  { %7196 = vmatpush3.bf16.msra.mxu0 %v7195_v57  ;;  %v7241_v57 = vpack.c.bf16 %v2126_v11, %v2121_v53  ;;  %v7257_v53 = vpack.c.bf16 %v2166_v52, %v2161_v50  ;;  %v2171_v11 = vld [vmem:[#allocation6 + $0xac0] sm:$0xff] }
 0x48e   :  { %7228 = vmatpush3.bf16.msra.mxu1 %v7227_v58  ;;  %7198 = vmatprep.subr.bf16.mxu0 %v7197_v62  ;;  %v2046_v58 = vld [vmem:[#allocation6 + $0x6d8] sm:$0xff]  ;;  %v1971_v62 = vld [vmem:[#allocation6 + $0x480] sm:$0xff] }
 0x48f   :  { %7230 = vmatprep.subr.bf16.mxu1 %v7229_v5  ;;  %v7211_v5 = vpack.c.bf16 %v1886_v56, %v1881_v55  ;;  %v7243_v34 = vpack.c.bf16 %v2046_v58, %v2041_v28  ;;  %v7213_v4 = vpack.c.bf16 %v1976_v63, %v1971_v62  ;;  %v2186_v55 = vld [vmem:[#allocation6 + $0xb38] sm:$0xff]  ;;  %v2191_v28 = vld [vmem:[#allocation6 + $0xb60] sm:$0xff]  ;;  %v2201_v62 = vld [vmem:[#allocation6 + $0xbb0] sm:$0xff] }
 0x490   :  { %v2206_v63 = vld [vmem:[#allocation6 + $0xbd8] sm:$0xff] }
 0x491   :  { %7200 = vmatpush3.bf16.msra.mxu0 %v7199_v10  ;;  %v7245_v10 = vpack.c.bf16 %v2136_v1, %v2131_v0  ;;  %v7269_v0 = vpack.c.bf16 %v2206_v63, %v2201_v62  ;;  %v2211_v1 = vld [vmem:[#allocation6 + $0xc00] sm:$0xff] }
 0x492   :  { %7232 = vmatpush3.bf16.msra.mxu1 %v7231_v18  ;;  %7202 = vmatprep.subr.bf16.mxu0 %v7201_v13  ;;  %v2056_v18 = vld [vmem:[#allocation6 + $0x728] sm:$0xff]  ;;  %v1981_v13 = vld [vmem:[#allocation6 + $0x4d0] sm:$0xff] }
 0x493   :  { %7234 = vmatprep.subr.bf16.mxu1 %v7233_v29  ;;  %v7215_v29 = vpack.c.bf16 %v1896_v8, %v1891_v7  ;;  %v7247_v17 = vpack.c.bf16 %v2056_v18, %v2051_v9  ;;  %v7217_v20 = vpack.c.bf16 %v1986_v14, %v1981_v13 }
 0x495   :  { %7204 = vmatpush3.bf16.msra.mxu0 %v7203_v25  ;;  %v2061_v25 = vld [vmem:[#allocation6 + $0x750] sm:$0xff] }
 0x496   :  { %7236 = vmatpush3.bf16.msra.mxu1 %v7235_v26  ;;  %7206 = vmatprep.subr.bf16.mxu0 %v7205_v36  ;;  %v2066_v26 = vld [vmem:[#allocation6 + $0x778] sm:$0xff]  ;;  %v7219_v36 = vpack.c.bf16 %v1906_v47, %v1901_v21 }
 0x497   :  { %7238 = vmatprep.subr.bf16.mxu1 %v7237_v46  ;;  %v7251_v37 = vpack.c.bf16 %v2066_v26, %v2061_v25  ;;  %v7254_v46 = vpack.c.bf16 %v2156_v43, %v2151_v39 }
 0x499   :  { %7208 = vmatpush3.bf16.msra.mxu0 %v7207_v19  ;;  %v2176_v19 = vld [vmem:[#allocation6 + $0xae8] sm:$0xff] }
 0x49a   :  { %7240 = vmatpush3.bf16.msra.mxu1 %v7239_v51  ;;  %7210 = vmatprep.subr.bf16.mxu0 %v7209_v54  ;;  %v7260_v51 = vpack.c.bf16 %v2176_v19, %v2171_v11  ;;  %v2181_v54 = vld [vmem:[#allocation6 + $0xb10] sm:$0xff] }
 0x49b   :  { %7242 = vmatprep.subr.bf16.mxu1 %v7241_v57  ;;  %v7263_v56 = vpack.c.bf16 %v2186_v55, %v2181_v54  ;;  %v2196_v57 = vld [vmem:[#allocation6 + $0xb88] sm:$0xff] }
 0x49c   :  { %v7266_v58 = vpack.c.bf16 %v2196_v57, %v2191_v28 }
 0x49d   :  { %7212 = vmatpush3.bf16.msra.mxu0 %v7211_v5  ;;  %v2216_v5 = vld [vmem:[#allocation6 + $0xc28] sm:$0xf] }
 0x49e   :  { %7244 = vmatpush3.bf16.msra.mxu1 %v7243_v34  ;;  %7214 = vmatprep.subr.bf16.mxu0 %v7213_v4  ;;  %v7272_v34 = vpack.c.bf16 %v2216_v5, %v2211_v1 }
 0x49f   :  { %7246 = vmatprep.subr.bf16.mxu1 %v7245_v10  ;;  %v2217_v10 = vld [vmem:[#allocation7] sm:$0x1f] }
 0x4a0   :  { %v2238_v13 = vrot.slane %v2217_v10, %v8793_v27  ;;  %v2222_v21 = vrot.slane %v2217_v10, %v8796_v23  ;;  %v2226_v47 = vrot.slane %v2217_v10, %v8798_v32 }
 0x4a1   :  { %7216 = vmatpush3.bf16.msra.mxu0 %v7215_v29 }
 0x4a2   :  { %7248 = vmatpush3.bf16.msra.mxu1 %v7247_v17  ;;  %7218 = vmatprep.subr.bf16.mxu0 %v7217_v20 }
 0x4a3   :  { %7250 = vmatprep.subr.bf16.mxu1 %v7249_v22 }
 0x4a5   :  { %7220 = vmatpush3.bf16.msra.mxu0 %v7219_v36  ;;  %v2230_v36 = vrot.slane %v2217_v10, %v8802_v41 }
 0x4a6   :  { %7252 = vmatpush3.bf16.msra.mxu1 %v7251_v37  ;;  %7253 = vmatprep.subr.bf16.mxu0 %v8537_v49 }
 0x4a8   :  { %2754 = vmatmul.mubr.f32.vlgmr.msra.gmra.mrb[8].mxu0 %v8889_v61 }
 0x4a9   :  { %2824 = vmatmul.mubr.f32.vlgmr.msra.gmra.mrb[8].mxu1 %v8913_v42  ;;  %7255 = vmatpush3.bf16.msra.mxu0 %v7254_v46  ;;  %v2234_v46 = vrot.slane %v2217_v10, %v8805_v45 }
 0x4aa   :  { %7256 = vmatprep.subr.bf16.mxu0 %v8537_v49  ;;  %6137 = vmatprep.mubr.msk.f32.mxu0 %vm8538_vm4, %v8535_v2 }
 0x4ad   :  { %7258 = vmatpush3.bf16.msra.mxu0 %v7257_v53 }
 0x4ae   :  { %7259 = vmatprep.subr.bf16.mxu0 %v8537_v49 }
 0x4b1   :  { %7261 = vmatpush3.bf16.msra.mxu0 %v7260_v51 }
 0x4b2   :  { %7262 = vmatprep.subr.bf16.mxu0 %v8537_v49 }
 0x4b5   :  { %7264 = vmatpush3.bf16.msra.mxu0 %v7263_v56 }
 0x4b6   :  { %7265 = vmatprep.subr.bf16.mxu0 %v8537_v49 }
 0x4b9   :  { %7267 = vmatpush3.bf16.msra.mxu0 %v7266_v58 }
 0x4ba   :  { %7268 = vmatprep.subr.bf16.mxu0 %v8537_v49 }
 0x4bd   :  { %7270 = vmatpush3.bf16.msra.mxu0 %v7269_v0 }
 0x4be   :  { %7271 = vmatprep.subr.bf16.mxu0 %v8537_v49 }
 0x4c1   :  { %7274 = vmatpush3.bf16.msk.msra.mxu0 %vm8925_vm3, %v7272_v34 }
 0x4c4   :  { %6138 = vmatmul.mubr.msk.f32.vlgmr.msra.gmra.mrb[10].mxu0 %vm1723_vm0, %v8944_v48 }
 0x55b   :  { %v2471_v4 = vpop.f32.mrb[6].mxu0  ;;  %v2684_v7 = vpop.f32.mrb[6].mxu1 }
 0x55c   :  { %v2473_v8 = vpop.f32.mrb[7].mxu0  ;;  %v2686_v9 = vpop.f32.mrb[7].mxu1  ;;  %v8169_v25 = vadd.f32 %v2471_v4, %v2222_v21  ;;  %v8171_v43 = vadd.f32 %v2684_v7, %v2230_v36  ;;  %v2990_v36 = vld [vmem:[#allocation9 + $0x40] sm:$0xff] }
 0x55d   :  { %v8170_v26 = vadd.f32 %v2473_v8, %v2226_v47  ;;  %v8172_v52 = vadd.f32 %v2686_v9, %v2234_v46  ;;  %v2983_v47 = vld [vmem:[#allocation9 + $0x8] sm:$0xff] }
 0x55e   :  { %v2904_v37 = vmul.f32 0.70710677, %v8169_v25  ;;  %v2906_v50 = vmul.f32 0.70710677, %v8171_v43  ;;  %v2899_v58 = vmul.f32 0.5, %v8169_v25  ;;  %v2901_v4 = vmul.f32 0.5, %v8171_v43 }
 0x55f   :  { %v2905_v39 = vmul.f32 0.70710677, %v8170_v26  ;;  %v2907_v53 = vmul.f32 0.70710677, %v8172_v52  ;;  %v2900_v62 = vmul.f32 0.5, %v8170_v26  ;;  %v2985_v25 = vld [vmem:[#allocation9 + $0x18] sm:$0xff] }
 0x560   :  { %8247 = verf.f32 %v2904_v37  ;;  %v2982_v37 = vld [vmem:[#allocation9] sm:$0xff]  ;;  %v7433_v43 = vpack.c.bf16 %v2990_v36, %v2985_v25  ;;  %v3020_v36 = vld [vmem:[#allocation9 + $0x130] sm:$0xff] }
 0x561   :  { %8249 = verf.f32 %v2905_v39  ;;  %v2987_v39 = vld [vmem:[#allocation9 + $0x28] sm:$0xff] }
 0x562   :  { %8251 = verf.f32 %v2906_v50  ;;  %v7277_v46 = vpack.c.bf16 %v2987_v39, %v2982_v37  ;;  %v2984_v50 = vld [vmem:[#allocation9 + $0x10] sm:$0xff]  ;;  %7434 = vmatprep.subr.bf16.mxu0 %v7433_v43  ;;  %v3017_v39 = vld [vmem:[#allocation9 + $0x118] sm:$0xff] }
 0x563   :  { %8253 = verf.f32 %v2907_v53  ;;  %v2993_v53 = vld [vmem:[#allocation9 + $0x58] sm:$0xff]  ;;  %v3012_v37 = vld [vmem:[#allocation9 + $0xf0] sm:$0xff] }
 0x56a   :  { %v8248_v11 = vpop.eup %8247 }
 0x56b   :  { %v8250_v19 = vpop.eup %8249  ;;  %v2914_v56 = vadd.f32 1.0, %v8248_v11 }
 0x56c   :  { %v2915_v28 = vadd.f32 1.0, %v8250_v19  ;;  %v8252_v63 = vpop.eup %8251  ;;  %v2998_v19 = vld [vmem:[#allocation9 + $0x80] sm:$0xff] }
 0x56d   :  { %v8972_v0 = vmul.f32 %v2914_v56, %v2899_v58  ;;  %v2916_v5 = vadd.f32 1.0, %v8252_v63  ;;  %v8254_v34 = vpop.eup %8253  ;;  %v2994_v58 = vld [vmem:[#allocation9 + $0x60] sm:$0xff]  ;;  %v2999_v63 = vld [vmem:[#allocation9 + $0x88] sm:$0xff] }
 0x56e   :  { %v8974_v1 = vmul.f32 %v2915_v28, %v2900_v62  ;;  %v2917_v9 = vadd.f32 1.0, %v8254_v34  ;;  %v2992_v28 = vld [vmem:[#allocation9 + $0x50] sm:$0xff] }
 0x56f   :  { %v8978_v8 = vmul.f32 %v2916_v5, %v2901_v4  ;;  %v3003_v5 = vld [vmem:[#allocation9 + $0xa8] sm:$0xff]  ;;  %v3008_v34 = vld [vmem:[#allocation9 + $0xd0] sm:$0xff]  ;;  %v7439_v4 = vpack.c.bf16 %v2999_v63, %v2994_v58  ;;  %v3033_v63 = vld [vmem:[#allocation9 + $0x198] sm:$0xff] }
 0x570   :  { %v2924_v7 = vadd.f32 %v8974_v1, %v8972_v0 }
 0x57b   :  { %v5801_v18 = vpop.f32.mrb[8].mxu0 }
 0x57c   :  { %v5836_v14 = vpop.f32.mrb[8].mxu1  ;;  %v5802_v15 = vpop.f32.mrb[9].mxu0 }
 0x57d   :  { %v5803_v16 = vadd.f32 %v5802_v15, %v5801_v18  ;;  %v5837_v29 = vpop.f32.mrb[9].mxu1  ;;  %v2902_v18 = vmul.f32 0.5, %v8172_v52  ;;  %v2989_v52 = vld [vmem:[#allocation9 + $0x38] sm:$0xff] }
 0x57e   :  { %v5838_v17 = vadd.f32 %v5837_v29, %v5836_v14  ;;  %v7435_v11 = vpack.c.bf16 %v2989_v52, %v2984_v50  ;;  %v3019_v50 = vld [vmem:[#allocation9 + $0x128] sm:$0xff] }
 0x57f   :  { %v2756_v20 = vadd.f32 %v5803_v16, %v2238_v13  ;;  %v2925_v13 = vadd.f32 %v2924_v7, %v8978_v8  ;;  %v8981_v16 = vmul.f32 %v2917_v9, %v2902_v18  ;;  %v7283_v7 = vpack.c.bf16 %v3008_v34, %v3003_v5  ;;  %v3005_v9 = vld [vmem:[#allocation9 + $0xb8] sm:$0xff]  ;;  %v3002_v18 = vld [vmem:[#allocation9 + $0xa0] sm:$0xff]  ;;  %v3023_v52 = vld [vmem:[#allocation9 + $0x148] sm:$0xff] }
 0x580   :  { %7436 = vmatpush1.bf16.msra.mxu0 %v7435_v11  ;;  %v3025_v11 = vld [vmem:[#allocation9 + $0x158] sm:$0xff]  ;;  %v3038_v5 = vld [vmem:[#allocation9 + $0x1c0] sm:$0xff]  ;;  %v3035_v34 = vld [vmem:[#allocation9 + $0x1a8] sm:$0xff] }
 0x581   :  { %v2826_v22 = vadd.f32 %v5838_v17, %v2756_v20  ;;  %v2926_v17 = vadd.f32 %v2925_v13, %v8981_v16 }
 0x597   :  { %v2895_v51 = vpop.f32.mrb[10].mxu0 }
 0x598   :  { %v2896_v54 = vadd.f32 %v2895_v51, %v2826_v22  ;;  %v6139_v55 = vpop.f32.mrb[11].mxu0  ;;  %v2988_v22 = vld [vmem:[#allocation9 + $0x30] sm:$0xff]  ;;  %v2995_v51 = vld [vmem:[#allocation9 + $0x68] sm:$0xff] }
 0x599   :  { %v7275_v26 = vpack.c.bf16 %v2988_v22, %v2983_v47  ;;  %v7279_v55 = vpack.c.bf16 %v2998_v19, %v2993_v53  ;;  %v3018_v47 = vld [vmem:[#allocation9 + $0x120] sm:$0xff]  ;;  %v3015_v22 = vld [vmem:[#allocation9 + $0x108] sm:$0xff]  ;;  %v3028_v53 = vld [vmem:[#allocation9 + $0x170] sm:$0xff] }
 0x59a   :  { %v2908_v57 = vmul.f32 0.70710677, %v2896_v54  ;;  %v2903_v14 = vmul.f32 0.5, %v2896_v54  ;;  %v3000_v54 = vld [vmem:[#allocation9 + $0x90] sm:$0xff]  ;;  %v7445_v43 = vpack.c.bf16 %v3020_v36, %v3015_v22  ;;  %v3030_v19 = vld [vmem:[#allocation9 + $0x180] sm:$0xff] }
 0x59b   :  { %7276 = vmatprep.subr.bf16.mxu1 %v7275_v26  ;;  %v7437_v56 = vpack.c.bf16 %v3000_v54, %v2995_v51  ;;  %v7289_v51 = vpack.c.bf16 %v3017_v39, %v3012_v37  ;;  %v7449_v58 = vpack.c.bf16 %v3030_v19, %v3025_v11  ;;  %v3050_v22 = vld [vmem:[#allocation9 + $0x220] sm:$0xff]  ;;  %v3047_v39 = vld [vmem:[#allocation9 + $0x208] sm:$0xff]  ;;  %v3060_v19 = vld [vmem:[#allocation9 + $0x270] sm:$0xff] }
 0x59c   :  { %8255 = verf.f32 %v2908_v57  ;;  %7278 = vmatpush1.bf16.msra.mxu1 %v7277_v46  ;;  %v2997_v57 = vld [vmem:[#allocation9 + $0x78] sm:$0xff]  ;;  %v3014_v46 = vld [vmem:[#allocation9 + $0x100] sm:$0xff]  ;;  %v3055_v11 = vld [vmem:[#allocation9 + $0x248] sm:$0xff] }
 0x59d   :  { %v7281_v62 = vpack.c.bf16 %v2997_v57, %v2992_v28  ;;  %7280 = vmatprep.subr.bf16.mxu1 %v7279_v55  ;;  %7438 = vmatprep.subr.bf16.mxu0 %v7437_v56  ;;  %v7447_v54 = vpack.c.bf16 %v3019_v50, %v3014_v46  ;;  %v7291_v55 = vpack.c.bf16 %v3028_v53, %v3023_v52  ;;  %v3022_v56 = vld [vmem:[#allocation9 + $0x140] sm:$0xff]  ;;  %v3027_v28 = vld [vmem:[#allocation9 + $0x168] sm:$0xff]  ;;  %v3024_v57 = vld [vmem:[#allocation9 + $0x150] sm:$0xff] }
 0x59e   :  { %7440 = vmatpush1.bf16.msra.mxu0 %v7439_v4  ;;  %v3040_v4 = vld [vmem:[#allocation9 + $0x1d0] sm:$0xff]  ;;  %v3042_v37 = vld [vmem:[#allocation9 + $0x1e0] sm:$0xff]  ;;  %v3049_v50 = vld [vmem:[#allocation9 + $0x218] sm:$0xff] }
 0x59f   :  { %v3053_v52 = vld [vmem:[#allocation9 + $0x238] sm:$0xff]  ;;  %v3058_v53 = vld [vmem:[#allocation9 + $0x260] sm:$0xff] }
 0x5a0   :  { %7282 = vmatpush1.bf16.msra.mxu1 %v7281_v62  ;;  %v3029_v62 = vld [vmem:[#allocation9 + $0x178] sm:$0xff] }
 0x5a1   :  { %7284 = vmatprep.subr.bf16.mxu1 %v7283_v7  ;;  %v7293_v7 = vpack.c.bf16 %v3027_v28, %v3022_v56  ;;  %v3052_v56 = vld [vmem:[#allocation9 + $0x230] sm:$0xff]  ;;  %v3057_v28 = vld [vmem:[#allocation9 + $0x258] sm:$0xff] }
 0x5a6   :  { %v8256_v10 = vpop.eup %8255 }
 0x5a7   :  { %v2918_v15 = vadd.f32 1.0, %v8256_v10  ;;  %v3010_v10 = vld [vmem:[#allocation9 + $0xe0] sm:$0xff] }
 0x5a8   :  { %v7441_v13 = vpack.c.bf16 %v3010_v10, %v3005_v9  ;;  %v7451_v9 = vpack.c.bf16 %v3029_v62, %v3024_v57  ;;  %v7295_v10 = vpack.c.bf16 %v3038_v5, %v3033_v63  ;;  %v3054_v57 = vld [vmem:[#allocation9 + $0x240] sm:$0xff]  ;;  %v3059_v62 = vld [vmem:[#allocation9 + $0x268] sm:$0xff]  ;;  %v3068_v5 = vld [vmem:[#allocation9 + $0x2b0] sm:$0xff] }
 0x5a9   :  { %v8983_v29 = vmul.f32 %v2918_v15, %v2903_v14  ;;  %v3007_v14 = vld [vmem:[#allocation9 + $0xc8] sm:$0xff]  ;;  %v3004_v15 = vld [vmem:[#allocation9 + $0xb0] sm:$0xff] }
 0x5aa   :  { %7442 = vmatprep.subr.bf16.mxu0 %v7441_v13  ;;  %v3037_v13 = vld [vmem:[#allocation9 + $0x1b8] sm:$0xff]  ;;  %v3063_v63 = vld [vmem:[#allocation9 + $0x288] sm:$0xff] }
 0x5ab   :  { %v2927_v20 = vsel %vm1723_vm0, %v8983_v29, 0.0 }
 0x5ac   :  { %v2928_v21 = vadd.f32 %v2927_v20, %v2926_v17  ;;  %v3009_v17 = vld [vmem:[#allocation9 + $0xd8] sm:$0xff]  ;;  %v7285_v20 = vpack.c.bf16 %v3007_v14, %v3002_v18  ;;  %v3032_v18 = vld [vmem:[#allocation9 + $0x190] sm:$0xff]  ;;  %v3034_v14 = vld [vmem:[#allocation9 + $0x1a0] sm:$0xff] }
 0x5ad   :  { %v7443_v25 = vpack.c.bf16 %v3009_v17, %v3004_v15  ;;  %v7453_v15 = vpack.c.bf16 %v3040_v4, %v3035_v34  ;;  %v3039_v17 = vld [vmem:[#allocation9 + $0x1c8] sm:$0xff]  ;;  %v3065_v34 = vld [vmem:[#allocation9 + $0x298] sm:$0xff]  ;;  %v3070_v4 = vld [vmem:[#allocation9 + $0x2c0] sm:$0xff] }
 0x5ae   :  { %2929 = vadd.xlane.f32.xlu1 %v2928_v21  ;;  %v3013_v21 = vld [vmem:[#allocation9 + $0xf8] sm:$0xff]  ;;  %7286 = vmatpush1.bf16.msra.mxu1 %v7285_v20  ;;  %v3043_v20 = vld [vmem:[#allocation9 + $0x1e8] sm:$0xff] }
 0x5af   :  { %v7287_v26 = vpack.c.bf16 %v3018_v47, %v3013_v21  ;;  %7444 = vmatpush1.bf16.msra.mxu0 %v7443_v25  ;;  %v3048_v21 = vld [vmem:[#allocation9 + $0x210] sm:$0xff]  ;;  %v3045_v47 = vld [vmem:[#allocation9 + $0x1f8] sm:$0xff]  ;;  %v7297_v25 = vpack.c.bf16 %v3037_v13, %v3032_v18  ;;  %v3062_v18 = vld [vmem:[#allocation9 + $0x280] sm:$0xff] }
 0x5b0   :  { %7446 = vmatprep.subr.bf16.mxu0 %v7445_v43  ;;  %v7299_v36 = vpack.c.bf16 %v3048_v21, %v3043_v20  ;;  %v3044_v43 = vld [vmem:[#allocation9 + $0x1f0] sm:$0xff]  ;;  %v7457_v46 = vpack.c.bf16 %v3050_v22, %v3045_v47  ;;  %v3067_v13 = vld [vmem:[#allocation9 + $0x2a8] sm:$0xff]  ;;  %v3073_v20 = vld [vmem:[#allocation9 + $0x2d8] sm:$0xff] }
 0x5b1   :  { %7288 = vmatprep.subr.bf16.mxu1 %v7287_v26  ;;  %v7455_v26 = vpack.c.bf16 %v3039_v17, %v3034_v14  ;;  %v3064_v14 = vld [vmem:[#allocation9 + $0x290] sm:$0xff]  ;;  %v3069_v17 = vld [vmem:[#allocation9 + $0x2b8] sm:$0xff]  ;;  %v3078_v21 = vld [vmem:[#allocation9 + $0x300] sm:$0xff] }
 0x5b2   :  { %7290 = vmatpush1.bf16.msra.mxu1 %v7289_v51  ;;  %v7301_v51 = vpack.c.bf16 %v3047_v39, %v3042_v37  ;;  %v3075_v47 = vld [vmem:[#allocation9 + $0x2e8] sm:$0xff]  ;;  %v3080_v22 = vld [vmem:[#allocation9 + $0x310] sm:$0xff]  ;;  %v3077_v39 = vld [vmem:[#allocation9 + $0x2f8] sm:$0xff] }
 0x5b3   :  { %7448 = vmatpush1.bf16.msra.mxu0 %v7447_v54  ;;  %7292 = vmatprep.subr.bf16.mxu1 %v7291_v55  ;;  %v7459_v54 = vpack.c.bf16 %v3049_v50, %v3044_v43  ;;  %v7303_v55 = vpack.c.bf16 %v3058_v53, %v3053_v52  ;;  %v3072_v37 = vld [vmem:[#allocation9 + $0x2d0] sm:$0xff]  ;;  %v7469_v43 = vpack.c.bf16 %v3080_v22, %v3075_v47  ;;  %v3079_v50 = vld [vmem:[#allocation9 + $0x308] sm:$0xff] }
 0x5b4   :  { %7450 = vmatprep.subr.bf16.mxu0 %v7449_v58  ;;  %v7461_v58 = vpack.c.bf16 %v3060_v19, %v3055_v11  ;;  %v7313_v52 = vpack.c.bf16 %v3077_v39, %v3072_v37  ;;  %v3093_v37 = vld [vmem:[#allocation9 + $0x378] sm:$0xff]  ;;  %v3098_v39 = vld [vmem:[#allocation9 + $0x3a0] sm:$0xff] }
 0x5b6   :  { %7294 = vmatpush1.bf16.msra.mxu1 %v7293_v7  ;;  %v7305_v7 = vpack.c.bf16 %v3057_v28, %v3052_v56 }
 0x5b7   :  { %7452 = vmatpush1.bf16.msra.mxu0 %v7451_v9  ;;  %7296 = vmatprep.subr.bf16.mxu1 %v7295_v10  ;;  %v7463_v9 = vpack.c.bf16 %v3059_v62, %v3054_v57  ;;  %v7307_v10 = vpack.c.bf16 %v3068_v5, %v3063_v63 }
 0x5b8   :  { %7454 = vmatprep.subr.bf16.mxu0 %v7453_v15  ;;  %v7465_v15 = vpack.c.bf16 %v3070_v4, %v3065_v34 }
 0x5ba   :  { %7298 = vmatpush1.bf16.msra.mxu1 %v7297_v25  ;;  %v7309_v25 = vpack.c.bf16 %v3067_v13, %v3062_v18  ;;  %v3083_v18 = vld [vmem:[#allocation9 + $0x328] sm:$0xff]  ;;  %v3088_v13 = vld [vmem:[#allocation9 + $0x350] sm:$0xff] }
 0x5bb   :  { %7456 = vmatpush1.bf16.msra.mxu0 %v7455_v26  ;;  %7300 = vmatprep.subr.bf16.mxu1 %v7299_v36  ;;  %v7467_v26 = vpack.c.bf16 %v3069_v17, %v3064_v14  ;;  %v7311_v36 = vpack.c.bf16 %v3078_v21, %v3073_v20  ;;  %v3085_v14 = vld [vmem:[#allocation9 + $0x338] sm:$0xff]  ;;  %v3090_v17 = vld [vmem:[#allocation9 + $0x360] sm:$0xff]  ;;  %v3087_v21 = vld [vmem:[#allocation9 + $0x348] sm:$0xff] }
 0x5bc   :  { %7458 = vmatprep.subr.bf16.mxu0 %v7457_v46  ;;  %v3074_v46 = vld [vmem:[#allocation9 + $0x2e0] sm:$0xff]  ;;  %v7473_v47 = vpack.c.bf16 %v3090_v17, %v3085_v14  ;;  %v3115_v17 = vld [vmem:[#allocation9 + $0x428] sm:$0xff] }
 0x5bd   :  { %v7471_v53 = vpack.c.bf16 %v3079_v50, %v3074_v46  ;;  %v3082_v20 = vld [vmem:[#allocation9 + $0x320] sm:$0xff]  ;;  %v7319_v46 = vpack.c.bf16 %v3098_v39, %v3093_v37  ;;  %v3100_v50 = vld [vmem:[#allocation9 + $0x3b0] sm:$0xff]  ;;  %v3123_v37 = vld [vmem:[#allocation9 + $0x468] sm:$0xff] }
 0x5be   :  { %7302 = vmatpush1.bf16.msra.mxu1 %v7301_v51  ;;  %v7317_v22 = vpack.c.bf16 %v3087_v21, %v3082_v20  ;;  %v3120_v20 = vld [vmem:[#allocation9 + $0x450] sm:$0xff] }
 0x5bf   :  { %7460 = vmatpush1.bf16.msra.mxu0 %v7459_v54  ;;  %7304 = vmatprep.subr.bf16.mxu1 %v7303_v55  ;;  %v3112_v21 = vld [vmem:[#allocation9 + $0x410] sm:$0xff] }
 0x5c0   :  { %7462 = vmatprep.subr.bf16.mxu0 %v7461_v58  ;;  %v3128_v39 = vld [vmem:[#allocation9 + $0x490] sm:$0xff] }
 0x5c2   :  { %7306 = vmatpush1.bf16.msra.mxu1 %v7305_v7 }
 0x5c3   :  { %7464 = vmatpush1.bf16.msra.mxu0 %v7463_v9  ;;  %7308 = vmatprep.subr.bf16.mxu1 %v7307_v10 }
 0x5c4   :  { %7466 = vmatprep.subr.bf16.mxu0 %v7465_v15  ;;  %v7315_v15 = vpack.c.bf16 %v3088_v13, %v3083_v18  ;;  %v3113_v18 = vld [vmem:[#allocation9 + $0x418] sm:$0xff]  ;;  %v3118_v13 = vld [vmem:[#allocation9 + $0x440] sm:$0xff] }
 0x5c6   :  { %7310 = vmatpush1.bf16.msra.mxu1 %v7309_v25  ;;  %v3084_v25 = vld [vmem:[#allocation9 + $0x330] sm:$0xff] }
 0x5c7   :  { %7468 = vmatpush1.bf16.msra.mxu0 %v7467_v26  ;;  %7312 = vmatprep.subr.bf16.mxu1 %v7311_v36  ;;  %v3089_v26 = vld [vmem:[#allocation9 + $0x358] sm:$0xff] }
 0x5c8   :  { %7470 = vmatprep.subr.bf16.mxu0 %v7469_v43  ;;  %v7475_v36 = vpack.c.bf16 %v3089_v26, %v3084_v25  ;;  %v3095_v43 = vld [vmem:[#allocation9 + $0x388] sm:$0xff]  ;;  %v3114_v25 = vld [vmem:[#allocation9 + $0x420] sm:$0xff] }
 0x5c9   :  { %v3119_v26 = vld [vmem:[#allocation9 + $0x448] sm:$0xff] }
 0x5ca   :  { %7314 = vmatpush1.bf16.msra.mxu1 %v7313_v52  ;;  %v3092_v52 = vld [vmem:[#allocation9 + $0x370] sm:$0xff] }
 0x5cb   :  { %7472 = vmatpush1.bf16.msra.mxu0 %v7471_v53  ;;  %7316 = vmatprep.subr.bf16.mxu1 %v7315_v15  ;;  %v3097_v53 = vld [vmem:[#allocation9 + $0x398] sm:$0xff]  ;;  %v7327_v15 = vpack.c.bf16 %v3118_v13, %v3113_v18 }
 0x5cc   :  { %7474 = vmatprep.subr.bf16.mxu0 %v7473_v47  ;;  %v7485_v47 = vpack.c.bf16 %v3120_v20, %v3115_v17  ;;  %v3145_v17 = vld [vmem:[#allocation9 + $0x518] sm:$0xff] }
 0x5ce   :  { %7318 = vmatpush1.bf16.msra.mxu1 %v7317_v22  ;;  %v3117_v22 = vld [vmem:[#allocation9 + $0x438] sm:$0xff] }
 0x5cf   :  { %7476 = vmatpush1.bf16.msra.mxu0 %v7475_v36  ;;  %7320 = vmatprep.subr.bf16.mxu1 %v7319_v46  ;;  %v7329_v36 = vpack.c.bf16 %v3117_v22, %v3112_v21  ;;  %v7487_v46 = vpack.c.bf16 %v3119_v26, %v3114_v25  ;;  %v3150_v21 = vld [vmem:[#allocation9 + $0x540] sm:$0xff] }
 0x63b   :  { %v2930_v11 = vpop.xlane.xlu1 %2929 }
 0x63c   :  { %v8988_v19 = vmul.f32 0.0016129032, %v2930_v11  ;;  %v7477_v11 = vpack.c.bf16 %v3100_v50, %v3095_v43  ;;  %v3125_v43 = vld [vmem:[#allocation9 + $0x478] sm:$0xff]  ;;  %v7331_v50 = vpack.c.bf16 %v3128_v39, %v3123_v37 }
 0x63e   :  { %v2932_v51 = vsub.f32 %v8972_v0, %v8988_v19  ;;  %v2933_v54 = vsub.f32 %v8974_v1, %v8988_v19  ;;  %v2934_v55 = vsub.f32 %v8978_v8, %v8988_v19  ;;  %v2936_v56 = vsub.f32 %v8983_v29, %v8988_v19  ;;  %7478 = vmatprep.subr.bf16.mxu0 %v7477_v11  ;;  %v3127_v11 = vld [vmem:[#allocation9 + $0x488] sm:$0xff] }
 0x63f   :  { %v2935_v28 = vsub.f32 %v8981_v16, %v8988_v19 }
 0x640   :  { %v2937_v57 = vmul.f32 %v2932_v51, %v2932_v51  ;;  %v2938_v58 = vmul.f32 %v2933_v54, %v2933_v54  ;;  %v2939_v62 = vmul.f32 %v2934_v55, %v2934_v55  ;;  %v2941_v5 = vmul.f32 %v2936_v56, %v2936_v56  ;;  %v3094_v54 = vld [vmem:[#allocation9 + $0x380] sm:$0xff]  ;;  %v3099_v55 = vld [vmem:[#allocation9 + $0x3a8] sm:$0xff] }
 0x641   :  { %v2940_v34 = vmul.f32 %v2935_v28, %v2935_v28  ;;  %v7321_v51 = vpack.c.bf16 %v3097_v53, %v3092_v52  ;;  %v3103_v56 = vld [vmem:[#allocation9 + $0x3c8] sm:$0xff]  ;;  %v7479_v28 = vpack.c.bf16 %v3099_v55, %v3094_v54  ;;  %v3130_v52 = vld [vmem:[#allocation9 + $0x4a0] sm:$0xff]  ;;  %v3124_v54 = vld [vmem:[#allocation9 + $0x470] sm:$0xff] }
 0x642   :  { %v2942_v63 = vadd.f32 %v2938_v58, %v2937_v57  ;;  %v2945_v9 = vsel %vm1723_vm0, %v2941_v5, 0.0  ;;  %v3108_v57 = vld [vmem:[#allocation9 + $0x3f0] sm:$0xff]  ;;  %v3105_v58 = vld [vmem:[#allocation9 + $0x3d8] sm:$0xff]  ;;  %v3122_v53 = vld [vmem:[#allocation9 + $0x460] sm:$0xff] }
 0x643   :  { %7322 = vmatpush1.bf16.msra.mxu1 %v7321_v51  ;;  %7480 = vmatpush1.bf16.msra.mxu0 %v7479_v28  ;;  %v7489_v51 = vpack.c.bf16 %v3130_v52, %v3125_v43  ;;  %v3129_v55 = vld [vmem:[#allocation9 + $0x498] sm:$0xff]  ;;  %v3138_v28 = vld [vmem:[#allocation9 + $0x4e0] sm:$0xff] }
 0x644   :  { %v2943_v4 = vadd.f32 %v2942_v63, %v2939_v62  ;;  %v3110_v62 = vld [vmem:[#allocation9 + $0x400] sm:$0xff]  ;;  %v7323_v63 = vpack.c.bf16 %v3108_v57, %v3103_v56  ;;  %v3133_v56 = vld [vmem:[#allocation9 + $0x4b8] sm:$0xff]  ;;  %v3135_v57 = vld [vmem:[#allocation9 + $0x4c8] sm:$0xff] }
 0x645   :  { %v7481_v5 = vpack.c.bf16 %v3110_v62, %v3105_v58  ;;  %v3140_v58 = vld [vmem:[#allocation9 + $0x4f0] sm:$0xff]  ;;  %v7333_v62 = vpack.c.bf16 %v3127_v11, %v3122_v53 }
 0x646   :  { %v2944_v7 = vadd.f32 %v2943_v4, %v2940_v34  ;;  %v3102_v34 = vld [vmem:[#allocation9 + $0x3c0] sm:$0xff]  ;;  %v3107_v4 = vld [vmem:[#allocation9 + $0x3e8] sm:$0xff]  ;;  %7324 = vmatprep.subr.bf16.mxu1 %v7323_v63  ;;  %v7491_v63 = vpack.c.bf16 %v3129_v55, %v3124_v54 }
 0x647   :  { %7482 = vmatprep.subr.bf16.mxu0 %v7481_v5  ;;  %v7335_v5 = vpack.c.bf16 %v3138_v28, %v3133_v56  ;;  %v3142_v55 = vld [vmem:[#allocation9 + $0x500] sm:$0xff]  ;;  %v3147_v56 = vld [vmem:[#allocation9 + $0x528] sm:$0xff]  ;;  %v3144_v28 = vld [vmem:[#allocation9 + $0x510] sm:$0xff] }
 0x648   :  { %v2946_v10 = vadd.f32 %v2945_v9, %v2944_v7  ;;  %v3104_v7 = vld [vmem:[#allocation9 + $0x3d0] sm:$0xff]  ;;  %v7325_v9 = vpack.c.bf16 %v3107_v4, %v3102_v34  ;;  %v3137_v4 = vld [vmem:[#allocation9 + $0x4d8] sm:$0xff] }
 0x649   :  { %v3132_v34 = vld [vmem:[#allocation9 + $0x4b0] sm:$0xff] }
 0x64a   :  { %2947 = vadd.xlane.f32.xlu1 %v2946_v10  ;;  %v3109_v10 = vld [vmem:[#allocation9 + $0x3f8] sm:$0xff]  ;;  %7326 = vmatpush1.bf16.msra.mxu1 %v7325_v9  ;;  %v3134_v9 = vld [vmem:[#allocation9 + $0x4c0] sm:$0xff]  ;;  %v7337_v18 = vpack.c.bf16 %v3137_v4, %v3132_v34 }
 0x64b   :  { %v7483_v14 = vpack.c.bf16 %v3109_v10, %v3104_v7  ;;  %7328 = vmatprep.subr.bf16.mxu1 %v7327_v15  ;;  %v7493_v7 = vpack.c.bf16 %v3140_v58, %v3135_v57  ;;  %v3139_v10 = vld [vmem:[#allocation9 + $0x4e8] sm:$0xff]  ;;  %v3148_v15 = vld [vmem:[#allocation9 + $0x530] sm:$0xff]  ;;  %v3149_v57 = vld [vmem:[#allocation9 + $0x538] sm:$0xff] }
 0x64c   :  { %v7495_v13 = vpack.c.bf16 %v3139_v10, %v3134_v9  ;;  %v3153_v34 = vld [vmem:[#allocation9 + $0x558] sm:$0xff]  ;;  %v3160_v9 = vld [vmem:[#allocation9 + $0x590] sm:$0xff] }
 0x64d   :  { %7484 = vmatpush1.bf16.msra.mxu0 %v7483_v14  ;;  %v3143_v14 = vld [vmem:[#allocation9 + $0x508] sm:$0xff] }
 0x64e   :  { %7486 = vmatprep.subr.bf16.mxu0 %v7485_v47  ;;  %7330 = vmatpush1.bf16.msra.mxu1 %v7329_v36  ;;  %v7339_v20 = vpack.c.bf16 %v3148_v15, %v3143_v14  ;;  %v7497_v47 = vpack.c.bf16 %v3150_v21, %v3145_v17  ;;  %v3152_v14 = vld [vmem:[#allocation9 + $0x550] sm:$0xff]  ;;  %v3157_v15 = vld [vmem:[#allocation9 + $0x578] sm:$0xff]  ;;  %v3159_v17 = vld [vmem:[#allocation9 + $0x588] sm:$0xff] }
 0x64f   :  { %7332 = vmatprep.subr.bf16.mxu1 %v7331_v50 }
 0x651   :  { %7488 = vmatpush1.bf16.msra.mxu0 %v7487_v46 }
 0x652   :  { %7490 = vmatprep.subr.bf16.mxu0 %v7489_v51  ;;  %7334 = vmatpush1.bf16.msra.mxu1 %v7333_v62 }
 0x653   :  { %7336 = vmatprep.subr.bf16.mxu1 %v7335_v5 }
 0x655   :  { %7492 = vmatpush1.bf16.msra.mxu0 %v7491_v63 }
 0x656   :  { %7494 = vmatprep.subr.bf16.mxu0 %v7493_v7  ;;  %7338 = vmatpush1.bf16.msra.mxu1 %v7337_v18  ;;  %v3158_v7 = vld [vmem:[#allocation9 + $0x580] sm:$0xff]  ;;  %v7341_v18 = vpack.c.bf16 %v3147_v56, %v3142_v55 }
 0x657   :  { %7340 = vmatprep.subr.bf16.mxu1 %v7339_v20  ;;  %v3163_v20 = vld [vmem:[#allocation9 + $0x5a8] sm:$0xff]  ;;  %v7343_v21 = vpack.c.bf16 %v3158_v7, %v3153_v34  ;;  %v3185_v7 = vld [vmem:[#allocation9 + $0x658] sm:$0xff] }
 0x658   :  { %v3183_v34 = vld [vmem:[#allocation9 + $0x648] sm:$0xff] }
 0x659   :  { %7496 = vmatpush1.bf16.msra.mxu0 %v7495_v13  ;;  %v7499_v13 = vpack.c.bf16 %v3149_v57, %v3144_v28  ;;  %v3172_v28 = vld [vmem:[#allocation9 + $0x5f0] sm:$0xff]  ;;  %v3177_v57 = vld [vmem:[#allocation9 + $0x618] sm:$0xff] }
 0x65a   :  { %7498 = vmatprep.subr.bf16.mxu0 %v7497_v47 }
 0x6d7   :  { %v2948_v22 = vpop.xlane.xlu1 %2947 }
 0x6d8   :  { %v2949_v25 = vmul.f32 0.0016129032, %v2948_v22  ;;  %v3168_v22 = vld [vmem:[#allocation9 + $0x5d0] sm:$0xff] }
 0x6da   :  { %v2950_v26 = vadd.f32 1e-05, %v2949_v25  ;;  %v3165_v25 = vld [vmem:[#allocation9 + $0x5b8] sm:$0xff] }
 0x6dc   :  { %8257 = vrsqrt.f32 %v2950_v26  ;;  %v7345_v26 = vpack.c.bf16 %v3157_v15, %v3152_v14  ;;  %v3187_v14 = vld [vmem:[#allocation9 + $0x668] sm:$0xff] }
 0x6e6   :  { %v9001_v36 = vpop.eup %8257 }
 0x6e7   :  { %v2953_v37 = vmul.f32 %v9001_v36, %v8849_v30  ;;  %v2952_v39 = vmul.f32 %v9001_v36, %v8853_v31  ;;  %v2955_v43 = vmul.f32 %v9001_v36, %v8857_v33 }
 0x6e9   :  { %v2963_v46 = vmul.f32 %v2953_v37, %v8988_v19  ;;  %v2962_v50 = vmul.f32 %v2952_v39, %v8988_v19  ;;  %v2965_v52 = vmul.f32 %v2955_v43, %v8988_v19  ;;  %v2958_v53 = vmul.f32 %v2953_v37, %v8974_v1  ;;  %v3155_v1 = vld [vmem:[#allocation9 + $0x568] sm:$0xff] }
 0x6ea   :  { %v2957_v51 = vmul.f32 %v2952_v39, %v8972_v0  ;;  %v2960_v58 = vmul.f32 %v2955_v43, %v8981_v16  ;;  %v3154_v16 = vld [vmem:[#allocation9 + $0x560] sm:$0xff]  ;;  %v7501_v47 = vpack.c.bf16 %v3160_v9, %v3155_v1  ;;  %v3167_v43 = vld [vmem:[#allocation9 + $0x5c8] sm:$0xff]  ;;  %v7353_v9 = vpack.c.bf16 %v3177_v57, %v3172_v28 }
 0x6eb   :  { %v2968_v11 = vsub.f32 %v8863_v35, %v2963_v46  ;;  %v2967_v54 = vsub.f32 %v8871_v38, %v2962_v50  ;;  %v2970_v62 = vsub.f32 %v8877_v40, %v2965_v52  ;;  %v7503_v37 = vpack.c.bf16 %v3159_v17, %v3154_v16  ;;  %v3162_v39 = vld [vmem:[#allocation9 + $0x5a0] sm:$0xff]  ;;  %v3164_v52 = vld [vmem:[#allocation9 + $0x5b0] sm:$0xff]  ;;  %v3207_v28 = vld [vmem:[#allocation9 + $0x708] sm:$0xff] }
 0x6ec   :  { %v7347_v46 = vpack.c.bf16 %v3168_v22, %v3163_v20  ;;  %v7349_v55 = vpack.c.bf16 %v3167_v43, %v3162_v39  ;;  %v3190_v1 = vld [vmem:[#allocation9 + $0x680] sm:$0xff]  ;;  %v3184_v17 = vld [vmem:[#allocation9 + $0x650] sm:$0xff]  ;;  %v3189_v20 = vld [vmem:[#allocation9 + $0x678] sm:$0xff] }
 0x6ed   :  { %v2973_v63 = vadd.f32 %v2968_v11, %v2958_v53  ;;  %v2972_v5 = vadd.f32 %v2967_v54, %v2957_v51  ;;  %v2975_v4 = vadd.f32 %v2970_v62, %v2960_v58  ;;  %v3169_v53 = vld [vmem:[#allocation9 + $0x5d8] sm:$0xff]  ;;  %v3178_v51 = vld [vmem:[#allocation9 + $0x620] sm:$0xff]  ;;  %v3180_v54 = vld [vmem:[#allocation9 + $0x630] sm:$0xff]  ;;  %v7513_v16 = vpack.c.bf16 %v3190_v1, %v3185_v7 }
 0x6ee   :  { %v3173_v11 = vld [vmem:[#allocation9 + $0x5f8] sm:$0xff]  ;;  %v7507_v56 = vpack.c.bf16 %v3169_v53, %v3164_v52  ;;  %v3195_v22 = vld [vmem:[#allocation9 + $0x6a8] sm:$0xff]  ;;  %v3220_v7 = vld [vmem:[#allocation9 + $0x770] sm:$0xff] }
 0x6ef   :  { %v9019_v10 = vadd.f32 %v2973_v63, %v8887_v60  ;;  %v9022_v0 = vadd.f32 %v2972_v5, %v8889_v61  ;;  %v3170_v60 = vld [vmem:[#allocation9 + $0x5e0] sm:$0xff]  ;;  %v9029_v61 = vadd.f32 %v2975_v4, %v8896_v12  ;;  %v3175_v12 = vld [vmem:[#allocation9 + $0x608] sm:$0xff]  ;;  %v7351_v58 = vpack.c.bf16 %v3178_v51, %v3173_v11  ;;  %v3188_v4 = vld [vmem:[#allocation9 + $0x670] sm:$0xff] }
 0x6f0   :  { %v7505_v50 = vpack.c.bf16 %v3170_v60, %v3165_v25  ;;  %v7509_v62 = vpack.c.bf16 %v3180_v54, %v3175_v12  ;;  %v3174_v63 = vld [vmem:[#allocation9 + $0x600] sm:$0xff]  ;;  %v3179_v5 = vld [vmem:[#allocation9 + $0x628] sm:$0xff]  ;;  %v7355_v15 = vpack.c.bf16 %v3188_v4, %v3183_v34  ;;  %v3200_v25 = vld [vmem:[#allocation9 + $0x6d0] sm:$0xff] }
 0x6f1   :  { %3481 = vmatprep.mubr.f32.mxu1 %v9019_v10  ;;  %3694 = vmatprep.mubr.f32.mxu0 %v9019_v10  ;;  %v3197_v39 = vld [vmem:[#allocation9 + $0x6b8] sm:$0xff]  ;;  %v3199_v52 = vld [vmem:[#allocation9 + $0x6c8] sm:$0xff]  ;;  %v3208_v11 = vld [vmem:[#allocation9 + $0x710] sm:$0xff] }
 0x6f2   :  { %3482 = vmatmul.mubr.f32.vlgmr.msra.gmra.mrb[10].mxu1 %v9022_v0  ;;  %3695 = vmatmul.mubr.f32.vlgmr.msra.gmra.mrb[12].mxu0 %v9022_v0  ;;  %v3203_v53 = vld [vmem:[#allocation9 + $0x6e8] sm:$0xff]  ;;  %v3205_v51 = vld [vmem:[#allocation9 + $0x6f8] sm:$0xff]  ;;  %v3210_v12 = vld [vmem:[#allocation9 + $0x720] sm:$0xff] }
 0x6f3   :  { %7342 = vmatpush1.bf16.msra.mxu1 %v7341_v18  ;;  %7500 = vmatpush1.bf16.msra.mxu0 %v7499_v13  ;;  %v7511_v18 = vpack.c.bf16 %v3179_v5, %v3174_v63  ;;  %v3182_v13 = vld [vmem:[#allocation9 + $0x640] sm:$0xff]  ;;  %v7363_v57 = vpack.c.bf16 %v3208_v11, %v3203_v53  ;;  %v3209_v63 = vld [vmem:[#allocation9 + $0x718] sm:$0xff]  ;;  %v3215_v4 = vld [vmem:[#allocation9 + $0x748] sm:$0xff] }
 0x6f4   :  { %3552 = vmatprep.mubr.f32.mxu1 %v9029_v61  ;;  %3765 = vmatprep.mubr.f32.mxu0 %v9029_v61  ;;  %v7357_v60 = vpack.c.bf16 %v3187_v14, %v3182_v13  ;;  %v3213_v5 = vld [vmem:[#allocation9 + $0x738] sm:$0xff]  ;;  %v3218_v34 = vld [vmem:[#allocation9 + $0x760] sm:$0xff]  ;;  %v3235_v11 = vld [vmem:[#allocation9 + $0x7e8] sm:$0xff] }
 0x6f5   :  { %7344 = vmatprep.subr.bf16.mxu1 %v7343_v21  ;;  %7502 = vmatprep.subr.bf16.mxu0 %v7501_v47  ;;  %v3193_v21 = vld [vmem:[#allocation9 + $0x698] sm:$0xff]  ;;  %v3198_v47 = vld [vmem:[#allocation9 + $0x6c0] sm:$0xff]  ;;  %v7367_v14 = vpack.c.bf16 %v3218_v34, %v3213_v5  ;;  %v3248_v5 = vld [vmem:[#allocation9 + $0x850] sm:$0xff] }
 0x6f6   :  { %v7359_v43 = vpack.c.bf16 %v3198_v47, %v3193_v21  ;;  %v3217_v13 = vld [vmem:[#allocation9 + $0x758] sm:$0xff]  ;;  %v3228_v21 = vld [vmem:[#allocation9 + $0x7b0] sm:$0xff]  ;;  %v3238_v53 = vld [vmem:[#allocation9 + $0x800] sm:$0xff] }
 0x6f7   :  { %7346 = vmatpush1.bf16.msra.mxu1 %v7345_v26  ;;  %7504 = vmatpush1.bf16.msra.mxu0 %v7503_v37  ;;  %v7515_v26 = vpack.c.bf16 %v3189_v20, %v3184_v17  ;;  %v3192_v37 = vld [vmem:[#allocation9 + $0x690] sm:$0xff]  ;;  %v3219_v17 = vld [vmem:[#allocation9 + $0x768] sm:$0xff]  ;;  %v3225_v47 = vld [vmem:[#allocation9 + $0x798] sm:$0xff] }
 0x6f8   :  { %7348 = vmatprep.subr.bf16.mxu1 %v7347_v46  ;;  %7506 = vmatprep.subr.bf16.mxu0 %v7505_v50  ;;  %v7517_v46 = vpack.c.bf16 %v3200_v25, %v3195_v22  ;;  %v3194_v50 = vld [vmem:[#allocation9 + $0x6a0] sm:$0xff]  ;;  %v7361_v54 = vpack.c.bf16 %v3197_v39, %v3192_v37  ;;  %v3223_v20 = vld [vmem:[#allocation9 + $0x788] sm:$0xff]  ;;  %v3245_v34 = vld [vmem:[#allocation9 + $0x838] sm:$0xff] }
 0x6f9   :  { %v3230_v22 = vld [vmem:[#allocation9 + $0x7c0] sm:$0xff]  ;;  %v3227_v37 = vld [vmem:[#allocation9 + $0x7a8] sm:$0xff]  ;;  %v7371_v39 = vpack.c.bf16 %v3228_v21, %v3223_v20 }
 0x6fa   :  { %v3258_v20 = vld [vmem:[#allocation9 + $0x8a0] sm:$0xff]  ;;  %v3255_v21 = vld [vmem:[#allocation9 + $0x888] sm:$0xff] }
 0x6fb   :  { %7350 = vmatpush1.bf16.msra.mxu1 %v7349_v55  ;;  %7508 = vmatpush1.bf16.msra.mxu0 %v7507_v56  ;;  %v7519_v55 = vpack.c.bf16 %v3199_v52, %v3194_v50  ;;  %v3202_v56 = vld [vmem:[#allocation9 + $0x6e0] sm:$0xff]  ;;  %v3229_v50 = vld [vmem:[#allocation9 + $0x7b8] sm:$0xff] }
 0x6fc   :  { %7352 = vmatprep.subr.bf16.mxu1 %v7351_v58  ;;  %7510 = vmatprep.subr.bf16.mxu0 %v7509_v62  ;;  %v7521_v58 = vpack.c.bf16 %v3210_v12, %v3205_v51  ;;  %v3204_v62 = vld [vmem:[#allocation9 + $0x6f0] sm:$0xff]  ;;  %v7365_v1 = vpack.c.bf16 %v3207_v28, %v3202_v56  ;;  %v3233_v52 = vld [vmem:[#allocation9 + $0x7d8] sm:$0xff] }
 0x6fd   :  { %v3240_v51 = vld [vmem:[#allocation9 + $0x810] sm:$0xff]  ;;  %v3237_v56 = vld [vmem:[#allocation9 + $0x7f8] sm:$0xff]  ;;  %v7375_v28 = vpack.c.bf16 %v3238_v53, %v3233_v52 }
 0x6fe   :  { %v3268_v52 = vld [vmem:[#allocation9 + $0x8f0] sm:$0xff]  ;;  %v3265_v53 = vld [vmem:[#allocation9 + $0x8d8] sm:$0xff] }
 0x6ff   :  { %7354 = vmatpush1.bf16.msra.mxu1 %v7353_v9  ;;  %7512 = vmatpush1.bf16.msra.mxu0 %v7511_v18  ;;  %v7523_v9 = vpack.c.bf16 %v3209_v63, %v3204_v62  ;;  %v3212_v18 = vld [vmem:[#allocation9 + $0x730] sm:$0xff]  ;;  %v3239_v62 = vld [vmem:[#allocation9 + $0x808] sm:$0xff] }
 0x700   :  { %7356 = vmatprep.subr.bf16.mxu1 %v7355_v15  ;;  %7514 = vmatprep.subr.bf16.mxu0 %v7513_v16  ;;  %v7525_v15 = vpack.c.bf16 %v3220_v7, %v3215_v4  ;;  %v3214_v16 = vld [vmem:[#allocation9 + $0x740] sm:$0xff]  ;;  %v7369_v25 = vpack.c.bf16 %v3217_v13, %v3212_v18  ;;  %v3243_v63 = vld [vmem:[#allocation9 + $0x828] sm:$0xff] }
 0x701   :  { %v3250_v4 = vld [vmem:[#allocation9 + $0x860] sm:$0xff]  ;;  %v3247_v18 = vld [vmem:[#allocation9 + $0x848] sm:$0xff]  ;;  %v7379_v13 = vpack.c.bf16 %v3248_v5, %v3243_v63 }
 0x702   :  { %v3278_v63 = vld [vmem:[#allocation9 + $0x940] sm:$0xff]  ;;  %v3275_v5 = vld [vmem:[#allocation9 + $0x928] sm:$0xff] }
 0x703   :  { %7358 = vmatpush1.bf16.msra.mxu1 %v7357_v60  ;;  %7516 = vmatpush1.bf16.msra.mxu0 %v7515_v26  ;;  %v7527_v60 = vpack.c.bf16 %v3219_v17, %v3214_v16  ;;  %v3222_v26 = vld [vmem:[#allocation9 + $0x780] sm:$0xff]  ;;  %v3249_v16 = vld [vmem:[#allocation9 + $0x858] sm:$0xff] }
 0x704   :  { %7360 = vmatprep.subr.bf16.mxu1 %v7359_v43  ;;  %7518 = vmatprep.subr.bf16.mxu0 %v7517_v46  ;;  %v7529_v43 = vpack.c.bf16 %v3230_v22, %v3225_v47  ;;  %v3224_v46 = vld [vmem:[#allocation9 + $0x790] sm:$0xff]  ;;  %v7373_v12 = vpack.c.bf16 %v3227_v37, %v3222_v26  ;;  %v3253_v17 = vld [vmem:[#allocation9 + $0x878] sm:$0xff] }
 0x705   :  { %v3260_v47 = vld [vmem:[#allocation9 + $0x8b0] sm:$0xff]  ;;  %v3257_v26 = vld [vmem:[#allocation9 + $0x898] sm:$0xff]  ;;  %v7383_v37 = vpack.c.bf16 %v3258_v20, %v3253_v17  ;;  %v2954_v17 = vmul.f32 %v9001_v36, %v8902_v24 }
 0x706   :  { %v3288_v20 = vld [vmem:[#allocation9 + $0x990] sm:$0xff] }
 0x707   :  { %7362 = vmatpush1.bf16.msra.mxu1 %v7361_v54  ;;  %7520 = vmatpush1.bf16.msra.mxu0 %v7519_v55  ;;  %v7531_v54 = vpack.c.bf16 %v3229_v50, %v3224_v46  ;;  %v3232_v55 = vld [vmem:[#allocation9 + $0x7d0] sm:$0xff]  ;;  %v3259_v46 = vld [vmem:[#allocation9 + $0x8a8] sm:$0xff] }
 0x708   :  { %7364 = vmatprep.subr.bf16.mxu1 %v7363_v57  ;;  %7522 = vmatprep.subr.bf16.mxu0 %v7521_v58  ;;  %v7533_v57 = vpack.c.bf16 %v3240_v51, %v3235_v11  ;;  %v3234_v58 = vld [vmem:[#allocation9 + $0x7e0] sm:$0xff]  ;;  %v7377_v7 = vpack.c.bf16 %v3237_v56, %v3232_v55  ;;  %v3263_v50 = vld [vmem:[#allocation9 + $0x8c8] sm:$0xff] }
 0x709   :  { %v3270_v11 = vld [vmem:[#allocation9 + $0x900] sm:$0xff]  ;;  %v3267_v55 = vld [vmem:[#allocation9 + $0x8e8] sm:$0xff]  ;;  %v7387_v56 = vpack.c.bf16 %v3268_v52, %v3263_v50  ;;  %v3293_v50 = vld [vmem:[#allocation9 + $0x9b8] sm:$0xff]  ;;  %v2964_v52 = vmul.f32 %v2954_v17, %v8988_v19 }
 0x70b   :  { %7366 = vmatpush1.bf16.msra.mxu1 %v7365_v1  ;;  %7524 = vmatpush1.bf16.msra.mxu0 %v7523_v9  ;;  %v7535_v1 = vpack.c.bf16 %v3239_v62, %v3234_v58  ;;  %v3242_v9 = vld [vmem:[#allocation9 + $0x820] sm:$0xff]  ;;  %v3269_v58 = vld [vmem:[#allocation9 + $0x8f8] sm:$0xff] }
 0x70c   :  { %7368 = vmatprep.subr.bf16.mxu1 %v7367_v14  ;;  %7526 = vmatprep.subr.bf16.mxu0 %v7525_v15  ;;  %v7537_v14 = vpack.c.bf16 %v3250_v4, %v3245_v34  ;;  %v3244_v15 = vld [vmem:[#allocation9 + $0x830] sm:$0xff]  ;;  %v7381_v22 = vpack.c.bf16 %v3247_v18, %v3242_v9  ;;  %v3273_v62 = vld [vmem:[#allocation9 + $0x918] sm:$0xff] }
 0x70d   :  { %v3280_v34 = vld [vmem:[#allocation9 + $0x950] sm:$0xff]  ;;  %v3277_v9 = vld [vmem:[#allocation9 + $0x938] sm:$0xff]  ;;  %v7391_v18 = vpack.c.bf16 %v3278_v63, %v3273_v62  ;;  %v3299_v62 = vld [vmem:[#allocation9 + $0x9e8] sm:$0xff]  ;;  %v2969_v63 = vsub.f32 %v8908_v59, %v2964_v52 }
 0x70e   :  { %v3314_v52 = vld [vmem:[#allocation9 + $0xa60] sm:$0xff] }
 0x70f   :  { %7370 = vmatpush1.bf16.msra.mxu1 %v7369_v25  ;;  %7528 = vmatpush1.bf16.msra.mxu0 %v7527_v60  ;;  %v7539_v25 = vpack.c.bf16 %v3249_v16, %v3244_v15  ;;  %v3252_v60 = vld [vmem:[#allocation9 + $0x870] sm:$0xff]  ;;  %v3279_v15 = vld [vmem:[#allocation9 + $0x948] sm:$0xff] }
 0x710   :  { %7372 = vmatprep.subr.bf16.mxu1 %v7371_v39  ;;  %7530 = vmatprep.subr.bf16.mxu0 %v7529_v43  ;;  %v7541_v39 = vpack.c.bf16 %v3260_v47, %v3255_v21  ;;  %v3254_v43 = vld [vmem:[#allocation9 + $0x880] sm:$0xff]  ;;  %v7385_v51 = vpack.c.bf16 %v3257_v26, %v3252_v60  ;;  %v3283_v16 = vld [vmem:[#allocation9 + $0x968] sm:$0xff]  ;;  %v3285_v21 = vld [vmem:[#allocation9 + $0x978] sm:$0xff] }
 0x711   :  { %v3290_v47 = vld [vmem:[#allocation9 + $0x9a0] sm:$0xff]  ;;  %v3287_v26 = vld [vmem:[#allocation9 + $0x988] sm:$0xff] }
 0x712   :  { %v3282_v60 = vld [vmem:[#allocation9 + $0x960] sm:$0xff] }
 0x713   :  { %7374 = vmatpush1.bf16.msra.mxu1 %v7373_v12  ;;  %7532 = vmatpush1.bf16.msra.mxu0 %v7531_v54  ;;  %v7543_v12 = vpack.c.bf16 %v3259_v46, %v3254_v43  ;;  %v3262_v54 = vld [vmem:[#allocation9 + $0x8c0] sm:$0xff]  ;;  %v3284_v43 = vld [vmem:[#allocation9 + $0x970] sm:$0xff]  ;;  %v3289_v46 = vld [vmem:[#allocation9 + $0x998] sm:$0xff] }
 0x714   :  { %7376 = vmatprep.subr.bf16.mxu1 %v7375_v28  ;;  %7534 = vmatprep.subr.bf16.mxu0 %v7533_v57  ;;  %v7545_v28 = vpack.c.bf16 %v3270_v11, %v3265_v53  ;;  %v3264_v57 = vld [vmem:[#allocation9 + $0x8d0] sm:$0xff]  ;;  %v7389_v4 = vpack.c.bf16 %v3267_v55, %v3262_v54  ;;  %v3298_v53 = vld [vmem:[#allocation9 + $0x9e0] sm:$0xff]  ;;  %v3295_v11 = vld [vmem:[#allocation9 + $0x9c8] sm:$0xff]  ;;  %v7555_v54 = vpack.c.bf16 %v3289_v46, %v3284_v43 }
 0x715   :  { %v3292_v55 = vld [vmem:[#allocation9 + $0x9b0] sm:$0xff] }
 0x717   :  { %7378 = vmatpush1.bf16.msra.mxu1 %v7377_v7  ;;  %7536 = vmatpush1.bf16.msra.mxu0 %v7535_v1  ;;  %v7547_v7 = vpack.c.bf16 %v3269_v58, %v3264_v57  ;;  %v3272_v1 = vld [vmem:[#allocation9 + $0x910] sm:$0xff]  ;;  %v3294_v58 = vld [vmem:[#allocation9 + $0x9c0] sm:$0xff] }
 0x718   :  { %7380 = vmatprep.subr.bf16.mxu1 %v7379_v13  ;;  %7538 = vmatprep.subr.bf16.mxu0 %v7537_v14  ;;  %v7549_v13 = vpack.c.bf16 %v3280_v34, %v3275_v5  ;;  %v3274_v14 = vld [vmem:[#allocation9 + $0x920] sm:$0xff]  ;;  %v3303_v5 = vld [vmem:[#allocation9 + $0xa08] sm:$0xff]  ;;  %v3308_v34 = vld [vmem:[#allocation9 + $0xa30] sm:$0xff] }
 0x71b   :  { %7382 = vmatpush1.bf16.msra.mxu1 %v7381_v22  ;;  %7540 = vmatpush1.bf16.msra.mxu0 %v7539_v25  ;;  %v7393_v22 = vpack.c.bf16 %v3277_v9, %v3272_v1  ;;  %v7551_v25 = vpack.c.bf16 %v3279_v15, %v3274_v14  ;;  %v2959_v1 = vmul.f32 %v2954_v17, %v8978_v8  ;;  %v3307_v14 = vld [vmem:[#allocation9 + $0xa28] sm:$0xff] }
 0x71c   :  { %7384 = vmatprep.subr.bf16.mxu1 %v7383_v37  ;;  %7542 = vmatprep.subr.bf16.mxu0 %v7541_v39  ;;  %v7395_v37 = vpack.c.bf16 %v3288_v20, %v3283_v16  ;;  %v7553_v39 = vpack.c.bf16 %v3290_v47, %v3285_v21  ;;  %v7403_v16 = vpack.c.bf16 %v3308_v34, %v3303_v5  ;;  %v3304_v21 = vld [vmem:[#allocation9 + $0xa10] sm:$0xff]  ;;  %v3309_v47 = vld [vmem:[#allocation9 + $0xa38] sm:$0xff]  ;;  %v3338_v34 = vld [vmem:[#allocation9 + $0xb20] sm:$0xff] }
 0x71d   :  { %v2974_v15 = vadd.f32 %v2969_v63, %v2959_v1  ;;  %v7563_v17 = vpack.c.bf16 %v3309_v47, %v3304_v21  ;;  %v3329_v63 = vld [vmem:[#allocation9 + $0xad8] sm:$0xff]  ;;  %v3343_v21 = vld [vmem:[#allocation9 + $0xb48] sm:$0xff]  ;;  %v3348_v47 = vld [vmem:[#allocation9 + $0xb70] sm:$0xff] }
 0x71e   :  { %v3333_v5 = vld [vmem:[#allocation9 + $0xaf8] sm:$0xff] }
 0x71f   :  { %7386 = vmatpush1.bf16.msra.mxu1 %v7385_v51  ;;  %7544 = vmatpush1.bf16.msra.mxu0 %v7543_v12  ;;  %v3300_v51 = vld [vmem:[#allocation9 + $0x9f0] sm:$0xff]  ;;  %v7397_v12 = vpack.c.bf16 %v3287_v26, %v3282_v60  ;;  %v3315_v60 = vld [vmem:[#allocation9 + $0xa68] sm:$0xff]  ;;  %v9039_v43 = vadd.f32 %v2974_v15, %v8913_v42  ;;  %v3322_v42 = vld [vmem:[#allocation9 + $0xaa0] sm:$0xff] }
 0x720   :  { %7388 = vmatprep.subr.bf16.mxu1 %v7387_v56  ;;  %7546 = vmatprep.subr.bf16.mxu0 %v7545_v28  ;;  %v3297_v56 = vld [vmem:[#allocation9 + $0x9d8] sm:$0xff]  ;;  %v7399_v28 = vpack.c.bf16 %v3298_v53, %v3293_v50  ;;  %v7557_v57 = vpack.c.bf16 %v3300_v51, %v3295_v11  ;;  %v3320_v26 = vld [vmem:[#allocation9 + $0xa90] sm:$0xff]  ;;  %v3319_v53 = vld [vmem:[#allocation9 + $0xa88] sm:$0xff] }
 0x721   :  { %v7401_v9 = vpack.c.bf16 %v3297_v56, %v3292_v55  ;;  %v7565_v50 = vpack.c.bf16 %v3320_v26, %v3315_v60  ;;  %v3323_v11 = vld [vmem:[#allocation9 + $0xaa8] sm:$0xff]  ;;  %v3328_v51 = vld [vmem:[#allocation9 + $0xad0] sm:$0xff]  ;;  %v7567_v56 = vpack.c.bf16 %v3319_v53, %v3314_v52  ;;  %v3353_v52 = vld [vmem:[#allocation9 + $0xb98] sm:$0xff]  ;;  %v2956_v53 = vmul.f32 %v9001_v36, %v8921_v44 }
 0x722   :  { %v3365_v36 = vld [vmem:[#allocation9 + $0xbf8] sm:$0xff] }
 0x723   :  { %7390 = vmatpush1.bf16.msra.mxu1 %v7389_v4  ;;  %7548 = vmatpush1.bf16.msra.mxu0 %v7547_v7  ;;  %v3305_v4 = vld [vmem:[#allocation9 + $0xa18] sm:$0xff]  ;;  %v3310_v7 = vld [vmem:[#allocation9 + $0xa40] sm:$0xff] }
 0x724   :  { %7392 = vmatprep.subr.bf16.mxu1 %v7391_v18  ;;  %7550 = vmatprep.subr.bf16.mxu0 %v7549_v13  ;;  %v7559_v18 = vpack.c.bf16 %v3299_v62, %v3294_v58  ;;  %v3302_v13 = vld [vmem:[#allocation9 + $0xa00] sm:$0xff]  ;;  %v7561_v20 = vpack.c.bf16 %v3310_v7, %v3305_v4  ;;  %v3324_v62 = vld [vmem:[#allocation9 + $0xab0] sm:$0xff]  ;;  %v3335_v4 = vld [vmem:[#allocation9 + $0xb08] sm:$0xff] }
 0x725   :  { %v7405_v8 = vpack.c.bf16 %v3307_v14, %v3302_v13  ;;  %v3340_v7 = vld [vmem:[#allocation9 + $0xb30] sm:$0xff]  ;;  %v3337_v13 = vld [vmem:[#allocation9 + $0xb18] sm:$0xff]  ;;  %v7415_v14 = vpack.c.bf16 %v3338_v34, %v3333_v5  ;;  %v2966_v5 = vmul.f32 %v2956_v53, %v8988_v19  ;;  %v3226_v19 = vld [vmem:[#allocation9 + $0x7a0] sm:$0xff] }
 0x726   :  { %v7573_v15 = vpack.c.bf16 %v3340_v7, %v3335_v4  ;;  %v3368_v34 = vld [vmem:[#allocation9 + $0xc10] sm:$0xf]  ;;  %v3370_v4 = vld [vmem:[#allocation9 + $0xc20] sm:$0xf] }
 0x727   :  { %7394 = vmatpush1.bf16.msra.mxu1 %v7393_v22  ;;  %7552 = vmatpush1.bf16.msra.mxu0 %v7551_v25  ;;  %v3313_v22 = vld [vmem:[#allocation9 + $0xa58] sm:$0xff]  ;;  %v3318_v25 = vld [vmem:[#allocation9 + $0xa80] sm:$0xff] }
 0x728   :  { %7396 = vmatprep.subr.bf16.mxu1 %v7395_v37  ;;  %7554 = vmatprep.subr.bf16.mxu0 %v7553_v39  ;;  %v3312_v37 = vld [vmem:[#allocation9 + $0xa50] sm:$0xff]  ;;  %v3317_v39 = vld [vmem:[#allocation9 + $0xa78] sm:$0xff]  ;;  %v7407_v46 = vpack.c.bf16 %v3318_v25, %v3313_v22  ;;  %v3350_v25 = vld [vmem:[#allocation9 + $0xb80] sm:$0xff] }
 0x729   :  { %v7409_v55 = vpack.c.bf16 %v3317_v39, %v3312_v37  ;;  %v3345_v22 = vld [vmem:[#allocation9 + $0xb58] sm:$0xff]  ;;  %v7419_v37 = vpack.c.bf16 %v3348_v47, %v3343_v21  ;;  %v3066_v21 = vld [vmem:[#allocation9 + $0x2a0] sm:$0xff]  ;;  %v3071_v47 = vld [vmem:[#allocation9 + $0x2c8] sm:$0xff] }
 0x72a   :  { %v7577_v39 = vpack.c.bf16 %v3350_v25, %v3345_v22  ;;  %v3231_v22 = vld [vmem:[#allocation9 + $0x7c8] sm:$0xff]  ;;  %v2961_v25 = vmul.f32 %v2956_v53, %v8983_v29  ;;  %v3236_v29 = vld [vmem:[#allocation9 + $0x7f0] sm:$0xff]  ;;  %v3241_v53 = vld [vmem:[#allocation9 + $0x818] sm:$0xff] }
 0x72b   :  { %7398 = vmatpush1.bf16.msra.mxu1 %v7397_v12  ;;  %7556 = vmatpush1.bf16.msra.mxu0 %v7555_v54  ;;  %v3325_v12 = vld [vmem:[#allocation9 + $0xab8] sm:$0xff]  ;;  %v3330_v54 = vld [vmem:[#allocation9 + $0xae0] sm:$0xff] }
 0x72c   :  { %7400 = vmatprep.subr.bf16.mxu1 %v7399_v28  ;;  %7558 = vmatprep.subr.bf16.mxu0 %v7557_v57  ;;  %v3327_v28 = vld [vmem:[#allocation9 + $0xac8] sm:$0xff]  ;;  %v7411_v57 = vpack.c.bf16 %v3328_v51, %v3323_v11  ;;  %v7569_v58 = vpack.c.bf16 %v3330_v54, %v3325_v12  ;;  %v3358_v11 = vld [vmem:[#allocation9 + $0xbc0] sm:$0xff]  ;;  %v3360_v12 = vld [vmem:[#allocation9 + $0xbd0] sm:$0xff] }
 0x72d   :  { %v7413_v1 = vpack.c.bf16 %v3327_v28, %v3322_v42  ;;  %v3355_v51 = vld [vmem:[#allocation9 + $0xba8] sm:$0xff]  ;;  %v3357_v42 = vld [vmem:[#allocation9 + $0xbb8] sm:$0xff]  ;;  %v7423_v28 = vpack.c.bf16 %v3358_v11, %v3353_v52  ;;  %v3076_v11 = vld [vmem:[#allocation9 + $0x2f0] sm:$0xff] }
 0x72e   :  { %v3151_v52 = vld [vmem:[#allocation9 + $0x548] sm:$0xff] }
 0x72f   :  { %7402 = vmatpush1.bf16.msra.mxu1 %v7401_v9  ;;  %7560 = vmatpush1.bf16.msra.mxu0 %v7559_v18  ;;  %v7571_v9 = vpack.c.bf16 %v3329_v63, %v3324_v62  ;;  %v3332_v18 = vld [vmem:[#allocation9 + $0xaf0] sm:$0xff]  ;;  %v3359_v62 = vld [vmem:[#allocation9 + $0xbc8] sm:$0xff] }
 0x730   :  { %7404 = vmatprep.subr.bf16.mxu1 %v7403_v16  ;;  %7562 = vmatprep.subr.bf16.mxu0 %v7561_v20  ;;  %v3334_v16 = vld [vmem:[#allocation9 + $0xb00] sm:$0xff]  ;;  %v3339_v20 = vld [vmem:[#allocation9 + $0xb28] sm:$0xff]  ;;  %v7417_v60 = vpack.c.bf16 %v3337_v13, %v3332_v18 }
 0x731   :  { %v7575_v26 = vpack.c.bf16 %v3339_v20, %v3334_v16  ;;  %v3363_v63 = vld [vmem:[#allocation9 + $0xbe8] sm:$0xff]  ;;  %v3369_v16 = vld [vmem:[#allocation9 + $0xc18] sm:$0xf]  ;;  %v2971_v20 = vsub.f32 %v8931_v3, %v2966_v5 }
 0x732   :  { %3553 = vmatmul.mubr.f32.vlgmr.msra.gmra.mrb[10].mxu1 %v9039_v43  ;;  %3766 = vmatmul.mubr.f32.vlgmr.msra.gmra.mrb[12].mxu0 %v9039_v43  ;;  %v3367_v18 = vld [vmem:[#allocation9 + $0xc08] sm:$0xf]  ;;  %v7427_v13 = vpack.c.bf16 %v3368_v34, %v3363_v63  ;;  %v3086_v63 = vld [vmem:[#allocation9 + $0x340] sm:$0xff] }
 0x733   :  { %7406 = vmatpush1.bf16.msra.mxu1 %v7405_v8  ;;  %7564 = vmatpush1.bf16.msra.mxu0 %v7563_v17  ;;  %v3342_v8 = vld [vmem:[#allocation9 + $0xb40] sm:$0xff]  ;;  %v3347_v17 = vld [vmem:[#allocation9 + $0xb68] sm:$0xff] }
 0x734   :  { %7408 = vmatprep.subr.bf16.mxu1 %v7407_v46  ;;  %7566 = vmatprep.subr.bf16.mxu0 %v7565_v50  ;;  %v3344_v46 = vld [vmem:[#allocation9 + $0xb50] sm:$0xff]  ;;  %v3349_v50 = vld [vmem:[#allocation9 + $0xb78] sm:$0xff]  ;;  %v7421_v54 = vpack.c.bf16 %v3347_v17, %v3342_v8  ;;  %v2976_v8 = vadd.f32 %v2971_v20, %v2961_v25  ;;  %v7591_v17 = vpack.c.bf16 %v3071_v47, %v3066_v21  ;;  %v3091_v5 = vld [vmem:[#allocation9 + $0x368] sm:$0xff] }
 0x735   :  { %3623 = vmatprep.mubr.f32.mxu1 %v8535_v2  ;;  %3836 = vmatprep.mubr.f32.mxu0 %v8535_v2  ;;  %v3246_v34 = vld [vmem:[#allocation9 + $0x840] sm:$0xff]  ;;  %v3256_v20 = vld [vmem:[#allocation9 + $0x890] sm:$0xff]  ;;  %v3261_v21 = vld [vmem:[#allocation9 + $0x8b8] sm:$0xff] }
 0x736   :  { %v3016_v25 = vld [vmem:[#allocation9 + $0x110] sm:$0xff] }
 0x737   :  { %7410 = vmatpush1.bf16.msra.mxu1 %v7409_v55  ;;  %7568 = vmatpush1.bf16.msra.mxu0 %v7567_v56  ;;  %v7579_v55 = vpack.c.bf16 %v3349_v50, %v3344_v46  ;;  %v3352_v56 = vld [vmem:[#allocation9 + $0xb90] sm:$0xff]  ;;  %v2991_v46 = vld [vmem:[#allocation9 + $0x48] sm:$0xff]  ;;  %v3146_v50 = vld [vmem:[#allocation9 + $0x520] sm:$0xff] }
 0x738   :  { %7412 = vmatprep.subr.bf16.mxu1 %v7411_v57  ;;  %7570 = vmatprep.subr.bf16.mxu0 %v7569_v58  ;;  %v7581_v57 = vpack.c.bf16 %v3360_v12, %v3355_v51  ;;  %v3354_v58 = vld [vmem:[#allocation9 + $0xba0] sm:$0xff]  ;;  %v7425_v7 = vpack.c.bf16 %v3357_v42, %v3352_v56  ;;  %v3081_v51 = vld [vmem:[#allocation9 + $0x318] sm:$0xff]  ;;  %v2996_v56 = vld [vmem:[#allocation9 + $0x70] sm:$0xff] }
 0x739   :  { %v3001_v42 = vld [vmem:[#allocation9 + $0x98] sm:$0xff] }
 0x73b   :  { %7414 = vmatpush1.bf16.msra.mxu1 %v7413_v1  ;;  %7572 = vmatpush1.bf16.msra.mxu0 %v7571_v9  ;;  %v7583_v1 = vpack.c.bf16 %v3359_v62, %v3354_v58  ;;  %v3362_v9 = vld [vmem:[#allocation9 + $0xbe0] sm:$0xff]  ;;  %v7627_v58 = vpack.c.bf16 %v3241_v53, %v3236_v29  ;;  %v3161_v62 = vld [vmem:[#allocation9 + $0x598] sm:$0xff]  ;;  %v3031_v53 = vld [vmem:[#allocation9 + $0x188] sm:$0xff] }
 0x73c   :  { %7416 = vmatprep.subr.bf16.mxu1 %v7415_v14  ;;  %7574 = vmatprep.subr.bf16.mxu0 %v7573_v15  ;;  %v7585_v14 = vpack.c.bf16 %v3370_v4, %v3365_v36  ;;  %v3364_v15 = vld [vmem:[#allocation9 + $0xbf0] sm:$0xff]  ;;  %v7597_v36 = vpack.c.bf16 %v3001_v42, %v2996_v56  ;;  %v3026_v29 = vld [vmem:[#allocation9 + $0x160] sm:$0xff]  ;;  %v3191_v56 = vld [vmem:[#allocation9 + $0x688] sm:$0xff] }
 0x73d   :  { %v3116_v42 = vld [vmem:[#allocation9 + $0x430] sm:$0xff] }
 0x73f   :  { %7418 = vmatpush1.bf16.msra.mxu1 %v7417_v60  ;;  %7576 = vmatpush1.bf16.msra.mxu0 %v7575_v26  ;;  %v7430_v60 = vpack.c.bf16 %v3367_v18, %v3362_v9  ;;  %v7588_v26 = vpack.c.bf16 %v3369_v16, %v3364_v15  ;;  %v3011_v9 = vld [vmem:[#allocation9 + $0xe8] sm:$0xff]  ;;  %v3166_v18 = vld [vmem:[#allocation9 + $0x5c0] sm:$0xff]  ;;  %v3096_v15 = vld [vmem:[#allocation9 + $0x390] sm:$0xff] }
 0x740   :  { %7420 = vmatprep.subr.bf16.mxu1 %v7419_v37  ;;  %7578 = vmatprep.subr.bf16.mxu0 %v7577_v39  ;;  %v7623_v37 = vpack.c.bf16 %v3231_v22, %v3226_v19  ;;  %v2986_v39 = vld [vmem:[#allocation9 + $0x20] sm:$0xff]  ;;  %v3101_v16 = vld [vmem:[#allocation9 + $0x3b8] sm:$0xff] }
 0x741   :  { %v7593_v12 = vpack.c.bf16 %v2991_v46, %v2986_v39  ;;  %v7603_v22 = vpack.c.bf16 %v3101_v16, %v3096_v15  ;;  %v3111_v39 = vld [vmem:[#allocation9 + $0x408] sm:$0xff]  ;;  %v3266_v46 = vld [vmem:[#allocation9 + $0x8e0] sm:$0xff] }
 0x743   :  { %7422 = vmatpush1.bf16.msra.mxu1 %v7421_v54  ;;  %7580 = vmatpush1.bf16.msra.mxu0 %v7579_v55  ;;  %v9059_v54 = vadd.f32 %v2976_v8, %v8944_v48  ;;  %v7625_v55 = vpack.c.bf16 %v3151_v52, %v3146_v50  ;;  %v3251_v48 = vld [vmem:[#allocation9 + $0x868] sm:$0xff]  ;;  %v7635_v8 = vpack.c.bf16 %v3261_v21, %v3256_v20  ;;  %v3046_v20 = vld [vmem:[#allocation9 + $0x200] sm:$0xff] }
 0x744   :  { %7424 = vmatprep.subr.bf16.mxu1 %v7423_v28  ;;  %7582 = vmatprep.subr.bf16.mxu0 %v7581_v57  ;;  %v3156_v28 = vld [vmem:[#allocation9 + $0x570] sm:$0xff]  ;;  %v7595_v57 = vpack.c.bf16 %v3081_v51, %v3076_v11  ;;  %v3271_v50 = vld [vmem:[#allocation9 + $0x908] sm:$0xff] }
 0x745   :  { %v7629_v4 = vpack.c.bf16 %v3161_v62, %v3156_v28  ;;  %v3121_v28 = vld [vmem:[#allocation9 + $0x458] sm:$0xff]  ;;  %v7609_v62 = vpack.c.bf16 %v3031_v53, %v3026_v29  ;;  %v3051_v21 = vld [vmem:[#allocation9 + $0x228] sm:$0xff] }
 0x747   :  { %7426 = vmatpush1.bf16.msra.mxu1 %v7425_v7  ;;  %7584 = vmatpush1.bf16.msra.mxu0 %v7583_v1  ;;  %v7599_v7 = vpack.c.bf16 %v3091_v5, %v3086_v63  ;;  %v3006_v1 = vld [vmem:[#allocation9 + $0xc0] sm:$0xff]  ;;  %v7611_v5 = vpack.c.bf16 %v3121_v28, %v3116_v42  ;;  %v3316_v42 = vld [vmem:[#allocation9 + $0xa70] sm:$0xff]  ;;  %v3321_v28 = vld [vmem:[#allocation9 + $0xa98] sm:$0xff] }
 0x748   :  { %7429 = vmatprep.subr.msk.bf16.mxu1 %vm8925_vm3, %v7427_v13  ;;  %7587 = vmatprep.subr.msk.bf16.mxu0 %vm8925_vm3, %v7585_v14  ;;  %v7631_v13 = vpack.c.bf16 %v3251_v48, %v3246_v34  ;;  %v3171_v14 = vld [vmem:[#allocation9 + $0x5e8] sm:$0xff]  ;;  %v7601_v47 = vpack.c.bf16 %v3011_v9, %v3006_v1  ;;  %v3036_v34 = vld [vmem:[#allocation9 + $0x1b0] sm:$0xff]  ;;  %v3041_v48 = vld [vmem:[#allocation9 + $0x1d8] sm:$0xff] }
 0x749   :  { %v7633_v19 = vpack.c.bf16 %v3171_v14, %v3166_v18  ;;  %v3126_v1 = vld [vmem:[#allocation9 + $0x480] sm:$0xff]  ;;  %v3131_v9 = vld [vmem:[#allocation9 + $0x4a8] sm:$0xff]  ;;  %v7613_v14 = vpack.c.bf16 %v3041_v48, %v3036_v34  ;;  %v3341_v34 = vld [vmem:[#allocation9 + $0xb38] sm:$0xff] }
 0x74a   :  { %v3286_v18 = vld [vmem:[#allocation9 + $0x980] sm:$0xff]  ;;  %v7615_v16 = vpack.c.bf16 %v3131_v9, %v3126_v1  ;;  %v3356_v1 = vld [vmem:[#allocation9 + $0xbb0] sm:$0xff]  ;;  %v3361_v9 = vld [vmem:[#allocation9 + $0xbd8] sm:$0xff] }
 0x74b   :  { %7432 = vmatpush1.bf16.msk.msra.mxu1 %vm8925_vm3, %v7430_v60  ;;  %7590 = vmatpush1.bf16.msk.msra.mxu0 %vm8925_vm3, %v7588_v26  ;;  %v3021_v60 = vld [vmem:[#allocation9 + $0x138] sm:$0xff]  ;;  %v3176_v26 = vld [vmem:[#allocation9 + $0x610] sm:$0xff] }
 0x74c   :  { %7592 = vmatprep.subr.bf16.mxu1 %v7591_v17  ;;  %7624 = vmatprep.subr.bf16.mxu0 %v7623_v37  ;;  %v3181_v17 = vld [vmem:[#allocation9 + $0x638] sm:$0xff]  ;;  %v3106_v37 = vld [vmem:[#allocation9 + $0x3e0] sm:$0xff]  ;;  %v7605_v52 = vpack.c.bf16 %v3021_v60, %v3016_v25  ;;  %v3136_v25 = vld [vmem:[#allocation9 + $0x4d0] sm:$0xff] }
 0x74d   :  { %v7637_v11 = vpack.c.bf16 %v3181_v17, %v3176_v26  ;;  %v7607_v51 = vpack.c.bf16 %v3111_v39, %v3106_v37  ;;  %v3141_v60 = vld [vmem:[#allocation9 + $0x4f8] sm:$0xff]  ;;  %v3296_v26 = vld [vmem:[#allocation9 + $0x9d0] sm:$0xff]  ;;  %v7617_v17 = vpack.c.bf16 %v3051_v21, %v3046_v20 }
 0x74e   :  { %5612 = vmatmul.mubr.msk.f32.vlgmr.msra.gmra.mrb[10].mxu1 %vm1723_vm0, %v9059_v54  ;;  %5615 = vmatmul.mubr.msk.f32.vlgmr.msra.gmra.mrb[12].mxu0 %vm1723_vm0, %v9059_v54  ;;  %v7619_v39 = vpack.c.bf16 %v3141_v60, %v3136_v25 }
 0x74f   :  { %7594 = vmatpush3.bf16.msra.mxu1 %v7593_v12  ;;  %3907 = vmatprep.mubr.f32.mxu1 %v9019_v10  ;;  %v3186_v12 = vld [vmem:[#allocation9 + $0x660] sm:$0xff] }
 0x750   :  { %7626 = vmatpush3.bf16.msra.mxu0 %v7625_v55  ;;  %3977 = vmatprep.mubr.f32.mxu0 %v9029_v61  ;;  %v7639_v55 = vpack.c.bf16 %v3271_v50, %v3266_v46  ;;  %v7641_v63 = vpack.c.bf16 %v3191_v56, %v3186_v12  ;;  %v3056_v46 = vld [vmem:[#allocation9 + $0x250] sm:$0xff]  ;;  %v3061_v50 = vld [vmem:[#allocation9 + $0x278] sm:$0xff]  ;;  %v3306_v12 = vld [vmem:[#allocation9 + $0xa20] sm:$0xff] }
 0x751   :  { %7596 = vmatprep.subr.bf16.mxu1 %v7595_v57  ;;  %7628 = vmatprep.subr.bf16.mxu0 %v7627_v58  ;;  %v3276_v57 = vld [vmem:[#allocation9 + $0x930] sm:$0xff]  ;;  %v3281_v58 = vld [vmem:[#allocation9 + $0x958] sm:$0xff]  ;;  %v7621_v29 = vpack.c.bf16 %v3061_v50, %v3056_v46 }
 0x753   :  { %7598 = vmatpush3.bf16.msra.mxu1 %v7597_v36  ;;  %v3196_v36 = vld [vmem:[#allocation9 + $0x6b0] sm:$0xff] }
 0x754   :  { %7630 = vmatpush3.bf16.msra.mxu0 %v7629_v4  ;;  %7600 = vmatprep.subr.bf16.mxu1 %v7599_v7  ;;  %v7643_v4 = vpack.c.bf16 %v3281_v58, %v3276_v57  ;;  %v3201_v7 = vld [vmem:[#allocation9 + $0x6d8] sm:$0xff]  ;;  %v7659_v57 = vpack.c.bf16 %v3321_v28, %v3316_v42  ;;  %v3326_v58 = vld [vmem:[#allocation9 + $0xac0] sm:$0xff] }
 0x755   :  { %7632 = vmatprep.subr.bf16.mxu0 %v7631_v13  ;;  %v3291_v13 = vld [vmem:[#allocation9 + $0x9a8] sm:$0xff]  ;;  %v7645_v15 = vpack.c.bf16 %v3201_v7, %v3196_v36  ;;  %v3346_v36 = vld [vmem:[#allocation9 + $0xb60] sm:$0xff] }
 0x757   :  { %7602 = vmatpush3.bf16.msra.mxu1 %v7601_v47  ;;  %v3206_v47 = vld [vmem:[#allocation9 + $0x700] sm:$0xff] }
 0x758   :  { %7634 = vmatpush3.bf16.msra.mxu0 %v7633_v19  ;;  %7604 = vmatprep.subr.bf16.mxu1 %v7603_v22  ;;  %v7647_v19 = vpack.c.bf16 %v3291_v13, %v3286_v18  ;;  %v3211_v22 = vld [vmem:[#allocation9 + $0x728] sm:$0xff]  ;;  %v7671_v18 = vpack.c.bf16 %v3361_v9, %v3356_v1  ;;  %v3366_v13 = vld [vmem:[#allocation9 + $0xc00] sm:$0xff] }
 0x759   :  { %7636 = vmatprep.subr.bf16.mxu0 %v7635_v8  ;;  %v3301_v8 = vld [vmem:[#allocation9 + $0x9f8] sm:$0xff]  ;;  %v7649_v37 = vpack.c.bf16 %v3211_v22, %v3206_v47 }
 0x75b   :  { %7606 = vmatpush3.bf16.msra.mxu1 %v7605_v52  ;;  %v7651_v52 = vpack.c.bf16 %v3301_v8, %v3296_v26 }
 0x75c   :  { %7638 = vmatpush3.bf16.msra.mxu0 %v7637_v11  ;;  %7608 = vmatprep.subr.bf16.mxu1 %v7607_v51  ;;  %v3216_v11 = vld [vmem:[#allocation9 + $0x750] sm:$0xff]  ;;  %v3221_v51 = vld [vmem:[#allocation9 + $0x778] sm:$0xff] }
 0x75d   :  { %7640 = vmatprep.subr.bf16.mxu0 %v7639_v55  ;;  %v7653_v53 = vpack.c.bf16 %v3221_v51, %v3216_v11  ;;  %v3311_v55 = vld [vmem:[#allocation9 + $0xa48] sm:$0xff] }
 0x75e   :  { %v7656_v56 = vpack.c.bf16 %v3311_v55, %v3306_v12 }
 0x75f   :  { %7610 = vmatpush3.bf16.msra.mxu1 %v7609_v62  ;;  %v3331_v62 = vld [vmem:[#allocation9 + $0xae8] sm:$0xff] }
 0x760   :  { %7642 = vmatpush3.bf16.msra.mxu0 %v7641_v63  ;;  %7612 = vmatprep.subr.bf16.mxu1 %v7611_v5  ;;  %v7662_v63 = vpack.c.bf16 %v3331_v62, %v3326_v58  ;;  %v3336_v5 = vld [vmem:[#allocation9 + $0xb10] sm:$0xff] }
 0x761   :  { %7644 = vmatprep.subr.bf16.mxu0 %v7643_v4  ;;  %v7665_v48 = vpack.c.bf16 %v3341_v34, %v3336_v5  ;;  %v3351_v4 = vld [vmem:[#allocation9 + $0xb88] sm:$0xff] }
 0x762   :  { %v7668_v7 = vpack.c.bf16 %v3351_v4, %v3346_v36 }
 0x763   :  { %7614 = vmatpush3.bf16.msra.mxu1 %v7613_v14  ;;  %v3371_v14 = vld [vmem:[#allocation9 + $0xc28] sm:$0xf] }
 0x764   :  { %7646 = vmatpush3.bf16.msra.mxu0 %v7645_v15  ;;  %7616 = vmatprep.subr.bf16.mxu1 %v7615_v16  ;;  %v7674_v15 = vpack.c.bf16 %v3371_v14, %v3366_v13 }
 0x765   :  { %7648 = vmatprep.subr.bf16.mxu0 %v7647_v19  ;;  %v3372_v19 = vld [vmem:[#allocation10] sm:$0x1f] }
 0x766   :  { %v3393_v25 = vrot.slane %v3372_v19, %v8793_v27  ;;  %v3377_v46 = vrot.slane %v3372_v19, %v8796_v23  ;;  %v3381_v50 = vrot.slane %v3372_v19, %v8798_v32 }
 0x767   :  { %7618 = vmatpush3.bf16.msra.mxu1 %v7617_v17 }
 0x768   :  { %7650 = vmatpush3.bf16.msra.mxu0 %v7649_v37  ;;  %7620 = vmatprep.subr.bf16.mxu1 %v7619_v39 }
 0x769   :  { %7652 = vmatprep.subr.bf16.mxu0 %v7651_v52 }
 0x76b   :  { %7622 = vmatpush3.bf16.msra.mxu1 %v7621_v29  ;;  %v3385_v29 = vrot.slane %v3372_v19, %v8802_v41 }
 0x76c   :  { %7654 = vmatpush3.bf16.msra.mxu0 %v7653_v53  ;;  %7655 = vmatprep.subr.bf16.mxu1 %v8537_v49 }
 0x76e   :  { %3908 = vmatmul.mubr.f32.vlgmr.msra.gmra.mrb[12].mxu1 %v9022_v0 }
 0x76f   :  { %3978 = vmatmul.mubr.f32.vlgmr.msra.gmra.mrb[14].mxu0 %v9039_v43  ;;  %7657 = vmatpush3.bf16.msra.mxu1 %v7656_v56  ;;  %v3389_v56 = vrot.slane %v3372_v19, %v8805_v45 }
 0x770   :  { %7658 = vmatprep.subr.bf16.mxu1 %v8537_v49  ;;  %6168 = vmatprep.mubr.msk.f32.mxu1 %vm8538_vm4, %v8535_v2 }
 0x773   :  { %7660 = vmatpush3.bf16.msra.mxu1 %v7659_v57 }
 0x774   :  { %7661 = vmatprep.subr.bf16.mxu1 %v8537_v49 }
 0x777   :  { %7663 = vmatpush3.bf16.msra.mxu1 %v7662_v63 }
 0x778   :  { %7664 = vmatprep.subr.bf16.mxu1 %v8537_v49 }
 0x77b   :  { %7666 = vmatpush3.bf16.msra.mxu1 %v7665_v48 }
 0x77c   :  { %7667 = vmatprep.subr.bf16.mxu1 %v8537_v49 }
 0x77f   :  { %7669 = vmatpush3.bf16.msra.mxu1 %v7668_v7 }
 0x780   :  { %7670 = vmatprep.subr.bf16.mxu1 %v8537_v49 }
 0x783   :  { %7672 = vmatpush3.bf16.msra.mxu1 %v7671_v18 }
 0x784   :  { %7673 = vmatprep.subr.bf16.mxu1 %v8537_v49 }
 0x787   :  { %7676 = vmatpush3.bf16.msk.msra.mxu1 %vm8925_vm3, %v7674_v15 }
 0x78a   :  { %6169 = vmatmul.mubr.msk.f32.vlgmr.msra.gmra.mrb[14].mxu1 %vm1723_vm0, %v9059_v54 }
 0x821   :  { %v3625_v16 = vpop.f32.mrb[10].mxu1  ;;  %v3838_v20 = vpop.f32.mrb[12].mxu0 }
 0x822   :  { %v3627_v21 = vpop.f32.mrb[11].mxu1  ;;  %v3840_v47 = vpop.f32.mrb[13].mxu0  ;;  %v8173_v11 = vadd.f32 %v3625_v16, %v3377_v46  ;;  %v8175_v55 = vadd.f32 %v3838_v20, %v3385_v29  ;;  %v4144_v29 = vld [vmem:[#allocation12 + $0x40] sm:$0xff] }
 0x823   :  { %v8174_v51 = vadd.f32 %v3627_v21, %v3381_v50  ;;  %v8176_v28 = vadd.f32 %v3840_v47, %v3389_v56  ;;  %v4137_v50 = vld [vmem:[#allocation12 + $0x8] sm:$0xff] }
 0x824   :  { %v4058_v53 = vmul.f32 0.70710677, %v8173_v11  ;;  %v4060_v42 = vmul.f32 0.70710677, %v8175_v55  ;;  %v4053_v7 = vmul.f32 0.5, %v8173_v11  ;;  %v4055_v16 = vmul.f32 0.5, %v8175_v55 }
 0x825   :  { %v4059_v12 = vmul.f32 0.70710677, %v8174_v51  ;;  %v4061_v57 = vmul.f32 0.70710677, %v8176_v28  ;;  %v4054_v1 = vmul.f32 0.5, %v8174_v51  ;;  %v4139_v11 = vld [vmem:[#allocation12 + $0x18] sm:$0xff] }
 0x826   :  { %8259 = verf.f32 %v4058_v53  ;;  %v4136_v53 = vld [vmem:[#allocation12] sm:$0xff]  ;;  %v7835_v55 = vpack.c.bf16 %v4144_v29, %v4139_v11  ;;  %v4174_v29 = vld [vmem:[#allocation12 + $0x130] sm:$0xff] }
 0x827   :  { %8261 = verf.f32 %v4059_v12  ;;  %v4141_v12 = vld [vmem:[#allocation12 + $0x28] sm:$0xff] }
 0x828   :  { %8263 = verf.f32 %v4060_v42  ;;  %v7679_v56 = vpack.c.bf16 %v4141_v12, %v4136_v53  ;;  %v4138_v42 = vld [vmem:[#allocation12 + $0x10] sm:$0xff]  ;;  %7836 = vmatprep.subr.bf16.mxu1 %v7835_v55  ;;  %v4171_v12 = vld [vmem:[#allocation12 + $0x118] sm:$0xff] }
 0x829   :  { %8265 = verf.f32 %v4061_v57  ;;  %v4147_v57 = vld [vmem:[#allocation12 + $0x58] sm:$0xff]  ;;  %v4166_v53 = vld [vmem:[#allocation12 + $0xf0] sm:$0xff] }
 0x830   :  { %v8260_v58 = vpop.eup %8259 }
 0x831   :  { %v8262_v62 = vpop.eup %8261  ;;  %v4068_v48 = vadd.f32 1.0, %v8260_v58 }
 0x832   :  { %v4069_v36 = vadd.f32 1.0, %v8262_v62  ;;  %v8264_v9 = vpop.eup %8263  ;;  %v4152_v62 = vld [vmem:[#allocation12 + $0x80] sm:$0xff] }
 0x833   :  { %v9087_v18 = vmul.f32 %v4068_v48, %v4053_v7  ;;  %v4070_v14 = vadd.f32 1.0, %v8264_v9  ;;  %v8266_v15 = vpop.eup %8265  ;;  %v4148_v7 = vld [vmem:[#allocation12 + $0x60] sm:$0xff]  ;;  %v4153_v9 = vld [vmem:[#allocation12 + $0x88] sm:$0xff] }
 0x834   :  { %v9089_v13 = vmul.f32 %v4069_v36, %v4054_v1  ;;  %v4071_v47 = vadd.f32 1.0, %v8266_v15  ;;  %v4146_v36 = vld [vmem:[#allocation12 + $0x50] sm:$0xff] }
 0x835   :  { %v9093_v21 = vmul.f32 %v4070_v14, %v4055_v16  ;;  %v4157_v14 = vld [vmem:[#allocation12 + $0xa8] sm:$0xff]  ;;  %v4162_v15 = vld [vmem:[#allocation12 + $0xd0] sm:$0xff]  ;;  %v7841_v16 = vpack.c.bf16 %v4153_v9, %v4148_v7  ;;  %v4187_v9 = vld [vmem:[#allocation12 + $0x198] sm:$0xff] }
 0x836   :  { %v4078_v20 = vadd.f32 %v9089_v13, %v9087_v18 }
 0x841   :  { %v5886_v22 = vpop.f32.mrb[12].mxu1 }
 0x842   :  { %v5921_v60 = vpop.f32.mrb[14].mxu0  ;;  %v5887_v26 = vpop.f32.mrb[13].mxu1 }
 0x843   :  { %v5888_v8 = vadd.f32 %v5887_v26, %v5886_v22  ;;  %v5922_v17 = vpop.f32.mrb[15].mxu0  ;;  %v4056_v22 = vmul.f32 0.5, %v8176_v28  ;;  %v4143_v28 = vld [vmem:[#allocation12 + $0x38] sm:$0xff] }
 0x844   :  { %v5923_v37 = vadd.f32 %v5922_v17, %v5921_v60  ;;  %v7837_v58 = vpack.c.bf16 %v4143_v28, %v4138_v42  ;;  %v4173_v42 = vld [vmem:[#allocation12 + $0x128] sm:$0xff] }
 0x845   :  { %v3910_v39 = vadd.f32 %v5888_v8, %v3393_v25  ;;  %v4079_v25 = vadd.f32 %v4078_v20, %v9093_v21  ;;  %v9096_v8 = vmul.f32 %v4071_v47, %v4056_v22  ;;  %v7685_v20 = vpack.c.bf16 %v4162_v15, %v4157_v14  ;;  %v4159_v47 = vld [vmem:[#allocation12 + $0xb8] sm:$0xff]  ;;  %v4156_v22 = vld [vmem:[#allocation12 + $0xa0] sm:$0xff]  ;;  %v4177_v28 = vld [vmem:[#allocation12 + $0x148] sm:$0xff] }
 0x846   :  { %7838 = vmatpush1.bf16.msra.mxu1 %v7837_v58  ;;  %v4179_v58 = vld [vmem:[#allocation12 + $0x158] sm:$0xff]  ;;  %v4192_v14 = vld [vmem:[#allocation12 + $0x1c0] sm:$0xff]  ;;  %v4189_v15 = vld [vmem:[#allocation12 + $0x1a8] sm:$0xff] }
 0x847   :  { %v3980_v52 = vadd.f32 %v5923_v37, %v3910_v39  ;;  %v4080_v37 = vadd.f32 %v4079_v25, %v9096_v8 }
 0x85d   :  { %v4049_v63 = vpop.f32.mrb[14].mxu1 }
 0x85e   :  { %v4050_v5 = vadd.f32 %v4049_v63, %v3980_v52  ;;  %v6170_v34 = vpop.f32.mrb[15].mxu1  ;;  %v4142_v52 = vld [vmem:[#allocation12 + $0x30] sm:$0xff]  ;;  %v4149_v63 = vld [vmem:[#allocation12 + $0x68] sm:$0xff] }
 0x85f   :  { %v7677_v51 = vpack.c.bf16 %v4142_v52, %v4137_v50  ;;  %v7681_v34 = vpack.c.bf16 %v4152_v62, %v4147_v57  ;;  %v4172_v50 = vld [vmem:[#allocation12 + $0x120] sm:$0xff]  ;;  %v4169_v52 = vld [vmem:[#allocation12 + $0x108] sm:$0xff]  ;;  %v4182_v57 = vld [vmem:[#allocation12 + $0x170] sm:$0xff] }
 0x860   :  { %v4062_v4 = vmul.f32 0.70710677, %v4050_v5  ;;  %v4057_v60 = vmul.f32 0.5, %v4050_v5  ;;  %v4154_v5 = vld [vmem:[#allocation12 + $0x90] sm:$0xff]  ;;  %v7847_v55 = vpack.c.bf16 %v4174_v29, %v4169_v52  ;;  %v4184_v62 = vld [vmem:[#allocation12 + $0x180] sm:$0xff] }
 0x861   :  { %7678 = vmatprep.subr.bf16.mxu0 %v7677_v51  ;;  %v7839_v48 = vpack.c.bf16 %v4154_v5, %v4149_v63  ;;  %v7691_v63 = vpack.c.bf16 %v4171_v12, %v4166_v53  ;;  %v7851_v7 = vpack.c.bf16 %v4184_v62, %v4179_v58  ;;  %v4204_v52 = vld [vmem:[#allocation12 + $0x220] sm:$0xff]  ;;  %v4201_v12 = vld [vmem:[#allocation12 + $0x208] sm:$0xff]  ;;  %v4214_v62 = vld [vmem:[#allocation12 + $0x270] sm:$0xff] }
 0x862   :  { %8267 = verf.f32 %v4062_v4  ;;  %7680 = vmatpush1.bf16.msra.mxu0 %v7679_v56  ;;  %v4151_v4 = vld [vmem:[#allocation12 + $0x78] sm:$0xff]  ;;  %v4168_v56 = vld [vmem:[#allocation12 + $0x100] sm:$0xff]  ;;  %v4209_v58 = vld [vmem:[#allocation12 + $0x248] sm:$0xff] }
 0x863   :  { %v7683_v1 = vpack.c.bf16 %v4151_v4, %v4146_v36  ;;  %7682 = vmatprep.subr.bf16.mxu0 %v7681_v34  ;;  %7840 = vmatprep.subr.bf16.mxu1 %v7839_v48  ;;  %v7849_v5 = vpack.c.bf16 %v4173_v42, %v4168_v56  ;;  %v7693_v34 = vpack.c.bf16 %v4182_v57, %v4177_v28  ;;  %v4176_v48 = vld [vmem:[#allocation12 + $0x140] sm:$0xff]  ;;  %v4181_v36 = vld [vmem:[#allocation12 + $0x168] sm:$0xff]  ;;  %v4178_v4 = vld [vmem:[#allocation12 + $0x150] sm:$0xff] }
 0x864   :  { %7842 = vmatpush1.bf16.msra.mxu1 %v7841_v16  ;;  %v4194_v16 = vld [vmem:[#allocation12 + $0x1d0] sm:$0xff]  ;;  %v4196_v53 = vld [vmem:[#allocation12 + $0x1e0] sm:$0xff]  ;;  %v4203_v42 = vld [vmem:[#allocation12 + $0x218] sm:$0xff] }
 0x865   :  { %v4207_v28 = vld [vmem:[#allocation12 + $0x238] sm:$0xff]  ;;  %v4212_v57 = vld [vmem:[#allocation12 + $0x260] sm:$0xff] }
 0x866   :  { %7684 = vmatpush1.bf16.msra.mxu0 %v7683_v1  ;;  %v4183_v1 = vld [vmem:[#allocation12 + $0x178] sm:$0xff] }
 0x867   :  { %7686 = vmatprep.subr.bf16.mxu0 %v7685_v20  ;;  %v7695_v20 = vpack.c.bf16 %v4181_v36, %v4176_v48  ;;  %v4206_v48 = vld [vmem:[#allocation12 + $0x230] sm:$0xff]  ;;  %v4211_v36 = vld [vmem:[#allocation12 + $0x258] sm:$0xff] }
 0x86c   :  { %v8268_v19 = vpop.eup %8267 }
 0x86d   :  { %v4072_v26 = vadd.f32 1.0, %v8268_v19  ;;  %v4164_v19 = vld [vmem:[#allocation12 + $0xe0] sm:$0xff] }
 0x86e   :  { %v7843_v25 = vpack.c.bf16 %v4164_v19, %v4159_v47  ;;  %v7853_v47 = vpack.c.bf16 %v4183_v1, %v4178_v4  ;;  %v7697_v19 = vpack.c.bf16 %v4192_v14, %v4187_v9  ;;  %v4208_v4 = vld [vmem:[#allocation12 + $0x240] sm:$0xff]  ;;  %v4213_v1 = vld [vmem:[#allocation12 + $0x268] sm:$0xff]  ;;  %v4222_v14 = vld [vmem:[#allocation12 + $0x2b0] sm:$0xff] }
 0x86f   :  { %v9098_v17 = vmul.f32 %v4072_v26, %v4057_v60  ;;  %v4161_v60 = vld [vmem:[#allocation12 + $0xc8] sm:$0xff]  ;;  %v4158_v26 = vld [vmem:[#allocation12 + $0xb0] sm:$0xff] }
 0x870   :  { %7844 = vmatprep.subr.bf16.mxu1 %v7843_v25  ;;  %v4191_v25 = vld [vmem:[#allocation12 + $0x1b8] sm:$0xff]  ;;  %v4217_v9 = vld [vmem:[#allocation12 + $0x288] sm:$0xff] }
 0x871   :  { %v4081_v39 = vsel %vm1723_vm0, %v9098_v17, 0.0 }
 0x872   :  { %v4082_v46 = vadd.f32 %v4081_v39, %v4080_v37  ;;  %v4163_v37 = vld [vmem:[#allocation12 + $0xd8] sm:$0xff]  ;;  %v7687_v39 = vpack.c.bf16 %v4161_v60, %v4156_v22  ;;  %v4186_v22 = vld [vmem:[#allocation12 + $0x190] sm:$0xff]  ;;  %v4188_v60 = vld [vmem:[#allocation12 + $0x1a0] sm:$0xff] }
 0x873   :  { %v7845_v11 = vpack.c.bf16 %v4163_v37, %v4158_v26  ;;  %v7855_v26 = vpack.c.bf16 %v4194_v16, %v4189_v15  ;;  %v4193_v37 = vld [vmem:[#allocation12 + $0x1c8] sm:$0xff]  ;;  %v4219_v15 = vld [vmem:[#allocation12 + $0x298] sm:$0xff]  ;;  %v4224_v16 = vld [vmem:[#allocation12 + $0x2c0] sm:$0xff] }
 0x874   :  { %4083 = vadd.xlane.f32.xlu0 %v4082_v46  ;;  %v4167_v46 = vld [vmem:[#allocation12 + $0xf8] sm:$0xff]  ;;  %7688 = vmatpush1.bf16.msra.mxu0 %v7687_v39  ;;  %v4197_v39 = vld [vmem:[#allocation12 + $0x1e8] sm:$0xff] }
 0x875   :  { %v7689_v51 = vpack.c.bf16 %v4172_v50, %v4167_v46  ;;  %7846 = vmatpush1.bf16.msra.mxu1 %v7845_v11  ;;  %v4202_v46 = vld [vmem:[#allocation12 + $0x210] sm:$0xff]  ;;  %v4199_v50 = vld [vmem:[#allocation12 + $0x1f8] sm:$0xff]  ;;  %v7699_v11 = vpack.c.bf16 %v4191_v25, %v4186_v22  ;;  %v4216_v22 = vld [vmem:[#allocation12 + $0x280] sm:$0xff] }
 0x876   :  { %7848 = vmatprep.subr.bf16.mxu1 %v7847_v55  ;;  %v7701_v29 = vpack.c.bf16 %v4202_v46, %v4197_v39  ;;  %v4198_v55 = vld [vmem:[#allocation12 + $0x1f0] sm:$0xff]  ;;  %v7859_v56 = vpack.c.bf16 %v4204_v52, %v4199_v50  ;;  %v4221_v25 = vld [vmem:[#allocation12 + $0x2a8] sm:$0xff]  ;;  %v4227_v39 = vld [vmem:[#allocation12 + $0x2d8] sm:$0xff] }
 0x877   :  { %7690 = vmatprep.subr.bf16.mxu0 %v7689_v51  ;;  %v7857_v51 = vpack.c.bf16 %v4193_v37, %v4188_v60  ;;  %v4218_v60 = vld [vmem:[#allocation12 + $0x290] sm:$0xff]  ;;  %v4223_v37 = vld [vmem:[#allocation12 + $0x2b8] sm:$0xff]  ;;  %v4232_v46 = vld [vmem:[#allocation12 + $0x300] sm:$0xff] }
 0x878   :  { %7692 = vmatpush1.bf16.msra.mxu0 %v7691_v63  ;;  %v7703_v63 = vpack.c.bf16 %v4201_v12, %v4196_v53  ;;  %v4229_v50 = vld [vmem:[#allocation12 + $0x2e8] sm:$0xff]  ;;  %v4234_v52 = vld [vmem:[#allocation12 + $0x310] sm:$0xff]  ;;  %v4231_v12 = vld [vmem:[#allocation12 + $0x2f8] sm:$0xff] }
 0x879   :  { %7850 = vmatpush1.bf16.msra.mxu1 %v7849_v5  ;;  %7694 = vmatprep.subr.bf16.mxu0 %v7693_v34  ;;  %v7861_v5 = vpack.c.bf16 %v4203_v42, %v4198_v55  ;;  %v7705_v34 = vpack.c.bf16 %v4212_v57, %v4207_v28  ;;  %v4226_v53 = vld [vmem:[#allocation12 + $0x2d0] sm:$0xff]  ;;  %v7871_v55 = vpack.c.bf16 %v4234_v52, %v4229_v50  ;;  %v4233_v42 = vld [vmem:[#allocation12 + $0x308] sm:$0xff] }
 0x87a   :  { %7852 = vmatprep.subr.bf16.mxu1 %v7851_v7  ;;  %v7863_v7 = vpack.c.bf16 %v4214_v62, %v4209_v58  ;;  %v7715_v28 = vpack.c.bf16 %v4231_v12, %v4226_v53  ;;  %v4247_v53 = vld [vmem:[#allocation12 + $0x378] sm:$0xff]  ;;  %v4252_v12 = vld [vmem:[#allocation12 + $0x3a0] sm:$0xff] }
 0x87c   :  { %7696 = vmatpush1.bf16.msra.mxu0 %v7695_v20  ;;  %v7707_v20 = vpack.c.bf16 %v4211_v36, %v4206_v48 }
 0x87d   :  { %7854 = vmatpush1.bf16.msra.mxu1 %v7853_v47  ;;  %7698 = vmatprep.subr.bf16.mxu0 %v7697_v19  ;;  %v7865_v47 = vpack.c.bf16 %v4213_v1, %v4208_v4  ;;  %v7709_v19 = vpack.c.bf16 %v4222_v14, %v4217_v9 }
 0x87e   :  { %7856 = vmatprep.subr.bf16.mxu1 %v7855_v26  ;;  %v7867_v26 = vpack.c.bf16 %v4224_v16, %v4219_v15 }
 0x880   :  { %7700 = vmatpush1.bf16.msra.mxu0 %v7699_v11  ;;  %v7711_v11 = vpack.c.bf16 %v4221_v25, %v4216_v22  ;;  %v4237_v22 = vld [vmem:[#allocation12 + $0x328] sm:$0xff]  ;;  %v4242_v25 = vld [vmem:[#allocation12 + $0x350] sm:$0xff] }
 0x881   :  { %7858 = vmatpush1.bf16.msra.mxu1 %v7857_v51  ;;  %7702 = vmatprep.subr.bf16.mxu0 %v7701_v29  ;;  %v7869_v51 = vpack.c.bf16 %v4223_v37, %v4218_v60  ;;  %v7713_v29 = vpack.c.bf16 %v4232_v46, %v4227_v39  ;;  %v4239_v60 = vld [vmem:[#allocation12 + $0x338] sm:$0xff]  ;;  %v4244_v37 = vld [vmem:[#allocation12 + $0x360] sm:$0xff]  ;;  %v4241_v46 = vld [vmem:[#allocation12 + $0x348] sm:$0xff] }
 0x882   :  { %7860 = vmatprep.subr.bf16.mxu1 %v7859_v56  ;;  %v4228_v56 = vld [vmem:[#allocation12 + $0x2e0] sm:$0xff]  ;;  %v7875_v50 = vpack.c.bf16 %v4244_v37, %v4239_v60  ;;  %v4269_v37 = vld [vmem:[#allocation12 + $0x428] sm:$0xff] }
 0x883   :  { %v7873_v57 = vpack.c.bf16 %v4233_v42, %v4228_v56  ;;  %v4236_v39 = vld [vmem:[#allocation12 + $0x320] sm:$0xff]  ;;  %v7721_v56 = vpack.c.bf16 %v4252_v12, %v4247_v53  ;;  %v4254_v42 = vld [vmem:[#allocation12 + $0x3b0] sm:$0xff]  ;;  %v4277_v53 = vld [vmem:[#allocation12 + $0x468] sm:$0xff] }
 0x884   :  { %7704 = vmatpush1.bf16.msra.mxu0 %v7703_v63  ;;  %v7719_v52 = vpack.c.bf16 %v4241_v46, %v4236_v39  ;;  %v4274_v39 = vld [vmem:[#allocation12 + $0x450] sm:$0xff] }
 0x885   :  { %7862 = vmatpush1.bf16.msra.mxu1 %v7861_v5  ;;  %7706 = vmatprep.subr.bf16.mxu0 %v7705_v34  ;;  %v4266_v46 = vld [vmem:[#allocation12 + $0x410] sm:$0xff] }
 0x886   :  { %7864 = vmatprep.subr.bf16.mxu1 %v7863_v7  ;;  %v4282_v12 = vld [vmem:[#allocation12 + $0x490] sm:$0xff] }
 0x888   :  { %7708 = vmatpush1.bf16.msra.mxu0 %v7707_v20 }
 0x889   :  { %7866 = vmatpush1.bf16.msra.mxu1 %v7865_v47  ;;  %7710 = vmatprep.subr.bf16.mxu0 %v7709_v19 }
 0x88a   :  { %7868 = vmatprep.subr.bf16.mxu1 %v7867_v26  ;;  %v7717_v26 = vpack.c.bf16 %v4242_v25, %v4237_v22  ;;  %v4267_v22 = vld [vmem:[#allocation12 + $0x418] sm:$0xff]  ;;  %v4272_v25 = vld [vmem:[#allocation12 + $0x440] sm:$0xff] }
 0x88c   :  { %7712 = vmatpush1.bf16.msra.mxu0 %v7711_v11  ;;  %v4238_v11 = vld [vmem:[#allocation12 + $0x330] sm:$0xff] }
 0x88d   :  { %7870 = vmatpush1.bf16.msra.mxu1 %v7869_v51  ;;  %7714 = vmatprep.subr.bf16.mxu0 %v7713_v29  ;;  %v4243_v51 = vld [vmem:[#allocation12 + $0x358] sm:$0xff] }
 0x88e   :  { %7872 = vmatprep.subr.bf16.mxu1 %v7871_v55  ;;  %v7877_v29 = vpack.c.bf16 %v4243_v51, %v4238_v11  ;;  %v4249_v55 = vld [vmem:[#allocation12 + $0x388] sm:$0xff]  ;;  %v4268_v11 = vld [vmem:[#allocation12 + $0x420] sm:$0xff] }
 0x88f   :  { %v4273_v51 = vld [vmem:[#allocation12 + $0x448] sm:$0xff] }
 0x890   :  { %7716 = vmatpush1.bf16.msra.mxu0 %v7715_v28  ;;  %v4246_v28 = vld [vmem:[#allocation12 + $0x370] sm:$0xff] }
 0x891   :  { %7874 = vmatpush1.bf16.msra.mxu1 %v7873_v57  ;;  %7718 = vmatprep.subr.bf16.mxu0 %v7717_v26  ;;  %v4251_v57 = vld [vmem:[#allocation12 + $0x398] sm:$0xff]  ;;  %v7729_v26 = vpack.c.bf16 %v4272_v25, %v4267_v22 }
 0x892   :  { %7876 = vmatprep.subr.bf16.mxu1 %v7875_v50  ;;  %v7887_v50 = vpack.c.bf16 %v4274_v39, %v4269_v37  ;;  %v4299_v37 = vld [vmem:[#allocation12 + $0x518] sm:$0xff] }
 0x894   :  { %7720 = vmatpush1.bf16.msra.mxu0 %v7719_v52  ;;  %v4271_v52 = vld [vmem:[#allocation12 + $0x438] sm:$0xff] }
 0x895   :  { %7878 = vmatpush1.bf16.msra.mxu1 %v7877_v29  ;;  %7722 = vmatprep.subr.bf16.mxu0 %v7721_v56  ;;  %v7731_v29 = vpack.c.bf16 %v4271_v52, %v4266_v46  ;;  %v7889_v56 = vpack.c.bf16 %v4273_v51, %v4268_v11  ;;  %v4304_v46 = vld [vmem:[#allocation12 + $0x540] sm:$0xff] }
 0x901   :  { %v4084_v58 = vpop.xlane.xlu0 %4083 }
 0x902   :  { %v9103_v62 = vmul.f32 0.0016129032, %v4084_v58  ;;  %v7879_v58 = vpack.c.bf16 %v4254_v42, %v4249_v55  ;;  %v4279_v55 = vld [vmem:[#allocation12 + $0x478] sm:$0xff]  ;;  %v7733_v42 = vpack.c.bf16 %v4282_v12, %v4277_v53 }
 0x904   :  { %v4086_v63 = vsub.f32 %v9087_v18, %v9103_v62  ;;  %v4087_v5 = vsub.f32 %v9089_v13, %v9103_v62  ;;  %v4088_v34 = vsub.f32 %v9093_v21, %v9103_v62  ;;  %v4090_v48 = vsub.f32 %v9098_v17, %v9103_v62  ;;  %7880 = vmatprep.subr.bf16.mxu1 %v7879_v58  ;;  %v4281_v58 = vld [vmem:[#allocation12 + $0x488] sm:$0xff] }
 0x905   :  { %v4089_v36 = vsub.f32 %v9096_v8, %v9103_v62 }
 0x906   :  { %v4091_v4 = vmul.f32 %v4086_v63, %v4086_v63  ;;  %v4092_v7 = vmul.f32 %v4087_v5, %v4087_v5  ;;  %v4093_v1 = vmul.f32 %v4088_v34, %v4088_v34  ;;  %v4095_v14 = vmul.f32 %v4090_v48, %v4090_v48  ;;  %v4248_v5 = vld [vmem:[#allocation12 + $0x380] sm:$0xff]  ;;  %v4253_v34 = vld [vmem:[#allocation12 + $0x3a8] sm:$0xff] }
 0x907   :  { %v4094_v15 = vmul.f32 %v4089_v36, %v4089_v36  ;;  %v7723_v63 = vpack.c.bf16 %v4251_v57, %v4246_v28  ;;  %v4257_v48 = vld [vmem:[#allocation12 + $0x3c8] sm:$0xff]  ;;  %v7881_v36 = vpack.c.bf16 %v4253_v34, %v4248_v5  ;;  %v4284_v28 = vld [vmem:[#allocation12 + $0x4a0] sm:$0xff]  ;;  %v4278_v5 = vld [vmem:[#allocation12 + $0x470] sm:$0xff] }
 0x908   :  { %v4096_v9 = vadd.f32 %v4092_v7, %v4091_v4  ;;  %v4099_v47 = vsel %vm1723_vm0, %v4095_v14, 0.0  ;;  %v4262_v4 = vld [vmem:[#allocation12 + $0x3f0] sm:$0xff]  ;;  %v4259_v7 = vld [vmem:[#allocation12 + $0x3d8] sm:$0xff]  ;;  %v4276_v57 = vld [vmem:[#allocation12 + $0x460] sm:$0xff] }
 0x909   :  { %7724 = vmatpush1.bf16.msra.mxu0 %v7723_v63  ;;  %7882 = vmatpush1.bf16.msra.mxu1 %v7881_v36  ;;  %v7891_v63 = vpack.c.bf16 %v4284_v28, %v4279_v55  ;;  %v4283_v34 = vld [vmem:[#allocation12 + $0x498] sm:$0xff]  ;;  %v4292_v36 = vld [vmem:[#allocation12 + $0x4e0] sm:$0xff] }
 0x90a   :  { %v4097_v16 = vadd.f32 %v4096_v9, %v4093_v1  ;;  %v4264_v1 = vld [vmem:[#allocation12 + $0x400] sm:$0xff]  ;;  %v7725_v9 = vpack.c.bf16 %v4262_v4, %v4257_v48  ;;  %v4287_v48 = vld [vmem:[#allocation12 + $0x4b8] sm:$0xff]  ;;  %v4289_v4 = vld [vmem:[#allocation12 + $0x4c8] sm:$0xff] }
 0x90b   :  { %v7883_v14 = vpack.c.bf16 %v4264_v1, %v4259_v7  ;;  %v4294_v7 = vld [vmem:[#allocation12 + $0x4f0] sm:$0xff]  ;;  %v7735_v1 = vpack.c.bf16 %v4281_v58, %v4276_v57 }
 0x90c   :  { %v4098_v20 = vadd.f32 %v4097_v16, %v4094_v15  ;;  %v4256_v15 = vld [vmem:[#allocation12 + $0x3c0] sm:$0xff]  ;;  %v4261_v16 = vld [vmem:[#allocation12 + $0x3e8] sm:$0xff]  ;;  %7726 = vmatprep.subr.bf16.mxu0 %v7725_v9  ;;  %v7893_v9 = vpack.c.bf16 %v4283_v34, %v4278_v5 }
 0x90d   :  { %7884 = vmatprep.subr.bf16.mxu1 %v7883_v14  ;;  %v7737_v14 = vpack.c.bf16 %v4292_v36, %v4287_v48  ;;  %v4296_v34 = vld [vmem:[#allocation12 + $0x500] sm:$0xff]  ;;  %v4301_v48 = vld [vmem:[#allocation12 + $0x528] sm:$0xff]  ;;  %v4298_v36 = vld [vmem:[#allocation12 + $0x510] sm:$0xff] }
 0x90e   :  { %v4100_v19 = vadd.f32 %v4099_v47, %v4098_v20  ;;  %v4258_v20 = vld [vmem:[#allocation12 + $0x3d0] sm:$0xff]  ;;  %v7727_v47 = vpack.c.bf16 %v4261_v16, %v4256_v15  ;;  %v4291_v16 = vld [vmem:[#allocation12 + $0x4d8] sm:$0xff] }
 0x90f   :  { %v4286_v15 = vld [vmem:[#allocation12 + $0x4b0] sm:$0xff] }
 0x910   :  { %4101 = vadd.xlane.f32.xlu1 %v4100_v19  ;;  %v4263_v19 = vld [vmem:[#allocation12 + $0x3f8] sm:$0xff]  ;;  %7728 = vmatpush1.bf16.msra.mxu0 %v7727_v47  ;;  %v4288_v47 = vld [vmem:[#allocation12 + $0x4c0] sm:$0xff]  ;;  %v7739_v22 = vpack.c.bf16 %v4291_v16, %v4286_v15 }
 0x911   :  { %v7885_v60 = vpack.c.bf16 %v4263_v19, %v4258_v20  ;;  %7730 = vmatprep.subr.bf16.mxu0 %v7729_v26  ;;  %v7895_v20 = vpack.c.bf16 %v4294_v7, %v4289_v4  ;;  %v4293_v19 = vld [vmem:[#allocation12 + $0x4e8] sm:$0xff]  ;;  %v4302_v26 = vld [vmem:[#allocation12 + $0x530] sm:$0xff]  ;;  %v4303_v4 = vld [vmem:[#allocation12 + $0x538] sm:$0xff] }
 0x912   :  { %v7897_v25 = vpack.c.bf16 %v4293_v19, %v4288_v47  ;;  %v4307_v15 = vld [vmem:[#allocation12 + $0x558] sm:$0xff]  ;;  %v4314_v47 = vld [vmem:[#allocation12 + $0x590] sm:$0xff] }
 0x913   :  { %7886 = vmatpush1.bf16.msra.mxu1 %v7885_v60  ;;  %v4297_v60 = vld [vmem:[#allocation12 + $0x508] sm:$0xff] }
 0x914   :  { %7888 = vmatprep.subr.bf16.mxu1 %v7887_v50  ;;  %7732 = vmatpush1.bf16.msra.mxu0 %v7731_v29  ;;  %v7741_v39 = vpack.c.bf16 %v4302_v26, %v4297_v60  ;;  %v7899_v50 = vpack.c.bf16 %v4304_v46, %v4299_v37  ;;  %v4306_v60 = vld [vmem:[#allocation12 + $0x550] sm:$0xff]  ;;  %v4311_v26 = vld [vmem:[#allocation12 + $0x578] sm:$0xff]  ;;  %v4313_v37 = vld [vmem:[#allocation12 + $0x588] sm:$0xff] }
 0x915   :  { %7734 = vmatprep.subr.bf16.mxu0 %v7733_v42 }
 0x917   :  { %7890 = vmatpush1.bf16.msra.mxu1 %v7889_v56 }
 0x918   :  { %7892 = vmatprep.subr.bf16.mxu1 %v7891_v63  ;;  %7736 = vmatpush1.bf16.msra.mxu0 %v7735_v1 }
 0x919   :  { %7738 = vmatprep.subr.bf16.mxu0 %v7737_v14 }
 0x91b   :  { %7894 = vmatpush1.bf16.msra.mxu1 %v7893_v9 }
 0x91c   :  { %7896 = vmatprep.subr.bf16.mxu1 %v7895_v20  ;;  %7740 = vmatpush1.bf16.msra.mxu0 %v7739_v22  ;;  %v4312_v20 = vld [vmem:[#allocation12 + $0x580] sm:$0xff]  ;;  %v7743_v22 = vpack.c.bf16 %v4301_v48, %v4296_v34 }
 0x91d   :  { %7742 = vmatprep.subr.bf16.mxu0 %v7741_v39  ;;  %v4317_v39 = vld [vmem:[#allocation12 + $0x5a8] sm:$0xff]  ;;  %v7745_v46 = vpack.c.bf16 %v4312_v20, %v4307_v15  ;;  %v4339_v20 = vld [vmem:[#allocation12 + $0x658] sm:$0xff] }
 0x91e   :  { %v4337_v15 = vld [vmem:[#allocation12 + $0x648] sm:$0xff] }
 0x91f   :  { %7898 = vmatpush1.bf16.msra.mxu1 %v7897_v25  ;;  %v7901_v25 = vpack.c.bf16 %v4303_v4, %v4298_v36  ;;  %v4326_v36 = vld [vmem:[#allocation12 + $0x5f0] sm:$0xff]  ;;  %v4331_v4 = vld [vmem:[#allocation12 + $0x618] sm:$0xff] }
 0x920   :  { %7900 = vmatprep.subr.bf16.mxu1 %v7899_v50 }
 0x99d   :  { %v4102_v52 = vpop.xlane.xlu1 %4101 }
 0x99e   :  { %v4103_v11 = vmul.f32 0.0016129032, %v4102_v52  ;;  %v4322_v52 = vld [vmem:[#allocation12 + $0x5d0] sm:$0xff] }
 0x9a0   :  { %v4104_v51 = vadd.f32 1e-05, %v4103_v11  ;;  %v4319_v11 = vld [vmem:[#allocation12 + $0x5b8] sm:$0xff] }
 0x9a2   :  { %8269 = vrsqrt.f32 %v4104_v51  ;;  %v7747_v51 = vpack.c.bf16 %v4311_v26, %v4306_v60  ;;  %v4341_v60 = vld [vmem:[#allocation12 + $0x668] sm:$0xff] }
 0x9ac   :  { %v9116_v29 = vpop.eup %8269 }
 0x9ad   :  { %v4107_v53 = vmul.f32 %v9116_v29, %v8849_v30  ;;  %v4106_v12 = vmul.f32 %v9116_v29, %v8853_v31  ;;  %v4109_v55 = vmul.f32 %v9116_v29, %v8857_v33 }
 0x9af   :  { %v4117_v56 = vmul.f32 %v4107_v53, %v9103_v62  ;;  %v4116_v42 = vmul.f32 %v4106_v12, %v9103_v62  ;;  %v4119_v28 = vmul.f32 %v4109_v55, %v9103_v62  ;;  %v4112_v57 = vmul.f32 %v4107_v53, %v9089_v13  ;;  %v4309_v13 = vld [vmem:[#allocation12 + $0x568] sm:$0xff] }
 0x9b0   :  { %v4111_v63 = vmul.f32 %v4106_v12, %v9087_v18  ;;  %v4114_v7 = vmul.f32 %v4109_v55, %v9096_v8  ;;  %v4308_v8 = vld [vmem:[#allocation12 + $0x560] sm:$0xff]  ;;  %v7903_v50 = vpack.c.bf16 %v4314_v47, %v4309_v13  ;;  %v4321_v55 = vld [vmem:[#allocation12 + $0x5c8] sm:$0xff]  ;;  %v7755_v47 = vpack.c.bf16 %v4331_v4, %v4326_v36 }
 0x9b1   :  { %v4122_v58 = vsub.f32 %v8863_v35, %v4117_v56  ;;  %v4121_v5 = vsub.f32 %v8871_v38, %v4116_v42  ;;  %v4124_v1 = vsub.f32 %v8877_v40, %v4119_v28  ;;  %v7905_v53 = vpack.c.bf16 %v4313_v37, %v4308_v8  ;;  %v4316_v12 = vld [vmem:[#allocation12 + $0x5a0] sm:$0xff]  ;;  %v4318_v28 = vld [vmem:[#allocation12 + $0x5b0] sm:$0xff]  ;;  %v4361_v36 = vld [vmem:[#allocation12 + $0x708] sm:$0xff] }
 0x9b2   :  { %v7749_v56 = vpack.c.bf16 %v4322_v52, %v4317_v39  ;;  %v7751_v34 = vpack.c.bf16 %v4321_v55, %v4316_v12  ;;  %v4344_v13 = vld [vmem:[#allocation12 + $0x680] sm:$0xff]  ;;  %v4338_v37 = vld [vmem:[#allocation12 + $0x650] sm:$0xff]  ;;  %v4343_v39 = vld [vmem:[#allocation12 + $0x678] sm:$0xff] }
 0x9b3   :  { %v4127_v9 = vadd.f32 %v4122_v58, %v4112_v57  ;;  %v4126_v14 = vadd.f32 %v4121_v5, %v4111_v63  ;;  %v4129_v16 = vadd.f32 %v4124_v1, %v4114_v7  ;;  %v4323_v57 = vld [vmem:[#allocation12 + $0x5d8] sm:$0xff]  ;;  %v4332_v63 = vld [vmem:[#allocation12 + $0x620] sm:$0xff]  ;;  %v4334_v5 = vld [vmem:[#allocation12 + $0x630] sm:$0xff]  ;;  %v7915_v8 = vpack.c.bf16 %v4344_v13, %v4339_v20 }
 0x9b4   :  { %v4327_v58 = vld [vmem:[#allocation12 + $0x5f8] sm:$0xff]  ;;  %v7909_v48 = vpack.c.bf16 %v4323_v57, %v4318_v28  ;;  %v4349_v52 = vld [vmem:[#allocation12 + $0x6a8] sm:$0xff]  ;;  %v4374_v20 = vld [vmem:[#allocation12 + $0x770] sm:$0xff] }
 0x9b5   :  { %v9134_v19 = vadd.f32 %v4127_v9, %v9019_v10  ;;  %v9137_v18 = vadd.f32 %v4126_v14, %v9022_v0  ;;  %v4324_v10 = vld [vmem:[#allocation12 + $0x5e0] sm:$0xff]  ;;  %v9144_v0 = vadd.f32 %v4129_v16, %v9029_v61  ;;  %v4329_v61 = vld [vmem:[#allocation12 + $0x608] sm:$0xff]  ;;  %v7753_v7 = vpack.c.bf16 %v4332_v63, %v4327_v58  ;;  %v4342_v16 = vld [vmem:[#allocation12 + $0x670] sm:$0xff] }
 0x9b6   :  { %v7907_v42 = vpack.c.bf16 %v4324_v10, %v4319_v11  ;;  %v7911_v1 = vpack.c.bf16 %v4334_v5, %v4329_v61  ;;  %v4328_v9 = vld [vmem:[#allocation12 + $0x600] sm:$0xff]  ;;  %v4333_v14 = vld [vmem:[#allocation12 + $0x628] sm:$0xff]  ;;  %v7757_v26 = vpack.c.bf16 %v4342_v16, %v4337_v15  ;;  %v4354_v11 = vld [vmem:[#allocation12 + $0x6d0] sm:$0xff] }
 0x9b7   :  { %4635 = vmatprep.mubr.f32.mxu0 %v9134_v19  ;;  %4848 = vmatprep.mubr.f32.mxu1 %v9134_v19  ;;  %v4351_v12 = vld [vmem:[#allocation12 + $0x6b8] sm:$0xff]  ;;  %v4353_v28 = vld [vmem:[#allocation12 + $0x6c8] sm:$0xff]  ;;  %v4362_v58 = vld [vmem:[#allocation12 + $0x710] sm:$0xff] }
 0x9b8   :  { %4636 = vmatmul.mubr.f32.vlgmr.msra.gmra.mrb[16].mxu0 %v9137_v18  ;;  %4849 = vmatmul.mubr.f32.vlgmr.msra.gmra.mrb[16].mxu1 %v9137_v18  ;;  %v4357_v57 = vld [vmem:[#allocation12 + $0x6e8] sm:$0xff]  ;;  %v4359_v63 = vld [vmem:[#allocation12 + $0x6f8] sm:$0xff]  ;;  %v4364_v61 = vld [vmem:[#allocation12 + $0x720] sm:$0xff] }
 0x9b9   :  { %7744 = vmatpush1.bf16.msra.mxu0 %v7743_v22  ;;  %7902 = vmatpush1.bf16.msra.mxu1 %v7901_v25  ;;  %v7913_v22 = vpack.c.bf16 %v4333_v14, %v4328_v9  ;;  %v4336_v25 = vld [vmem:[#allocation12 + $0x640] sm:$0xff]  ;;  %v7765_v4 = vpack.c.bf16 %v4362_v58, %v4357_v57  ;;  %v4363_v9 = vld [vmem:[#allocation12 + $0x718] sm:$0xff]  ;;  %v4369_v16 = vld [vmem:[#allocation12 + $0x748] sm:$0xff] }
 0x9ba   :  { %4706 = vmatprep.mubr.f32.mxu0 %v9144_v0  ;;  %4919 = vmatprep.mubr.f32.mxu1 %v9144_v0  ;;  %v7759_v10 = vpack.c.bf16 %v4341_v60, %v4336_v25  ;;  %v4367_v14 = vld [vmem:[#allocation12 + $0x738] sm:$0xff]  ;;  %v4372_v15 = vld [vmem:[#allocation12 + $0x760] sm:$0xff]  ;;  %v4389_v58 = vld [vmem:[#allocation12 + $0x7e8] sm:$0xff] }
 0x9bb   :  { %7746 = vmatprep.subr.bf16.mxu0 %v7745_v46  ;;  %7904 = vmatprep.subr.bf16.mxu1 %v7903_v50  ;;  %v4347_v46 = vld [vmem:[#allocation12 + $0x698] sm:$0xff]  ;;  %v4352_v50 = vld [vmem:[#allocation12 + $0x6c0] sm:$0xff]  ;;  %v7769_v60 = vpack.c.bf16 %v4372_v15, %v4367_v14  ;;  %v4402_v14 = vld [vmem:[#allocation12 + $0x850] sm:$0xff] }
 0x9bc   :  { %v7761_v55 = vpack.c.bf16 %v4352_v50, %v4347_v46  ;;  %v4371_v25 = vld [vmem:[#allocation12 + $0x758] sm:$0xff]  ;;  %v4382_v46 = vld [vmem:[#allocation12 + $0x7b0] sm:$0xff]  ;;  %v4392_v57 = vld [vmem:[#allocation12 + $0x800] sm:$0xff] }
 0x9bd   :  { %7748 = vmatpush1.bf16.msra.mxu0 %v7747_v51  ;;  %7906 = vmatpush1.bf16.msra.mxu1 %v7905_v53  ;;  %v7917_v51 = vpack.c.bf16 %v4343_v39, %v4338_v37  ;;  %v4346_v53 = vld [vmem:[#allocation12 + $0x690] sm:$0xff]  ;;  %v4373_v37 = vld [vmem:[#allocation12 + $0x768] sm:$0xff]  ;;  %v4379_v50 = vld [vmem:[#allocation12 + $0x798] sm:$0xff] }
 0x9be   :  { %7750 = vmatprep.subr.bf16.mxu0 %v7749_v56  ;;  %7908 = vmatprep.subr.bf16.mxu1 %v7907_v42  ;;  %v7919_v56 = vpack.c.bf16 %v4354_v11, %v4349_v52  ;;  %v4348_v42 = vld [vmem:[#allocation12 + $0x6a0] sm:$0xff]  ;;  %v7763_v5 = vpack.c.bf16 %v4351_v12, %v4346_v53  ;;  %v4377_v39 = vld [vmem:[#allocation12 + $0x788] sm:$0xff]  ;;  %v4399_v15 = vld [vmem:[#allocation12 + $0x838] sm:$0xff] }
 0x9bf   :  { %v4384_v52 = vld [vmem:[#allocation12 + $0x7c0] sm:$0xff]  ;;  %v4381_v53 = vld [vmem:[#allocation12 + $0x7a8] sm:$0xff]  ;;  %v7773_v12 = vpack.c.bf16 %v4382_v46, %v4377_v39 }
 0x9c0   :  { %v4412_v39 = vld [vmem:[#allocation12 + $0x8a0] sm:$0xff]  ;;  %v4409_v46 = vld [vmem:[#allocation12 + $0x888] sm:$0xff] }
 0x9c1   :  { %7752 = vmatpush1.bf16.msra.mxu0 %v7751_v34  ;;  %7910 = vmatpush1.bf16.msra.mxu1 %v7909_v48  ;;  %v7921_v34 = vpack.c.bf16 %v4353_v28, %v4348_v42  ;;  %v4356_v48 = vld [vmem:[#allocation12 + $0x6e0] sm:$0xff]  ;;  %v4383_v42 = vld [vmem:[#allocation12 + $0x7b8] sm:$0xff] }
 0x9c2   :  { %7754 = vmatprep.subr.bf16.mxu0 %v7753_v7  ;;  %7912 = vmatprep.subr.bf16.mxu1 %v7911_v1  ;;  %v7923_v7 = vpack.c.bf16 %v4364_v61, %v4359_v63  ;;  %v4358_v1 = vld [vmem:[#allocation12 + $0x6f0] sm:$0xff]  ;;  %v7767_v13 = vpack.c.bf16 %v4361_v36, %v4356_v48  ;;  %v4387_v28 = vld [vmem:[#allocation12 + $0x7d8] sm:$0xff] }
 0x9c3   :  { %v4394_v63 = vld [vmem:[#allocation12 + $0x810] sm:$0xff]  ;;  %v4391_v48 = vld [vmem:[#allocation12 + $0x7f8] sm:$0xff]  ;;  %v7777_v36 = vpack.c.bf16 %v4392_v57, %v4387_v28 }
 0x9c4   :  { %v4422_v28 = vld [vmem:[#allocation12 + $0x8f0] sm:$0xff]  ;;  %v4419_v57 = vld [vmem:[#allocation12 + $0x8d8] sm:$0xff] }
 0x9c5   :  { %7756 = vmatpush1.bf16.msra.mxu0 %v7755_v47  ;;  %7914 = vmatpush1.bf16.msra.mxu1 %v7913_v22  ;;  %v7925_v47 = vpack.c.bf16 %v4363_v9, %v4358_v1  ;;  %v4366_v22 = vld [vmem:[#allocation12 + $0x730] sm:$0xff]  ;;  %v4393_v1 = vld [vmem:[#allocation12 + $0x808] sm:$0xff] }
 0x9c6   :  { %7758 = vmatprep.subr.bf16.mxu0 %v7757_v26  ;;  %7916 = vmatprep.subr.bf16.mxu1 %v7915_v8  ;;  %v7927_v26 = vpack.c.bf16 %v4374_v20, %v4369_v16  ;;  %v4368_v8 = vld [vmem:[#allocation12 + $0x740] sm:$0xff]  ;;  %v7771_v11 = vpack.c.bf16 %v4371_v25, %v4366_v22  ;;  %v4397_v9 = vld [vmem:[#allocation12 + $0x828] sm:$0xff] }
 0x9c7   :  { %v4404_v16 = vld [vmem:[#allocation12 + $0x860] sm:$0xff]  ;;  %v4401_v22 = vld [vmem:[#allocation12 + $0x848] sm:$0xff]  ;;  %v7781_v25 = vpack.c.bf16 %v4402_v14, %v4397_v9 }
 0x9c8   :  { %v4432_v9 = vld [vmem:[#allocation12 + $0x940] sm:$0xff]  ;;  %v4429_v14 = vld [vmem:[#allocation12 + $0x928] sm:$0xff] }
 0x9c9   :  { %7760 = vmatpush1.bf16.msra.mxu0 %v7759_v10  ;;  %7918 = vmatpush1.bf16.msra.mxu1 %v7917_v51  ;;  %v7929_v10 = vpack.c.bf16 %v4373_v37, %v4368_v8  ;;  %v4376_v51 = vld [vmem:[#allocation12 + $0x780] sm:$0xff]  ;;  %v4403_v8 = vld [vmem:[#allocation12 + $0x858] sm:$0xff] }
 0x9ca   :  { %7762 = vmatprep.subr.bf16.mxu0 %v7761_v55  ;;  %7920 = vmatprep.subr.bf16.mxu1 %v7919_v56  ;;  %v7931_v55 = vpack.c.bf16 %v4384_v52, %v4379_v50  ;;  %v4378_v56 = vld [vmem:[#allocation12 + $0x790] sm:$0xff]  ;;  %v7775_v61 = vpack.c.bf16 %v4381_v53, %v4376_v51  ;;  %v4407_v37 = vld [vmem:[#allocation12 + $0x878] sm:$0xff] }
 0x9cb   :  { %v4414_v50 = vld [vmem:[#allocation12 + $0x8b0] sm:$0xff]  ;;  %v4411_v51 = vld [vmem:[#allocation12 + $0x898] sm:$0xff]  ;;  %v7785_v53 = vpack.c.bf16 %v4412_v39, %v4407_v37  ;;  %v4108_v37 = vmul.f32 %v9116_v29, %v8902_v24 }
 0x9cc   :  { %v4442_v39 = vld [vmem:[#allocation12 + $0x990] sm:$0xff] }
 0x9cd   :  { %7764 = vmatpush1.bf16.msra.mxu0 %v7763_v5  ;;  %7922 = vmatpush1.bf16.msra.mxu1 %v7921_v34  ;;  %v7933_v5 = vpack.c.bf16 %v4383_v42, %v4378_v56  ;;  %v4386_v34 = vld [vmem:[#allocation12 + $0x7d0] sm:$0xff]  ;;  %v4413_v56 = vld [vmem:[#allocation12 + $0x8a8] sm:$0xff] }
 0x9ce   :  { %7766 = vmatprep.subr.bf16.mxu0 %v7765_v4  ;;  %7924 = vmatprep.subr.bf16.mxu1 %v7923_v7  ;;  %v7935_v4 = vpack.c.bf16 %v4394_v63, %v4389_v58  ;;  %v4388_v7 = vld [vmem:[#allocation12 + $0x7e0] sm:$0xff]  ;;  %v7779_v20 = vpack.c.bf16 %v4391_v48, %v4386_v34  ;;  %v4417_v42 = vld [vmem:[#allocation12 + $0x8c8] sm:$0xff] }
 0x9cf   :  { %v4424_v58 = vld [vmem:[#allocation12 + $0x900] sm:$0xff]  ;;  %v4421_v34 = vld [vmem:[#allocation12 + $0x8e8] sm:$0xff]  ;;  %v7789_v48 = vpack.c.bf16 %v4422_v28, %v4417_v42  ;;  %v4447_v42 = vld [vmem:[#allocation12 + $0x9b8] sm:$0xff]  ;;  %v4118_v28 = vmul.f32 %v4108_v37, %v9103_v62 }
 0x9d1   :  { %7768 = vmatpush1.bf16.msra.mxu0 %v7767_v13  ;;  %7926 = vmatpush1.bf16.msra.mxu1 %v7925_v47  ;;  %v7937_v13 = vpack.c.bf16 %v4393_v1, %v4388_v7  ;;  %v4396_v47 = vld [vmem:[#allocation12 + $0x820] sm:$0xff]  ;;  %v4423_v7 = vld [vmem:[#allocation12 + $0x8f8] sm:$0xff] }
 0x9d2   :  { %7770 = vmatprep.subr.bf16.mxu0 %v7769_v60  ;;  %7928 = vmatprep.subr.bf16.mxu1 %v7927_v26  ;;  %v7939_v60 = vpack.c.bf16 %v4404_v16, %v4399_v15  ;;  %v4398_v26 = vld [vmem:[#allocation12 + $0x830] sm:$0xff]  ;;  %v7783_v52 = vpack.c.bf16 %v4401_v22, %v4396_v47  ;;  %v4427_v1 = vld [vmem:[#allocation12 + $0x918] sm:$0xff] }
 0x9d3   :  { %v4434_v15 = vld [vmem:[#allocation12 + $0x950] sm:$0xff]  ;;  %v4431_v47 = vld [vmem:[#allocation12 + $0x938] sm:$0xff]  ;;  %v7793_v22 = vpack.c.bf16 %v4432_v9, %v4427_v1  ;;  %v4453_v1 = vld [vmem:[#allocation12 + $0x9e8] sm:$0xff]  ;;  %v4123_v9 = vsub.f32 %v8908_v59, %v4118_v28 }
 0x9d4   :  { %v4468_v28 = vld [vmem:[#allocation12 + $0xa60] sm:$0xff] }
 0x9d5   :  { %7772 = vmatpush1.bf16.msra.mxu0 %v7771_v11  ;;  %7930 = vmatpush1.bf16.msra.mxu1 %v7929_v10  ;;  %v7941_v11 = vpack.c.bf16 %v4403_v8, %v4398_v26  ;;  %v4406_v10 = vld [vmem:[#allocation12 + $0x870] sm:$0xff]  ;;  %v4433_v26 = vld [vmem:[#allocation12 + $0x948] sm:$0xff] }
 0x9d6   :  { %7774 = vmatprep.subr.bf16.mxu0 %v7773_v12  ;;  %7932 = vmatprep.subr.bf16.mxu1 %v7931_v55  ;;  %v7943_v12 = vpack.c.bf16 %v4414_v50, %v4409_v46  ;;  %v4408_v55 = vld [vmem:[#allocation12 + $0x880] sm:$0xff]  ;;  %v7787_v63 = vpack.c.bf16 %v4411_v51, %v4406_v10  ;;  %v4437_v8 = vld [vmem:[#allocation12 + $0x968] sm:$0xff]  ;;  %v4439_v46 = vld [vmem:[#allocation12 + $0x978] sm:$0xff] }
 0x9d7   :  { %v4444_v50 = vld [vmem:[#allocation12 + $0x9a0] sm:$0xff]  ;;  %v4441_v51 = vld [vmem:[#allocation12 + $0x988] sm:$0xff] }
 0x9d8   :  { %v4436_v10 = vld [vmem:[#allocation12 + $0x960] sm:$0xff] }
 0x9d9   :  { %7776 = vmatpush1.bf16.msra.mxu0 %v7775_v61  ;;  %7934 = vmatpush1.bf16.msra.mxu1 %v7933_v5  ;;  %v7945_v61 = vpack.c.bf16 %v4413_v56, %v4408_v55  ;;  %v4416_v5 = vld [vmem:[#allocation12 + $0x8c0] sm:$0xff]  ;;  %v4438_v55 = vld [vmem:[#allocation12 + $0x970] sm:$0xff]  ;;  %v4443_v56 = vld [vmem:[#allocation12 + $0x998] sm:$0xff] }
 0x9da   :  { %7778 = vmatprep.subr.bf16.mxu0 %v7777_v36  ;;  %7936 = vmatprep.subr.bf16.mxu1 %v7935_v4  ;;  %v7947_v36 = vpack.c.bf16 %v4424_v58, %v4419_v57  ;;  %v4418_v4 = vld [vmem:[#allocation12 + $0x8d0] sm:$0xff]  ;;  %v7791_v16 = vpack.c.bf16 %v4421_v34, %v4416_v5  ;;  %v4452_v57 = vld [vmem:[#allocation12 + $0x9e0] sm:$0xff]  ;;  %v4449_v58 = vld [vmem:[#allocation12 + $0x9c8] sm:$0xff]  ;;  %v7957_v5 = vpack.c.bf16 %v4443_v56, %v4438_v55 }
 0x9db   :  { %v4446_v34 = vld [vmem:[#allocation12 + $0x9b0] sm:$0xff] }
 0x9dd   :  { %7780 = vmatpush1.bf16.msra.mxu0 %v7779_v20  ;;  %7938 = vmatpush1.bf16.msra.mxu1 %v7937_v13  ;;  %v7949_v20 = vpack.c.bf16 %v4423_v7, %v4418_v4  ;;  %v4426_v13 = vld [vmem:[#allocation12 + $0x910] sm:$0xff]  ;;  %v4448_v7 = vld [vmem:[#allocation12 + $0x9c0] sm:$0xff] }
 0x9de   :  { %7782 = vmatprep.subr.bf16.mxu0 %v7781_v25  ;;  %7940 = vmatprep.subr.bf16.mxu1 %v7939_v60  ;;  %v7951_v25 = vpack.c.bf16 %v4434_v15, %v4429_v14  ;;  %v4428_v60 = vld [vmem:[#allocation12 + $0x920] sm:$0xff]  ;;  %v4457_v14 = vld [vmem:[#allocation12 + $0xa08] sm:$0xff]  ;;  %v4462_v15 = vld [vmem:[#allocation12 + $0xa30] sm:$0xff] }
 0x9e1   :  { %7784 = vmatpush1.bf16.msra.mxu0 %v7783_v52  ;;  %7942 = vmatpush1.bf16.msra.mxu1 %v7941_v11  ;;  %v7795_v52 = vpack.c.bf16 %v4431_v47, %v4426_v13  ;;  %v7953_v11 = vpack.c.bf16 %v4433_v26, %v4428_v60  ;;  %v4113_v13 = vmul.f32 %v4108_v37, %v9093_v21  ;;  %v4461_v60 = vld [vmem:[#allocation12 + $0xa28] sm:$0xff] }
 0x9e2   :  { %7786 = vmatprep.subr.bf16.mxu0 %v7785_v53  ;;  %7944 = vmatprep.subr.bf16.mxu1 %v7943_v12  ;;  %v7797_v53 = vpack.c.bf16 %v4442_v39, %v4437_v8  ;;  %v7955_v12 = vpack.c.bf16 %v4444_v50, %v4439_v46  ;;  %v7805_v8 = vpack.c.bf16 %v4462_v15, %v4457_v14  ;;  %v4458_v46 = vld [vmem:[#allocation12 + $0xa10] sm:$0xff]  ;;  %v4463_v50 = vld [vmem:[#allocation12 + $0xa38] sm:$0xff]  ;;  %v4492_v15 = vld [vmem:[#allocation12 + $0xb20] sm:$0xff] }
 0x9e3   :  { %v4128_v26 = vadd.f32 %v4123_v9, %v4113_v13  ;;  %v7965_v37 = vpack.c.bf16 %v4463_v50, %v4458_v46  ;;  %v4483_v9 = vld [vmem:[#allocation12 + $0xad8] sm:$0xff]  ;;  %v4497_v46 = vld [vmem:[#allocation12 + $0xb48] sm:$0xff]  ;;  %v4502_v50 = vld [vmem:[#allocation12 + $0xb70] sm:$0xff] }
 0x9e4   :  { %v4487_v14 = vld [vmem:[#allocation12 + $0xaf8] sm:$0xff] }
 0x9e5   :  { %7788 = vmatpush1.bf16.msra.mxu0 %v7787_v63  ;;  %7946 = vmatpush1.bf16.msra.mxu1 %v7945_v61  ;;  %v4454_v63 = vld [vmem:[#allocation12 + $0x9f0] sm:$0xff]  ;;  %v7799_v61 = vpack.c.bf16 %v4441_v51, %v4436_v10  ;;  %v4469_v10 = vld [vmem:[#allocation12 + $0xa68] sm:$0xff]  ;;  %v9154_v55 = vadd.f32 %v4128_v26, %v9039_v43  ;;  %v4476_v43 = vld [vmem:[#allocation12 + $0xaa0] sm:$0xff] }
 0x9e6   :  { %7790 = vmatprep.subr.bf16.mxu0 %v7789_v48  ;;  %7948 = vmatprep.subr.bf16.mxu1 %v7947_v36  ;;  %v4451_v48 = vld [vmem:[#allocation12 + $0x9d8] sm:$0xff]  ;;  %v7801_v36 = vpack.c.bf16 %v4452_v57, %v4447_v42  ;;  %v7959_v4 = vpack.c.bf16 %v4454_v63, %v4449_v58  ;;  %v4474_v51 = vld [vmem:[#allocation12 + $0xa90] sm:$0xff]  ;;  %v4473_v57 = vld [vmem:[#allocation12 + $0xa88] sm:$0xff] }
 0x9e7   :  { %v7803_v47 = vpack.c.bf16 %v4451_v48, %v4446_v34  ;;  %v7967_v42 = vpack.c.bf16 %v4474_v51, %v4469_v10  ;;  %v4477_v58 = vld [vmem:[#allocation12 + $0xaa8] sm:$0xff]  ;;  %v4482_v63 = vld [vmem:[#allocation12 + $0xad0] sm:$0xff]  ;;  %v7969_v48 = vpack.c.bf16 %v4473_v57, %v4468_v28  ;;  %v4507_v28 = vld [vmem:[#allocation12 + $0xb98] sm:$0xff]  ;;  %v4110_v57 = vmul.f32 %v9116_v29, %v8921_v44 }
 0x9e8   :  { %v4519_v29 = vld [vmem:[#allocation12 + $0xbf8] sm:$0xff] }
 0x9e9   :  { %7792 = vmatpush1.bf16.msra.mxu0 %v7791_v16  ;;  %7950 = vmatpush1.bf16.msra.mxu1 %v7949_v20  ;;  %v4459_v16 = vld [vmem:[#allocation12 + $0xa18] sm:$0xff]  ;;  %v4464_v20 = vld [vmem:[#allocation12 + $0xa40] sm:$0xff] }
 0x9ea   :  { %7794 = vmatprep.subr.bf16.mxu0 %v7793_v22  ;;  %7952 = vmatprep.subr.bf16.mxu1 %v7951_v25  ;;  %v7961_v22 = vpack.c.bf16 %v4453_v1, %v4448_v7  ;;  %v4456_v25 = vld [vmem:[#allocation12 + $0xa00] sm:$0xff]  ;;  %v7963_v39 = vpack.c.bf16 %v4464_v20, %v4459_v16  ;;  %v4478_v1 = vld [vmem:[#allocation12 + $0xab0] sm:$0xff]  ;;  %v4489_v16 = vld [vmem:[#allocation12 + $0xb08] sm:$0xff] }
 0x9eb   :  { %v7807_v21 = vpack.c.bf16 %v4461_v60, %v4456_v25  ;;  %v4494_v20 = vld [vmem:[#allocation12 + $0xb30] sm:$0xff]  ;;  %v4491_v25 = vld [vmem:[#allocation12 + $0xb18] sm:$0xff]  ;;  %v7817_v60 = vpack.c.bf16 %v4492_v15, %v4487_v14  ;;  %v4120_v14 = vmul.f32 %v4110_v57, %v9103_v62  ;;  %v4380_v62 = vld [vmem:[#allocation12 + $0x7a0] sm:$0xff] }
 0x9ec   :  { %v7975_v26 = vpack.c.bf16 %v4494_v20, %v4489_v16  ;;  %v4522_v15 = vld [vmem:[#allocation12 + $0xc10] sm:$0xf]  ;;  %v4524_v16 = vld [vmem:[#allocation12 + $0xc20] sm:$0xf] }
 0x9ed   :  { %7796 = vmatpush1.bf16.msra.mxu0 %v7795_v52  ;;  %7954 = vmatpush1.bf16.msra.mxu1 %v7953_v11  ;;  %v4467_v52 = vld [vmem:[#allocation12 + $0xa58] sm:$0xff]  ;;  %v4472_v11 = vld [vmem:[#allocation12 + $0xa80] sm:$0xff] }
 0x9ee   :  { %7798 = vmatprep.subr.bf16.mxu0 %v7797_v53  ;;  %7956 = vmatprep.subr.bf16.mxu1 %v7955_v12  ;;  %v4466_v53 = vld [vmem:[#allocation12 + $0xa50] sm:$0xff]  ;;  %v4471_v12 = vld [vmem:[#allocation12 + $0xa78] sm:$0xff]  ;;  %v7809_v56 = vpack.c.bf16 %v4472_v11, %v4467_v52  ;;  %v4504_v11 = vld [vmem:[#allocation12 + $0xb80] sm:$0xff] }
 0x9ef   :  { %v7811_v34 = vpack.c.bf16 %v4471_v12, %v4466_v53  ;;  %v4499_v52 = vld [vmem:[#allocation12 + $0xb58] sm:$0xff]  ;;  %v7821_v53 = vpack.c.bf16 %v4502_v50, %v4497_v46  ;;  %v4220_v46 = vld [vmem:[#allocation12 + $0x2a0] sm:$0xff]  ;;  %v4225_v50 = vld [vmem:[#allocation12 + $0x2c8] sm:$0xff] }
 0x9f0   :  { %v7979_v12 = vpack.c.bf16 %v4504_v11, %v4499_v52  ;;  %v4385_v52 = vld [vmem:[#allocation12 + $0x7c8] sm:$0xff]  ;;  %v4115_v11 = vmul.f32 %v4110_v57, %v9098_v17  ;;  %v4390_v17 = vld [vmem:[#allocation12 + $0x7f0] sm:$0xff]  ;;  %v4395_v57 = vld [vmem:[#allocation12 + $0x818] sm:$0xff] }
 0x9f1   :  { %7800 = vmatpush1.bf16.msra.mxu0 %v7799_v61  ;;  %7958 = vmatpush1.bf16.msra.mxu1 %v7957_v5  ;;  %v4479_v61 = vld [vmem:[#allocation12 + $0xab8] sm:$0xff]  ;;  %v4484_v5 = vld [vmem:[#allocation12 + $0xae0] sm:$0xff] }
 0x9f2   :  { %7802 = vmatprep.subr.bf16.mxu0 %v7801_v36  ;;  %7960 = vmatprep.subr.bf16.mxu1 %v7959_v4  ;;  %v4481_v36 = vld [vmem:[#allocation12 + $0xac8] sm:$0xff]  ;;  %v7813_v4 = vpack.c.bf16 %v4482_v63, %v4477_v58  ;;  %v7971_v7 = vpack.c.bf16 %v4484_v5, %v4479_v61  ;;  %v4512_v58 = vld [vmem:[#allocation12 + $0xbc0] sm:$0xff]  ;;  %v4514_v61 = vld [vmem:[#allocation12 + $0xbd0] sm:$0xff] }
 0x9f3   :  { %v7815_v13 = vpack.c.bf16 %v4481_v36, %v4476_v43  ;;  %v4509_v63 = vld [vmem:[#allocation12 + $0xba8] sm:$0xff]  ;;  %v4511_v43 = vld [vmem:[#allocation12 + $0xbb8] sm:$0xff]  ;;  %v7825_v36 = vpack.c.bf16 %v4512_v58, %v4507_v28  ;;  %v4230_v58 = vld [vmem:[#allocation12 + $0x2f0] sm:$0xff] }
 0x9f4   :  { %v4305_v28 = vld [vmem:[#allocation12 + $0x548] sm:$0xff] }
 0x9f5   :  { %7804 = vmatpush1.bf16.msra.mxu0 %v7803_v47  ;;  %7962 = vmatpush1.bf16.msra.mxu1 %v7961_v22  ;;  %v7973_v47 = vpack.c.bf16 %v4483_v9, %v4478_v1  ;;  %v4486_v22 = vld [vmem:[#allocation12 + $0xaf0] sm:$0xff]  ;;  %v4513_v1 = vld [vmem:[#allocation12 + $0xbc8] sm:$0xff] }
 0x9f6   :  { %7806 = vmatprep.subr.bf16.mxu0 %v7805_v8  ;;  %7964 = vmatprep.subr.bf16.mxu1 %v7963_v39  ;;  %v4488_v8 = vld [vmem:[#allocation12 + $0xb00] sm:$0xff]  ;;  %v4493_v39 = vld [vmem:[#allocation12 + $0xb28] sm:$0xff]  ;;  %v7819_v10 = vpack.c.bf16 %v4491_v25, %v4486_v22 }
 0x9f7   :  { %v7977_v51 = vpack.c.bf16 %v4493_v39, %v4488_v8  ;;  %v4517_v9 = vld [vmem:[#allocation12 + $0xbe8] sm:$0xff]  ;;  %v4523_v8 = vld [vmem:[#allocation12 + $0xc18] sm:$0xf]  ;;  %v4125_v39 = vsub.f32 %v8931_v3, %v4120_v14 }
 0x9f8   :  { %4707 = vmatmul.mubr.f32.vlgmr.msra.gmra.mrb[16].mxu0 %v9154_v55  ;;  %4920 = vmatmul.mubr.f32.vlgmr.msra.gmra.mrb[16].mxu1 %v9154_v55  ;;  %v4521_v22 = vld [vmem:[#allocation12 + $0xc08] sm:$0xf]  ;;  %v7829_v25 = vpack.c.bf16 %v4522_v15, %v4517_v9  ;;  %v4240_v9 = vld [vmem:[#allocation12 + $0x340] sm:$0xff] }
 0x9f9   :  { %7808 = vmatpush1.bf16.msra.mxu0 %v7807_v21  ;;  %7966 = vmatpush1.bf16.msra.mxu1 %v7965_v37  ;;  %v4496_v21 = vld [vmem:[#allocation12 + $0xb40] sm:$0xff]  ;;  %v4501_v37 = vld [vmem:[#allocation12 + $0xb68] sm:$0xff] }
 0x9fa   :  { %7810 = vmatprep.subr.bf16.mxu0 %v7809_v56  ;;  %7968 = vmatprep.subr.bf16.mxu1 %v7967_v42  ;;  %v4498_v56 = vld [vmem:[#allocation12 + $0xb50] sm:$0xff]  ;;  %v4503_v42 = vld [vmem:[#allocation12 + $0xb78] sm:$0xff]  ;;  %v7823_v5 = vpack.c.bf16 %v4501_v37, %v4496_v21  ;;  %v4130_v21 = vadd.f32 %v4125_v39, %v4115_v11  ;;  %v7993_v37 = vpack.c.bf16 %v4225_v50, %v4220_v46  ;;  %v4245_v14 = vld [vmem:[#allocation12 + $0x368] sm:$0xff] }
 0x9fb   :  { %4777 = vmatprep.mubr.f32.mxu0 %v8535_v2  ;;  %4990 = vmatprep.mubr.f32.mxu1 %v8535_v2  ;;  %v4400_v15 = vld [vmem:[#allocation12 + $0x840] sm:$0xff]  ;;  %v4410_v39 = vld [vmem:[#allocation12 + $0x890] sm:$0xff]  ;;  %v4415_v46 = vld [vmem:[#allocation12 + $0x8b8] sm:$0xff] }
 0x9fc   :  { %v4170_v11 = vld [vmem:[#allocation12 + $0x110] sm:$0xff] }
 0x9fd   :  { %7812 = vmatpush1.bf16.msra.mxu0 %v7811_v34  ;;  %7970 = vmatpush1.bf16.msra.mxu1 %v7969_v48  ;;  %v7981_v34 = vpack.c.bf16 %v4503_v42, %v4498_v56  ;;  %v4506_v48 = vld [vmem:[#allocation12 + $0xb90] sm:$0xff]  ;;  %v4145_v56 = vld [vmem:[#allocation12 + $0x48] sm:$0xff]  ;;  %v4300_v42 = vld [vmem:[#allocation12 + $0x520] sm:$0xff] }
 0x9fe   :  { %7814 = vmatprep.subr.bf16.mxu0 %v7813_v4  ;;  %7972 = vmatprep.subr.bf16.mxu1 %v7971_v7  ;;  %v7983_v4 = vpack.c.bf16 %v4514_v61, %v4509_v63  ;;  %v4508_v7 = vld [vmem:[#allocation12 + $0xba0] sm:$0xff]  ;;  %v7827_v20 = vpack.c.bf16 %v4511_v43, %v4506_v48  ;;  %v4235_v63 = vld [vmem:[#allocation12 + $0x318] sm:$0xff]  ;;  %v4150_v48 = vld [vmem:[#allocation12 + $0x70] sm:$0xff] }
 0x9ff   :  { %v4155_v43 = vld [vmem:[#allocation12 + $0x98] sm:$0xff] }
 0xa01   :  { %7816 = vmatpush1.bf16.msra.mxu0 %v7815_v13  ;;  %7974 = vmatpush1.bf16.msra.mxu1 %v7973_v47  ;;  %v7985_v13 = vpack.c.bf16 %v4513_v1, %v4508_v7  ;;  %v4516_v47 = vld [vmem:[#allocation12 + $0xbe0] sm:$0xff]  ;;  %v8029_v7 = vpack.c.bf16 %v4395_v57, %v4390_v17  ;;  %v4315_v1 = vld [vmem:[#allocation12 + $0x598] sm:$0xff]  ;;  %v4185_v57 = vld [vmem:[#allocation12 + $0x188] sm:$0xff] }
 0xa02   :  { %7818 = vmatprep.subr.bf16.mxu0 %v7817_v60  ;;  %7976 = vmatprep.subr.bf16.mxu1 %v7975_v26  ;;  %v7987_v60 = vpack.c.bf16 %v4524_v16, %v4519_v29  ;;  %v4518_v26 = vld [vmem:[#allocation12 + $0xbf0] sm:$0xff]  ;;  %v7999_v29 = vpack.c.bf16 %v4155_v43, %v4150_v48  ;;  %v4180_v17 = vld [vmem:[#allocation12 + $0x160] sm:$0xff]  ;;  %v4345_v48 = vld [vmem:[#allocation12 + $0x688] sm:$0xff] }
 0xa03   :  { %v4270_v43 = vld [vmem:[#allocation12 + $0x430] sm:$0xff] }
 0xa05   :  { %7820 = vmatpush1.bf16.msra.mxu0 %v7819_v10  ;;  %7978 = vmatpush1.bf16.msra.mxu1 %v7977_v51  ;;  %v7832_v10 = vpack.c.bf16 %v4521_v22, %v4516_v47  ;;  %v7990_v51 = vpack.c.bf16 %v4523_v8, %v4518_v26  ;;  %v4165_v47 = vld [vmem:[#allocation12 + $0xe8] sm:$0xff]  ;;  %v4320_v22 = vld [vmem:[#allocation12 + $0x5c0] sm:$0xff]  ;;  %v4250_v26 = vld [vmem:[#allocation12 + $0x390] sm:$0xff] }
 0xa06   :  { %7822 = vmatprep.subr.bf16.mxu0 %v7821_v53  ;;  %7980 = vmatprep.subr.bf16.mxu1 %v7979_v12  ;;  %v8025_v53 = vpack.c.bf16 %v4385_v52, %v4380_v62  ;;  %v4140_v12 = vld [vmem:[#allocation12 + $0x20] sm:$0xff]  ;;  %v4255_v8 = vld [vmem:[#allocation12 + $0x3b8] sm:$0xff] }
 0xa07   :  { %v7995_v61 = vpack.c.bf16 %v4145_v56, %v4140_v12  ;;  %v8005_v52 = vpack.c.bf16 %v4255_v8, %v4250_v26  ;;  %v4265_v12 = vld [vmem:[#allocation12 + $0x408] sm:$0xff]  ;;  %v4420_v56 = vld [vmem:[#allocation12 + $0x8e0] sm:$0xff] }
 0xa09   :  { %7824 = vmatpush1.bf16.msra.mxu0 %v7823_v5  ;;  %7982 = vmatpush1.bf16.msra.mxu1 %v7981_v34  ;;  %v9174_v5 = vadd.f32 %v4130_v21, %v9059_v54  ;;  %v8027_v34 = vpack.c.bf16 %v4305_v28, %v4300_v42  ;;  %v4405_v54 = vld [vmem:[#allocation12 + $0x868] sm:$0xff]  ;;  %v8037_v21 = vpack.c.bf16 %v4415_v46, %v4410_v39  ;;  %v4200_v39 = vld [vmem:[#allocation12 + $0x200] sm:$0xff] }
 0xa0a   :  { %7826 = vmatprep.subr.bf16.mxu0 %v7825_v36  ;;  %7984 = vmatprep.subr.bf16.mxu1 %v7983_v4  ;;  %v4310_v36 = vld [vmem:[#allocation12 + $0x570] sm:$0xff]  ;;  %v7997_v4 = vpack.c.bf16 %v4235_v63, %v4230_v58  ;;  %v4425_v42 = vld [vmem:[#allocation12 + $0x908] sm:$0xff] }
 0xa0b   :  { %v8031_v16 = vpack.c.bf16 %v4315_v1, %v4310_v36  ;;  %v4275_v36 = vld [vmem:[#allocation12 + $0x458] sm:$0xff]  ;;  %v8011_v1 = vpack.c.bf16 %v4185_v57, %v4180_v17  ;;  %v4205_v46 = vld [vmem:[#allocation12 + $0x228] sm:$0xff] }
 0xa0d   :  { %7828 = vmatpush1.bf16.msra.mxu0 %v7827_v20  ;;  %7986 = vmatpush1.bf16.msra.mxu1 %v7985_v13  ;;  %v8001_v20 = vpack.c.bf16 %v4245_v14, %v4240_v9  ;;  %v4160_v13 = vld [vmem:[#allocation12 + $0xc0] sm:$0xff]  ;;  %v8013_v14 = vpack.c.bf16 %v4275_v36, %v4270_v43  ;;  %v4470_v43 = vld [vmem:[#allocation12 + $0xa70] sm:$0xff]  ;;  %v4475_v36 = vld [vmem:[#allocation12 + $0xa98] sm:$0xff] }
 0xa0e   :  { %7831 = vmatprep.subr.msk.bf16.mxu0 %vm8925_vm3, %v7829_v25  ;;  %7989 = vmatprep.subr.msk.bf16.mxu1 %vm8925_vm3, %v7987_v60  ;;  %v8033_v25 = vpack.c.bf16 %v4405_v54, %v4400_v15  ;;  %v4325_v60 = vld [vmem:[#allocation12 + $0x5e8] sm:$0xff]  ;;  %v8003_v50 = vpack.c.bf16 %v4165_v47, %v4160_v13  ;;  %v4190_v15 = vld [vmem:[#allocation12 + $0x1b0] sm:$0xff]  ;;  %v4195_v54 = vld [vmem:[#allocation12 + $0x1d8] sm:$0xff] }
 0xa0f   :  { %v8035_v62 = vpack.c.bf16 %v4325_v60, %v4320_v22  ;;  %v4280_v13 = vld [vmem:[#allocation12 + $0x480] sm:$0xff]  ;;  %v4285_v47 = vld [vmem:[#allocation12 + $0x4a8] sm:$0xff]  ;;  %v8015_v60 = vpack.c.bf16 %v4195_v54, %v4190_v15  ;;  %v4495_v15 = vld [vmem:[#allocation12 + $0xb38] sm:$0xff] }
 0xa10   :  { %v4440_v22 = vld [vmem:[#allocation12 + $0x980] sm:$0xff]  ;;  %v8017_v8 = vpack.c.bf16 %v4285_v47, %v4280_v13  ;;  %v4510_v13 = vld [vmem:[#allocation12 + $0xbb0] sm:$0xff]  ;;  %v4515_v47 = vld [vmem:[#allocation12 + $0xbd8] sm:$0xff] }
 0xa11   :  { %7834 = vmatpush1.bf16.msk.msra.mxu0 %vm8925_vm3, %v7832_v10  ;;  %7992 = vmatpush1.bf16.msk.msra.mxu1 %vm8925_vm3, %v7990_v51  ;;  %v4175_v10 = vld [vmem:[#allocation12 + $0x138] sm:$0xff]  ;;  %v4330_v51 = vld [vmem:[#allocation12 + $0x610] sm:$0xff] }
 0xa12   :  { %7994 = vmatprep.subr.bf16.mxu0 %v7993_v37  ;;  %8026 = vmatprep.subr.bf16.mxu1 %v8025_v53  ;;  %v4335_v37 = vld [vmem:[#allocation12 + $0x638] sm:$0xff]  ;;  %v4260_v53 = vld [vmem:[#allocation12 + $0x3e0] sm:$0xff]  ;;  %v8007_v28 = vpack.c.bf16 %v4175_v10, %v4170_v11  ;;  %v4290_v11 = vld [vmem:[#allocation12 + $0x4d0] sm:$0xff] }
 0xa13   :  { %v8039_v58 = vpack.c.bf16 %v4335_v37, %v4330_v51  ;;  %v8009_v63 = vpack.c.bf16 %v4265_v12, %v4260_v53  ;;  %v4295_v10 = vld [vmem:[#allocation12 + $0x4f8] sm:$0xff]  ;;  %v4450_v51 = vld [vmem:[#allocation12 + $0x9d0] sm:$0xff]  ;;  %v8019_v37 = vpack.c.bf16 %v4205_v46, %v4200_v39 }
 0xa14   :  { %5620 = vmatmul.mubr.msk.f32.vlgmr.msra.gmra.mrb[16].mxu0 %vm1723_vm0, %v9174_v5  ;;  %5623 = vmatmul.mubr.msk.f32.vlgmr.msra.gmra.mrb[16].mxu1 %vm1723_vm0, %v9174_v5  ;;  %v8021_v12 = vpack.c.bf16 %v4295_v10, %v4290_v11 }
 0xa15   :  { %7996 = vmatpush3.bf16.msra.mxu0 %v7995_v61  ;;  %5061 = vmatprep.mubr.f32.mxu0 %v9134_v19  ;;  %v4340_v61 = vld [vmem:[#allocation12 + $0x660] sm:$0xff] }
 0xa16   :  { %8028 = vmatpush3.bf16.msra.mxu1 %v8027_v34  ;;  %5131 = vmatprep.mubr.f32.mxu1 %v9144_v0  ;;  %v8041_v34 = vpack.c.bf16 %v4425_v42, %v4420_v56  ;;  %v8043_v9 = vpack.c.bf16 %v4345_v48, %v4340_v61  ;;  %v4210_v56 = vld [vmem:[#allocation12 + $0x250] sm:$0xff]  ;;  %v4215_v42 = vld [vmem:[#allocation12 + $0x278] sm:$0xff]  ;;  %v4460_v61 = vld [vmem:[#allocation12 + $0xa20] sm:$0xff] }
 0xa17   :  { %7998 = vmatprep.subr.bf16.mxu0 %v7997_v4  ;;  %8030 = vmatprep.subr.bf16.mxu1 %v8029_v7  ;;  %v4430_v4 = vld [vmem:[#allocation12 + $0x930] sm:$0xff]  ;;  %v4435_v7 = vld [vmem:[#allocation12 + $0x958] sm:$0xff]  ;;  %v8023_v17 = vpack.c.bf16 %v4215_v42, %v4210_v56 }
 0xa19   :  { %8000 = vmatpush3.bf16.msra.mxu0 %v7999_v29  ;;  %v4350_v29 = vld [vmem:[#allocation12 + $0x6b0] sm:$0xff] }
 0xa1a   :  { %8032 = vmatpush3.bf16.msra.mxu1 %v8031_v16  ;;  %8002 = vmatprep.subr.bf16.mxu0 %v8001_v20  ;;  %v8045_v16 = vpack.c.bf16 %v4435_v7, %v4430_v4  ;;  %v4355_v20 = vld [vmem:[#allocation12 + $0x6d8] sm:$0xff]  ;;  %v8061_v4 = vpack.c.bf16 %v4475_v36, %v4470_v43  ;;  %v4480_v7 = vld [vmem:[#allocation12 + $0xac0] sm:$0xff] }
 0xa1b   :  { %8034 = vmatprep.subr.bf16.mxu1 %v8033_v25  ;;  %v4445_v25 = vld [vmem:[#allocation12 + $0x9a8] sm:$0xff]  ;;  %v8047_v26 = vpack.c.bf16 %v4355_v20, %v4350_v29  ;;  %v4500_v29 = vld [vmem:[#allocation12 + $0xb60] sm:$0xff] }
 0xa1d   :  { %8004 = vmatpush3.bf16.msra.mxu0 %v8003_v50  ;;  %v4360_v50 = vld [vmem:[#allocation12 + $0x700] sm:$0xff] }
 0xa1e   :  { %8036 = vmatpush3.bf16.msra.mxu1 %v8035_v62  ;;  %8006 = vmatprep.subr.bf16.mxu0 %v8005_v52  ;;  %v8049_v62 = vpack.c.bf16 %v4445_v25, %v4440_v22  ;;  %v4365_v52 = vld [vmem:[#allocation12 + $0x728] sm:$0xff]  ;;  %v8073_v22 = vpack.c.bf16 %v4515_v47, %v4510_v13  ;;  %v4520_v25 = vld [vmem:[#allocation12 + $0xc00] sm:$0xff] }
 0xa1f   :  { %8038 = vmatprep.subr.bf16.mxu1 %v8037_v21  ;;  %v4455_v21 = vld [vmem:[#allocation12 + $0x9f8] sm:$0xff]  ;;  %v8051_v53 = vpack.c.bf16 %v4365_v52, %v4360_v50 }
 0xa21   :  { %8008 = vmatpush3.bf16.msra.mxu0 %v8007_v28  ;;  %v8053_v28 = vpack.c.bf16 %v4455_v21, %v4450_v51 }
 0xa22   :  { %8040 = vmatpush3.bf16.msra.mxu1 %v8039_v58  ;;  %8010 = vmatprep.subr.bf16.mxu0 %v8009_v63  ;;  %v4370_v58 = vld [vmem:[#allocation12 + $0x750] sm:$0xff]  ;;  %v4375_v63 = vld [vmem:[#allocation12 + $0x778] sm:$0xff] }
 0xa23   :  { %8042 = vmatprep.subr.bf16.mxu1 %v8041_v34  ;;  %v8055_v57 = vpack.c.bf16 %v4375_v63, %v4370_v58  ;;  %v4465_v34 = vld [vmem:[#allocation12 + $0xa48] sm:$0xff] }
 0xa24   :  { %v8058_v48 = vpack.c.bf16 %v4465_v34, %v4460_v61 }
 0xa25   :  { %8012 = vmatpush3.bf16.msra.mxu0 %v8011_v1  ;;  %v4485_v1 = vld [vmem:[#allocation12 + $0xae8] sm:$0xff] }
 0xa26   :  { %8044 = vmatpush3.bf16.msra.mxu1 %v8043_v9  ;;  %8014 = vmatprep.subr.bf16.mxu0 %v8013_v14  ;;  %v8064_v9 = vpack.c.bf16 %v4485_v1, %v4480_v7  ;;  %v4490_v14 = vld [vmem:[#allocation12 + $0xb10] sm:$0xff] }
 0xa27   :  { %8046 = vmatprep.subr.bf16.mxu1 %v8045_v16  ;;  %v8067_v54 = vpack.c.bf16 %v4495_v15, %v4490_v14  ;;  %v4505_v16 = vld [vmem:[#allocation12 + $0xb88] sm:$0xff] }
 0xa28   :  { %v8070_v20 = vpack.c.bf16 %v4505_v16, %v4500_v29 }
 0xa29   :  { %8016 = vmatpush3.bf16.msra.mxu0 %v8015_v60  ;;  %v4525_v60 = vld [vmem:[#allocation12 + $0xc28] sm:$0xf] }
 0xa2a   :  { %8048 = vmatpush3.bf16.msra.mxu1 %v8047_v26  ;;  %8018 = vmatprep.subr.bf16.mxu0 %v8017_v8  ;;  %v8076_v26 = vpack.c.bf16 %v4525_v60, %v4520_v25 }
 0xa2b   :  { %8050 = vmatprep.subr.bf16.mxu1 %v8049_v62  ;;  %v4526_v62 = vld [vmem:[#allocation13] sm:$0x1f] }
 0xa2c   :  { %v4547_v11 = vrot.slane %v4526_v62, %v8793_v27  ;;  %v4531_v56 = vrot.slane %v4526_v62, %v8796_v23  ;;  %v4535_v42 = vrot.slane %v4526_v62, %v8798_v32  ;;  %v4543_v27 = vrot.slane %v4526_v62, %v8805_v45 }
 0xa2d   :  { %8020 = vmatpush3.bf16.msra.mxu0 %v8019_v37 }
 0xa2e   :  { %8052 = vmatpush3.bf16.msra.mxu1 %v8051_v53  ;;  %8022 = vmatprep.subr.bf16.mxu0 %v8021_v12 }
 0xa2f   :  { %8054 = vmatprep.subr.bf16.mxu1 %v8053_v28 }
 0xa31   :  { %8024 = vmatpush3.bf16.msra.mxu0 %v8023_v17  ;;  %v4539_v17 = vrot.slane %v4526_v62, %v8802_v41 }
 0xa32   :  { %8056 = vmatpush3.bf16.msra.mxu1 %v8055_v57  ;;  %8057 = vmatprep.subr.bf16.mxu0 %v8537_v49 }
 0xa34   :  { %5062 = vmatmul.mubr.f32.vlgmr.msra.gmra.mrb[18].mxu0 %v9137_v18 }
 0xa35   :  { %5132 = vmatmul.mubr.f32.vlgmr.msra.gmra.mrb[18].mxu1 %v9154_v55  ;;  %8059 = vmatpush3.bf16.msra.mxu0 %v8058_v48 }
 0xa36   :  { %8060 = vmatprep.subr.bf16.mxu0 %v8537_v49  ;;  %6199 = vmatprep.mubr.msk.f32.mxu0 %vm8538_vm4, %v8535_v2 }
 0xa39   :  { %8062 = vmatpush3.bf16.msra.mxu0 %v8061_v4 }
 0xa3a   :  { %8063 = vmatprep.subr.bf16.mxu0 %v8537_v49 }
 0xa3d   :  { %8065 = vmatpush3.bf16.msra.mxu0 %v8064_v9 }
 0xa3e   :  { %8066 = vmatprep.subr.bf16.mxu0 %v8537_v49 }
 0xa41   :  { %8068 = vmatpush3.bf16.msra.mxu0 %v8067_v54 }
 0xa42   :  { %8069 = vmatprep.subr.bf16.mxu0 %v8537_v49 }
 0xa45   :  { %8071 = vmatpush3.bf16.msra.mxu0 %v8070_v20 }
 0xa46   :  { %8072 = vmatprep.subr.bf16.mxu0 %v8537_v49 }
 0xa49   :  { %8074 = vmatpush3.bf16.msra.mxu0 %v8073_v22 }
 0xa4a   :  { %8075 = vmatprep.subr.bf16.mxu0 %v8537_v49 }
 0xa4d   :  { %8078 = vmatpush3.bf16.msk.msra.mxu0 %vm8925_vm3, %v8076_v26 }
 0xa50   :  { %6200 = vmatmul.mubr.msk.f32.vlgmr.msra.gmra.mrb[20].mxu0 %vm1723_vm0, %v9174_v5 }
 0xae7   :  { %v4779_v8 = vpop.f32.mrb[16].mxu0  ;;  %v4992_v39 = vpop.f32.mrb[16].mxu1 }
 0xae8   :  { %v4781_v46 = vpop.f32.mrb[17].mxu0  ;;  %v4994_v50 = vpop.f32.mrb[17].mxu1  ;;  %v8177_v58 = vadd.f32 %v4779_v8, %v4531_v56  ;;  %v8179_v34 = vadd.f32 %v4992_v39, %v4539_v17  ;;  %v5291_v56 = vld [vmem:[#allocation15 + $0x8] sm:$0xff]  ;;  %v5322_v17 = vld [vmem:[#allocation15 + $0x100] sm:$0xff] }
 0xae9   :  { %v8178_v63 = vadd.f32 %v4781_v46, %v4535_v42  ;;  %v8180_v43 = vadd.f32 %v4994_v50, %v4543_v27  ;;  %v5338_v42 = vld [vmem:[#allocation15 + $0x180] sm:$0xff]  ;;  %v5309_v27 = vld [vmem:[#allocation15 + $0x98] sm:$0xff] }
 0xaea   :  { %v5212_v57 = vmul.f32 0.70710677, %v8177_v58  ;;  %v5214_v48 = vmul.f32 0.70710677, %v8179_v34  ;;  %v5207_v15 = vmul.f32 0.5, %v8177_v58  ;;  %v5209_v47 = vmul.f32 0.5, %v8179_v34 }
 0xaeb   :  { %v5213_v61 = vmul.f32 0.70710677, %v8178_v63  ;;  %v5215_v36 = vmul.f32 0.70710677, %v8180_v43  ;;  %v5208_v54 = vmul.f32 0.5, %v8178_v63  ;;  %v5210_v8 = vmul.f32 0.5, %v8180_v43 }
 0xaec   :  { %8271 = verf.f32 %v5212_v57  ;;  %v5323_v57 = vld [vmem:[#allocation15 + $0x108] sm:$0xff]  ;;  %v5293_v43 = vld [vmem:[#allocation15 + $0x18] sm:$0xff] }
 0xaed   :  { %8273 = verf.f32 %v5213_v61  ;;  %v5308_v61 = vld [vmem:[#allocation15 + $0x90] sm:$0xff]  ;;  %v8113_v34 = vpack.c.bf16 %v5323_v57, %v5322_v17  ;;  %v5327_v17 = vld [vmem:[#allocation15 + $0x128] sm:$0xff] }
 0xaee   :  { %8275 = verf.f32 %v5214_v48  ;;  %v5292_v48 = vld [vmem:[#allocation15 + $0x10] sm:$0xff] }
 0xaef   :  { %8277 = verf.f32 %v5215_v36  ;;  %v8083_v36 = vpack.c.bf16 %v5309_v27, %v5308_v61  ;;  %v5313_v27 = vld [vmem:[#allocation15 + $0xb8] sm:$0xff] }
 0xaf6   :  { %v8272_v4 = vpop.eup %8271 }
 0xaf7   :  { %v8274_v23 = vpop.eup %8273  ;;  %v5222_v9 = vadd.f32 1.0, %v8272_v4  ;;  %v8085_v4 = vpack.c.bf16 %v5293_v43, %v5292_v48  ;;  %v5296_v48 = vld [vmem:[#allocation15 + $0x30] sm:$0xff] }
 0xaf8   :  { %v5223_v14 = vadd.f32 1.0, %v8274_v23  ;;  %v8276_v29 = vpop.eup %8275  ;;  %v5340_v23 = vld [vmem:[#allocation15 + $0x190] sm:$0xff] }
 0xaf9   :  { %v9202_v45 = vmul.f32 %v5222_v9, %v5207_v15  ;;  %v5224_v20 = vadd.f32 1.0, %v8276_v29  ;;  %v8278_v13 = vpop.eup %8277  ;;  %v5325_v9 = vld [vmem:[#allocation15 + $0x118] sm:$0xff] }
 0xafa   :  { %v9204_v16 = vmul.f32 %v5223_v14, %v5208_v54  ;;  %v5225_v60 = vadd.f32 1.0, %v8278_v13 }
 0xafb   :  { %v9208_v25 = vmul.f32 %v5224_v20, %v5209_v47 }
 0xafc   :  { %v5232_v22 = vadd.f32 %v9204_v16, %v9202_v45  ;;  %v9211_v62 = vmul.f32 %v5225_v60, %v5210_v8 }
 0xafe   :  { %v5233_v39 = vadd.f32 %v5232_v22, %v9208_v25 }
 0xb07   :  { %v5971_v52 = vpop.f32.mrb[18].mxu0 }
 0xb08   :  { %v6006_v10 = vpop.f32.mrb[18].mxu1  ;;  %v5972_v51 = vpop.f32.mrb[19].mxu0 }
 0xb09   :  { %v5973_v21 = vadd.f32 %v5972_v51, %v5971_v52  ;;  %v6007_v37 = vpop.f32.mrb[19].mxu1 }
 0xb0a   :  { %v6008_v53 = vadd.f32 %v6007_v37, %v6006_v10  ;;  %v5307_v37 = vld [vmem:[#allocation15 + $0x88] sm:$0xff] }
 0xb0b   :  { %v5064_v12 = vadd.f32 %v5973_v21, %v4547_v11  ;;  %v5234_v11 = vadd.f32 %v5233_v39, %v9211_v62  ;;  %v5306_v21 = vld [vmem:[#allocation15 + $0x80] sm:$0xff] }
 0xb0d   :  { %v5134_v28 = vadd.f32 %v6008_v53, %v5064_v12  ;;  %v5290_v53 = vld [vmem:[#allocation15] sm:$0xff]  ;;  %v8079_v12 = vpack.c.bf16 %v5307_v37, %v5306_v21  ;;  %v5311_v37 = vld [vmem:[#allocation15 + $0xa8] sm:$0xff] }
 0xb0e   :  { %v8081_v58 = vpack.c.bf16 %v5291_v56, %v5290_v53  ;;  %v5310_v21 = vld [vmem:[#allocation15 + $0xa0] sm:$0xff]  ;;  %v5295_v56 = vld [vmem:[#allocation15 + $0x28] sm:$0xff] }
 0xb0f   :  { %8080 = vmatprep.subr.bf16.mxu1 %v8079_v12  ;;  %v8087_v53 = vpack.c.bf16 %v5311_v37, %v5310_v21  ;;  %v5294_v12 = vld [vmem:[#allocation15 + $0x20] sm:$0xff]  ;;  %v5301_v21 = vld [vmem:[#allocation15 + $0x58] sm:$0xff]  ;;  %v5348_v37 = vld [vmem:[#allocation15 + $0x1d0] sm:$0xff] }
 0xb10   :  { %8082 = vmatpush3.bf16.msra.mxu1 %v8081_v58  ;;  %v5343_v58 = vld [vmem:[#allocation15 + $0x1a8] sm:$0xff] }
 0xb11   :  { %8084 = vmatprep.subr.bf16.mxu1 %v8083_v36  ;;  %v5297_v36 = vld [vmem:[#allocation15 + $0x38] sm:$0xff] }
 0xb14   :  { %8086 = vmatpush3.bf16.msra.mxu1 %v8085_v4  ;;  %v5344_v4 = vld [vmem:[#allocation15 + $0x1b0] sm:$0xff] }
 0xb15   :  { %8088 = vmatprep.subr.bf16.mxu1 %v8087_v53  ;;  %v5349_v53 = vld [vmem:[#allocation15 + $0x1d8] sm:$0xff] }
 0xb23   :  { %v5203_v32 = vpop.f32.mrb[20].mxu0 }
 0xb24   :  { %v5204_v7 = vadd.f32 %v5203_v32, %v5134_v28  ;;  %v6201_v1 = vpop.f32.mrb[21].mxu0  ;;  %v5339_v28 = vld [vmem:[#allocation15 + $0x188] sm:$0xff]  ;;  %v5341_v32 = vld [vmem:[#allocation15 + $0x198] sm:$0xff] }
 0xb25   :  { %v8111_v63 = vpack.c.bf16 %v5339_v28, %v5338_v42  ;;  %v8115_v1 = vpack.c.bf16 %v5341_v32, %v5340_v23  ;;  %v5342_v42 = vld [vmem:[#allocation15 + $0x1a0] sm:$0xff]  ;;  %v8089_v28 = vpack.c.bf16 %v5295_v56, %v5294_v12  ;;  %v5345_v23 = vld [vmem:[#allocation15 + $0x1b8] sm:$0xff]  ;;  %v8093_v32 = vpack.c.bf16 %v5297_v36, %v5296_v48  ;;  %v5332_v12 = vld [vmem:[#allocation15 + $0x150] sm:$0xff] }
 0xb26   :  { %v5216_v41 = vmul.f32 0.70710677, %v5204_v7  ;;  %v5211_v46 = vmul.f32 0.5, %v5204_v7  ;;  %v5324_v7 = vld [vmem:[#allocation15 + $0x110] sm:$0xff]  ;;  %v8119_v57 = vpack.c.bf16 %v5343_v58, %v5342_v42  ;;  %v5333_v56 = vld [vmem:[#allocation15 + $0x158] sm:$0xff]  ;;  %v5318_v58 = vld [vmem:[#allocation15 + $0xe0] sm:$0xff] }
 0xb27   :  { %8112 = vmatprep.subr.bf16.mxu0 %v8111_v63  ;;  %v8117_v14 = vpack.c.bf16 %v5325_v9, %v5324_v7  ;;  %v5326_v63 = vld [vmem:[#allocation15 + $0x120] sm:$0xff]  ;;  %8090 = vmatpush3.bf16.msra.mxu1 %v8089_v28  ;;  %v8123_v7 = vpack.c.bf16 %v5345_v23, %v5344_v4  ;;  %v5329_v9 = vld [vmem:[#allocation15 + $0x138] sm:$0xff]  ;;  %v8131_v28 = vpack.c.bf16 %v5349_v53, %v5348_v37  ;;  %v5335_v23 = vld [vmem:[#allocation15 + $0x168] sm:$0xff] }
 0xb28   :  { %8279 = verf.f32 %v5216_v41  ;;  %8114 = vmatpush3.bf16.msra.mxu0 %v8113_v34  ;;  %v8121_v61 = vpack.c.bf16 %v5327_v17, %v5326_v63  ;;  %v5312_v34 = vld [vmem:[#allocation15 + $0xb0] sm:$0xff]  ;;  %v5319_v63 = vld [vmem:[#allocation15 + $0xe8] sm:$0xff]  ;;  %v5302_v17 = vld [vmem:[#allocation15 + $0x60] sm:$0xff]  ;;  %v8133_v48 = vpack.c.bf16 %v5333_v56, %v5332_v12 }
 0xb29   :  { %8116 = vmatprep.subr.bf16.mxu0 %v8115_v1  ;;  %v8091_v43 = vpack.c.bf16 %v5313_v27, %v5312_v34  ;;  %v5328_v1 = vld [vmem:[#allocation15 + $0x130] sm:$0xff]  ;;  %v5350_v34 = vld [vmem:[#allocation15 + $0x1e0] sm:$0xff]  ;;  %v5351_v27 = vld [vmem:[#allocation15 + $0x1e8] sm:$0xff] }
 0xb2a   :  { %v8135_v36 = vpack.c.bf16 %v5351_v27, %v5350_v34  ;;  %v5334_v4 = vld [vmem:[#allocation15 + $0x160] sm:$0xff] }
 0xb2b   :  { %8092 = vmatprep.subr.bf16.mxu1 %v8091_v43  ;;  %v5320_v43 = vld [vmem:[#allocation15 + $0xf0] sm:$0xff] }
 0xb2c   :  { %8118 = vmatpush3.bf16.msra.mxu0 %v8117_v14  ;;  %v5314_v14 = vld [vmem:[#allocation15 + $0xc0] sm:$0xff]  ;;  %8094 = vmatpush3.bf16.msra.mxu1 %v8093_v32  ;;  %v5321_v32 = vld [vmem:[#allocation15 + $0xf8] sm:$0xff] }
 0xb2d   :  { %8120 = vmatprep.subr.bf16.mxu0 %v8119_v57  ;;  %v8103_v57 = vpack.c.bf16 %v5319_v63, %v5318_v58  ;;  %v5354_v63 = vld [vmem:[#allocation15 + $0x200] sm:$0xff] }
 0xb30   :  { %8122 = vmatpush3.bf16.msra.mxu0 %v8121_v61  ;;  %v5303_v61 = vld [vmem:[#allocation15 + $0x68] sm:$0xff] }
 0xb31   :  { %8124 = vmatprep.subr.bf16.mxu0 %v8123_v7  ;;  %v8105_v7 = vpack.c.bf16 %v5303_v61, %v5302_v17  ;;  %v5355_v17 = vld [vmem:[#allocation15 + $0x208] sm:$0xff] }
 0xb32   :  { %v8280_v26 = vpop.eup %8279  ;;  %v8144_v27 = vpack.c.bf16 %v5355_v17, %v5354_v63 }
 0xb33   :  { %v5226_v50 = vadd.f32 1.0, %v8280_v26 }
 0xb35   :  { %v9213_v52 = vmul.f32 %v5226_v50, %v5211_v46 }
 0xb37   :  { %v5235_v10 = vsel %vm1723_vm0, %v9213_v52, 0.0 }
 0xb38   :  { %v5236_v51 = vadd.f32 %v5235_v10, %v5234_v11 }
 0xb3a   :  { %5237 = vadd.xlane.f32.xlu0 %v5236_v51 }
 0xbc7   :  { %v5238_v41 = vpop.xlane.xlu0 %5237 }
 0xbc8   :  { %v9218_v15 = vmul.f32 0.0016129032, %v5238_v41  ;;  %v8125_v41 = vpack.c.bf16 %v5329_v9, %v5328_v1  ;;  %v5352_v1 = vld [vmem:[#allocation15 + $0x1f0] sm:$0xff]  ;;  %v5353_v9 = vld [vmem:[#allocation15 + $0x1f8] sm:$0xff] }
 0xbca   :  { %v5240_v54 = vsub.f32 %v9202_v45, %v9218_v15  ;;  %v5241_v29 = vsub.f32 %v9204_v16, %v9218_v15  ;;  %v5242_v20 = vsub.f32 %v9208_v25, %v9218_v15  ;;  %v5244_v13 = vsub.f32 %v9213_v52, %v9218_v15  ;;  %8126 = vmatpush3.bf16.msra.mxu0 %v8125_v41  ;;  %v5304_v41 = vld [vmem:[#allocation15 + $0x70] sm:$0xff] }
 0xbcb   :  { %v5243_v47 = vsub.f32 %v9211_v62, %v9218_v15 }
 0xbcc   :  { %v5245_v22 = vmul.f32 %v5240_v54, %v5240_v54  ;;  %v5246_v60 = vmul.f32 %v5241_v29, %v5241_v29  ;;  %v5247_v26 = vmul.f32 %v5242_v20, %v5242_v20  ;;  %v5249_v39 = vmul.f32 %v5244_v13, %v5244_v13  ;;  %v5315_v54 = vld [vmem:[#allocation15 + $0xc8] sm:$0xff]  ;;  %v5298_v29 = vld [vmem:[#allocation15 + $0x40] sm:$0xff] }
 0xbcd   :  { %v5248_v46 = vmul.f32 %v5243_v47, %v5243_v47  ;;  %v5299_v20 = vld [vmem:[#allocation15 + $0x48] sm:$0xff]  ;;  %v8095_v13 = vpack.c.bf16 %v5315_v54, %v5314_v14  ;;  %v8107_v14 = vpack.c.bf16 %v5321_v32, %v5320_v43  ;;  %v5305_v54 = vld [vmem:[#allocation15 + $0x78] sm:$0xff]  ;;  %v5364_v32 = vld [vmem:[#allocation15 + $0x250] sm:$0xff] }
 0xbce   :  { %v5250_v8 = vadd.f32 %v5246_v60, %v5245_v22  ;;  %v5253_v10 = vsel %vm1723_vm0, %v5249_v39, 0.0  ;;  %v8097_v47 = vpack.c.bf16 %v5299_v20, %v5298_v29  ;;  %v5346_v22 = vld [vmem:[#allocation15 + $0x1c0] sm:$0xff]  ;;  %v5347_v60 = vld [vmem:[#allocation15 + $0x1c8] sm:$0xff]  ;;  %v8137_v29 = vpack.c.bf16 %v5335_v23, %v5334_v4 }
 0xbcf   :  { %v5331_v39 = vld [vmem:[#allocation15 + $0x148] sm:$0xff]  ;;  %8096 = vmatprep.subr.bf16.mxu1 %v8095_v13  ;;  %v8139_v20 = vpack.c.bf16 %v5353_v9, %v5352_v1  ;;  %v5336_v13 = vld [vmem:[#allocation15 + $0x170] sm:$0xff] }
 0xbd0   :  { %v5251_v50 = vadd.f32 %v5250_v8, %v5247_v26  ;;  %v5330_v26 = vld [vmem:[#allocation15 + $0x140] sm:$0xff]  ;;  %v8127_v8 = vpack.c.bf16 %v5347_v60, %v5346_v22  ;;  %8098 = vmatpush3.bf16.msra.mxu1 %v8097_v47  ;;  %v5337_v47 = vld [vmem:[#allocation15 + $0x178] sm:$0xff]  ;;  %v8109_v22 = vpack.c.bf16 %v5305_v54, %v5304_v41  ;;  %v5363_v4 = vld [vmem:[#allocation15 + $0x248] sm:$0xff] }
 0xbd1   :  { %v8141_v60 = vpack.c.bf16 %v5337_v47, %v5336_v13  ;;  %v5367_v41 = vld [vmem:[#allocation15 + $0x268] sm:$0xf] }
 0xbd2   :  { %v5252_v11 = vadd.f32 %v5251_v50, %v5248_v46  ;;  %v5316_v46 = vld [vmem:[#allocation15 + $0xd0] sm:$0xff]  ;;  %v5317_v50 = vld [vmem:[#allocation15 + $0xd8] sm:$0xff]  ;;  %8128 = vmatprep.subr.bf16.mxu0 %v8127_v8 }
 0xbd4   :  { %v5254_v51 = vadd.f32 %v5253_v10, %v5252_v11  ;;  %v8129_v11 = vpack.c.bf16 %v5331_v39, %v5330_v26  ;;  %v8099_v10 = vpack.c.bf16 %v5317_v50, %v5316_v46 }
 0xbd6   :  { %5255 = vadd.xlane.f32.xlu1 %v5254_v51  ;;  %v5300_v51 = vld [vmem:[#allocation15 + $0x50] sm:$0xff]  ;;  %8100 = vmatprep.subr.bf16.mxu1 %v8099_v10 }
 0xbd7   :  { %v8101_v42 = vpack.c.bf16 %v5301_v21, %v5300_v51  ;;  %8130 = vmatpush3.bf16.msra.mxu0 %v8129_v11 }
 0xbd8   :  { %8132 = vmatprep.subr.bf16.mxu0 %v8131_v28 }
 0xbd9   :  { %8102 = vmatpush3.bf16.msra.mxu1 %v8101_v42 }
 0xbda   :  { %8104 = vmatprep.subr.bf16.mxu1 %v8103_v57 }
 0xbdb   :  { %8134 = vmatpush3.bf16.msra.mxu0 %v8133_v48  ;;  %v5357_v48 = vld [vmem:[#allocation15 + $0x218] sm:$0xff] }
 0xbdc   :  { %8136 = vmatprep.subr.bf16.mxu0 %v8135_v36  ;;  %v5362_v36 = vld [vmem:[#allocation15 + $0x240] sm:$0xff] }
 0xbdd   :  { %8106 = vmatpush3.bf16.msra.mxu1 %v8105_v7  ;;  %v5365_v7 = vld [vmem:[#allocation15 + $0x258] sm:$0xff] }
 0xbde   :  { %8108 = vmatprep.subr.bf16.mxu1 %v8107_v14  ;;  %v8159_v9 = vpack.c.bf16 %v5365_v7, %v5364_v32  ;;  %v5366_v14 = vld [vmem:[#allocation15 + $0x260] sm:$0xff] }
 0xbdf   :  { %8138 = vmatpush3.bf16.msra.mxu0 %v8137_v29 }
 0xbe0   :  { %8140 = vmatprep.subr.bf16.mxu0 %v8139_v20 }
 0xbe1   :  { %8110 = vmatpush3.bf16.msra.mxu1 %v8109_v22  ;;  %v5626_v22 = vld [vmem:[#allocation16] ss:$0 sm:$0xff] }
 0xbe2   :  { %8143 = vmatprep.subr.bf16.mxu1 %v8537_v49 }
 0xbe3   :  { %8142 = vmatpush3.bf16.msra.mxu0 %v8141_v60 }
 0xc63   :  { %v5256_v26 = vpop.xlane.xlu1 %5255 }
 0xc64   :  { %v5257_v8 = vmul.f32 0.0016129032, %v5256_v26 }
 0xc66   :  { %v5258_v39 = vadd.f32 1e-05, %v5257_v8 }
 0xc68   :  { %8281 = vrsqrt.f32 %v5258_v39 }
 0xc72   :  { %v8282_v46 = vpop.eup %8281 }
 0xc73   :  { %v5261_v50 = vmul.f32 %v8282_v46, %v8849_v30  ;;  %v5263_v11 = vmul.f32 %v8282_v46, %v8857_v33  ;;  %v5260_v10 = vmul.f32 %v8282_v46, %v8853_v31  ;;  %v5262_v51 = vmul.f32 %v8282_v46, %v8902_v24 }
 0xc74   :  { %v5264_v23 = vmul.f32 %v8282_v46, %v8921_v44  ;;  %v8162_v44 = vpack.c.bf16 %v5367_v41, %v5366_v14 }
 0xc75   :  { %v5271_v21 = vmul.f32 %v5261_v50, %v9218_v15  ;;  %v5273_v37 = vmul.f32 %v5263_v11, %v9218_v15  ;;  %v5270_v53 = vmul.f32 %v5260_v10, %v9218_v15  ;;  %v5272_v12 = vmul.f32 %v5262_v51, %v9218_v15 }
 0xc76   :  { %v5266_v56 = vmul.f32 %v5261_v50, %v9204_v16  ;;  %v5268_v30 = vmul.f32 %v5263_v11, %v9211_v62  ;;  %v5265_v31 = vmul.f32 %v5260_v10, %v9202_v45  ;;  %v5267_v28 = vmul.f32 %v5262_v51, %v9208_v25 }
 0xc77   :  { %v5276_v42 = vsub.f32 %v8863_v35, %v5271_v21  ;;  %v5278_v33 = vsub.f32 %v8877_v40, %v5273_v37  ;;  %v5275_v24 = vsub.f32 %v8871_v38, %v5270_v53  ;;  %v5277_v58 = vsub.f32 %v8908_v59, %v5272_v12  ;;  %v5356_v38 = vld [vmem:[#allocation15 + $0x210] sm:$0xff] }
 0xc78   :  { %v8147_v59 = vpack.c.bf16 %v5357_v48, %v5356_v38  ;;  %v5274_v1 = vmul.f32 %v5264_v23, %v9218_v15  ;;  %v5269_v29 = vmul.f32 %v5264_v23, %v9213_v52 }
 0xc79   :  { %v5281_v57 = vadd.f32 %v5276_v42, %v5266_v56  ;;  %v5283_v61 = vadd.f32 %v5278_v33, %v5268_v30  ;;  %v5280_v34 = vadd.f32 %v5275_v24, %v5265_v31  ;;  %v5282_v16 = vadd.f32 %v5277_v58, %v5267_v28 }
 0xc7a   :  { %v5279_v54 = vsub.f32 %v8931_v3, %v5274_v1 }
 0xc7b   :  { %v5286_v35 = vadd.f32 %v5281_v57, %v9134_v19  ;;  %v5288_v62 = vadd.f32 %v5283_v61, %v9144_v0  ;;  %v5285_v40 = vadd.f32 %v5280_v34, %v9137_v18  ;;  %v5287_v45 = vadd.f32 %v5282_v16, %v9154_v55  ;;  %v5358_v19 = vld [vmem:[#allocation15 + $0x220] sm:$0xff]  ;;  %v5359_v0 = vld [vmem:[#allocation15 + $0x228] sm:$0xff]  ;;  %v5360_v18 = vld [vmem:[#allocation15 + $0x230] sm:$0xff] }
 0xc7c   :  { %v8150_v25 = vpack.c.bf16 %v5359_v0, %v5358_v19  ;;  %v5361_v55 = vld [vmem:[#allocation15 + $0x238] sm:$0xff]  ;;  %v5284_v20 = vadd.f32 %v5279_v54, %v5269_v29 }
 0xc7d   :  { %5445 = vmatprep.mubr.f32.mxu1 %v5286_v35  ;;  %5515 = vmatprep.mubr.f32.mxu0 %v5288_v62  ;;  %v8153_v43 = vpack.c.bf16 %v5361_v55, %v5360_v18 }
 0xc7e   :  { %5446 = vmatmul.mubr.f32.vlgmr.msra.gmra.mrb[20].mxu1 %v5285_v40  ;;  %5516 = vmatmul.mubr.f32.vlgmr.msra.gmra.mrb[22].mxu0 %v5287_v45  ;;  %v5289_v15 = vadd.f32 %v5284_v20, %v9174_v5 }
 0xc7f   :  { %8145 = vmatpush3.bf16.msra.mxu1 %v8144_v27  ;;  %6230 = vmatprep.mubr.msk.f32.mxu1 %vm8538_vm4, %v8535_v2  ;;  %v8156_v2 = vpack.c.bf16 %v5363_v4, %v5362_v36 }
 0xc80   :  { %8146 = vmatprep.subr.bf16.mxu1 %v8537_v49 }
 0xc83   :  { %8148 = vmatpush3.bf16.msra.mxu1 %v8147_v59 }
 0xc84   :  { %8149 = vmatprep.subr.bf16.mxu1 %v8537_v49 }
 0xc87   :  { %8151 = vmatpush3.bf16.msra.mxu1 %v8150_v25 }
 0xc88   :  { %8152 = vmatprep.subr.bf16.mxu1 %v8537_v49 }
 0xc8b   :  { %8154 = vmatpush3.bf16.msra.mxu1 %v8153_v43 }
 0xc8c   :  { %8155 = vmatprep.subr.bf16.mxu1 %v8537_v49 }
 0xc8f   :  { %8157 = vmatpush3.bf16.msra.mxu1 %v8156_v2 }
 0xc90   :  { %8158 = vmatprep.subr.bf16.mxu1 %v8537_v49 }
 0xc93   :  { %8160 = vmatpush3.bf16.msra.mxu1 %v8159_v9 }
 0xc94   :  { %8161 = vmatprep.subr.bf16.mxu1 %v8537_v49 }
 0xc97   :  { %8164 = vmatpush3.bf16.msk.msra.mxu1 %vm8925_vm3, %v8162_v44 }
 0xc9a   :  { %6231 = vmatmul.mubr.msk.f32.vlgmr.msra.gmra.mrb[22].mxu1 %vm1723_vm0, %v5289_v15 }
 0xd51   :  { %v6056_v13 = vpop.f32.mrb[20].mxu1  ;;  %v6091_v47 = vpop.f32.mrb[22].mxu0 }
 0xd52   :  { %v6057_v60 = vpop.f32.mrb[21].mxu1  ;;  %v6092_v26 = vpop.f32.mrb[23].mxu0 }
 0xd53   :  { %v6058_v3 = vadd.f32 %v6057_v60, %v6056_v13  ;;  %v6093_v8 = vadd.f32 %v6092_v26, %v6091_v47 }
 0xd55   :  { %v5448_v52 = vadd.f32 %v6058_v3, %v5626_v22 }
 0xd57   :  { %v5518_v39 = vadd.f32 %v6093_v8, %v5448_v52 }
 0xd6d   :  { %v5587_v46 = vpop.f32.mrb[22].mxu1 }
 0xd6e   :  { %v5588_v50 = vadd.f32 %v5587_v46, %v5518_v39  ;;  %v6232_v49 = vpop.f32.mrb[23].mxu1 }
 0xd70   :  { %5591 = vst [vmem:[%s9284_s13] sm:$0xff] %v5588_v50 }
 0xd71   :  { %5596 = vsyncpa [#allocation3], 1 }
 0xd72   :  { %5597 = vsyncpa [#allocation5], 1 }
 0xd73   :  { %5598 = vsyncpa [#allocation8], 1 }
 0xd74   :  { %5599 = vsyncpa [#allocation11], 1 }
 0xd75   :  { %5600 = vsyncpa [#allocation14], 1 }
 0xd76   :  { %5601 = vsyncpa [#allocation17], 1 }

</bundles_post_ra>
